<compile_context>
chip_gen: v7x
topology: tpu7x:2x2x1
jax: 0.10.0
libtpu: 0.0.40
codegen_flags: <defaults>
</compile_context>

<pallas_src>
import functools
import math

import jax
import jax.numpy as jnp
from jax import lax
from jax.experimental import pallas as pl
from jax.experimental.pallas import tpu as pltpu

EPS = 1e-5
VMEM_LIMIT = 32 * 1024 * 1024    # explicit scoped-VMEM budget (safe on v5e/v6e/v7x)
MXU_DTYPE = jnp.float32          # set to jnp.bfloat16 on v6e/v7x for more MXU TF/s
                                 # (kept f32 here to preserve reference precision)


def _round_up(x, m):
    return ((x + m - 1) // m) * m


def _pick_tk(k):
    for cand in (512, 256, 128):
        if k % cand == 0:
            return cand
    return k


def _mxu_dot(a, b):
    return jnp.dot(a.astype(MXU_DTYPE), b.astype(MXU_DTYPE),
                   preferred_element_type=jnp.float32)


# --------------------------------------------------------------------------
# Kernel 1: per-channel batch statistics (sum + sum-of-squares in one read)
# --------------------------------------------------------------------------
def _bn_stats_kernel(x_ref, s_ref, ss_ref, *, m_total, tm):
    i = pl.program_id(0)

    @pl.when(i == 0)
    def _init():
        s_ref[...] = jnp.zeros_like(s_ref)
        ss_ref[...] = jnp.zeros_like(ss_ref)

    x = x_ref[...]
    row = lax.broadcasted_iota(jnp.int32, x.shape, 0) + i * tm
    x = jnp.where(row < m_total, x, 0.0)          # mask ragged last tile
    s_ref[...] += jnp.sum(x, axis=0, keepdims=True)
    ss_ref[...] += jnp.sum(x * x, axis=0, keepdims=True)


def pallas_bn_stats(x2d):
    """Tiled one-pass reduction -> per-channel (mean, biased var)."""
    m, c = x2d.shape
    tm = min(512, _round_up(m, 8))
    s, ss = pl.pallas_call(
        functools.partial(_bn_stats_kernel, m_total=m, tm=tm),
        out_shape=(jax.ShapeDtypeStruct((1, c), jnp.float32),
                   jax.ShapeDtypeStruct((1, c), jnp.float32)),
        grid=(pl.cdiv(m, tm),),
        in_specs=[pl.BlockSpec((tm, c), lambda i: (i, 0))],
        out_specs=(pl.BlockSpec((1, c), lambda i: (0, 0)),
                   pl.BlockSpec((1, c), lambda i: (0, 0))),
        compiler_params=pltpu.CompilerParams(
            dimension_semantics=("arbitrary",),
            vmem_limit_bytes=VMEM_LIMIT),
    )(x2d)
    mean = s[0] / m
    var = jnp.maximum(ss[0] / m - mean * mean, 0.0)   # train-mode biased variance
    return mean, var


def _affine_from_stats(gamma, beta, mean, var):
    scale = gamma * lax.rsqrt(var + EPS)
    shift = beta - mean * scale
    return scale, shift


# --------------------------------------------------------------------------
# Kernel 2: fused (BN-affine + optional ReLU) prologue -> tiled MXU matmul
# --------------------------------------------------------------------------
def _fused_matmul_kernel(x_ref, sc_ref, sh_ref, w_ref, o_ref, acc_ref, *,
                         apply_relu):
    kk = pl.program_id(1)

    @pl.when(kk == 0)
    def _init():
        acc_ref[...] = jnp.zeros_like(acc_ref)

    x = x_ref[...] * sc_ref[...] + sh_ref[...]
    if apply_relu:
        x = jnp.maximum(x, 0.0)
    acc_ref[...] += _mxu_dot(x, w_ref[...])

    @pl.when(kk == pl.num_programs(1) - 1)
    def _finish():
        o_ref[...] = acc_ref[...]


def pallas_fused_matmul(a, scale, shift, w, *, relu):
    """a: (M, K), w: (K, Nc).  scale/shift per-K-channel (None -> plain matmul).

    M tiled ('parallel', tm<=512), K tiled ('arbitrary') with an f32 VMEM
    accumulator; no host-side pad/slice (ragged M handled by masked stores).
    """
    m, k = a.shape
    nc = w.shape[1]
    if scale is None:
        scale = jnp.ones((k,), jnp.float32)
        shift = jnp.zeros((k,), jnp.float32)
    tm = min(512, _round_up(m, 8))
    tk = _pick_tk(k)
    return pl.pallas_call(
        functools.partial(_fused_matmul_kernel, apply_relu=relu),
        out_shape=jax.ShapeDtypeStruct((m, nc), jnp.float32),
        grid=(pl.cdiv(m, tm), k // tk),
        in_specs=[pl.BlockSpec((tm, tk), lambda i, j: (i, j)),
                  pl.BlockSpec((1, tk), lambda i, j: (0, j)),
                  pl.BlockSpec((1, tk), lambda i, j: (0, j)),
                  pl.BlockSpec((tk, nc), lambda i, j: (j, 0))],
        out_specs=pl.BlockSpec((tm, nc), lambda i, j: (i, 0)),
        scratch_shapes=[pltpu.VMEM((tm, nc), jnp.float32)],
        compiler_params=pltpu.CompilerParams(
            dimension_semantics=("parallel", "arbitrary"),
            vmem_limit_bytes=VMEM_LIMIT),
    )(a, scale.reshape(1, k), shift.reshape(1, k), w)


# --------------------------------------------------------------------------
# Kernel 3: standalone scale/shift + ReLU (only needed for norm0 before pool0)
# --------------------------------------------------------------------------
def _affine_relu_kernel(x_ref, sc_ref, sh_ref, o_ref):
    o_ref[...] = jnp.maximum(x_ref[...] * sc_ref[...] + sh_ref[...], 0.0)


def pallas_affine_relu(x2d, scale, shift):
    m, c = x2d.shape
    tm = min(512, _round_up(m, 8))
    return pl.pallas_call(
        _affine_relu_kernel,
        out_shape=jax.ShapeDtypeStruct((m, c), jnp.float32),
        grid=(pl.cdiv(m, tm),),
        in_specs=[pl.BlockSpec((tm, c), lambda i: (i, 0)),
                  pl.BlockSpec((1, c), lambda i: (0, 0)),
                  pl.BlockSpec((1, c), lambda i: (0, 0))],
        out_specs=pl.BlockSpec((tm, c), lambda i: (i, 0)),
        compiler_params=pltpu.CompilerParams(
            dimension_semantics=("parallel",),
            vmem_limit_bytes=VMEM_LIMIT),
    )(x2d, scale.reshape(1, c), shift.reshape(1, c))


# --------------------------------------------------------------------------
# Kernel 4: fused BN + ReLU + 3x3 conv (stride 1, pad 1) -- patches in VMEM
# --------------------------------------------------------------------------
def _bn_relu_conv3x3_kernel(x_ref, sc_ref, sh_ref, m_ref, w_ref, o_ref, *, H, W):
    wp = W + 2
    p_out = H * wp
    sc = sc_ref[...]
    sh = sh_ref[...]
    acc = None
    for dy in range(3):
        for dx in range(3):
            off = dy * wp + dx
            xs = x_ref[0, off:off + p_out, :]     # shifted window, built in VMEM
            ms = m_ref[off:off + p_out, :]        # zero-padding mask (post-ReLU)
            ys = jnp.maximum(xs * sc + sh, 0.0) * ms
            part = _mxu_dot(ys, w_ref[dy * 3 + dx])
            acc = part if acc is None else acc + part
    o_ref[0, :, :] = acc


def pallas_bn_relu_conv3x3(x_nhwc, scale, shift, w_oihw):
    """Fused train-mode BN + ReLU + 3x3 conv (stride 1, padding 1, no bias).

    The 9 shifted patches are formed from static ref slices of a width-padded,
    flattened image -> no 9x-expanded im2col tensor in HBM.  Grid = one image
    per step, 'parallel' so it shards across TensorCores.
    """
    n, h, w, cin = x_nhwc.shape
    cout = w_oihw.shape[0]
    wp = w + 2
    p_in = (h + 3) * wp            # 1 top halo, 1 bottom halo, 2 overrun rows
    p_out = h * wp
    xp = jnp.pad(x_nhwc, ((0, 0), (1, 2), (1, 1), (0, 0))).reshape(n, p_in, cin)
    hi = jnp.arange(h + 3)[:, None]
    wi = jnp.arange(wp)[None, :]
    mask = ((hi >= 1) & (hi <= h) & (wi >= 1) & (wi <= w)).astype(jnp.float32)
    mask = mask.reshape(p_in, 1)
    w9 = jnp.transpose(w_oihw, (2, 3, 1, 0)).reshape(9, cin, cout)

    out = pl.pallas_call(
        functools.partial(_bn_relu_conv3x3_kernel, H=h, W=w),
        out_shape=jax.ShapeDtypeStruct((n, p_out, cout), jnp.float32),
        grid=(n,),
        in_specs=[pl.BlockSpec((1, p_in, cin), lambda i: (i, 0, 0)),
                  pl.BlockSpec((1, cin), lambda i: (0, 0)),
                  pl.BlockSpec((1, cin), lambda i: (0, 0)),
                  pl.BlockSpec((p_in, 1), lambda i: (0, 0)),
                  pl.BlockSpec((9, cin, cout), lambda i: (0, 0, 0))],
        out_specs=pl.BlockSpec((1, p_out, cout), lambda i: (i, 0, 0)),
        compiler_params=pltpu.CompilerParams(
            dimension_semantics=("parallel",),
            vmem_limit_bytes=VMEM_LIMIT),
    )(xp, scale.reshape(1, cin), shift.reshape(1, cin), mask, w9)
    # TODO(synk): for large H the kernel should row-tile with halos instead of
    #             mapping one full image per grid step.
    return out.reshape(n, h, wp, cout)[:, :, :w, :]


# --------------------------------------------------------------------------
# Kernel 5: fused BN + ReLU + global-avg-pool + classifier (GAP as a matmul)
# --------------------------------------------------------------------------
def _bn_relu_gap_fc_kernel(x_ref, sc_ref, sh_ref, p_ref, w_ref, o_ref):
    y = jnp.maximum(x_ref[...] * sc_ref[...] + sh_ref[...], 0.0)   # (N*HW, C)
    pooled = _mxu_dot(p_ref[...], y)                               # (N, C) GAP
    o_ref[...] = _mxu_dot(pooled, w_ref[...])                      # (N, classes)


def pallas_bn_relu_gap_fc(x2d, scale, shift, pool_mat, w):
    _, c = x2d.shape
    nb = pool_mat.shape[0]
    ncls = w.shape[1]
    return pl.pallas_call(
        _bn_relu_gap_fc_kernel,
        out_shape=jax.ShapeDtypeStruct((nb, ncls), jnp.float32),
        compiler_params=pltpu.CompilerParams(vmem_limit_bytes=VMEM_LIMIT),
    )(x2d, scale.reshape(1, c), shift.reshape(1, c), pool_mat, w)


# --------------------------------------------------------------------------
# Pooling glue + conv0 im2col
# --------------------------------------------------------------------------
# TODO(synk): windowed max/avg pooling kept as cheap JAX glue
#             (reduce_window / reshape-mean); no clean Pallas matmul mapping.
def maxpool_3x3_s2_p1(x):
    return lax.reduce_window(x, -jnp.inf, lax.max,
                             (1, 3, 3, 1), (1, 2, 2, 1),
                             ((0, 0), (1, 1), (1, 1), (0, 0)))


def avgpool_2x2_s2(x):
    n, h, w, c = x.shape
    return x.reshape(n, h // 2, 2, w // 2, 2, c).mean(axis=(2, 4))


def _im2col(x, kh, kw, stride, pad):
    # TODO(synk): only used for conv0 (7x7 s2 on the 3-channel input); all 3x3
    #             convs build patches in VMEM inside the Pallas kernel.
    n, h, w, c = x.shape
    xp = jnp.pad(x, ((0, 0), (pad, pad), (pad, pad), (0, 0)))
    hout = (h + 2 * pad - kh) // stride + 1
    wout = (w + 2 * pad - kw) // stride + 1
    cols = []
    for dy in range(kh):
        for dx in range(kw):
            cols.append(xp[:, dy:dy + stride * hout:stride,
                           dx:dx + stride * wout:stride, :])
    patches = jnp.stack(cols, axis=3)                 # (N, Ho, Wo, kh*kw, C)
    return patches.reshape(n * hout * wout, kh * kw * c), (n, hout, wout)


# --------------------------------------------------------------------------
# DenseNet forward (dense-block features kept as segments -> no concat)
# --------------------------------------------------------------------------
def _make_segment(x_nhwc):
    n, h, w, c = x_nhwc.shape
    mean, var = pallas_bn_stats(x_nhwc.reshape(n * h * w, c))
    return (x_nhwc, mean, var)


def _dense_layer(segments, p):
    n, h, w, _ = segments[0][0].shape
    m = n * h * w
    g1, b1 = p["norm1"]
    w1 = jnp.transpose(p["conv1"][:, :, 0, 0], (1, 0))     # (C_cur, mid)
    bott = None
    off = 0
    for (sx, sm, sv) in segments:                          # norm1+relu1+conv1
        ck = sx.shape[-1]
        sc, sh = _affine_from_stats(g1[off:off + ck], b1[off:off + ck], sm, sv)
        part = pallas_fused_matmul(sx.reshape(m, ck), sc, sh,
                                   w1[off:off + ck, :], relu=True)
        bott = part if bott is None else bott + part
        off += ck
    mid = w1.shape[1]
    mean2, var2 = pallas_bn_stats(bott)                    # norm2 stats
    sc2, sh2 = _affine_from_stats(*p["norm2"], mean2, var2)
    return pallas_bn_relu_conv3x3(bott.reshape(n, h, w, mid), sc2, sh2,
                                  p["conv2"])              # norm2+relu2+conv2


def _transition(segments, p):
    n, h, w, _ = segments[0][0].shape
    m = n * h * w
    g, b = p["norm"]
    wt = jnp.transpose(p["conv"][:, :, 0, 0], (1, 0))      # (C_in, C_out)
    out = None
    off = 0
    for (sx, sm, sv) in segments:                          # norm+relu+1x1conv
        ck = sx.shape[-1]
        sc, sh = _affine_from_stats(g[off:off + ck], b[off:off + ck], sm, sv)
        part = pallas_fused_matmul(sx.reshape(m, ck), sc, sh,
                                   wt[off:off + ck, :], relu=True)
        out = part if out is None else out + part
        off += ck
    out = out.reshape(n, h, w, wt.shape[1])
    return avgpool_2x2_s2(out)


def densenet_forward(params, x_nchw, block_config):
    x = jnp.transpose(x_nchw, (0, 2, 3, 1))                # NCHW -> NHWC

    # conv0 (7x7 s2 p3, no bias) via small host im2col + plain Pallas matmul.
    w0 = params["conv0"]
    c0 = w0.shape[0]
    cols, (n, ho, wo) = _im2col(x, 7, 7, 2, 3)
    w0_2d = jnp.transpose(w0, (2, 3, 1, 0)).reshape(-1, c0)
    y2d = pallas_fused_matmul(cols, None, None, w0_2d, relu=False)

    # norm0 + relu0 (train-mode batch stats), then pool0.
    mean0, var0 = pallas_bn_stats(y2d)
    sc0, sh0 = _affine_from_stats(*params["norm0"], mean0, var0)
    y = pallas_affine_relu(y2d, sc0, sh0).reshape(n, ho, wo, c0)
    x = maxpool_3x3_s2_p1(y)

    segments = [_make_segment(x)]
    n_blocks = len(block_config)
    for bi, num_layers in enumerate(block_config):
        for li in range(num_layers):
            p = params[f"block{bi}_layer{li}"]
            new_feat = _dense_layer(segments, p)
            segments.append(_make_segment(new_feat))
        if bi != n_blocks - 1:
            x = _transition(segments, params[f"trans{bi}"])
            segments = [_make_segment(x)]

    # norm5 + relu + global avg pool + classifier, fused per segment.
    g5, b5 = params["norm5"]
    fc_wt = jnp.transpose(params["fc_w"], (1, 0))          # (C_total, classes)
    nb, h, w, _ = segments[0][0].shape
    hw = h * w
    pool_mat = jnp.repeat(jnp.eye(nb, dtype=jnp.float32), hw, axis=1) / float(hw)
    logits = None
    off = 0
    for (sx, sm, sv) in segments:
        ck = sx.shape[-1]
        sc, sh = _affine_from_stats(g5[off:off + ck], b5[off:off + ck], sm, sv)
        part = pallas_bn_relu_gap_fc(sx.reshape(nb * hw, ck), sc, sh, pool_mat,
                                     fc_wt[off:off + ck, :])
        logits = part if logits is None else logits + part
        off += ck
    return logits + params["fc_b"][None, :]


# --------------------------------------------------------------------------
# Parameter init (mirrors the PyTorch __init__: kaiming conv, BN w=1 b=0,
# Linear weight uniform(-1/sqrt(fan_in), 1/sqrt(fan_in)), Linear bias 0)
# --------------------------------------------------------------------------
def init_params(key, growth_rate, block_config, num_init_features, bn_size,
                num_classes):
    keys = iter(jax.random.split(key, 64))

    def kaiming(cout, cin, kh, kw):
        std = math.sqrt(2.0 / (cin * kh * kw))
        return jax.random.normal(next(keys), (cout, cin, kh, kw),
                                 jnp.float32) * std

    def bn(c):
        return (jnp.ones((c,), jnp.float32), jnp.zeros((c,), jnp.float32))

    params = {"conv0": kaiming(num_init_features, 3, 7, 7),
              "norm0": bn(num_init_features)}
    num_features = num_init_features
    for bi, num_layers in enumerate(block_config):
        for li in range(num_layers):
            cin = num_features + li * growth_rate
            mid = bn_size * growth_rate
            params[f"block{bi}_layer{li}"] = {
                "norm1": bn(cin),
                "conv1": kaiming(mid, cin, 1, 1),
                "norm2": bn(mid),
                "conv2": kaiming(growth_rate, mid, 3, 3),
            }
        num_features += num_layers * growth_rate
        if bi != len(block_config) - 1:
            params[f"trans{bi}"] = {
                "norm": bn(num_features),
                "conv": kaiming(num_features // 2, num_features, 1, 1),
            }
            num_features //= 2
    params["norm5"] = bn(num_features)
    bound = 1.0 / math.sqrt(num_features)
    params["fc_w"] = jax.random.uniform(next(keys), (num_classes, num_features),
                                        jnp.float32, -bound, bound)
    params["fc_b"] = jnp.zeros((num_classes,), jnp.float32)
    return params


# --------------------------------------------------------------------------
if __name__ == "__main__":
    # Small DenseNet config: growth_rate=8, block_config=(2,2),
    # num_init_features=16, bn_size=2, drop_rate=0, num_classes=10; NCHW RGB in.
    growth_rate = 8
    block_config = (2, 2)
    num_init_features = 16
    bn_size = 2
    n_classes = 10

    key = jax.random.PRNGKey(0)
    k_param, k_x = jax.random.split(key)
    params = init_params(k_param, growth_rate, block_config,
                         num_init_features, bn_size, n_classes)
    x = jax.random.normal(k_x, (2, 3, 32, 32), jnp.float32)

    fwd = jax.jit(functools.partial(densenet_forward,
                                    block_config=block_config))
    out = fwd(params, x)
    jax.block_until_ready(out)
    assert out.shape == (2, n_classes), out.shape
    assert out.dtype == jnp.float32
    assert bool(jnp.all(jnp.isfinite(out)))
    print("KERNEL_OK")
</pallas_src>

<mosaic_0001>
module attributes {stable_mosaic.version = 11 : i64} {
  func.func @_fused_matmul_kernel(%arg0: i32, %arg1: i32, %arg2: memref<512x147xf32, #tpu.memory_space<vmem>>, %arg3: memref<1x147xf32, #tpu.memory_space<vmem>>, %arg4: memref<1x147xf32, #tpu.memory_space<vmem>>, %arg5: memref<147x16xf32, #tpu.memory_space<vmem>>, %arg6: memref<512x16xf32, #tpu.memory_space<vmem>>, %arg7: memref<512x16xf32, #tpu.memory_space<vmem>>) attributes {dimension_semantics = [#tpu.dimension_semantics<parallel>, #tpu.dimension_semantics<arbitrary>], iteration_bounds = array<i64: 1, 1>, scalar_prefetch = 0 : i64, scratch_operands = 1 : i64, tpu.core_type = #tpu.core_type<tc>, window_params = [{transform_indices = @transform_0, window_bounds = array<i64: 512, 147>}, {transform_indices = @transform_1, window_bounds = array<i64: 1, 147>}, {transform_indices = @transform_2, window_bounds = array<i64: 1, 147>}, {transform_indices = @transform_3, window_bounds = array<i64: 147, 16>}, {transform_indices = @transform_4, window_bounds = array<i64: 512, 16>}]} {
    %c0_i32 = arith.constant 0 : i32
    %0 = arith.cmpi eq, %arg1, %c0_i32 : i32
    %1 = arith.extui %0 : i1 to i32
    %c0_i32_0 = arith.constant 0 : i32
    %2 = arith.cmpi ne, %1, %c0_i32_0 : i32
    scf.if %2 {
      %cst_14 = arith.constant 0.000000e+00 : f32
      %18 = vector.broadcast %cst_14 : f32 to vector<512x16xf32>
      %c0_15 = arith.constant 0 : index
      %c0_16 = arith.constant 0 : index
      %19 = vector.load %arg7[%c0_15, %c0_16] : memref<512x16xf32, #tpu.memory_space<vmem>>, vector<512x16xf32>
      tpu.vector_store %arg7[%c0_15, %c0_16], %18 {strides = array<i32>} : memref<512x16xf32, #tpu.memory_space<vmem>>, vector<512x16xf32>,
    } else {
    }
    %c0 = arith.constant 0 : index
    %c0_1 = arith.constant 0 : index
    %3 = vector.load %arg2[%c0, %c0_1] : memref<512x147xf32, #tpu.memory_space<vmem>>, vector<512x147xf32>
    %c0_2 = arith.constant 0 : index
    %c0_3 = arith.constant 0 : index
    %4 = vector.load %arg3[%c0_2, %c0_3] : memref<1x147xf32, #tpu.memory_space<vmem>>, vector<1x147xf32>
    %5 = vector.broadcast %4 : vector<1x147xf32> to vector<512x147xf32>
    %6 = arith.mulf %3, %5 : vector<512x147xf32>
    %c0_4 = arith.constant 0 : index
    %c0_5 = arith.constant 0 : index
    %7 = vector.load %arg4[%c0_4, %c0_5] : memref<1x147xf32, #tpu.memory_space<vmem>>, vector<1x147xf32>
    %8 = vector.broadcast %7 : vector<1x147xf32> to vector<512x147xf32>
    %9 = arith.addf %6, %8 : vector<512x147xf32>
    %c0_6 = arith.constant 0 : index
    %c0_7 = arith.constant 0 : index
    %10 = vector.load %arg7[%c0_6, %c0_7] : memref<512x16xf32, #tpu.memory_space<vmem>>, vector<512x16xf32>
    %c0_8 = arith.constant 0 : index
    %c0_9 = arith.constant 0 : index
    %11 = vector.load %arg5[%c0_8, %c0_9] : memref<147x16xf32, #tpu.memory_space<vmem>>, vector<147x16xf32>
    %cst = arith.constant dense<0.000000e+00> : vector<512x16xf32>
    %12 = tpu.matmul %9, %11, %cst {dimension_numbers = #tpu.dot_dimension_numbers<[1], [0], [0], [1], [0, 0, 1, 1], [], []>} : vector<512x147xf32>, vector<147x16xf32>, vector<512x16xf32> -> vector<512x16xf32>
    %13 = arith.addf %10, %12 : vector<512x16xf32>
    %c0_10 = arith.constant 0 : index
    %c0_11 = arith.constant 0 : index
    %14 = vector.load %arg7[%c0_10, %c0_11] : memref<512x16xf32, #tpu.memory_space<vmem>>, vector<512x16xf32>
    tpu.vector_store %arg7[%c0_10, %c0_11], %13 {strides = array<i32>} : memref<512x16xf32, #tpu.memory_space<vmem>>, vector<512x16xf32>,
    %c0_i32_12 = arith.constant 0 : i32
    %15 = arith.cmpi eq, %arg1, %c0_i32_12 : i32
    %16 = arith.extui %15 : i1 to i32
    %c0_i32_13 = arith.constant 0 : i32
    %17 = arith.cmpi ne, %16, %c0_i32_13 : i32
    scf.if %17 {
      %c0_14 = arith.constant 0 : index
      %c0_15 = arith.constant 0 : index
      %18 = vector.load %arg7[%c0_14, %c0_15] : memref<512x16xf32, #tpu.memory_space<vmem>>, vector<512x16xf32>
      %c0_16 = arith.constant 0 : index
      %c0_17 = arith.constant 0 : index
      %19 = vector.load %arg6[%c0_16, %c0_17] : memref<512x16xf32, #tpu.memory_space<vmem>>, vector<512x16xf32>
      tpu.vector_store %arg6[%c0_16, %c0_17], %18 {strides = array<i32>} : memref<512x16xf32, #tpu.memory_space<vmem>>, vector<512x16xf32>,
    } else {
    }
    return
  }
  func.func @transform_0(%arg0: i32, %arg1: i32) -> (i32, i32) {
    %c0_i32 = arith.constant 0 : i32
    return %arg0, %arg1 : i32, i32
  }
  func.func @transform_1(%arg0: i32, %arg1: i32) -> (i32, i32) {
    %c0_i32 = arith.constant 0 : i32
    %c0_i32_0 = arith.constant 0 : i32
    return %c0_i32, %arg1 : i32, i32
  }
  func.func @transform_2(%arg0: i32, %arg1: i32) -> (i32, i32) {
    %c0_i32 = arith.constant 0 : i32
    %c0_i32_0 = arith.constant 0 : i32
    return %c0_i32, %arg1 : i32, i32
  }
  func.func @transform_3(%arg0: i32, %arg1: i32) -> (i32, i32) {
    %c0_i32 = arith.constant 0 : i32
    %c0_i32_0 = arith.constant 0 : i32
    return %arg1, %c0_i32 : i32, i32
  }
  func.func @transform_4(%arg0: i32, %arg1: i32) -> (i32, i32) {
    %c0_i32 = arith.constant 0 : i32
    %c0_i32_0 = arith.constant 0 : i32
    return %arg0, %c0_i32 : i32, i32
  }
}

module attributes {stable_mosaic.version = 11 : i64} {
  func.func @_bn_stats_kernel(%arg0: i32, %arg1: memref<512x16xf32, #tpu.memory_space<vmem>>, %arg2: memref<1x16xf32, #tpu.memory_space<vmem>>, %arg3: memref<1x16xf32, #tpu.memory_space<vmem>>) attributes {dimension_semantics = [#tpu.dimension_semantics<arbitrary>], iteration_bounds = array<i64: 1>, scalar_prefetch = 0 : i64, scratch_operands = 0 : i64, tpu.core_type = #tpu.core_type<tc>, window_params = [{transform_indices = @transform_0, window_bounds = array<i64: 512, 16>}, {pipeline_mode = #tpu.pipeline_mode<synchronous>, transform_indices = @transform_1, window_bounds = array<i64: 1, 16>}, {pipeline_mode = #tpu.pipeline_mode<synchronous>, transform_indices = @transform_2, window_bounds = array<i64: 1, 16>}]} {
    %c0_i32 = arith.constant 0 : i32
    %0 = arith.cmpi eq, %arg0, %c0_i32 : i32
    %1 = arith.extui %0 : i1 to i32
    %c0_i32_0 = arith.constant 0 : i32
    %2 = arith.cmpi ne, %1, %c0_i32_0 : i32
    scf.if %2 {
      %cst_13 = arith.constant 0.000000e+00 : f32
      %23 = vector.broadcast %cst_13 : f32 to vector<1x16xf32>
      %c0_14 = arith.constant 0 : index
      %c0_15 = arith.constant 0 : index
      %24 = vector.load %arg2[%c0_14, %c0_15] : memref<1x16xf32, #tpu.memory_space<vmem>>, vector<1x16xf32>
      tpu.vector_store %arg2[%c0_14, %c0_15], %23 {strides = array<i32>} : memref<1x16xf32, #tpu.memory_space<vmem>>, vector<1x16xf32>,
      %cst_16 = arith.constant 0.000000e+00 : f32
      %25 = vector.broadcast %cst_16 : f32 to vector<1x16xf32>
      %c0_17 = arith.constant 0 : index
      %c0_18 = arith.constant 0 : index
      %26 = vector.load %arg3[%c0_17, %c0_18] : memref<1x16xf32, #tpu.memory_space<vmem>>, vector<1x16xf32>
      tpu.vector_store %arg3[%c0_17, %c0_18], %25 {strides = array<i32>} : memref<1x16xf32, #tpu.memory_space<vmem>>, vector<1x16xf32>,
    } else {
    }
    %c0 = arith.constant 0 : index
    %c0_1 = arith.constant 0 : index
    %3 = vector.load %arg1[%c0, %c0_1] : memref<512x16xf32, #tpu.memory_space<vmem>>, vector<512x16xf32>
    %4 = tpu.iota {dimensions = array<i32: 0>} : vector<512x16xi32>
    %c512_i32 = arith.constant 512 : i32
    %5 = arith.muli %arg0, %c512_i32 : i32
    %6 = vector.broadcast %5 : i32 to vector<512x16xi32>
    %7 = arith.addi %4, %6 : vector<512x16xi32>
    %c512_i32_2 = arith.constant 512 : i32
    %8 = vector.broadcast %c512_i32_2 : i32 to vector<512x16xi32>
    %9 = arith.cmpi slt, %7, %8 : vector<512x16xi32>
    %cst = arith.constant 0.000000e+00 : f32
    %10 = vector.broadcast %cst : f32 to vector<512x16xf32>
    %11 = arith.select %9, %3, %10 : vector<512x16xi1>, vector<512x16xf32>
    %c0_3 = arith.constant 0 : index
    %c0_4 = arith.constant 0 : index
    %12 = vector.load %arg2[%c0_3, %c0_4] : memref<1x16xf32, #tpu.memory_space<vmem>>, vector<1x16xf32>
    %cst_5 = arith.constant dense<0.000000e+00> : vector<16xf32>
    %13 = vector.multi_reduction <add>, %11, %cst_5 [0] : vector<512x16xf32> to vector<16xf32>
    %14 = vector.shape_cast %13 : vector<16xf32> to vector<1x16xf32>
    %15 = arith.addf %12, %14 : vector<1x16xf32>
    %c0_6 = arith.constant 0 : index
    %c0_7 = arith.constant 0 : index
    %16 = vector.load %arg2[%c0_6, %c0_7] : memref<1x16xf32, #tpu.memory_space<vmem>>, vector<1x16xf32>
    tpu.vector_store %arg2[%c0_6, %c0_7], %15 {strides = array<i32>} : memref<1x16xf32, #tpu.memory_space<vmem>>, vector<1x16xf32>,
    %c0_8 = arith.constant 0 : index
    %c0_9 = arith.constant 0 : index
    %17 = vector.load %arg3[%c0_8, %c0_9] : memref<1x16xf32, #tpu.memory_space<vmem>>, vector<1x16xf32>
    %18 = arith.mulf %11, %11 : vector<512x16xf32>
    %cst_10 = arith.constant dense<0.000000e+00> : vector<16xf32>
    %19 = vector.multi_reduction <add>, %18, %cst_10 [0] : vector<512x16xf32> to vector<16xf32>
    %20 = vector.shape_cast %19 : vector<16xf32> to vector<1x16xf32>
    %21 = arith.addf %17, %20 : vector<1x16xf32>
    %c0_11 = arith.constant 0 : index
    %c0_12 = arith.constant 0 : index
    %22 = vector.load %arg3[%c0_11, %c0_12] : memref<1x16xf32, #tpu.memory_space<vmem>>, vector<1x16xf32>
    tpu.vector_store %arg3[%c0_11, %c0_12], %21 {strides = array<i32>} : memref<1x16xf32, #tpu.memory_space<vmem>>, vector<1x16xf32>,
    return
  }
  func.func @transform_0(%arg0: i32) -> (i32, i32) {
    %c0_i32 = arith.constant 0 : i32
    %c0_i32_0 = arith.constant 0 : i32
    return %arg0, %c0_i32 : i32, i32
  }
  func.func @transform_1(%arg0: i32) -> (i32, i32) {
    %c0_i32 = arith.constant 0 : i32
    %c0_i32_0 = arith.constant 0 : i32
    %c0_i32_1 = arith.constant 0 : i32
    return %c0_i32, %c0_i32_0 : i32, i32
  }
  func.func @transform_2(%arg0: i32) -> (i32, i32) {
    %c0_i32 = arith.constant 0 : i32
    %c0_i32_0 = arith.constant 0 : i32
    %c0_i32_1 = arith.constant 0 : i32
    return %c0_i32, %c0_i32_0 : i32, i32
  }
}

module attributes {stable_mosaic.version = 11 : i64} {
  func.func @_affine_relu_kernel(%arg0: i32, %arg1: memref<512x16xf32, #tpu.memory_space<vmem>>, %arg2: memref<1x16xf32, #tpu.memory_space<vmem>>, %arg3: memref<1x16xf32, #tpu.memory_space<vmem>>, %arg4: memref<512x16xf32, #tpu.memory_space<vmem>>) attributes {dimension_semantics = [#tpu.dimension_semantics<parallel>], iteration_bounds = array<i64: 1>, scalar_prefetch = 0 : i64, scratch_operands = 0 : i64, tpu.core_type = #tpu.core_type<tc>, window_params = [{transform_indices = @transform_0, window_bounds = array<i64: 512, 16>}, {pipeline_mode = #tpu.pipeline_mode<synchronous>, transform_indices = @transform_1, window_bounds = array<i64: 1, 16>}, {pipeline_mode = #tpu.pipeline_mode<synchronous>, transform_indices = @transform_2, window_bounds = array<i64: 1, 16>}, {transform_indices = @transform_3, window_bounds = array<i64: 512, 16>}]} {
    %c0 = arith.constant 0 : index
    %c0_0 = arith.constant 0 : index
    %0 = vector.load %arg1[%c0, %c0_0] : memref<512x16xf32, #tpu.memory_space<vmem>>, vector<512x16xf32>
    %c0_1 = arith.constant 0 : index
    %c0_2 = arith.constant 0 : index
    %1 = vector.load %arg2[%c0_1, %c0_2] : memref<1x16xf32, #tpu.memory_space<vmem>>, vector<1x16xf32>
    %2 = vector.broadcast %1 : vector<1x16xf32> to vector<512x16xf32>
    %3 = arith.mulf %0, %2 : vector<512x16xf32>
    %c0_3 = arith.constant 0 : index
    %c0_4 = arith.constant 0 : index
    %4 = vector.load %arg3[%c0_3, %c0_4] : memref<1x16xf32, #tpu.memory_space<vmem>>, vector<1x16xf32>
    %5 = vector.broadcast %4 : vector<1x16xf32> to vector<512x16xf32>
    %6 = arith.addf %3, %5 : vector<512x16xf32>
    %cst = arith.constant 0.000000e+00 : f32
    %7 = vector.broadcast %cst : f32 to vector<512x16xf32>
    %8 = arith.maximumf %6, %7 : vector<512x16xf32>
    %c0_5 = arith.constant 0 : index
    %c0_6 = arith.constant 0 : index
    %9 = vector.load %arg4[%c0_5, %c0_6] : memref<512x16xf32, #tpu.memory_space<vmem>>, vector<512x16xf32>
    tpu.vector_store %arg4[%c0_5, %c0_6], %8 {strides = array<i32>} : memref<512x16xf32, #tpu.memory_space<vmem>>, vector<512x16xf32>,
    return
  }
  func.func @transform_0(%arg0: i32) -> (i32, i32) {
    %c0_i32 = arith.constant 0 : i32
    %c0_i32_0 = arith.constant 0 : i32
    return %arg0, %c0_i32 : i32, i32
  }
  func.func @transform_1(%arg0: i32) -> (i32, i32) {
    %c0_i32 = arith.constant 0 : i32
    %c0_i32_0 = arith.constant 0 : i32
    %c0_i32_1 = arith.constant 0 : i32
    return %c0_i32, %c0_i32_0 : i32, i32
  }
  func.func @transform_2(%arg0: i32) -> (i32, i32) {
    %c0_i32 = arith.constant 0 : i32
    %c0_i32_0 = arith.constant 0 : i32
    %c0_i32_1 = arith.constant 0 : i32
    return %c0_i32, %c0_i32_0 : i32, i32
  }
  func.func @transform_3(%arg0: i32) -> (i32, i32) {
    %c0_i32 = arith.constant 0 : i32
    %c0_i32_0 = arith.constant 0 : i32
    return %arg0, %c0_i32 : i32, i32
  }
}

module attributes {stable_mosaic.version = 11 : i64} {
  func.func @_bn_stats_kernel(%arg0: i32, %arg1: memref<128x16xf32, #tpu.memory_space<vmem>>, %arg2: memref<1x16xf32, #tpu.memory_space<vmem>>, %arg3: memref<1x16xf32, #tpu.memory_space<vmem>>) attributes {dimension_semantics = [#tpu.dimension_semantics<arbitrary>], iteration_bounds = array<i64: 1>, scalar_prefetch = 0 : i64, scratch_operands = 0 : i64, tpu.core_type = #tpu.core_type<tc>, window_params = [{transform_indices = @transform_0, window_bounds = array<i64: 128, 16>}, {pipeline_mode = #tpu.pipeline_mode<synchronous>, transform_indices = @transform_1, window_bounds = array<i64: 1, 16>}, {pipeline_mode = #tpu.pipeline_mode<synchronous>, transform_indices = @transform_2, window_bounds = array<i64: 1, 16>}]} {
    %c0_i32 = arith.constant 0 : i32
    %0 = arith.cmpi eq, %arg0, %c0_i32 : i32
    %1 = arith.extui %0 : i1 to i32
    %c0_i32_0 = arith.constant 0 : i32
    %2 = arith.cmpi ne, %1, %c0_i32_0 : i32
    scf.if %2 {
      %cst_13 = arith.constant 0.000000e+00 : f32
      %23 = vector.broadcast %cst_13 : f32 to vector<1x16xf32>
      %c0_14 = arith.constant 0 : index
      %c0_15 = arith.constant 0 : index
      %24 = vector.load %arg2[%c0_14, %c0_15] : memref<1x16xf32, #tpu.memory_space<vmem>>, vector<1x16xf32>
      tpu.vector_store %arg2[%c0_14, %c0_15], %23 {strides = array<i32>} : memref<1x16xf32, #tpu.memory_space<vmem>>, vector<1x16xf32>,
      %cst_16 = arith.constant 0.000000e+00 : f32
      %25 = vector.broadcast %cst_16 : f32 to vector<1x16xf32>
      %c0_17 = arith.constant 0 : index
      %c0_18 = arith.constant 0 : index
      %26 = vector.load %arg3[%c0_17, %c0_18] : memref<1x16xf32, #tpu.memory_space<vmem>>, vector<1x16xf32>
      tpu.vector_store %arg3[%c0_17, %c0_18], %25 {strides = array<i32>} : memref<1x16xf32, #tpu.memory_space<vmem>>, vector<1x16xf32>,
    } else {
    }
    %c0 = arith.constant 0 : index
    %c0_1 = arith.constant 0 : index
    %3 = vector.load %arg1[%c0, %c0_1] : memref<128x16xf32, #tpu.memory_space<vmem>>, vector<128x16xf32>
    %4 = tpu.iota {dimensions = array<i32: 0>} : vector<128x16xi32>
    %c128_i32 = arith.constant 128 : i32
    %5 = arith.muli %arg0, %c128_i32 : i32
    %6 = vector.broadcast %5 : i32 to vector<128x16xi32>
    %7 = arith.addi %4, %6 : vector<128x16xi32>
    %c128_i32_2 = arith.constant 128 : i32
    %8 = vector.broadcast %c128_i32_2 : i32 to vector<128x16xi32>
    %9 = arith.cmpi slt, %7, %8 : vector<128x16xi32>
    %cst = arith.constant 0.000000e+00 : f32
    %10 = vector.broadcast %cst : f32 to vector<128x16xf32>
    %11 = arith.select %9, %3, %10 : vector<128x16xi1>, vector<128x16xf32>
    %c0_3 = arith.constant 0 : index
    %c0_4 = arith.constant 0 : index
    %12 = vector.load %arg2[%c0_3, %c0_4] : memref<1x16xf32, #tpu.memory_space<vmem>>, vector<1x16xf32>
    %cst_5 = arith.constant dense<0.000000e+00> : vector<16xf32>
    %13 = vector.multi_reduction <add>, %11, %cst_5 [0] : vector<128x16xf32> to vector<16xf32>
    %14 = vector.shape_cast %13 : vector<16xf32> to vector<1x16xf32>
    %15 = arith.addf %12, %14 : vector<1x16xf32>
    %c0_6 = arith.constant 0 : index
    %c0_7 = arith.constant 0 : index
    %16 = vector.load %arg2[%c0_6, %c0_7] : memref<1x16xf32, #tpu.memory_space<vmem>>, vector<1x16xf32>
    tpu.vector_store %arg2[%c0_6, %c0_7], %15 {strides = array<i32>} : memref<1x16xf32, #tpu.memory_space<vmem>>, vector<1x16xf32>,
    %c0_8 = arith.constant 0 : index
    %c0_9 = arith.constant 0 : index
    %17 = vector.load %arg3[%c0_8, %c0_9] : memref<1x16xf32, #tpu.memory_space<vmem>>, vector<1x16xf32>
    %18 = arith.mulf %11, %11 : vector<128x16xf32>
    %cst_10 = arith.constant dense<0.000000e+00> : vector<16xf32>
    %19 = vector.multi_reduction <add>, %18, %cst_10 [0] : vector<128x16xf32> to vector<16xf32>
    %20 = vector.shape_cast %19 : vector<16xf32> to vector<1x16xf32>
    %21 = arith.addf %17, %20 : vector<1x16xf32>
    %c0_11 = arith.constant 0 : index
    %c0_12 = arith.constant 0 : index
    %22 = vector.load %arg3[%c0_11, %c0_12] : memref<1x16xf32, #tpu.memory_space<vmem>>, vector<1x16xf32>
    tpu.vector_store %arg3[%c0_11, %c0_12], %21 {strides = array<i32>} : memref<1x16xf32, #tpu.memory_space<vmem>>, vector<1x16xf32>,
    return
  }
  func.func @transform_0(%arg0: i32) -> (i32, i32) {
    %c0_i32 = arith.constant 0 : i32
    %c0_i32_0 = arith.constant 0 : i32
    return %arg0, %c0_i32 : i32, i32
  }
  func.func @transform_1(%arg0: i32) -> (i32, i32) {
    %c0_i32 = arith.constant 0 : i32
    %c0_i32_0 = arith.constant 0 : i32
    %c0_i32_1 = arith.constant 0 : i32
    return %c0_i32, %c0_i32_0 : i32, i32
  }
  func.func @transform_2(%arg0: i32) -> (i32, i32) {
    %c0_i32 = arith.constant 0 : i32
    %c0_i32_0 = arith.constant 0 : i32
    %c0_i32_1 = arith.constant 0 : i32
    return %c0_i32, %c0_i32_0 : i32, i32
  }
}

module attributes {stable_mosaic.version = 11 : i64} {
  func.func @_fused_matmul_kernel(%arg0: i32, %arg1: i32, %arg2: memref<128x16xf32, #tpu.memory_space<vmem>>, %arg3: memref<1x16xf32, #tpu.memory_space<vmem>>, %arg4: memref<1x16xf32, #tpu.memory_space<vmem>>, %arg5: memref<16x16xf32, #tpu.memory_space<vmem>>, %arg6: memref<128x16xf32, #tpu.memory_space<vmem>>, %arg7: memref<128x16xf32, #tpu.memory_space<vmem>>) attributes {dimension_semantics = [#tpu.dimension_semantics<parallel>, #tpu.dimension_semantics<arbitrary>], iteration_bounds = array<i64: 1, 1>, scalar_prefetch = 0 : i64, scratch_operands = 1 : i64, tpu.core_type = #tpu.core_type<tc>, window_params = [{transform_indices = @transform_0, window_bounds = array<i64: 128, 16>}, {transform_indices = @transform_1, window_bounds = array<i64: 1, 16>}, {transform_indices = @transform_2, window_bounds = array<i64: 1, 16>}, {transform_indices = @transform_3, window_bounds = array<i64: 16, 16>}, {transform_indices = @transform_4, window_bounds = array<i64: 128, 16>}]} {
    %c0_i32 = arith.constant 0 : i32
    %0 = arith.cmpi eq, %arg1, %c0_i32 : i32
    %1 = arith.extui %0 : i1 to i32
    %c0_i32_0 = arith.constant 0 : i32
    %2 = arith.cmpi ne, %1, %c0_i32_0 : i32
    scf.if %2 {
      %cst_15 = arith.constant 0.000000e+00 : f32
      %20 = vector.broadcast %cst_15 : f32 to vector<128x16xf32>
      %c0_16 = arith.constant 0 : index
      %c0_17 = arith.constant 0 : index
      %21 = vector.load %arg7[%c0_16, %c0_17] : memref<128x16xf32, #tpu.memory_space<vmem>>, vector<128x16xf32>
      tpu.vector_store %arg7[%c0_16, %c0_17], %20 {strides = array<i32>} : memref<128x16xf32, #tpu.memory_space<vmem>>, vector<128x16xf32>,
    } else {
    }
    %c0 = arith.constant 0 : index
    %c0_1 = arith.constant 0 : index
    %3 = vector.load %arg2[%c0, %c0_1] : memref<128x16xf32, #tpu.memory_space<vmem>>, vector<128x16xf32>
    %c0_2 = arith.constant 0 : index
    %c0_3 = arith.constant 0 : index
    %4 = vector.load %arg3[%c0_2, %c0_3] : memref<1x16xf32, #tpu.memory_space<vmem>>, vector<1x16xf32>
    %5 = vector.broadcast %4 : vector<1x16xf32> to vector<128x16xf32>
    %6 = arith.mulf %3, %5 : vector<128x16xf32>
    %c0_4 = arith.constant 0 : index
    %c0_5 = arith.constant 0 : index
    %7 = vector.load %arg4[%c0_4, %c0_5] : memref<1x16xf32, #tpu.memory_space<vmem>>, vector<1x16xf32>
    %8 = vector.broadcast %7 : vector<1x16xf32> to vector<128x16xf32>
    %9 = arith.addf %6, %8 : vector<128x16xf32>
    %cst = arith.constant 0.000000e+00 : f32
    %10 = vector.broadcast %cst : f32 to vector<128x16xf32>
    %11 = arith.maximumf %9, %10 : vector<128x16xf32>
    %c0_6 = arith.constant 0 : index
    %c0_7 = arith.constant 0 : index
    %12 = vector.load %arg7[%c0_6, %c0_7] : memref<128x16xf32, #tpu.memory_space<vmem>>, vector<128x16xf32>
    %c0_8 = arith.constant 0 : index
    %c0_9 = arith.constant 0 : index
    %13 = vector.load %arg5[%c0_8, %c0_9] : memref<16x16xf32, #tpu.memory_space<vmem>>, vector<16x16xf32>
    %cst_10 = arith.constant dense<0.000000e+00> : vector<128x16xf32>
    %14 = tpu.matmul %11, %13, %cst_10 {dimension_numbers = #tpu.dot_dimension_numbers<[1], [0], [0], [1], [0, 0, 1, 1], [], []>} : vector<128x16xf32>, vector<16x16xf32>, vector<128x16xf32> -> vector<128x16xf32>
    %15 = arith.addf %12, %14 : vector<128x16xf32>
    %c0_11 = arith.constant 0 : index
    %c0_12 = arith.constant 0 : index
    %16 = vector.load %arg7[%c0_11, %c0_12] : memref<128x16xf32, #tpu.memory_space<vmem>>, vector<128x16xf32>
    tpu.vector_store %arg7[%c0_11, %c0_12], %15 {strides = array<i32>} : memref<128x16xf32, #tpu.memory_space<vmem>>, vector<128x16xf32>,
    %c0_i32_13 = arith.constant 0 : i32
    %17 = arith.cmpi eq, %arg1, %c0_i32_13 : i32
    %18 = arith.extui %17 : i1 to i32
    %c0_i32_14 = arith.constant 0 : i32
    %19 = arith.cmpi ne, %18, %c0_i32_14 : i32
    scf.if %19 {
      %c0_15 = arith.constant 0 : index
      %c0_16 = arith.constant 0 : index
      %20 = vector.load %arg7[%c0_15, %c0_16] : memref<128x16xf32, #tpu.memory_space<vmem>>, vector<128x16xf32>
      %c0_17 = arith.constant 0 : index
      %c0_18 = arith.constant 0 : index
      %21 = vector.load %arg6[%c0_17, %c0_18] : memref<128x16xf32, #tpu.memory_space<vmem>>, vector<128x16xf32>
      tpu.vector_store %arg6[%c0_17, %c0_18], %20 {strides = array<i32>} : memref<128x16xf32, #tpu.memory_space<vmem>>, vector<128x16xf32>,
    } else {
    }
    return
  }
  func.func @transform_0(%arg0: i32, %arg1: i32) -> (i32, i32) {
    %c0_i32 = arith.constant 0 : i32
    return %arg0, %arg1 : i32, i32
  }
  func.func @transform_1(%arg0: i32, %arg1: i32) -> (i32, i32) {
    %c0_i32 = arith.constant 0 : i32
    %c0_i32_0 = arith.constant 0 : i32
    return %c0_i32, %arg1 : i32, i32
  }
  func.func @transform_2(%arg0: i32, %arg1: i32) -> (i32, i32) {
    %c0_i32 = arith.constant 0 : i32
    %c0_i32_0 = arith.constant 0 : i32
    return %c0_i32, %arg1 : i32, i32
  }
  func.func @transform_3(%arg0: i32, %arg1: i32) -> (i32, i32) {
    %c0_i32 = arith.constant 0 : i32
    %c0_i32_0 = arith.constant 0 : i32
    return %arg1, %c0_i32 : i32, i32
  }
  func.func @transform_4(%arg0: i32, %arg1: i32) -> (i32, i32) {
    %c0_i32 = arith.constant 0 : i32
    %c0_i32_0 = arith.constant 0 : i32
    return %arg0, %c0_i32 : i32, i32
  }
}

module attributes {stable_mosaic.version = 11 : i64} {
  func.func @_bn_relu_conv3x3_kernel(%arg0: i32, %arg1: memref<1x110x16xf32, #tpu.memory_space<vmem>>, %arg2: memref<1x16xf32, #tpu.memory_space<vmem>>, %arg3: memref<1x16xf32, #tpu.memory_space<vmem>>, %arg4: memref<110x1xf32, #tpu.memory_space<vmem>>, %arg5: memref<9x16x8xf32, #tpu.memory_space<vmem>>, %arg6: memref<1x80x8xf32, #tpu.memory_space<vmem>>) attributes {dimension_semantics = [#tpu.dimension_semantics<parallel>], iteration_bounds = array<i64: 2>, scalar_prefetch = 0 : i64, scratch_operands = 0 : i64, tpu.core_type = #tpu.core_type<tc>, window_params = [{transform_indices = @transform_0, window_bounds = array<i64: 1, 110, 16>}, {pipeline_mode = #tpu.pipeline_mode<synchronous>, transform_indices = @transform_1, window_bounds = array<i64: 1, 16>}, {pipeline_mode = #tpu.pipeline_mode<synchronous>, transform_indices = @transform_2, window_bounds = array<i64: 1, 16>}, {pipeline_mode = #tpu.pipeline_mode<synchronous>, transform_indices = @transform_3, window_bounds = array<i64: 110, 1>}, {pipeline_mode = #tpu.pipeline_mode<synchronous>, transform_indices = @transform_4, window_bounds = array<i64: 9, 16, 8>}, {transform_indices = @transform_5, window_bounds = array<i64: 1, 80, 8>}]} {
    %c0 = arith.constant 0 : index
    %c0_0 = arith.constant 0 : index
    %0 = vector.load %arg2[%c0, %c0_0] : memref<1x16xf32, #tpu.memory_space<vmem>>, vector<1x16xf32>
    %c0_1 = arith.constant 0 : index
    %c0_2 = arith.constant 0 : index
    %1 = vector.load %arg3[%c0_1, %c0_2] : memref<1x16xf32, #tpu.memory_space<vmem>>, vector<1x16xf32>
    %c0_3 = arith.constant 0 : index
    %c0_4 = arith.constant 0 : index
    %c0_5 = arith.constant 0 : index
    %2 = vector.load %arg1[%c0_3, %c0_4, %c0_5] : memref<1x110x16xf32, #tpu.memory_space<vmem>>, vector<1x80x16xf32>
    %3 = vector.shape_cast %2 : vector<1x80x16xf32> to vector<80x16xf32>
    %c0_6 = arith.constant 0 : index
    %c0_7 = arith.constant 0 : index
    %4 = vector.load %arg4[%c0_6, %c0_7] : memref<110x1xf32, #tpu.memory_space<vmem>>, vector<80x1xf32>
    %5 = vector.broadcast %0 : vector<1x16xf32> to vector<80x16xf32>
    %6 = arith.mulf %3, %5 : vector<80x16xf32>
    %7 = vector.broadcast %1 : vector<1x16xf32> to vector<80x16xf32>
    %8 = arith.addf %6, %7 : vector<80x16xf32>
    %cst = arith.constant 0.000000e+00 : f32
    %9 = vector.broadcast %cst : f32 to vector<80x16xf32>
    %10 = arith.maximumf %8, %9 : vector<80x16xf32>
    %11 = vector.broadcast %4 : vector<80x1xf32> to vector<80x16xf32>
    %12 = arith.mulf %10, %11 : vector<80x16xf32>
    %c0_8 = arith.constant 0 : index
    %c0_9 = arith.constant 0 : index
    %c0_10 = arith.constant 0 : index
    %13 = vector.load %arg5[%c0_8, %c0_9, %c0_10] : memref<9x16x8xf32, #tpu.memory_space<vmem>>, vector<1x16x8xf32>
    %14 = vector.shape_cast %13 : vector<1x16x8xf32> to vector<16x8xf32>
    %cst_11 = arith.constant dense<0.000000e+00> : vector<80x8xf32>
    %15 = tpu.matmul %12, %14, %cst_11 {dimension_numbers = #tpu.dot_dimension_numbers<[1], [0], [0], [1], [0, 0, 1, 1], [], []>} : vector<80x16xf32>, vector<16x8xf32>, vector<80x8xf32> -> vector<80x8xf32>
    %c0_12 = arith.constant 0 : index
    %c1 = arith.constant 1 : index
    %c0_13 = arith.constant 0 : index
    %16 = vector.load %arg1[%c0_12, %c1, %c0_13] : memref<1x110x16xf32, #tpu.memory_space<vmem>>, vector<1x80x16xf32>
    %17 = vector.shape_cast %16 : vector<1x80x16xf32> to vector<80x16xf32>
    %c1_14 = arith.constant 1 : index
    %c0_15 = arith.constant 0 : index
    %18 = vector.load %arg4[%c1_14, %c0_15] : memref<110x1xf32, #tpu.memory_space<vmem>>, vector<80x1xf32>
    %19 = vector.broadcast %0 : vector<1x16xf32> to vector<80x16xf32>
    %20 = arith.mulf %17, %19 : vector<80x16xf32>
    %21 = vector.broadcast %1 : vector<1x16xf32> to vector<80x16xf32>
    %22 = arith.addf %20, %21 : vector<80x16xf32>
    %cst_16 = arith.constant 0.000000e+00 : f32
    %23 = vector.broadcast %cst_16 : f32 to vector<80x16xf32>
    %24 = arith.maximumf %22, %23 : vector<80x16xf32>
    %25 = vector.broadcast %18 : vector<80x1xf32> to vector<80x16xf32>
    %26 = arith.mulf %24, %25 : vector<80x16xf32>
    %c1_17 = arith.constant 1 : index
    %c0_18 = arith.constant 0 : index
    %c0_19 = arith.constant 0 : index
    %27 = vector.load %arg5[%c1_17, %c0_18, %c0_19] : memref<9x16x8xf32, #tpu.memory_space<vmem>>, vector<1x16x8xf32>
    %28 = vector.shape_cast %27 : vector<1x16x8xf32> to vector<16x8xf32>
    %cst_20 = arith.constant dense<0.000000e+00> : vector<80x8xf32>
    %29 = tpu.matmul %26, %28, %cst_20 {dimension_numbers = #tpu.dot_dimension_numbers<[1], [0], [0], [1], [0, 0, 1, 1], [], []>} : vector<80x16xf32>, vector<16x8xf32>, vector<80x8xf32> -> vector<80x8xf32>
    %30 = arith.addf %15, %29 : vector<80x8xf32>
    %c0_21 = arith.constant 0 : index
    %c2 = arith.constant 2 : index
    %c0_22 = arith.constant 0 : index
    %31 = vector.load %arg1[%c0_21, %c2, %c0_22] : memref<1x110x16xf32, #tpu.memory_space<vmem>>, vector<1x80x16xf32>
    %32 = vector.shape_cast %31 : vector<1x80x16xf32> to vector<80x16xf32>
    %c2_23 = arith.constant 2 : index
    %c0_24 = arith.constant 0 : index
    %33 = vector.load %arg4[%c2_23, %c0_24] : memref<110x1xf32, #tpu.memory_space<vmem>>, vector<80x1xf32>
    %34 = vector.broadcast %0 : vector<1x16xf32> to vector<80x16xf32>
    %35 = arith.mulf %32, %34 : vector<80x16xf32>
    %36 = vector.broadcast %1 : vector<1x16xf32> to vector<80x16xf32>
    %37 = arith.addf %35, %36 : vector<80x16xf32>
    %cst_25 = arith.constant 0.000000e+00 : f32
    %38 = vector.broadcast %cst_25 : f32 to vector<80x16xf32>
    %39 = arith.maximumf %37, %38 : vector<80x16xf32>
    %40 = vector.broadcast %33 : vector<80x1xf32> to vector<80x16xf32>
    %41 = arith.mulf %39, %40 : vector<80x16xf32>
    %c2_26 = arith.constant 2 : index
    %c0_27 = arith.constant 0 : index
    %c0_28 = arith.constant 0 : index
    %42 = vector.load %arg5[%c2_26, %c0_27, %c0_28] : memref<9x16x8xf32, #tpu.memory_space<vmem>>, vector<1x16x8xf32>
    %43 = vector.shape_cast %42 : vector<1x16x8xf32> to vector<16x8xf32>
    %cst_29 = arith.constant dense<0.000000e+00> : vector<80x8xf32>
    %44 = tpu.matmul %41, %43, %cst_29 {dimension_numbers = #tpu.dot_dimension_numbers<[1], [0], [0], [1], [0, 0, 1, 1], [], []>} : vector<80x16xf32>, vector<16x8xf32>, vector<80x8xf32> -> vector<80x8xf32>
    %45 = arith.addf %30, %44 : vector<80x8xf32>
    %c0_30 = arith.constant 0 : index
    %c10 = arith.constant 10 : index
    %c0_31 = arith.constant 0 : index
    %46 = vector.load %arg1[%c0_30, %c10, %c0_31] : memref<1x110x16xf32, #tpu.memory_space<vmem>>, vector<1x80x16xf32>
    %47 = vector.shape_cast %46 : vector<1x80x16xf32> to vector<80x16xf32>
    %c10_32 = arith.constant 10 : index
    %c0_33 = arith.constant 0 : index
    %48 = vector.load %arg4[%c10_32, %c0_33] : memref<110x1xf32, #tpu.memory_space<vmem>>, vector<80x1xf32>
    %49 = vector.broadcast %0 : vector<1x16xf32> to vector<80x16xf32>
    %50 = arith.mulf %47, %49 : vector<80x16xf32>
    %51 = vector.broadcast %1 : vector<1x16xf32> to vector<80x16xf32>
    %52 = arith.addf %50, %51 : vector<80x16xf32>
    %cst_34 = arith.constant 0.000000e+00 : f32
    %53 = vector.broadcast %cst_34 : f32 to vector<80x16xf32>
    %54 = arith.maximumf %52, %53 : vector<80x16xf32>
    %55 = vector.broadcast %48 : vector<80x1xf32> to vector<80x16xf32>
    %56 = arith.mulf %54, %55 : vector<80x16xf32>
    %c3 = arith.constant 3 : index
    %c0_35 = arith.constant 0 : index
    %c0_36 = arith.constant 0 : index
    %57 = vector.load %arg5[%c3, %c0_35, %c0_36] : memref<9x16x8xf32, #tpu.memory_space<vmem>>, vector<1x16x8xf32>
    %58 = vector.shape_cast %57 : vector<1x16x8xf32> to vector<16x8xf32>
    %cst_37 = arith.constant dense<0.000000e+00> : vector<80x8xf32>
    %59 = tpu.matmul %56, %58, %cst_37 {dimension_numbers = #tpu.dot_dimension_numbers<[1], [0], [0], [1], [0, 0, 1, 1], [], []>} : vector<80x16xf32>, vector<16x8xf32>, vector<80x8xf32> -> vector<80x8xf32>
    %60 = arith.addf %45, %59 : vector<80x8xf32>
    %c0_38 = arith.constant 0 : index
    %c11 = arith.constant 11 : index
    %c0_39 = arith.constant 0 : index
    %61 = vector.load %arg1[%c0_38, %c11, %c0_39] : memref<1x110x16xf32, #tpu.memory_space<vmem>>, vector<1x80x16xf32>
    %62 = vector.shape_cast %61 : vector<1x80x16xf32> to vector<80x16xf32>
    %c11_40 = arith.constant 11 : index
    %c0_41 = arith.constant 0 : index
    %63 = vector.load %arg4[%c11_40, %c0_41] : memref<110x1xf32, #tpu.memory_space<vmem>>, vector<80x1xf32>
    %64 = vector.broadcast %0 : vector<1x16xf32> to vector<80x16xf32>
    %65 = arith.mulf %62, %64 : vector<80x16xf32>
    %66 = vector.broadcast %1 : vector<1x16xf32> to vector<80x16xf32>
    %67 = arith.addf %65, %66 : vector<80x16xf32>
    %cst_42 = arith.constant 0.000000e+00 : f32
    %68 = vector.broadcast %cst_42 : f32 to vector<80x16xf32>
    %69 = arith.maximumf %67, %68 : vector<80x16xf32>
    %70 = vector.broadcast %63 : vector<80x1xf32> to vector<80x16xf32>
    %71 = arith.mulf %69, %70 : vector<80x16xf32>
    %c4 = arith.constant 4 : index
    %c0_43 = arith.constant 0 : index
    %c0_44 = arith.constant 0 : index
    %72 = vector.load %arg5[%c4, %c0_43, %c0_44] : memref<9x16x8xf32, #tpu.memory_space<vmem>>, vector<1x16x8xf32>
    %73 = vector.shape_cast %72 : vector<1x16x8xf32> to vector<16x8xf32>
    %cst_45 = arith.constant dense<0.000000e+00> : vector<80x8xf32>
    %74 = tpu.matmul %71, %73, %cst_45 {dimension_numbers = #tpu.dot_dimension_numbers<[1], [0], [0], [1], [0, 0, 1, 1], [], []>} : vector<80x16xf32>, vector<16x8xf32>, vector<80x8xf32> -> vector<80x8xf32>
    %75 = arith.addf %60, %74 : vector<80x8xf32>
    %c0_46 = arith.constant 0 : index
    %c12 = arith.constant 12 : index
    %c0_47 = arith.constant 0 : index
    %76 = vector.load %arg1[%c0_46, %c12, %c0_47] : memref<1x110x16xf32, #tpu.memory_space<vmem>>, vector<1x80x16xf32>
    %77 = vector.shape_cast %76 : vector<1x80x16xf32> to vector<80x16xf32>
    %c12_48 = arith.constant 12 : index
    %c0_49 = arith.constant 0 : index
    %78 = vector.load %arg4[%c12_48, %c0_49] : memref<110x1xf32, #tpu.memory_space<vmem>>, vector<80x1xf32>
    %79 = vector.broadcast %0 : vector<1x16xf32> to vector<80x16xf32>
    %80 = arith.mulf %77, %79 : vector<80x16xf32>
    %81 = vector.broadcast %1 : vector<1x16xf32> to vector<80x16xf32>
    %82 = arith.addf %80, %81 : vector<80x16xf32>
    %cst_50 = arith.constant 0.000000e+00 : f32
    %83 = vector.broadcast %cst_50 : f32 to vector<80x16xf32>
    %84 = arith.maximumf %82, %83 : vector<80x16xf32>
    %85 = vector.broadcast %78 : vector<80x1xf32> to vector<80x16xf32>
    %86 = arith.mulf %84, %85 : vector<80x16xf32>
    %c5 = arith.constant 5 : index
    %c0_51 = arith.constant 0 : index
    %c0_52 = arith.constant 0 : index
    %87 = vector.load %arg5[%c5, %c0_51, %c0_52] : memref<9x16x8xf32, #tpu.memory_space<vmem>>, vector<1x16x8xf32>
    %88 = vector.shape_cast %87 : vector<1x16x8xf32> to vector<16x8xf32>
    %cst_53 = arith.constant dense<0.000000e+00> : vector<80x8xf32>
    %89 = tpu.matmul %86, %88, %cst_53 {dimension_numbers = #tpu.dot_dimension_numbers<[1], [0], [0], [1], [0, 0, 1, 1], [], []>} : vector<80x16xf32>, vector<16x8xf32>, vector<80x8xf32> -> vector<80x8xf32>
    %90 = arith.addf %75, %89 : vector<80x8xf32>
    %c0_54 = arith.constant 0 : index
    %c20 = arith.constant 20 : index
    %c0_55 = arith.constant 0 : index
    %91 = vector.load %arg1[%c0_54, %c20, %c0_55] : memref<1x110x16xf32, #tpu.memory_space<vmem>>, vector<1x80x16xf32>
    %92 = vector.shape_cast %91 : vector<1x80x16xf32> to vector<80x16xf32>
    %c20_56 = arith.constant 20 : index
    %c0_57 = arith.constant 0 : index
    %93 = vector.load %arg4[%c20_56, %c0_57] : memref<110x1xf32, #tpu.memory_space<vmem>>, vector<80x1xf32>
    %94 = vector.broadcast %0 : vector<1x16xf32> to vector<80x16xf32>
    %95 = arith.mulf %92, %94 : vector<80x16xf32>
    %96 = vector.broadcast %1 : vector<1x16xf32> to vector<80x16xf32>
    %97 = arith.addf %95, %96 : vector<80x16xf32>
    %cst_58 = arith.constant 0.000000e+00 : f32
    %98 = vector.broadcast %cst_58 : f32 to vector<80x16xf32>
    %99 = arith.maximumf %97, %98 : vector<80x16xf32>
    %100 = vector.broadcast %93 : vector<80x1xf32> to vector<80x16xf32>
    %101 = arith.mulf %99, %100 : vector<80x16xf32>
    %c6 = arith.constant 6 : index
    %c0_59 = arith.constant 0 : index
    %c0_60 = arith.constant 0 : index
    %102 = vector.load %arg5[%c6, %c0_59, %c0_60] : memref<9x16x8xf32, #tpu.memory_space<vmem>>, vector<1x16x8xf32>
    %103 = vector.shape_cast %102 : vector<1x16x8xf32> to vector<16x8xf32>
    %cst_61 = arith.constant dense<0.000000e+00> : vector<80x8xf32>
    %104 = tpu.matmul %101, %103, %cst_61 {dimension_numbers = #tpu.dot_dimension_numbers<[1], [0], [0], [1], [0, 0, 1, 1], [], []>} : vector<80x16xf32>, vector<16x8xf32>, vector<80x8xf32> -> vector<80x8xf32>
    %105 = arith.addf %90, %104 : vector<80x8xf32>
    %c0_62 = arith.constant 0 : index
    %c21 = arith.constant 21 : index
    %c0_63 = arith.constant 0 : index
    %106 = vector.load %arg1[%c0_62, %c21, %c0_63] : memref<1x110x16xf32, #tpu.memory_space<vmem>>, vector<1x80x16xf32>
    %107 = vector.shape_cast %106 : vector<1x80x16xf32> to vector<80x16xf32>
    %c21_64 = arith.constant 21 : index
    %c0_65 = arith.constant 0 : index
    %108 = vector.load %arg4[%c21_64, %c0_65] : memref<110x1xf32, #tpu.memory_space<vmem>>, vector<80x1xf32>
    %109 = vector.broadcast %0 : vector<1x16xf32> to vector<80x16xf32>
    %110 = arith.mulf %107, %109 : vector<80x16xf32>
    %111 = vector.broadcast %1 : vector<1x16xf32> to vector<80x16xf32>
    %112 = arith.addf %110, %111 : vector<80x16xf32>
    %cst_66 = arith.constant 0.000000e+00 : f32
    %113 = vector.broadcast %cst_66 : f32 to vector<80x16xf32>
    %114 = arith.maximumf %112, %113 : vector<80x16xf32>
    %115 = vector.broadcast %108 : vector<80x1xf32> to vector<80x16xf32>
    %116 = arith.mulf %114, %115 : vector<80x16xf32>
    %c7 = arith.constant 7 : index
    %c0_67 = arith.constant 0 : index
    %c0_68 = arith.constant 0 : index
    %117 = vector.load %arg5[%c7, %c0_67, %c0_68] : memref<9x16x8xf32, #tpu.memory_space<vmem>>, vector<1x16x8xf32>
    %118 = vector.shape_cast %117 : vector<1x16x8xf32> to vector<16x8xf32>
    %cst_69 = arith.constant dense<0.000000e+00> : vector<80x8xf32>
    %119 = tpu.matmul %116, %118, %cst_69 {dimension_numbers = #tpu.dot_dimension_numbers<[1], [0], [0], [1], [0, 0, 1, 1], [], []>} : vector<80x16xf32>, vector<16x8xf32>, vector<80x8xf32> -> vector<80x8xf32>
    %120 = arith.addf %105, %119 : vector<80x8xf32>
    %c0_70 = arith.constant 0 : index
    %c22 = arith.constant 22 : index
    %c0_71 = arith.constant 0 : index
    %121 = vector.load %arg1[%c0_70, %c22, %c0_71] : memref<1x110x16xf32, #tpu.memory_space<vmem>>, vector<1x80x16xf32>
    %122 = vector.shape_cast %121 : vector<1x80x16xf32> to vector<80x16xf32>
    %c22_72 = arith.constant 22 : index
    %c0_73 = arith.constant 0 : index
    %123 = vector.load %arg4[%c22_72, %c0_73] : memref<110x1xf32, #tpu.memory_space<vmem>>, vector<80x1xf32>
    %124 = vector.broadcast %0 : vector<1x16xf32> to vector<80x16xf32>
    %125 = arith.mulf %122, %124 : vector<80x16xf32>
    %126 = vector.broadcast %1 : vector<1x16xf32> to vector<80x16xf32>
    %127 = arith.addf %125, %126 : vector<80x16xf32>
    %cst_74 = arith.constant 0.000000e+00 : f32
    %128 = vector.broadcast %cst_74 : f32 to vector<80x16xf32>
    %129 = arith.maximumf %127, %128 : vector<80x16xf32>
    %130 = vector.broadcast %123 : vector<80x1xf32> to vector<80x16xf32>
    %131 = arith.mulf %129, %130 : vector<80x16xf32>
    %c8 = arith.constant 8 : index
    %c0_75 = arith.constant 0 : index
    %c0_76 = arith.constant 0 : index
    %132 = vector.load %arg5[%c8, %c0_75, %c0_76] : memref<9x16x8xf32, #tpu.memory_space<vmem>>, vector<1x16x8xf32>
    %133 = vector.shape_cast %132 : vector<1x16x8xf32> to vector<16x8xf32>
    %cst_77 = arith.constant dense<0.000000e+00> : vector<80x8xf32>
    %134 = tpu.matmul %131, %133, %cst_77 {dimension_numbers = #tpu.dot_dimension_numbers<[1], [0], [0], [1], [0, 0, 1, 1], [], []>} : vector<80x16xf32>, vector<16x8xf32>, vector<80x8xf32> -> vector<80x8xf32>
    %135 = arith.addf %120, %134 : vector<80x8xf32>
    %c0_78 = arith.constant 0 : index
    %c0_79 = arith.constant 0 : index
    %c0_80 = arith.constant 0 : index
    %136 = vector.load %arg6[%c0_78, %c0_79, %c0_80] : memref<1x80x8xf32, #tpu.memory_space<vmem>>, vector<1x80x8xf32>
    %137 = vector.shape_cast %136 : vector<1x80x8xf32> to vector<80x8xf32>
    %138 = vector.shape_cast %135 : vector<80x8xf32> to vector<1x80x8xf32>
    tpu.vector_store %arg6[%c0_78, %c0_79, %c0_80], %138 {strides = array<i32>} : memref<1x80x8xf32, #tpu.memory_space<vmem>>, vector<1x80x8xf32>,
    return
  }
  func.func @transform_0(%arg0: i32) -> (i32, i32, i32) {
    %c0_i32 = arith.constant 0 : i32
    %c0_i32_0 = arith.constant 0 : i32
    %c0_i32_1 = arith.constant 0 : i32
    return %arg0, %c0_i32, %c0_i32_0 : i32, i32, i32
  }
  func.func @transform_1(%arg0: i32) -> (i32, i32) {
    %c0_i32 = arith.constant 0 : i32
    %c0_i32_0 = arith.constant 0 : i32
    %c0_i32_1 = arith.constant 0 : i32
    return %c0_i32, %c0_i32_0 : i32, i32
  }
  func.func @transform_2(%arg0: i32) -> (i32, i32) {
    %c0_i32 = arith.constant 0 : i32
    %c0_i32_0 = arith.constant 0 : i32
    %c0_i32_1 = arith.constant 0 : i32
    return %c0_i32, %c0_i32_0 : i32, i32
  }
  func.func @transform_3(%arg0: i32) -> (i32, i32) {
    %c0_i32 = arith.constant 0 : i32
    %c0_i32_0 = arith.constant 0 : i32
    %c0_i32_1 = arith.constant 0 : i32
    return %c0_i32, %c0_i32_0 : i32, i32
  }
  func.func @transform_4(%arg0: i32) -> (i32, i32, i32) {
    %c0_i32 = arith.constant 0 : i32
    %c0_i32_0 = arith.constant 0 : i32
    %c0_i32_1 = arith.constant 0 : i32
    %c0_i32_2 = arith.constant 0 : i32
    return %c0_i32, %c0_i32_0, %c0_i32_1 : i32, i32, i32
  }
  func.func @transform_5(%arg0: i32) -> (i32, i32, i32) {
    %c0_i32 = arith.constant 0 : i32
    %c0_i32_0 = arith.constant 0 : i32
    %c0_i32_1 = arith.constant 0 : i32
    return %arg0, %c0_i32, %c0_i32_0 : i32, i32, i32
  }
}

module attributes {stable_mosaic.version = 11 : i64} {
  func.func @_bn_stats_kernel(%arg0: i32, %arg1: memref<128x8xf32, #tpu.memory_space<vmem>>, %arg2: memref<1x8xf32, #tpu.memory_space<vmem>>, %arg3: memref<1x8xf32, #tpu.memory_space<vmem>>) attributes {dimension_semantics = [#tpu.dimension_semantics<arbitrary>], iteration_bounds = array<i64: 1>, scalar_prefetch = 0 : i64, scratch_operands = 0 : i64, tpu.core_type = #tpu.core_type<tc>, window_params = [{transform_indices = @transform_0, window_bounds = array<i64: 128, 8>}, {pipeline_mode = #tpu.pipeline_mode<synchronous>, transform_indices = @transform_1, window_bounds = array<i64: 1, 8>}, {pipeline_mode = #tpu.pipeline_mode<synchronous>, transform_indices = @transform_2, window_bounds = array<i64: 1, 8>}]} {
    %c0_i32 = arith.constant 0 : i32
    %0 = arith.cmpi eq, %arg0, %c0_i32 : i32
    %1 = arith.extui %0 : i1 to i32
    %c0_i32_0 = arith.constant 0 : i32
    %2 = arith.cmpi ne, %1, %c0_i32_0 : i32
    scf.if %2 {
      %cst_13 = arith.constant 0.000000e+00 : f32
      %23 = vector.broadcast %cst_13 : f32 to vector<1x8xf32>
      %c0_14 = arith.constant 0 : index
      %c0_15 = arith.constant 0 : index
      %24 = vector.load %arg2[%c0_14, %c0_15] : memref<1x8xf32, #tpu.memory_space<vmem>>, vector<1x8xf32>
      tpu.vector_store %arg2[%c0_14, %c0_15], %23 {strides = array<i32>} : memref<1x8xf32, #tpu.memory_space<vmem>>, vector<1x8xf32>,
      %cst_16 = arith.constant 0.000000e+00 : f32
      %25 = vector.broadcast %cst_16 : f32 to vector<1x8xf32>
      %c0_17 = arith.constant 0 : index
      %c0_18 = arith.constant 0 : index
      %26 = vector.load %arg3[%c0_17, %c0_18] : memref<1x8xf32, #tpu.memory_space<vmem>>, vector<1x8xf32>
      tpu.vector_store %arg3[%c0_17, %c0_18], %25 {strides = array<i32>} : memref<1x8xf32, #tpu.memory_space<vmem>>, vector<1x8xf32>,
    } else {
    }
    %c0 = arith.constant 0 : index
    %c0_1 = arith.constant 0 : index
    %3 = vector.load %arg1[%c0, %c0_1] : memref<128x8xf32, #tpu.memory_space<vmem>>, vector<128x8xf32>
    %4 = tpu.iota {dimensions = array<i32: 0>} : vector<128x8xi32>
    %c128_i32 = arith.constant 128 : i32
    %5 = arith.muli %arg0, %c128_i32 : i32
    %6 = vector.broadcast %5 : i32 to vector<128x8xi32>
    %7 = arith.addi %4, %6 : vector<128x8xi32>
    %c128_i32_2 = arith.constant 128 : i32
    %8 = vector.broadcast %c128_i32_2 : i32 to vector<128x8xi32>
    %9 = arith.cmpi slt, %7, %8 : vector<128x8xi32>
    %cst = arith.constant 0.000000e+00 : f32
    %10 = vector.broadcast %cst : f32 to vector<128x8xf32>
    %11 = arith.select %9, %3, %10 : vector<128x8xi1>, vector<128x8xf32>
    %c0_3 = arith.constant 0 : index
    %c0_4 = arith.constant 0 : index
    %12 = vector.load %arg2[%c0_3, %c0_4] : memref<1x8xf32, #tpu.memory_space<vmem>>, vector<1x8xf32>
    %cst_5 = arith.constant dense<0.000000e+00> : vector<8xf32>
    %13 = vector.multi_reduction <add>, %11, %cst_5 [0] : vector<128x8xf32> to vector<8xf32>
    %14 = vector.shape_cast %13 : vector<8xf32> to vector<1x8xf32>
    %15 = arith.addf %12, %14 : vector<1x8xf32>
    %c0_6 = arith.constant 0 : index
    %c0_7 = arith.constant 0 : index
    %16 = vector.load %arg2[%c0_6, %c0_7] : memref<1x8xf32, #tpu.memory_space<vmem>>, vector<1x8xf32>
    tpu.vector_store %arg2[%c0_6, %c0_7], %15 {strides = array<i32>} : memref<1x8xf32, #tpu.memory_space<vmem>>, vector<1x8xf32>,
    %c0_8 = arith.constant 0 : index
    %c0_9 = arith.constant 0 : index
    %17 = vector.load %arg3[%c0_8, %c0_9] : memref<1x8xf32, #tpu.memory_space<vmem>>, vector<1x8xf32>
    %18 = arith.mulf %11, %11 : vector<128x8xf32>
    %cst_10 = arith.constant dense<0.000000e+00> : vector<8xf32>
    %19 = vector.multi_reduction <add>, %18, %cst_10 [0] : vector<128x8xf32> to vector<8xf32>
    %20 = vector.shape_cast %19 : vector<8xf32> to vector<1x8xf32>
    %21 = arith.addf %17, %20 : vector<1x8xf32>
    %c0_11 = arith.constant 0 : index
    %c0_12 = arith.constant 0 : index
    %22 = vector.load %arg3[%c0_11, %c0_12] : memref<1x8xf32, #tpu.memory_space<vmem>>, vector<1x8xf32>
    tpu.vector_store %arg3[%c0_11, %c0_12], %21 {strides = array<i32>} : memref<1x8xf32, #tpu.memory_space<vmem>>, vector<1x8xf32>,
    return
  }
  func.func @transform_0(%arg0: i32) -> (i32, i32) {
    %c0_i32 = arith.constant 0 : i32
    %c0_i32_0 = arith.constant 0 : i32
    return %arg0, %c0_i32 : i32, i32
  }
  func.func @transform_1(%arg0: i32) -> (i32, i32) {
    %c0_i32 = arith.constant 0 : i32
    %c0_i32_0 = arith.constant 0 : i32
    %c0_i32_1 = arith.constant 0 : i32
    return %c0_i32, %c0_i32_0 : i32, i32
  }
  func.func @transform_2(%arg0: i32) -> (i32, i32) {
    %c0_i32 = arith.constant 0 : i32
    %c0_i32_0 = arith.constant 0 : i32
    %c0_i32_1 = arith.constant 0 : i32
    return %c0_i32, %c0_i32_0 : i32, i32
  }
}

module attributes {stable_mosaic.version = 11 : i64} {
  func.func @_fused_matmul_kernel(%arg0: i32, %arg1: i32, %arg2: memref<128x8xf32, #tpu.memory_space<vmem>>, %arg3: memref<1x8xf32, #tpu.memory_space<vmem>>, %arg4: memref<1x8xf32, #tpu.memory_space<vmem>>, %arg5: memref<8x16xf32, #tpu.memory_space<vmem>>, %arg6: memref<128x16xf32, #tpu.memory_space<vmem>>, %arg7: memref<128x16xf32, #tpu.memory_space<vmem>>) attributes {dimension_semantics = [#tpu.dimension_semantics<parallel>, #tpu.dimension_semantics<arbitrary>], iteration_bounds = array<i64: 1, 1>, scalar_prefetch = 0 : i64, scratch_operands = 1 : i64, tpu.core_type = #tpu.core_type<tc>, window_params = [{transform_indices = @transform_0, window_bounds = array<i64: 128, 8>}, {transform_indices = @transform_1, window_bounds = array<i64: 1, 8>}, {transform_indices = @transform_2, window_bounds = array<i64: 1, 8>}, {transform_indices = @transform_3, window_bounds = array<i64: 8, 16>}, {transform_indices = @transform_4, window_bounds = array<i64: 128, 16>}]} {
    %c0_i32 = arith.constant 0 : i32
    %0 = arith.cmpi eq, %arg1, %c0_i32 : i32
    %1 = arith.extui %0 : i1 to i32
    %c0_i32_0 = arith.constant 0 : i32
    %2 = arith.cmpi ne, %1, %c0_i32_0 : i32
    scf.if %2 {
      %cst_15 = arith.constant 0.000000e+00 : f32
      %20 = vector.broadcast %cst_15 : f32 to vector<128x16xf32>
      %c0_16 = arith.constant 0 : index
      %c0_17 = arith.constant 0 : index
      %21 = vector.load %arg7[%c0_16, %c0_17] : memref<128x16xf32, #tpu.memory_space<vmem>>, vector<128x16xf32>
      tpu.vector_store %arg7[%c0_16, %c0_17], %20 {strides = array<i32>} : memref<128x16xf32, #tpu.memory_space<vmem>>, vector<128x16xf32>,
    } else {
    }
    %c0 = arith.constant 0 : index
    %c0_1 = arith.constant 0 : index
    %3 = vector.load %arg2[%c0, %c0_1] : memref<128x8xf32, #tpu.memory_space<vmem>>, vector<128x8xf32>
    %c0_2 = arith.constant 0 : index
    %c0_3 = arith.constant 0 : index
    %4 = vector.load %arg3[%c0_2, %c0_3] : memref<1x8xf32, #tpu.memory_space<vmem>>, vector<1x8xf32>
    %5 = vector.broadcast %4 : vector<1x8xf32> to vector<128x8xf32>
    %6 = arith.mulf %3, %5 : vector<128x8xf32>
    %c0_4 = arith.constant 0 : index
    %c0_5 = arith.constant 0 : index
    %7 = vector.load %arg4[%c0_4, %c0_5] : memref<1x8xf32, #tpu.memory_space<vmem>>, vector<1x8xf32>
    %8 = vector.broadcast %7 : vector<1x8xf32> to vector<128x8xf32>
    %9 = arith.addf %6, %8 : vector<128x8xf32>
    %cst = arith.constant 0.000000e+00 : f32
    %10 = vector.broadcast %cst : f32 to vector<128x8xf32>
    %11 = arith.maximumf %9, %10 : vector<128x8xf32>
    %c0_6 = arith.constant 0 : index
    %c0_7 = arith.constant 0 : index
    %12 = vector.load %arg7[%c0_6, %c0_7] : memref<128x16xf32, #tpu.memory_space<vmem>>, vector<128x16xf32>
    %c0_8 = arith.constant 0 : index
    %c0_9 = arith.constant 0 : index
    %13 = vector.load %arg5[%c0_8, %c0_9] : memref<8x16xf32, #tpu.memory_space<vmem>>, vector<8x16xf32>
    %cst_10 = arith.constant dense<0.000000e+00> : vector<128x16xf32>
    %14 = tpu.matmul %11, %13, %cst_10 {dimension_numbers = #tpu.dot_dimension_numbers<[1], [0], [0], [1], [0, 0, 1, 1], [], []>} : vector<128x8xf32>, vector<8x16xf32>, vector<128x16xf32> -> vector<128x16xf32>
    %15 = arith.addf %12, %14 : vector<128x16xf32>
    %c0_11 = arith.constant 0 : index
    %c0_12 = arith.constant 0 : index
    %16 = vector.load %arg7[%c0_11, %c0_12] : memref<128x16xf32, #tpu.memory_space<vmem>>, vector<128x16xf32>
    tpu.vector_store %arg7[%c0_11, %c0_12], %15 {strides = array<i32>} : memref<128x16xf32, #tpu.memory_space<vmem>>, vector<128x16xf32>,
    %c0_i32_13 = arith.constant 0 : i32
    %17 = arith.cmpi eq, %arg1, %c0_i32_13 : i32
    %18 = arith.extui %17 : i1 to i32
    %c0_i32_14 = arith.constant 0 : i32
    %19 = arith.cmpi ne, %18, %c0_i32_14 : i32
    scf.if %19 {
      %c0_15 = arith.constant 0 : index
      %c0_16 = arith.constant 0 : index
      %20 = vector.load %arg7[%c0_15, %c0_16] : memref<128x16xf32, #tpu.memory_space<vmem>>, vector<128x16xf32>
      %c0_17 = arith.constant 0 : index
      %c0_18 = arith.constant 0 : index
      %21 = vector.load %arg6[%c0_17, %c0_18] : memref<128x16xf32, #tpu.memory_space<vmem>>, vector<128x16xf32>
      tpu.vector_store %arg6[%c0_17, %c0_18], %20 {strides = array<i32>} : memref<128x16xf32, #tpu.memory_space<vmem>>, vector<128x16xf32>,
    } else {
    }
    return
  }
  func.func @transform_0(%arg0: i32, %arg1: i32) -> (i32, i32) {
    %c0_i32 = arith.constant 0 : i32
    return %arg0, %arg1 : i32, i32
  }
  func.func @transform_1(%arg0: i32, %arg1: i32) -> (i32, i32) {
    %c0_i32 = arith.constant 0 : i32
    %c0_i32_0 = arith.constant 0 : i32
    return %c0_i32, %arg1 : i32, i32
  }
  func.func @transform_2(%arg0: i32, %arg1: i32) -> (i32, i32) {
    %c0_i32 = arith.constant 0 : i32
    %c0_i32_0 = arith.constant 0 : i32
    return %c0_i32, %arg1 : i32, i32
  }
  func.func @transform_3(%arg0: i32, %arg1: i32) -> (i32, i32) {
    %c0_i32 = arith.constant 0 : i32
    %c0_i32_0 = arith.constant 0 : i32
    return %arg1, %c0_i32 : i32, i32
  }
  func.func @transform_4(%arg0: i32, %arg1: i32) -> (i32, i32) {
    %c0_i32 = arith.constant 0 : i32
    %c0_i32_0 = arith.constant 0 : i32
    return %arg0, %c0_i32 : i32, i32
  }
}

module attributes {stable_mosaic.version = 11 : i64} {
  func.func @_bn_stats_kernel(%arg0: i32, %arg1: memref<32x16xf32, #tpu.memory_space<vmem>>, %arg2: memref<1x16xf32, #tpu.memory_space<vmem>>, %arg3: memref<1x16xf32, #tpu.memory_space<vmem>>) attributes {dimension_semantics = [#tpu.dimension_semantics<arbitrary>], iteration_bounds = array<i64: 1>, scalar_prefetch = 0 : i64, scratch_operands = 0 : i64, tpu.core_type = #tpu.core_type<tc>, window_params = [{transform_indices = @transform_0, window_bounds = array<i64: 32, 16>}, {pipeline_mode = #tpu.pipeline_mode<synchronous>, transform_indices = @transform_1, window_bounds = array<i64: 1, 16>}, {pipeline_mode = #tpu.pipeline_mode<synchronous>, transform_indices = @transform_2, window_bounds = array<i64: 1, 16>}]} {
    %c0_i32 = arith.constant 0 : i32
    %0 = arith.cmpi eq, %arg0, %c0_i32 : i32
    %1 = arith.extui %0 : i1 to i32
    %c0_i32_0 = arith.constant 0 : i32
    %2 = arith.cmpi ne, %1, %c0_i32_0 : i32
    scf.if %2 {
      %cst_13 = arith.constant 0.000000e+00 : f32
      %23 = vector.broadcast %cst_13 : f32 to vector<1x16xf32>
      %c0_14 = arith.constant 0 : index
      %c0_15 = arith.constant 0 : index
      %24 = vector.load %arg2[%c0_14, %c0_15] : memref<1x16xf32, #tpu.memory_space<vmem>>, vector<1x16xf32>
      tpu.vector_store %arg2[%c0_14, %c0_15], %23 {strides = array<i32>} : memref<1x16xf32, #tpu.memory_space<vmem>>, vector<1x16xf32>,
      %cst_16 = arith.constant 0.000000e+00 : f32
      %25 = vector.broadcast %cst_16 : f32 to vector<1x16xf32>
      %c0_17 = arith.constant 0 : index
      %c0_18 = arith.constant 0 : index
      %26 = vector.load %arg3[%c0_17, %c0_18] : memref<1x16xf32, #tpu.memory_space<vmem>>, vector<1x16xf32>
      tpu.vector_store %arg3[%c0_17, %c0_18], %25 {strides = array<i32>} : memref<1x16xf32, #tpu.memory_space<vmem>>, vector<1x16xf32>,
    } else {
    }
    %c0 = arith.constant 0 : index
    %c0_1 = arith.constant 0 : index
    %3 = vector.load %arg1[%c0, %c0_1] : memref<32x16xf32, #tpu.memory_space<vmem>>, vector<32x16xf32>
    %4 = tpu.iota {dimensions = array<i32: 0>} : vector<32x16xi32>
    %c32_i32 = arith.constant 32 : i32
    %5 = arith.muli %arg0, %c32_i32 : i32
    %6 = vector.broadcast %5 : i32 to vector<32x16xi32>
    %7 = arith.addi %4, %6 : vector<32x16xi32>
    %c32_i32_2 = arith.constant 32 : i32
    %8 = vector.broadcast %c32_i32_2 : i32 to vector<32x16xi32>
    %9 = arith.cmpi slt, %7, %8 : vector<32x16xi32>
    %cst = arith.constant 0.000000e+00 : f32
    %10 = vector.broadcast %cst : f32 to vector<32x16xf32>
    %11 = arith.select %9, %3, %10 : vector<32x16xi1>, vector<32x16xf32>
    %c0_3 = arith.constant 0 : index
    %c0_4 = arith.constant 0 : index
    %12 = vector.load %arg2[%c0_3, %c0_4] : memref<1x16xf32, #tpu.memory_space<vmem>>, vector<1x16xf32>
    %cst_5 = arith.constant dense<0.000000e+00> : vector<16xf32>
    %13 = vector.multi_reduction <add>, %11, %cst_5 [0] : vector<32x16xf32> to vector<16xf32>
    %14 = vector.shape_cast %13 : vector<16xf32> to vector<1x16xf32>
    %15 = arith.addf %12, %14 : vector<1x16xf32>
    %c0_6 = arith.constant 0 : index
    %c0_7 = arith.constant 0 : index
    %16 = vector.load %arg2[%c0_6, %c0_7] : memref<1x16xf32, #tpu.memory_space<vmem>>, vector<1x16xf32>
    tpu.vector_store %arg2[%c0_6, %c0_7], %15 {strides = array<i32>} : memref<1x16xf32, #tpu.memory_space<vmem>>, vector<1x16xf32>,
    %c0_8 = arith.constant 0 : index
    %c0_9 = arith.constant 0 : index
    %17 = vector.load %arg3[%c0_8, %c0_9] : memref<1x16xf32, #tpu.memory_space<vmem>>, vector<1x16xf32>
    %18 = arith.mulf %11, %11 : vector<32x16xf32>
    %cst_10 = arith.constant dense<0.000000e+00> : vector<16xf32>
    %19 = vector.multi_reduction <add>, %18, %cst_10 [0] : vector<32x16xf32> to vector<16xf32>
    %20 = vector.shape_cast %19 : vector<16xf32> to vector<1x16xf32>
    %21 = arith.addf %17, %20 : vector<1x16xf32>
    %c0_11 = arith.constant 0 : index
    %c0_12 = arith.constant 0 : index
    %22 = vector.load %arg3[%c0_11, %c0_12] : memref<1x16xf32, #tpu.memory_space<vmem>>, vector<1x16xf32>
    tpu.vector_store %arg3[%c0_11, %c0_12], %21 {strides = array<i32>} : memref<1x16xf32, #tpu.memory_space<vmem>>, vector<1x16xf32>,
    return
  }
  func.func @transform_0(%arg0: i32) -> (i32, i32) {
    %c0_i32 = arith.constant 0 : i32
    %c0_i32_0 = arith.constant 0 : i32
    return %arg0, %c0_i32 : i32, i32
  }
  func.func @transform_1(%arg0: i32) -> (i32, i32) {
    %c0_i32 = arith.constant 0 : i32
    %c0_i32_0 = arith.constant 0 : i32
    %c0_i32_1 = arith.constant 0 : i32
    return %c0_i32, %c0_i32_0 : i32, i32
  }
  func.func @transform_2(%arg0: i32) -> (i32, i32) {
    %c0_i32 = arith.constant 0 : i32
    %c0_i32_0 = arith.constant 0 : i32
    %c0_i32_1 = arith.constant 0 : i32
    return %c0_i32, %c0_i32_0 : i32, i32
  }
}

module attributes {stable_mosaic.version = 11 : i64} {
  func.func @_fused_matmul_kernel(%arg0: i32, %arg1: i32, %arg2: memref<32x16xf32, #tpu.memory_space<vmem>>, %arg3: memref<1x16xf32, #tpu.memory_space<vmem>>, %arg4: memref<1x16xf32, #tpu.memory_space<vmem>>, %arg5: memref<16x16xf32, #tpu.memory_space<vmem>>, %arg6: memref<32x16xf32, #tpu.memory_space<vmem>>, %arg7: memref<32x16xf32, #tpu.memory_space<vmem>>) attributes {dimension_semantics = [#tpu.dimension_semantics<parallel>, #tpu.dimension_semantics<arbitrary>], iteration_bounds = array<i64: 1, 1>, scalar_prefetch = 0 : i64, scratch_operands = 1 : i64, tpu.core_type = #tpu.core_type<tc>, window_params = [{transform_indices = @transform_0, window_bounds = array<i64: 32, 16>}, {transform_indices = @transform_1, window_bounds = array<i64: 1, 16>}, {transform_indices = @transform_2, window_bounds = array<i64: 1, 16>}, {transform_indices = @transform_3, window_bounds = array<i64: 16, 16>}, {transform_indices = @transform_4, window_bounds = array<i64: 32, 16>}]} {
    %c0_i32 = arith.constant 0 : i32
    %0 = arith.cmpi eq, %arg1, %c0_i32 : i32
    %1 = arith.extui %0 : i1 to i32
    %c0_i32_0 = arith.constant 0 : i32
    %2 = arith.cmpi ne, %1, %c0_i32_0 : i32
    scf.if %2 {
      %cst_15 = arith.constant 0.000000e+00 : f32
      %20 = vector.broadcast %cst_15 : f32 to vector<32x16xf32>
      %c0_16 = arith.constant 0 : index
      %c0_17 = arith.constant 0 : index
      %21 = vector.load %arg7[%c0_16, %c0_17] : memref<32x16xf32, #tpu.memory_space<vmem>>, vector<32x16xf32>
      tpu.vector_store %arg7[%c0_16, %c0_17], %20 {strides = array<i32>} : memref<32x16xf32, #tpu.memory_space<vmem>>, vector<32x16xf32>,
    } else {
    }
    %c0 = arith.constant 0 : index
    %c0_1 = arith.constant 0 : index
    %3 = vector.load %arg2[%c0, %c0_1] : memref<32x16xf32, #tpu.memory_space<vmem>>, vector<32x16xf32>
    %c0_2 = arith.constant 0 : index
    %c0_3 = arith.constant 0 : index
    %4 = vector.load %arg3[%c0_2, %c0_3] : memref<1x16xf32, #tpu.memory_space<vmem>>, vector<1x16xf32>
    %5 = vector.broadcast %4 : vector<1x16xf32> to vector<32x16xf32>
    %6 = arith.mulf %3, %5 : vector<32x16xf32>
    %c0_4 = arith.constant 0 : index
    %c0_5 = arith.constant 0 : index
    %7 = vector.load %arg4[%c0_4, %c0_5] : memref<1x16xf32, #tpu.memory_space<vmem>>, vector<1x16xf32>
    %8 = vector.broadcast %7 : vector<1x16xf32> to vector<32x16xf32>
    %9 = arith.addf %6, %8 : vector<32x16xf32>
    %cst = arith.constant 0.000000e+00 : f32
    %10 = vector.broadcast %cst : f32 to vector<32x16xf32>
    %11 = arith.maximumf %9, %10 : vector<32x16xf32>
    %c0_6 = arith.constant 0 : index
    %c0_7 = arith.constant 0 : index
    %12 = vector.load %arg7[%c0_6, %c0_7] : memref<32x16xf32, #tpu.memory_space<vmem>>, vector<32x16xf32>
    %c0_8 = arith.constant 0 : index
    %c0_9 = arith.constant 0 : index
    %13 = vector.load %arg5[%c0_8, %c0_9] : memref<16x16xf32, #tpu.memory_space<vmem>>, vector<16x16xf32>
    %cst_10 = arith.constant dense<0.000000e+00> : vector<32x16xf32>
    %14 = tpu.matmul %11, %13, %cst_10 {dimension_numbers = #tpu.dot_dimension_numbers<[1], [0], [0], [1], [0, 0, 1, 1], [], []>} : vector<32x16xf32>, vector<16x16xf32>, vector<32x16xf32> -> vector<32x16xf32>
    %15 = arith.addf %12, %14 : vector<32x16xf32>
    %c0_11 = arith.constant 0 : index
    %c0_12 = arith.constant 0 : index
    %16 = vector.load %arg7[%c0_11, %c0_12] : memref<32x16xf32, #tpu.memory_space<vmem>>, vector<32x16xf32>
    tpu.vector_store %arg7[%c0_11, %c0_12], %15 {strides = array<i32>} : memref<32x16xf32, #tpu.memory_space<vmem>>, vector<32x16xf32>,
    %c0_i32_13 = arith.constant 0 : i32
    %17 = arith.cmpi eq, %arg1, %c0_i32_13 : i32
    %18 = arith.extui %17 : i1 to i32
    %c0_i32_14 = arith.constant 0 : i32
    %19 = arith.cmpi ne, %18, %c0_i32_14 : i32
    scf.if %19 {
      %c0_15 = arith.constant 0 : index
      %c0_16 = arith.constant 0 : index
      %20 = vector.load %arg7[%c0_15, %c0_16] : memref<32x16xf32, #tpu.memory_space<vmem>>, vector<32x16xf32>
      %c0_17 = arith.constant 0 : index
      %c0_18 = arith.constant 0 : index
      %21 = vector.load %arg6[%c0_17, %c0_18] : memref<32x16xf32, #tpu.memory_space<vmem>>, vector<32x16xf32>
      tpu.vector_store %arg6[%c0_17, %c0_18], %20 {strides = array<i32>} : memref<32x16xf32, #tpu.memory_space<vmem>>, vector<32x16xf32>,
    } else {
    }
    return
  }
  func.func @transform_0(%arg0: i32, %arg1: i32) -> (i32, i32) {
    %c0_i32 = arith.constant 0 : i32
    return %arg0, %arg1 : i32, i32
  }
  func.func @transform_1(%arg0: i32, %arg1: i32) -> (i32, i32) {
    %c0_i32 = arith.constant 0 : i32
    %c0_i32_0 = arith.constant 0 : i32
    return %c0_i32, %arg1 : i32, i32
  }
  func.func @transform_2(%arg0: i32, %arg1: i32) -> (i32, i32) {
    %c0_i32 = arith.constant 0 : i32
    %c0_i32_0 = arith.constant 0 : i32
    return %c0_i32, %arg1 : i32, i32
  }
  func.func @transform_3(%arg0: i32, %arg1: i32) -> (i32, i32) {
    %c0_i32 = arith.constant 0 : i32
    %c0_i32_0 = arith.constant 0 : i32
    return %arg1, %c0_i32 : i32, i32
  }
  func.func @transform_4(%arg0: i32, %arg1: i32) -> (i32, i32) {
    %c0_i32 = arith.constant 0 : i32
    %c0_i32_0 = arith.constant 0 : i32
    return %arg0, %c0_i32 : i32, i32
  }
}

module attributes {stable_mosaic.version = 11 : i64} {
  func.func @_bn_stats_kernel(%arg0: i32, %arg1: memref<32x8xf32, #tpu.memory_space<vmem>>, %arg2: memref<1x8xf32, #tpu.memory_space<vmem>>, %arg3: memref<1x8xf32, #tpu.memory_space<vmem>>) attributes {dimension_semantics = [#tpu.dimension_semantics<arbitrary>], iteration_bounds = array<i64: 1>, scalar_prefetch = 0 : i64, scratch_operands = 0 : i64, tpu.core_type = #tpu.core_type<tc>, window_params = [{transform_indices = @transform_0, window_bounds = array<i64: 32, 8>}, {pipeline_mode = #tpu.pipeline_mode<synchronous>, transform_indices = @transform_1, window_bounds = array<i64: 1, 8>}, {pipeline_mode = #tpu.pipeline_mode<synchronous>, transform_indices = @transform_2, window_bounds = array<i64: 1, 8>}]} {
    %c0_i32 = arith.constant 0 : i32
    %0 = arith.cmpi eq, %arg0, %c0_i32 : i32
    %1 = arith.extui %0 : i1 to i32
    %c0_i32_0 = arith.constant 0 : i32
    %2 = arith.cmpi ne, %1, %c0_i32_0 : i32
    scf.if %2 {
      %cst_13 = arith.constant 0.000000e+00 : f32
      %23 = vector.broadcast %cst_13 : f32 to vector<1x8xf32>
      %c0_14 = arith.constant 0 : index
      %c0_15 = arith.constant 0 : index
      %24 = vector.load %arg2[%c0_14, %c0_15] : memref<1x8xf32, #tpu.memory_space<vmem>>, vector<1x8xf32>
      tpu.vector_store %arg2[%c0_14, %c0_15], %23 {strides = array<i32>} : memref<1x8xf32, #tpu.memory_space<vmem>>, vector<1x8xf32>,
      %cst_16 = arith.constant 0.000000e+00 : f32
      %25 = vector.broadcast %cst_16 : f32 to vector<1x8xf32>
      %c0_17 = arith.constant 0 : index
      %c0_18 = arith.constant 0 : index
      %26 = vector.load %arg3[%c0_17, %c0_18] : memref<1x8xf32, #tpu.memory_space<vmem>>, vector<1x8xf32>
      tpu.vector_store %arg3[%c0_17, %c0_18], %25 {strides = array<i32>} : memref<1x8xf32, #tpu.memory_space<vmem>>, vector<1x8xf32>,
    } else {
    }
    %c0 = arith.constant 0 : index
    %c0_1 = arith.constant 0 : index
    %3 = vector.load %arg1[%c0, %c0_1] : memref<32x8xf32, #tpu.memory_space<vmem>>, vector<32x8xf32>
    %4 = tpu.iota {dimensions = array<i32: 0>} : vector<32x8xi32>
    %c32_i32 = arith.constant 32 : i32
    %5 = arith.muli %arg0, %c32_i32 : i32
    %6 = vector.broadcast %5 : i32 to vector<32x8xi32>
    %7 = arith.addi %4, %6 : vector<32x8xi32>
    %c32_i32_2 = arith.constant 32 : i32
    %8 = vector.broadcast %c32_i32_2 : i32 to vector<32x8xi32>
    %9 = arith.cmpi slt, %7, %8 : vector<32x8xi32>
    %cst = arith.constant 0.000000e+00 : f32
    %10 = vector.broadcast %cst : f32 to vector<32x8xf32>
    %11 = arith.select %9, %3, %10 : vector<32x8xi1>, vector<32x8xf32>
    %c0_3 = arith.constant 0 : index
    %c0_4 = arith.constant 0 : index
    %12 = vector.load %arg2[%c0_3, %c0_4] : memref<1x8xf32, #tpu.memory_space<vmem>>, vector<1x8xf32>
    %cst_5 = arith.constant dense<0.000000e+00> : vector<8xf32>
    %13 = vector.multi_reduction <add>, %11, %cst_5 [0] : vector<32x8xf32> to vector<8xf32>
    %14 = vector.shape_cast %13 : vector<8xf32> to vector<1x8xf32>
    %15 = arith.addf %12, %14 : vector<1x8xf32>
    %c0_6 = arith.constant 0 : index
    %c0_7 = arith.constant 0 : index
    %16 = vector.load %arg2[%c0_6, %c0_7] : memref<1x8xf32, #tpu.memory_space<vmem>>, vector<1x8xf32>
    tpu.vector_store %arg2[%c0_6, %c0_7], %15 {strides = array<i32>} : memref<1x8xf32, #tpu.memory_space<vmem>>, vector<1x8xf32>,
    %c0_8 = arith.constant 0 : index
    %c0_9 = arith.constant 0 : index
    %17 = vector.load %arg3[%c0_8, %c0_9] : memref<1x8xf32, #tpu.memory_space<vmem>>, vector<1x8xf32>
    %18 = arith.mulf %11, %11 : vector<32x8xf32>
    %cst_10 = arith.constant dense<0.000000e+00> : vector<8xf32>
    %19 = vector.multi_reduction <add>, %18, %cst_10 [0] : vector<32x8xf32> to vector<8xf32>
    %20 = vector.shape_cast %19 : vector<8xf32> to vector<1x8xf32>
    %21 = arith.addf %17, %20 : vector<1x8xf32>
    %c0_11 = arith.constant 0 : index
    %c0_12 = arith.constant 0 : index
    %22 = vector.load %arg3[%c0_11, %c0_12] : memref<1x8xf32, #tpu.memory_space<vmem>>, vector<1x8xf32>
    tpu.vector_store %arg3[%c0_11, %c0_12], %21 {strides = array<i32>} : memref<1x8xf32, #tpu.memory_space<vmem>>, vector<1x8xf32>,
    return
  }
  func.func @transform_0(%arg0: i32) -> (i32, i32) {
    %c0_i32 = arith.constant 0 : i32
    %c0_i32_0 = arith.constant 0 : i32
    return %arg0, %c0_i32 : i32, i32
  }
  func.func @transform_1(%arg0: i32) -> (i32, i32) {
    %c0_i32 = arith.constant 0 : i32
    %c0_i32_0 = arith.constant 0 : i32
    %c0_i32_1 = arith.constant 0 : i32
    return %c0_i32, %c0_i32_0 : i32, i32
  }
  func.func @transform_2(%arg0: i32) -> (i32, i32) {
    %c0_i32 = arith.constant 0 : i32
    %c0_i32_0 = arith.constant 0 : i32
    %c0_i32_1 = arith.constant 0 : i32
    return %c0_i32, %c0_i32_0 : i32, i32
  }
}

module attributes {stable_mosaic.version = 11 : i64} {
  func.func @_bn_relu_conv3x3_kernel(%arg0: i32, %arg1: memref<1x42x16xf32, #tpu.memory_space<vmem>>, %arg2: memref<1x16xf32, #tpu.memory_space<vmem>>, %arg3: memref<1x16xf32, #tpu.memory_space<vmem>>, %arg4: memref<42x1xf32, #tpu.memory_space<vmem>>, %arg5: memref<9x16x8xf32, #tpu.memory_space<vmem>>, %arg6: memref<1x24x8xf32, #tpu.memory_space<vmem>>) attributes {dimension_semantics = [#tpu.dimension_semantics<parallel>], iteration_bounds = array<i64: 2>, scalar_prefetch = 0 : i64, scratch_operands = 0 : i64, tpu.core_type = #tpu.core_type<tc>, window_params = [{transform_indices = @transform_0, window_bounds = array<i64: 1, 42, 16>}, {pipeline_mode = #tpu.pipeline_mode<synchronous>, transform_indices = @transform_1, window_bounds = array<i64: 1, 16>}, {pipeline_mode = #tpu.pipeline_mode<synchronous>, transform_indices = @transform_2, window_bounds = array<i64: 1, 16>}, {pipeline_mode = #tpu.pipeline_mode<synchronous>, transform_indices = @transform_3, window_bounds = array<i64: 42, 1>}, {pipeline_mode = #tpu.pipeline_mode<synchronous>, transform_indices = @transform_4, window_bounds = array<i64: 9, 16, 8>}, {transform_indices = @transform_5, window_bounds = array<i64: 1, 24, 8>}]} {
    %c0 = arith.constant 0 : index
    %c0_0 = arith.constant 0 : index
    %0 = vector.load %arg2[%c0, %c0_0] : memref<1x16xf32, #tpu.memory_space<vmem>>, vector<1x16xf32>
    %c0_1 = arith.constant 0 : index
    %c0_2 = arith.constant 0 : index
    %1 = vector.load %arg3[%c0_1, %c0_2] : memref<1x16xf32, #tpu.memory_space<vmem>>, vector<1x16xf32>
    %c0_3 = arith.constant 0 : index
    %c0_4 = arith.constant 0 : index
    %c0_5 = arith.constant 0 : index
    %2 = vector.load %arg1[%c0_3, %c0_4, %c0_5] : memref<1x42x16xf32, #tpu.memory_space<vmem>>, vector<1x24x16xf32>
    %3 = vector.shape_cast %2 : vector<1x24x16xf32> to vector<24x16xf32>
    %c0_6 = arith.constant 0 : index
    %c0_7 = arith.constant 0 : index
    %4 = vector.load %arg4[%c0_6, %c0_7] : memref<42x1xf32, #tpu.memory_space<vmem>>, vector<24x1xf32>
    %5 = vector.broadcast %0 : vector<1x16xf32> to vector<24x16xf32>
    %6 = arith.mulf %3, %5 : vector<24x16xf32>
    %7 = vector.broadcast %1 : vector<1x16xf32> to vector<24x16xf32>
    %8 = arith.addf %6, %7 : vector<24x16xf32>
    %cst = arith.constant 0.000000e+00 : f32
    %9 = vector.broadcast %cst : f32 to vector<24x16xf32>
    %10 = arith.maximumf %8, %9 : vector<24x16xf32>
    %11 = vector.broadcast %4 : vector<24x1xf32> to vector<24x16xf32>
    %12 = arith.mulf %10, %11 : vector<24x16xf32>
    %c0_8 = arith.constant 0 : index
    %c0_9 = arith.constant 0 : index
    %c0_10 = arith.constant 0 : index
    %13 = vector.load %arg5[%c0_8, %c0_9, %c0_10] : memref<9x16x8xf32, #tpu.memory_space<vmem>>, vector<1x16x8xf32>
    %14 = vector.shape_cast %13 : vector<1x16x8xf32> to vector<16x8xf32>
    %cst_11 = arith.constant dense<0.000000e+00> : vector<24x8xf32>
    %15 = tpu.matmul %12, %14, %cst_11 {dimension_numbers = #tpu.dot_dimension_numbers<[1], [0], [0], [1], [0, 0, 1, 1], [], []>} : vector<24x16xf32>, vector<16x8xf32>, vector<24x8xf32> -> vector<24x8xf32>
    %c0_12 = arith.constant 0 : index
    %c1 = arith.constant 1 : index
    %c0_13 = arith.constant 0 : index
    %16 = vector.load %arg1[%c0_12, %c1, %c0_13] : memref<1x42x16xf32, #tpu.memory_space<vmem>>, vector<1x24x16xf32>
    %17 = vector.shape_cast %16 : vector<1x24x16xf32> to vector<24x16xf32>
    %c1_14 = arith.constant 1 : index
    %c0_15 = arith.constant 0 : index
    %18 = vector.load %arg4[%c1_14, %c0_15] : memref<42x1xf32, #tpu.memory_space<vmem>>, vector<24x1xf32>
    %19 = vector.broadcast %0 : vector<1x16xf32> to vector<24x16xf32>
    %20 = arith.mulf %17, %19 : vector<24x16xf32>
    %21 = vector.broadcast %1 : vector<1x16xf32> to vector<24x16xf32>
    %22 = arith.addf %20, %21 : vector<24x16xf32>
    %cst_16 = arith.constant 0.000000e+00 : f32
    %23 = vector.broadcast %cst_16 : f32 to vector<24x16xf32>
    %24 = arith.maximumf %22, %23 : vector<24x16xf32>
    %25 = vector.broadcast %18 : vector<24x1xf32> to vector<24x16xf32>
    %26 = arith.mulf %24, %25 : vector<24x16xf32>
    %c1_17 = arith.constant 1 : index
    %c0_18 = arith.constant 0 : index
    %c0_19 = arith.constant 0 : index
    %27 = vector.load %arg5[%c1_17, %c0_18, %c0_19] : memref<9x16x8xf32, #tpu.memory_space<vmem>>, vector<1x16x8xf32>
    %28 = vector.shape_cast %27 : vector<1x16x8xf32> to vector<16x8xf32>
    %cst_20 = arith.constant dense<0.000000e+00> : vector<24x8xf32>
    %29 = tpu.matmul %26, %28, %cst_20 {dimension_numbers = #tpu.dot_dimension_numbers<[1], [0], [0], [1], [0, 0, 1, 1], [], []>} : vector<24x16xf32>, vector<16x8xf32>, vector<24x8xf32> -> vector<24x8xf32>
    %30 = arith.addf %15, %29 : vector<24x8xf32>
    %c0_21 = arith.constant 0 : index
    %c2 = arith.constant 2 : index
    %c0_22 = arith.constant 0 : index
    %31 = vector.load %arg1[%c0_21, %c2, %c0_22] : memref<1x42x16xf32, #tpu.memory_space<vmem>>, vector<1x24x16xf32>
    %32 = vector.shape_cast %31 : vector<1x24x16xf32> to vector<24x16xf32>
    %c2_23 = arith.constant 2 : index
    %c0_24 = arith.constant 0 : index
    %33 = vector.load %arg4[%c2_23, %c0_24] : memref<42x1xf32, #tpu.memory_space<vmem>>, vector<24x1xf32>
    %34 = vector.broadcast %0 : vector<1x16xf32> to vector<24x16xf32>
    %35 = arith.mulf %32, %34 : vector<24x16xf32>
    %36 = vector.broadcast %1 : vector<1x16xf32> to vector<24x16xf32>
    %37 = arith.addf %35, %36 : vector<24x16xf32>
    %cst_25 = arith.constant 0.000000e+00 : f32
    %38 = vector.broadcast %cst_25 : f32 to vector<24x16xf32>
    %39 = arith.maximumf %37, %38 : vector<24x16xf32>
    %40 = vector.broadcast %33 : vector<24x1xf32> to vector<24x16xf32>
    %41 = arith.mulf %39, %40 : vector<24x16xf32>
    %c2_26 = arith.constant 2 : index
    %c0_27 = arith.constant 0 : index
    %c0_28 = arith.constant 0 : index
    %42 = vector.load %arg5[%c2_26, %c0_27, %c0_28] : memref<9x16x8xf32, #tpu.memory_space<vmem>>, vector<1x16x8xf32>
    %43 = vector.shape_cast %42 : vector<1x16x8xf32> to vector<16x8xf32>
    %cst_29 = arith.constant dense<0.000000e+00> : vector<24x8xf32>
    %44 = tpu.matmul %41, %43, %cst_29 {dimension_numbers = #tpu.dot_dimension_numbers<[1], [0], [0], [1], [0, 0, 1, 1], [], []>} : vector<24x16xf32>, vector<16x8xf32>, vector<24x8xf32> -> vector<24x8xf32>
    %45 = arith.addf %30, %44 : vector<24x8xf32>
    %c0_30 = arith.constant 0 : index
    %c6 = arith.constant 6 : index
    %c0_31 = arith.constant 0 : index
    %46 = vector.load %arg1[%c0_30, %c6, %c0_31] : memref<1x42x16xf32, #tpu.memory_space<vmem>>, vector<1x24x16xf32>
    %47 = vector.shape_cast %46 : vector<1x24x16xf32> to vector<24x16xf32>
    %c6_32 = arith.constant 6 : index
    %c0_33 = arith.constant 0 : index
    %48 = vector.load %arg4[%c6_32, %c0_33] : memref<42x1xf32, #tpu.memory_space<vmem>>, vector<24x1xf32>
    %49 = vector.broadcast %0 : vector<1x16xf32> to vector<24x16xf32>
    %50 = arith.mulf %47, %49 : vector<24x16xf32>
    %51 = vector.broadcast %1 : vector<1x16xf32> to vector<24x16xf32>
    %52 = arith.addf %50, %51 : vector<24x16xf32>
    %cst_34 = arith.constant 0.000000e+00 : f32
    %53 = vector.broadcast %cst_34 : f32 to vector<24x16xf32>
    %54 = arith.maximumf %52, %53 : vector<24x16xf32>
    %55 = vector.broadcast %48 : vector<24x1xf32> to vector<24x16xf32>
    %56 = arith.mulf %54, %55 : vector<24x16xf32>
    %c3 = arith.constant 3 : index
    %c0_35 = arith.constant 0 : index
    %c0_36 = arith.constant 0 : index
    %57 = vector.load %arg5[%c3, %c0_35, %c0_36] : memref<9x16x8xf32, #tpu.memory_space<vmem>>, vector<1x16x8xf32>
    %58 = vector.shape_cast %57 : vector<1x16x8xf32> to vector<16x8xf32>
    %cst_37 = arith.constant dense<0.000000e+00> : vector<24x8xf32>
    %59 = tpu.matmul %56, %58, %cst_37 {dimension_numbers = #tpu.dot_dimension_numbers<[1], [0], [0], [1], [0, 0, 1, 1], [], []>} : vector<24x16xf32>, vector<16x8xf32>, vector<24x8xf32> -> vector<24x8xf32>
    %60 = arith.addf %45, %59 : vector<24x8xf32>
    %c0_38 = arith.constant 0 : index
    %c7 = arith.constant 7 : index
    %c0_39 = arith.constant 0 : index
    %61 = vector.load %arg1[%c0_38, %c7, %c0_39] : memref<1x42x16xf32, #tpu.memory_space<vmem>>, vector<1x24x16xf32>
    %62 = vector.shape_cast %61 : vector<1x24x16xf32> to vector<24x16xf32>
    %c7_40 = arith.constant 7 : index
    %c0_41 = arith.constant 0 : index
    %63 = vector.load %arg4[%c7_40, %c0_41] : memref<42x1xf32, #tpu.memory_space<vmem>>, vector<24x1xf32>
    %64 = vector.broadcast %0 : vector<1x16xf32> to vector<24x16xf32>
    %65 = arith.mulf %62, %64 : vector<24x16xf32>
    %66 = vector.broadcast %1 : vector<1x16xf32> to vector<24x16xf32>
    %67 = arith.addf %65, %66 : vector<24x16xf32>
    %cst_42 = arith.constant 0.000000e+00 : f32
    %68 = vector.broadcast %cst_42 : f32 to vector<24x16xf32>
    %69 = arith.maximumf %67, %68 : vector<24x16xf32>
    %70 = vector.broadcast %63 : vector<24x1xf32> to vector<24x16xf32>
    %71 = arith.mulf %69, %70 : vector<24x16xf32>
    %c4 = arith.constant 4 : index
    %c0_43 = arith.constant 0 : index
    %c0_44 = arith.constant 0 : index
    %72 = vector.load %arg5[%c4, %c0_43, %c0_44] : memref<9x16x8xf32, #tpu.memory_space<vmem>>, vector<1x16x8xf32>
    %73 = vector.shape_cast %72 : vector<1x16x8xf32> to vector<16x8xf32>
    %cst_45 = arith.constant dense<0.000000e+00> : vector<24x8xf32>
    %74 = tpu.matmul %71, %73, %cst_45 {dimension_numbers = #tpu.dot_dimension_numbers<[1], [0], [0], [1], [0, 0, 1, 1], [], []>} : vector<24x16xf32>, vector<16x8xf32>, vector<24x8xf32> -> vector<24x8xf32>
    %75 = arith.addf %60, %74 : vector<24x8xf32>
    %c0_46 = arith.constant 0 : index
    %c8 = arith.constant 8 : index
    %c0_47 = arith.constant 0 : index
    %76 = vector.load %arg1[%c0_46, %c8, %c0_47] : memref<1x42x16xf32, #tpu.memory_space<vmem>>, vector<1x24x16xf32>
    %77 = vector.shape_cast %76 : vector<1x24x16xf32> to vector<24x16xf32>
    %c8_48 = arith.constant 8 : index
    %c0_49 = arith.constant 0 : index
    %78 = vector.load %arg4[%c8_48, %c0_49] : memref<42x1xf32, #tpu.memory_space<vmem>>, vector<24x1xf32>
    %79 = vector.broadcast %0 : vector<1x16xf32> to vector<24x16xf32>
    %80 = arith.mulf %77, %79 : vector<24x16xf32>
    %81 = vector.broadcast %1 : vector<1x16xf32> to vector<24x16xf32>
    %82 = arith.addf %80, %81 : vector<24x16xf32>
    %cst_50 = arith.constant 0.000000e+00 : f32
    %83 = vector.broadcast %cst_50 : f32 to vector<24x16xf32>
    %84 = arith.maximumf %82, %83 : vector<24x16xf32>
    %85 = vector.broadcast %78 : vector<24x1xf32> to vector<24x16xf32>
    %86 = arith.mulf %84, %85 : vector<24x16xf32>
    %c5 = arith.constant 5 : index
    %c0_51 = arith.constant 0 : index
    %c0_52 = arith.constant 0 : index
    %87 = vector.load %arg5[%c5, %c0_51, %c0_52] : memref<9x16x8xf32, #tpu.memory_space<vmem>>, vector<1x16x8xf32>
    %88 = vector.shape_cast %87 : vector<1x16x8xf32> to vector<16x8xf32>
    %cst_53 = arith.constant dense<0.000000e+00> : vector<24x8xf32>
    %89 = tpu.matmul %86, %88, %cst_53 {dimension_numbers = #tpu.dot_dimension_numbers<[1], [0], [0], [1], [0, 0, 1, 1], [], []>} : vector<24x16xf32>, vector<16x8xf32>, vector<24x8xf32> -> vector<24x8xf32>
    %90 = arith.addf %75, %89 : vector<24x8xf32>
    %c0_54 = arith.constant 0 : index
    %c12 = arith.constant 12 : index
    %c0_55 = arith.constant 0 : index
    %91 = vector.load %arg1[%c0_54, %c12, %c0_55] : memref<1x42x16xf32, #tpu.memory_space<vmem>>, vector<1x24x16xf32>
    %92 = vector.shape_cast %91 : vector<1x24x16xf32> to vector<24x16xf32>
    %c12_56 = arith.constant 12 : index
    %c0_57 = arith.constant 0 : index
    %93 = vector.load %arg4[%c12_56, %c0_57] : memref<42x1xf32, #tpu.memory_space<vmem>>, vector<24x1xf32>
    %94 = vector.broadcast %0 : vector<1x16xf32> to vector<24x16xf32>
    %95 = arith.mulf %92, %94 : vector<24x16xf32>
    %96 = vector.broadcast %1 : vector<1x16xf32> to vector<24x16xf32>
    %97 = arith.addf %95, %96 : vector<24x16xf32>
    %cst_58 = arith.constant 0.000000e+00 : f32
    %98 = vector.broadcast %cst_58 : f32 to vector<24x16xf32>
    %99 = arith.maximumf %97, %98 : vector<24x16xf32>
    %100 = vector.broadcast %93 : vector<24x1xf32> to vector<24x16xf32>
    %101 = arith.mulf %99, %100 : vector<24x16xf32>
    %c6_59 = arith.constant 6 : index
    %c0_60 = arith.constant 0 : index
    %c0_61 = arith.constant 0 : index
    %102 = vector.load %arg5[%c6_59, %c0_60, %c0_61] : memref<9x16x8xf32, #tpu.memory_space<vmem>>, vector<1x16x8xf32>
    %103 = vector.shape_cast %102 : vector<1x16x8xf32> to vector<16x8xf32>
    %cst_62 = arith.constant dense<0.000000e+00> : vector<24x8xf32>
    %104 = tpu.matmul %101, %103, %cst_62 {dimension_numbers = #tpu.dot_dimension_numbers<[1], [0], [0], [1], [0, 0, 1, 1], [], []>} : vector<24x16xf32>, vector<16x8xf32>, vector<24x8xf32> -> vector<24x8xf32>
    %105 = arith.addf %90, %104 : vector<24x8xf32>
    %c0_63 = arith.constant 0 : index
    %c13 = arith.constant 13 : index
    %c0_64 = arith.constant 0 : index
    %106 = vector.load %arg1[%c0_63, %c13, %c0_64] : memref<1x42x16xf32, #tpu.memory_space<vmem>>, vector<1x24x16xf32>
    %107 = vector.shape_cast %106 : vector<1x24x16xf32> to vector<24x16xf32>
    %c13_65 = arith.constant 13 : index
    %c0_66 = arith.constant 0 : index
    %108 = vector.load %arg4[%c13_65, %c0_66] : memref<42x1xf32, #tpu.memory_space<vmem>>, vector<24x1xf32>
    %109 = vector.broadcast %0 : vector<1x16xf32> to vector<24x16xf32>
    %110 = arith.mulf %107, %109 : vector<24x16xf32>
    %111 = vector.broadcast %1 : vector<1x16xf32> to vector<24x16xf32>
    %112 = arith.addf %110, %111 : vector<24x16xf32>
    %cst_67 = arith.constant 0.000000e+00 : f32
    %113 = vector.broadcast %cst_67 : f32 to vector<24x16xf32>
    %114 = arith.maximumf %112, %113 : vector<24x16xf32>
    %115 = vector.broadcast %108 : vector<24x1xf32> to vector<24x16xf32>
    %116 = arith.mulf %114, %115 : vector<24x16xf32>
    %c7_68 = arith.constant 7 : index
    %c0_69 = arith.constant 0 : index
    %c0_70 = arith.constant 0 : index
    %117 = vector.load %arg5[%c7_68, %c0_69, %c0_70] : memref<9x16x8xf32, #tpu.memory_space<vmem>>, vector<1x16x8xf32>
    %118 = vector.shape_cast %117 : vector<1x16x8xf32> to vector<16x8xf32>
    %cst_71 = arith.constant dense<0.000000e+00> : vector<24x8xf32>
    %119 = tpu.matmul %116, %118, %cst_71 {dimension_numbers = #tpu.dot_dimension_numbers<[1], [0], [0], [1], [0, 0, 1, 1], [], []>} : vector<24x16xf32>, vector<16x8xf32>, vector<24x8xf32> -> vector<24x8xf32>
    %120 = arith.addf %105, %119 : vector<24x8xf32>
    %c0_72 = arith.constant 0 : index
    %c14 = arith.constant 14 : index
    %c0_73 = arith.constant 0 : index
    %121 = vector.load %arg1[%c0_72, %c14, %c0_73] : memref<1x42x16xf32, #tpu.memory_space<vmem>>, vector<1x24x16xf32>
    %122 = vector.shape_cast %121 : vector<1x24x16xf32> to vector<24x16xf32>
    %c14_74 = arith.constant 14 : index
    %c0_75 = arith.constant 0 : index
    %123 = vector.load %arg4[%c14_74, %c0_75] : memref<42x1xf32, #tpu.memory_space<vmem>>, vector<24x1xf32>
    %124 = vector.broadcast %0 : vector<1x16xf32> to vector<24x16xf32>
    %125 = arith.mulf %122, %124 : vector<24x16xf32>
    %126 = vector.broadcast %1 : vector<1x16xf32> to vector<24x16xf32>
    %127 = arith.addf %125, %126 : vector<24x16xf32>
    %cst_76 = arith.constant 0.000000e+00 : f32
    %128 = vector.broadcast %cst_76 : f32 to vector<24x16xf32>
    %129 = arith.maximumf %127, %128 : vector<24x16xf32>
    %130 = vector.broadcast %123 : vector<24x1xf32> to vector<24x16xf32>
    %131 = arith.mulf %129, %130 : vector<24x16xf32>
    %c8_77 = arith.constant 8 : index
    %c0_78 = arith.constant 0 : index
    %c0_79 = arith.constant 0 : index
    %132 = vector.load %arg5[%c8_77, %c0_78, %c0_79] : memref<9x16x8xf32, #tpu.memory_space<vmem>>, vector<1x16x8xf32>
    %133 = vector.shape_cast %132 : vector<1x16x8xf32> to vector<16x8xf32>
    %cst_80 = arith.constant dense<0.000000e+00> : vector<24x8xf32>
    %134 = tpu.matmul %131, %133, %cst_80 {dimension_numbers = #tpu.dot_dimension_numbers<[1], [0], [0], [1], [0, 0, 1, 1], [], []>} : vector<24x16xf32>, vector<16x8xf32>, vector<24x8xf32> -> vector<24x8xf32>
    %135 = arith.addf %120, %134 : vector<24x8xf32>
    %c0_81 = arith.constant 0 : index
    %c0_82 = arith.constant 0 : index
    %c0_83 = arith.constant 0 : index
    %136 = vector.load %arg6[%c0_81, %c0_82, %c0_83] : memref<1x24x8xf32, #tpu.memory_space<vmem>>, vector<1x24x8xf32>
    %137 = vector.shape_cast %136 : vector<1x24x8xf32> to vector<24x8xf32>
    %138 = vector.shape_cast %135 : vector<24x8xf32> to vector<1x24x8xf32>
    tpu.vector_store %arg6[%c0_81, %c0_82, %c0_83], %138 {strides = array<i32>} : memref<1x24x8xf32, #tpu.memory_space<vmem>>, vector<1x24x8xf32>,
    return
  }
  func.func @transform_0(%arg0: i32) -> (i32, i32, i32) {
    %c0_i32 = arith.constant 0 : i32
    %c0_i32_0 = arith.constant 0 : i32
    %c0_i32_1 = arith.constant 0 : i32
    return %arg0, %c0_i32, %c0_i32_0 : i32, i32, i32
  }
  func.func @transform_1(%arg0: i32) -> (i32, i32) {
    %c0_i32 = arith.constant 0 : i32
    %c0_i32_0 = arith.constant 0 : i32
    %c0_i32_1 = arith.constant 0 : i32
    return %c0_i32, %c0_i32_0 : i32, i32
  }
  func.func @transform_2(%arg0: i32) -> (i32, i32) {
    %c0_i32 = arith.constant 0 : i32
    %c0_i32_0 = arith.constant 0 : i32
    %c0_i32_1 = arith.constant 0 : i32
    return %c0_i32, %c0_i32_0 : i32, i32
  }
  func.func @transform_3(%arg0: i32) -> (i32, i32) {
    %c0_i32 = arith.constant 0 : i32
    %c0_i32_0 = arith.constant 0 : i32
    %c0_i32_1 = arith.constant 0 : i32
    return %c0_i32, %c0_i32_0 : i32, i32
  }
  func.func @transform_4(%arg0: i32) -> (i32, i32, i32) {
    %c0_i32 = arith.constant 0 : i32
    %c0_i32_0 = arith.constant 0 : i32
    %c0_i32_1 = arith.constant 0 : i32
    %c0_i32_2 = arith.constant 0 : i32
    return %c0_i32, %c0_i32_0, %c0_i32_1 : i32, i32, i32
  }
  func.func @transform_5(%arg0: i32) -> (i32, i32, i32) {
    %c0_i32 = arith.constant 0 : i32
    %c0_i32_0 = arith.constant 0 : i32
    %c0_i32_1 = arith.constant 0 : i32
    return %arg0, %c0_i32, %c0_i32_0 : i32, i32, i32
  }
}

module attributes {stable_mosaic.version = 11 : i64} {
  func.func @_fused_matmul_kernel(%arg0: i32, %arg1: i32, %arg2: memref<32x8xf32, #tpu.memory_space<vmem>>, %arg3: memref<1x8xf32, #tpu.memory_space<vmem>>, %arg4: memref<1x8xf32, #tpu.memory_space<vmem>>, %arg5: memref<8x16xf32, #tpu.memory_space<vmem>>, %arg6: memref<32x16xf32, #tpu.memory_space<vmem>>, %arg7: memref<32x16xf32, #tpu.memory_space<vmem>>) attributes {dimension_semantics = [#tpu.dimension_semantics<parallel>, #tpu.dimension_semantics<arbitrary>], iteration_bounds = array<i64: 1, 1>, scalar_prefetch = 0 : i64, scratch_operands = 1 : i64, tpu.core_type = #tpu.core_type<tc>, window_params = [{transform_indices = @transform_0, window_bounds = array<i64: 32, 8>}, {transform_indices = @transform_1, window_bounds = array<i64: 1, 8>}, {transform_indices = @transform_2, window_bounds = array<i64: 1, 8>}, {transform_indices = @transform_3, window_bounds = array<i64: 8, 16>}, {transform_indices = @transform_4, window_bounds = array<i64: 32, 16>}]} {
    %c0_i32 = arith.constant 0 : i32
    %0 = arith.cmpi eq, %arg1, %c0_i32 : i32
    %1 = arith.extui %0 : i1 to i32
    %c0_i32_0 = arith.constant 0 : i32
    %2 = arith.cmpi ne, %1, %c0_i32_0 : i32
    scf.if %2 {
      %cst_15 = arith.constant 0.000000e+00 : f32
      %20 = vector.broadcast %cst_15 : f32 to vector<32x16xf32>
      %c0_16 = arith.constant 0 : index
      %c0_17 = arith.constant 0 : index
      %21 = vector.load %arg7[%c0_16, %c0_17] : memref<32x16xf32, #tpu.memory_space<vmem>>, vector<32x16xf32>
      tpu.vector_store %arg7[%c0_16, %c0_17], %20 {strides = array<i32>} : memref<32x16xf32, #tpu.memory_space<vmem>>, vector<32x16xf32>,
    } else {
    }
    %c0 = arith.constant 0 : index
    %c0_1 = arith.constant 0 : index
    %3 = vector.load %arg2[%c0, %c0_1] : memref<32x8xf32, #tpu.memory_space<vmem>>, vector<32x8xf32>
    %c0_2 = arith.constant 0 : index
    %c0_3 = arith.constant 0 : index
    %4 = vector.load %arg3[%c0_2, %c0_3] : memref<1x8xf32, #tpu.memory_space<vmem>>, vector<1x8xf32>
    %5 = vector.broadcast %4 : vector<1x8xf32> to vector<32x8xf32>
    %6 = arith.mulf %3, %5 : vector<32x8xf32>
    %c0_4 = arith.constant 0 : index
    %c0_5 = arith.constant 0 : index
    %7 = vector.load %arg4[%c0_4, %c0_5] : memref<1x8xf32, #tpu.memory_space<vmem>>, vector<1x8xf32>
    %8 = vector.broadcast %7 : vector<1x8xf32> to vector<32x8xf32>
    %9 = arith.addf %6, %8 : vector<32x8xf32>
    %cst = arith.constant 0.000000e+00 : f32
    %10 = vector.broadcast %cst : f32 to vector<32x8xf32>
    %11 = arith.maximumf %9, %10 : vector<32x8xf32>
    %c0_6 = arith.constant 0 : index
    %c0_7 = arith.constant 0 : index
    %12 = vector.load %arg7[%c0_6, %c0_7] : memref<32x16xf32, #tpu.memory_space<vmem>>, vector<32x16xf32>
    %c0_8 = arith.constant 0 : index
    %c0_9 = arith.constant 0 : index
    %13 = vector.load %arg5[%c0_8, %c0_9] : memref<8x16xf32, #tpu.memory_space<vmem>>, vector<8x16xf32>
    %cst_10 = arith.constant dense<0.000000e+00> : vector<32x16xf32>
    %14 = tpu.matmul %11, %13, %cst_10 {dimension_numbers = #tpu.dot_dimension_numbers<[1], [0], [0], [1], [0, 0, 1, 1], [], []>} : vector<32x8xf32>, vector<8x16xf32>, vector<32x16xf32> -> vector<32x16xf32>
    %15 = arith.addf %12, %14 : vector<32x16xf32>
    %c0_11 = arith.constant 0 : index
    %c0_12 = arith.constant 0 : index
    %16 = vector.load %arg7[%c0_11, %c0_12] : memref<32x16xf32, #tpu.memory_space<vmem>>, vector<32x16xf32>
    tpu.vector_store %arg7[%c0_11, %c0_12], %15 {strides = array<i32>} : memref<32x16xf32, #tpu.memory_space<vmem>>, vector<32x16xf32>,
    %c0_i32_13 = arith.constant 0 : i32
    %17 = arith.cmpi eq, %arg1, %c0_i32_13 : i32
    %18 = arith.extui %17 : i1 to i32
    %c0_i32_14 = arith.constant 0 : i32
    %19 = arith.cmpi ne, %18, %c0_i32_14 : i32
    scf.if %19 {
      %c0_15 = arith.constant 0 : index
      %c0_16 = arith.constant 0 : index
      %20 = vector.load %arg7[%c0_15, %c0_16] : memref<32x16xf32, #tpu.memory_space<vmem>>, vector<32x16xf32>
      %c0_17 = arith.constant 0 : index
      %c0_18 = arith.constant 0 : index
      %21 = vector.load %arg6[%c0_17, %c0_18] : memref<32x16xf32, #tpu.memory_space<vmem>>, vector<32x16xf32>
      tpu.vector_store %arg6[%c0_17, %c0_18], %20 {strides = array<i32>} : memref<32x16xf32, #tpu.memory_space<vmem>>, vector<32x16xf32>,
    } else {
    }
    return
  }
  func.func @transform_0(%arg0: i32, %arg1: i32) -> (i32, i32) {
    %c0_i32 = arith.constant 0 : i32
    return %arg0, %arg1 : i32, i32
  }
  func.func @transform_1(%arg0: i32, %arg1: i32) -> (i32, i32) {
    %c0_i32 = arith.constant 0 : i32
    %c0_i32_0 = arith.constant 0 : i32
    return %c0_i32, %arg1 : i32, i32
  }
  func.func @transform_2(%arg0: i32, %arg1: i32) -> (i32, i32) {
    %c0_i32 = arith.constant 0 : i32
    %c0_i32_0 = arith.constant 0 : i32
    return %c0_i32, %arg1 : i32, i32
  }
  func.func @transform_3(%arg0: i32, %arg1: i32) -> (i32, i32) {
    %c0_i32 = arith.constant 0 : i32
    %c0_i32_0 = arith.constant 0 : i32
    return %arg1, %c0_i32 : i32, i32
  }
  func.func @transform_4(%arg0: i32, %arg1: i32) -> (i32, i32) {
    %c0_i32 = arith.constant 0 : i32
    %c0_i32_0 = arith.constant 0 : i32
    return %arg0, %c0_i32 : i32, i32
  }
}

module attributes {stable_mosaic.version = 11 : i64} {
  func.func @_bn_relu_gap_fc_kernel(%arg0: memref<32x8xf32, #tpu.memory_space<vmem>>, %arg1: memref<1x8xf32, #tpu.memory_space<vmem>>, %arg2: memref<1x8xf32, #tpu.memory_space<vmem>>, %arg3: memref<2x32xf32, #tpu.memory_space<vmem>>, %arg4: memref<8x10xf32, #tpu.memory_space<vmem>>, %arg5: memref<2x10xf32, #tpu.memory_space<vmem>>) attributes {dimension_semantics = [], scalar_prefetch = 0 : i64, scratch_operands = 0 : i64, tpu.core_type = #tpu.core_type<tc>} {
    %c0 = arith.constant 0 : index
    %c0_0 = arith.constant 0 : index
    %0 = vector.load %arg0[%c0, %c0_0] : memref<32x8xf32, #tpu.memory_space<vmem>>, vector<32x8xf32>
    %c0_1 = arith.constant 0 : index
    %c0_2 = arith.constant 0 : index
    %1 = vector.load %arg1[%c0_1, %c0_2] : memref<1x8xf32, #tpu.memory_space<vmem>>, vector<1x8xf32>
    %2 = vector.broadcast %1 : vector<1x8xf32> to vector<32x8xf32>
    %3 = arith.mulf %0, %2 : vector<32x8xf32>
    %c0_3 = arith.constant 0 : index
    %c0_4 = arith.constant 0 : index
    %4 = vector.load %arg2[%c0_3, %c0_4] : memref<1x8xf32, #tpu.memory_space<vmem>>, vector<1x8xf32>
    %5 = vector.broadcast %4 : vector<1x8xf32> to vector<32x8xf32>
    %6 = arith.addf %3, %5 : vector<32x8xf32>
    %cst = arith.constant 0.000000e+00 : f32
    %7 = vector.broadcast %cst : f32 to vector<32x8xf32>
    %8 = arith.maximumf %6, %7 : vector<32x8xf32>
    %c0_5 = arith.constant 0 : index
    %c0_6 = arith.constant 0 : index
    %9 = vector.load %arg3[%c0_5, %c0_6] : memref<2x32xf32, #tpu.memory_space<vmem>>, vector<2x32xf32>
    %cst_7 = arith.constant dense<0.000000e+00> : vector<2x8xf32>
    %10 = tpu.matmul %9, %8, %cst_7 {dimension_numbers = #tpu.dot_dimension_numbers<[1], [0], [0], [1], [0, 0, 1, 1], [], []>} : vector<2x32xf32>, vector<32x8xf32>, vector<2x8xf32> -> vector<2x8xf32>
    %c0_8 = arith.constant 0 : index
    %c0_9 = arith.constant 0 : index
    %11 = vector.load %arg4[%c0_8, %c0_9] : memref<8x10xf32, #tpu.memory_space<vmem>>, vector<8x10xf32>
    %cst_10 = arith.constant dense<0.000000e+00> : vector<2x10xf32>
    %12 = tpu.matmul %10, %11, %cst_10 {dimension_numbers = #tpu.dot_dimension_numbers<[1], [0], [0], [1], [0, 0, 1, 1], [], []>} : vector<2x8xf32>, vector<8x10xf32>, vector<2x10xf32> -> vector<2x10xf32>
    %c0_11 = arith.constant 0 : index
    %c0_12 = arith.constant 0 : index
    %13 = vector.load %arg5[%c0_11, %c0_12] : memref<2x10xf32, #tpu.memory_space<vmem>>, vector<2x10xf32>
    tpu.vector_store %arg5[%c0_11, %c0_12], %12 {strides = array<i32>} : memref<2x10xf32, #tpu.memory_space<vmem>>, vector<2x10xf32>,
    return
  }
}

module attributes {stable_mosaic.version = 11 : i64} {
  func.func @_bn_relu_gap_fc_kernel(%arg0: memref<32x16xf32, #tpu.memory_space<vmem>>, %arg1: memref<1x16xf32, #tpu.memory_space<vmem>>, %arg2: memref<1x16xf32, #tpu.memory_space<vmem>>, %arg3: memref<2x32xf32, #tpu.memory_space<vmem>>, %arg4: memref<16x10xf32, #tpu.memory_space<vmem>>, %arg5: memref<2x10xf32, #tpu.memory_space<vmem>>) attributes {dimension_semantics = [], scalar_prefetch = 0 : i64, scratch_operands = 0 : i64, tpu.core_type = #tpu.core_type<tc>} {
    %c0 = arith.constant 0 : index
    %c0_0 = arith.constant 0 : index
    %0 = vector.load %arg0[%c0, %c0_0] : memref<32x16xf32, #tpu.memory_space<vmem>>, vector<32x16xf32>
    %c0_1 = arith.constant 0 : index
    %c0_2 = arith.constant 0 : index
    %1 = vector.load %arg1[%c0_1, %c0_2] : memref<1x16xf32, #tpu.memory_space<vmem>>, vector<1x16xf32>
    %2 = vector.broadcast %1 : vector<1x16xf32> to vector<32x16xf32>
    %3 = arith.mulf %0, %2 : vector<32x16xf32>
    %c0_3 = arith.constant 0 : index
    %c0_4 = arith.constant 0 : index
    %4 = vector.load %arg2[%c0_3, %c0_4] : memref<1x16xf32, #tpu.memory_space<vmem>>, vector<1x16xf32>
    %5 = vector.broadcast %4 : vector<1x16xf32> to vector<32x16xf32>
    %6 = arith.addf %3, %5 : vector<32x16xf32>
    %cst = arith.constant 0.000000e+00 : f32
    %7 = vector.broadcast %cst : f32 to vector<32x16xf32>
    %8 = arith.maximumf %6, %7 : vector<32x16xf32>
    %c0_5 = arith.constant 0 : index
    %c0_6 = arith.constant 0 : index
    %9 = vector.load %arg3[%c0_5, %c0_6] : memref<2x32xf32, #tpu.memory_space<vmem>>, vector<2x32xf32>
    %cst_7 = arith.constant dense<0.000000e+00> : vector<2x16xf32>
    %10 = tpu.matmul %9, %8, %cst_7 {dimension_numbers = #tpu.dot_dimension_numbers<[1], [0], [0], [1], [0, 0, 1, 1], [], []>} : vector<2x32xf32>, vector<32x16xf32>, vector<2x16xf32> -> vector<2x16xf32>
    %c0_8 = arith.constant 0 : index
    %c0_9 = arith.constant 0 : index
    %11 = vector.load %arg4[%c0_8, %c0_9] : memref<16x10xf32, #tpu.memory_space<vmem>>, vector<16x10xf32>
    %cst_10 = arith.constant dense<0.000000e+00> : vector<2x10xf32>
    %12 = tpu.matmul %10, %11, %cst_10 {dimension_numbers = #tpu.dot_dimension_numbers<[1], [0], [0], [1], [0, 0, 1, 1], [], []>} : vector<2x16xf32>, vector<16x10xf32>, vector<2x10xf32> -> vector<2x10xf32>
    %c0_11 = arith.constant 0 : index
    %c0_12 = arith.constant 0 : index
    %13 = vector.load %arg5[%c0_11, %c0_12] : memref<2x10xf32, #tpu.memory_space<vmem>>, vector<2x10xf32>
    tpu.vector_store %arg5[%c0_11, %c0_12], %12 {strides = array<i32>} : memref<2x10xf32, #tpu.memory_space<vmem>>, vector<2x10xf32>,
    return
  }
}

</mosaic_0001>

<bundles_post_ra>
// kernel: densenet_forward.30
= control target key start
LH: loop header
LB: loop body
LE: loop exit
PB: predicated region body
PF: predicated region fallthrough
CT: control target
= control target key end

     0   :  { %vm14_vm0 = vcmask 122880   ;;  %vm341_vm1 = vcmask 130048   ;;  %v687_v0 = vmov 0.0   ;;  %s1577_s0 = inlined_call_operand.vmem [shape: f32[512,16], index: 0, kind: input, shape index: {}]   ;;  %s1578_s1 = inlined_call_operand.vmem [shape: f32[1,16], index: 1, kind: output, shape index: {0}]   ;;  %s1579_s2 = inlined_call_operand.vmem [shape: f32[1,16], index: 2, kind: output, shape index: {1}]  }
   0x1   :  { %15 = vst.msk [vmem:[%s1578_s1] sm:$0x1] %vm14_vm0, %v687_v0  ;;  %16 = vst.msk [vmem:[%s1579_s2] sm:$0x1] %vm14_vm0, %v687_v0  ;;  %v714_v1 = vld [vmem:[%s1577_s0] sm:$0xff]  ;;  %v719_v2 = vld [vmem:[%s1577_s0 + $0x8] sm:$0xff] }
   0x2   :  { %v724_v3 = vld [vmem:[%s1577_s0 + $0x10] sm:$0xff]  ;;  %v342_v4 = vsel %vm341_vm1, %v714_v1, 0.0  ;;  %v343_v5 = vsel %vm341_vm1, %v719_v2, 0.0  ;;  %v735_v7 = vld [vmem:[%s1577_s0 + $0x18] sm:$0xff]  ;;  %v742_v10 = vld [vmem:[%s1577_s0 + $0x20] sm:$0xff] }
   0x3   :  { %v345_v6 = vsel %vm341_vm1, %v724_v3, 0.0  ;;  %v344_v8 = vadd.f32 %v343_v5, %v342_v4  ;;  %v347_v9 = vsel %vm341_vm1, %v735_v7, 0.0  ;;  %v349_v12 = vsel %vm341_vm1, %v742_v10, 0.0  ;;  %v749_v13 = vld [vmem:[%s1577_s0 + $0x28] sm:$0xff]  ;;  %v756_v16 = vld [vmem:[%s1577_s0 + $0x30] sm:$0xff]  ;;  %v761_v18 = vld [vmem:[%s1577_s0 + $0x38] sm:$0xff] }
   0x4   :  { %v351_v15 = vsel %vm341_vm1, %v749_v13, 0.0  ;;  %v766_v19 = vld [vmem:[%s1577_s0 + $0x40] sm:$0xff]  ;;  %v353_v20 = vsel %vm341_vm1, %v756_v16, 0.0  ;;  %v773_v21 = vld [vmem:[%s1577_s0 + $0x48] sm:$0xff]  ;;  %v778_v22 = vld [vmem:[%s1577_s0 + $0x50] sm:$0xff]  ;;  %v355_v25 = vsel %vm341_vm1, %v761_v18, 0.0 }
   0x5   :  { %v346_v11 = vadd.f32 %v345_v6, %v344_v8  ;;  %v783_v23 = vld [vmem:[%s1577_s0 + $0x58] sm:$0xff]  ;;  %v357_v26 = vsel %vm341_vm1, %v766_v19, 0.0  ;;  %v792_v27 = vld [vmem:[%s1577_s0 + $0x108] sm:$0xff]  ;;  %v797_v28 = vld [vmem:[%s1577_s0 + $0x110] sm:$0xff]  ;;  %v359_v30 = vsel %vm341_vm1, %v773_v21, 0.0  ;;  %v361_v31 = vsel %vm341_vm1, %v778_v22, 0.0 }
   0x6   :  { %v802_v29 = vld [vmem:[%s1577_s0 + $0x118] sm:$0xff]  ;;  %v810_v32 = vsel %vm341_vm1, %v783_v23, 0.0  ;;  %v815_v33 = vld [vmem:[%s1577_s0 + $0x120] sm:$0xff]  ;;  %v820_v34 = vld [vmem:[%s1577_s0 + $0x128] sm:$0xff]  ;;  %v829_v37 = vsel %vm341_vm1, %v792_v27, 0.0  ;;  %v833_v38 = vsel %vm341_vm1, %v797_v28, 0.0 }
   0x7   :  { %v348_v14 = vadd.f32 %v347_v9, %v346_v11  ;;  %v825_v35 = vld [vmem:[%s1577_s0 + $0x130] sm:$0xff]  ;;  %1598 = vst [vmem:[#allocation2_spill] sm:$0xff] %v829_v37  ;;  %1599 = vst [vmem:[#allocation3_spill] sm:$0xff] %v833_v38  ;;  %v837_v39 = vsel %vm341_vm1, %v802_v29, 0.0  ;;  %v842_v40 = vld [vmem:[%s1577_s0 + $0x138] sm:$0xff]  ;;  %v856_v43 = vsel %vm341_vm1, %v815_v33, 0.0  ;;  %v481_v37 = vmul.f32 %v724_v3, %v724_v3 }
   0x8   :  { %1600 = vst [vmem:[#allocation4_spill] sm:$0xff] %v837_v39  ;;  %v847_v41 = vld [vmem:[%s1577_s0 + $0x140] sm:$0xff]  ;;  %v852_v42 = vld [vmem:[%s1577_s0 + $0x148] sm:$0xff]  ;;  %1601 = vst [vmem:[#allocation5_spill] sm:$0xff] %v856_v43  ;;  %v860_v44 = vsel %vm341_vm1, %v820_v34, 0.0  ;;  %v864_v45 = vsel %vm341_vm1, %v825_v35, 0.0 }
   0x9   :  { %v350_v17 = vadd.f32 %v349_v12, %v348_v14  ;;  %1602 = vst [vmem:[#allocation6_spill] sm:$0xff] %v860_v44  ;;  %1603 = vst [vmem:[#allocation7_spill] sm:$0xff] %v864_v45  ;;  %v869_v46 = vld [vmem:[%s1577_s0 + $0x150] sm:$0xff]  ;;  %v874_v47 = vld [vmem:[%s1577_s0 + $0x158] sm:$0xff]  ;;  %v883_v50 = vsel %vm341_vm1, %v842_v40, 0.0  ;;  %v887_v51 = vsel %vm341_vm1, %v847_v41, 0.0 }
   0xa   :  { %v879_v48 = vld [vmem:[%s1577_s0 + $0x160] sm:$0xff]  ;;  %1604 = vst [vmem:[#allocation8_spill] sm:$0xff] %v883_v50  ;;  %1605 = vst [vmem:[#allocation9_spill] sm:$0xff] %v887_v51  ;;  %v891_v52 = vsel %vm341_vm1, %v852_v42, 0.0  ;;  %v896_v53 = vld [vmem:[%s1577_s0 + $0x168] sm:$0xff]  ;;  %v910_v56 = vsel %vm341_vm1, %v869_v46, 0.0 }
   0xb   :  { %v352_v24 = vadd.f32 %v351_v15, %v350_v17  ;;  %1606 = vst [vmem:[#allocation10_spill] sm:$0xff] %v891_v52  ;;  %v901_v54 = vld [vmem:[%s1577_s0 + $0x170] sm:$0xff]  ;;  %v906_v55 = vld [vmem:[%s1577_s0 + $0x178] sm:$0xff]  ;;  %1607 = vst [vmem:[#allocation11_spill] sm:$0xff] %v910_v56  ;;  %v914_v57 = vsel %vm341_vm1, %v874_v47, 0.0  ;;  %v918_v58 = vsel %vm341_vm1, %v879_v48, 0.0 }
   0xc   :  { %1608 = vst [vmem:[#allocation12_spill] sm:$0xff] %v914_v57  ;;  %1609 = vst [vmem:[#allocation13_spill] sm:$0xff] %v918_v58  ;;  %v923_v59 = vld [vmem:[%s1577_s0 + $0x180] sm:$0xff]  ;;  %v928_v60 = vld [vmem:[%s1577_s0 + $0x188] sm:$0xff]  ;;  %v937_v63 = vsel %vm341_vm1, %v896_v53, 0.0  ;;  %v941_v0 = vsel %vm341_vm1, %v901_v54, 0.0 }
   0xd   :  { %v354_v36 = vadd.f32 %v353_v20, %v352_v24  ;;  %v933_v61 = vld [vmem:[%s1577_s0 + $0x190] sm:$0xff]  ;;  %1610 = vst [vmem:[#allocation14_spill] sm:$0xff] %v937_v63  ;;  %1611 = vst [vmem:[#allocation15_spill] sm:$0xff] %v941_v0  ;;  %v945_v4 = vsel %vm341_vm1, %v906_v55, 0.0  ;;  %v950_v5 = vld [vmem:[%s1577_s0 + $0x198] sm:$0xff]  ;;  %v964_v9 = vsel %vm341_vm1, %v923_v59, 0.0 }
   0xe   :  { %1612 = vst [vmem:[#allocation16_spill] sm:$0xff] %v945_v4  ;;  %v955_v6 = vld [vmem:[%s1577_s0 + $0x1a0] sm:$0xff]  ;;  %v960_v8 = vld [vmem:[%s1577_s0 + $0x1a8] sm:$0xff]  ;;  %1613 = vst [vmem:[#allocation17_spill] sm:$0xff] %v964_v9  ;;  %v968_v11 = vsel %vm341_vm1, %v928_v60, 0.0  ;;  %v972_v12 = vsel %vm341_vm1, %v933_v61, 0.0 }
   0xf   :  { %v356_v49 = vadd.f32 %v355_v25, %v354_v36  ;;  %1614 = vst [vmem:[#allocation18_spill] sm:$0xff] %v968_v11  ;;  %1615 = vst [vmem:[#allocation19_spill] sm:$0xff] %v972_v12  ;;  %v977_v14 = vld [vmem:[%s1577_s0 + $0x60] sm:$0xff]  ;;  %v982_v15 = vld [vmem:[%s1577_s0 + $0x1b0] sm:$0xff]  ;;  %v996_v25 = vsel %vm341_vm1, %v950_v5, 0.0  ;;  %v1004_v36 = vsel %vm341_vm1, %v960_v8, 0.0 }
  0x10   :  { %v987_v17 = vld [vmem:[%s1577_s0 + $0x1b8] sm:$0xff]  ;;  %v992_v20 = vld [vmem:[%s1577_s0 + $0x1c0] sm:$0xff]  ;;  %1616 = vst [vmem:[#allocation20_spill] sm:$0xff] %v996_v25  ;;  %1618 = vst [vmem:[#allocation22_spill] sm:$0xff] %v1004_v36 }
  0x11   :  { %v358_v62 = vadd.f32 %v357_v26, %v356_v49  ;;  %v1000_v26 = vsel %vm341_vm1, %v955_v6, 0.0  ;;  %v1009_v49 = vld [vmem:[%s1577_s0 + $0x1c8] sm:$0xff]  ;;  %v1027_v36 = vsel %vm341_vm1, %v987_v17, 0.0  ;;  %v1031_v25 = vsel %vm341_vm1, %v992_v20, 0.0  ;;  %v1036_v12 = vld [vmem:[%s1577_s0 + $0x1e0] sm:$0xff]  ;;  %v1063_v0 = vld [vmem:[%s1577_s0 + $0x1f8] sm:$0xff] }
  0x12   :  { %1617 = vst [vmem:[#allocation21_spill] sm:$0xff] %v1000_v26  ;;  %v1023_v26 = vsel %vm341_vm1, %v982_v15, 0.0  ;;  %1620 = vst [vmem:[#allocation24_spill] sm:$0xff] %v1027_v36  ;;  %v1041_v11 = vld [vmem:[%s1577_s0 + $0x1e8] sm:$0xff]  ;;  %v1050_v9 = vsel %vm341_vm1, %v1009_v49, 0.0  ;;  %v1085_v58 = vsel %vm341_vm1, %v1063_v0, 0.0 }
  0x13   :  { %v360_v24 = vadd.f32 %v359_v30, %v358_v62  ;;  %v1014_v30 = vld [vmem:[%s1577_s0 + $0x1d0] sm:$0xff]  ;;  %v1019_v62 = vld [vmem:[%s1577_s0 + $0x1d8] sm:$0xff]  ;;  %1619 = vst [vmem:[#allocation23_spill] sm:$0xff] %v1023_v26  ;;  %1621 = vst [vmem:[#allocation25_spill] sm:$0xff] %v1031_v25 }
  0x14   :  { %v1046_v26 = vld [vmem:[%s1577_s0 + $0x1f0] sm:$0xff]  ;;  %1623 = vst [vmem:[#allocation27_spill] sm:$0xff] %v1050_v9  ;;  %v1054_v25 = vsel %vm341_vm1, %v1014_v30, 0.0  ;;  %v1058_v4 = vsel %vm341_vm1, %v1019_v62, 0.0  ;;  %1626 = vst [vmem:[#allocation30_spill] sm:$0xff] %v1063_v0  ;;  %v1073_v9 = vsel %vm341_vm1, %v1041_v11, 0.0 }
  0x15   :  { %1622 = vst [vmem:[#allocation26_spill] sm:$0xff] %v1046_v26  ;;  %v362_v36 = vadd.f32 %v361_v31, %v360_v24  ;;  %1624 = vst [vmem:[#allocation28_spill] sm:$0xff] %v1054_v25  ;;  %v365_v31 = vsel %vm341_vm1, %v977_v14, 0.0  ;;  %v1069_v24 = vsel %vm341_vm1, %v1036_v12, 0.0  ;;  %v1077_v25 = vsel %vm341_vm1, %v1046_v26, 0.0  ;;  %v1114_v56 = vld [vmem:[%s1577_s0 + $0x90] sm:$0xff] }
  0x16   :  { %1625 = vst [vmem:[#allocation29_spill] sm:$0xff] %v1058_v4  ;;  %1627 = vst [vmem:[#allocation31_spill] sm:$0xff] %v1069_v24  ;;  %v30_v4 = vld [vmem:[%s1577_s0 + $0x68] sm:$0xff]  ;;  %v1119_v52 = vld [vmem:[%s1577_s0 + $0x98] sm:$0xff] }
  0x17   :  { %1628 = vst [vmem:[#allocation32_spill] sm:$0xff] %v1073_v9  ;;  %1629 = vst [vmem:[#allocation33_spill] sm:$0xff] %v1077_v25  ;;  %v364_v63 = vadd.f32 %v810_v32, %v362_v36  ;;  %v367_v24 = vsel %vm341_vm1, %v30_v4, 0.0  ;;  %v31_v9 = vld [vmem:[%s1577_s0 + $0x70] sm:$0xff]  ;;  %v1094_v25 = vld [vmem:[%s1577_s0 + $0x78] sm:$0xff]  ;;  %v379_v39 = vsel %vm341_vm1, %v1119_v52, 0.0 }
  0x18   :  { %1630 = vst [vmem:[#allocation34_spill] sm:$0xff] %v1085_v58  ;;  %1631 = vst [vmem:[#allocation35_spill] sm:$0xff] %v1094_v25  ;;  %v1099_v32 = vld [vmem:[%s1577_s0 + $0x80] sm:$0xff]  ;;  %v1104_v36 = vld [vmem:[%s1577_s0 + $0x88] sm:$0xff]  ;;  %v369_v58 = vsel %vm341_vm1, %v31_v9, 0.0 }
  0x19   :  { %v366_v57 = vadd.f32 %v365_v31, %v364_v63  ;;  %1632 = vst [vmem:[#allocation36_spill] sm:$0xff] %v1099_v32  ;;  %1633 = vst [vmem:[#allocation37_spill] sm:$0xff] %v1104_v36  ;;  %v479_v63 = vmul.f32 %v714_v1, %v714_v1  ;;  %v480_v31 = vmul.f32 %v719_v2, %v719_v2  ;;  %v1124_v51 = vld [vmem:[%s1577_s0 + $0xa0] sm:$0xff]  ;;  %v371_v1 = vsel %vm341_vm1, %v1094_v25, 0.0  ;;  %v1135_v44 = vld [vmem:[%s1577_s0 + $0xa8] sm:$0xff] }
  0x1a   :  { %1634 = vst [vmem:[#allocation38_spill] sm:$0xff] %v1114_v56  ;;  %1635 = vst [vmem:[#allocation39_spill] sm:$0xff] %v1119_v52  ;;  %v373_v2 = vsel %vm341_vm1, %v1099_v32, 0.0  ;;  %v375_v45 = vsel %vm341_vm1, %v1104_v36, 0.0  ;;  %v1140_v43 = vld [vmem:[%s1577_s0 + $0xb0] sm:$0xff]  ;;  %v381_v38 = vsel %vm341_vm1, %v1124_v51, 0.0  ;;  %v482_v25 = vmul.f32 %v735_v7, %v735_v7 }
  0x1b   :  { %1636 = vst [vmem:[#allocation40_spill] sm:$0xff] %v1124_v51  ;;  %v368_v50 = vadd.f32 %v367_v24, %v366_v57  ;;  %1637 = vst [vmem:[#allocation41_spill] sm:$0xff] %v1135_v44  ;;  %v1145_v57 = vld [vmem:[%s1577_s0 + $0xb8] sm:$0xff]  ;;  %v377_v24 = vsel %vm341_vm1, %v1114_v56, 0.0  ;;  %v1158_v36 = vld [vmem:[%s1577_s0 + $0xc0] sm:$0xff]  ;;  %v383_v51 = vsel %vm341_vm1, %v1135_v44, 0.0 }
  0x1c   :  { %1638 = vst [vmem:[#allocation42_spill] sm:$0xff] %v1140_v43  ;;  %1639 = vst [vmem:[#allocation43_spill] sm:$0xff] %v1145_v57  ;;  %v1163_v32 = vld [vmem:[%s1577_s0 + $0xc8] sm:$0xff]  ;;  %v1168_v52 = vld [vmem:[%s1577_s0 + $0xd0] sm:$0xff]  ;;  %v1174_v3 = vsel %vm341_vm1, %v1140_v43, 0.0 }
  0x1d   :  { %1640 = vst [vmem:[#allocation44_spill] sm:$0xff] %v1158_v36  ;;  %1641 = vst [vmem:[#allocation45_spill] sm:$0xff] %v1163_v32  ;;  %v370_v56 = vadd.f32 %v369_v58, %v368_v50  ;;  %v1181_v0 = vld [vmem:[%s1577_s0 + $0xd8] sm:$0xff]  ;;  %v1186_v26 = vld [vmem:[%s1577_s0 + $0xe0] sm:$0xff]  ;;  %v1190_v50 = vsel %vm341_vm1, %v1145_v57, 0.0  ;;  %v1194_v58 = vsel %vm341_vm1, %v1158_v36, 0.0 }
  0x1e   :  { %1642 = vst [vmem:[#allocation46_spill] sm:$0xff] %v1168_v52  ;;  %1643 = vst [vmem:[#allocation47_spill] sm:$0xff] %v1181_v0  ;;  %v1198_v7 = vsel %vm341_vm1, %v1163_v32, 0.0  ;;  %v1202_v43 = vsel %vm341_vm1, %v1168_v52, 0.0  ;;  %v1207_v44 = vld [vmem:[%s1577_s0 + $0xe8] sm:$0xff]  ;;  %v1212_v57 = vld [vmem:[%s1577_s0 + $0xf0] sm:$0xff]  ;;  %v483_v52 = vmul.f32 %v742_v10, %v742_v10  ;;  %v487_v10 = vmul.f32 %v766_v19, %v766_v19 }
  0x1f   :  { %1644 = vst [vmem:[#allocation48_spill] sm:$0xff] %v1186_v26  ;;  %1645 = vst [vmem:[#allocation49_spill] sm:$0xff] %v1194_v58  ;;  %v372_v36 = vadd.f32 %v371_v1, %v370_v56  ;;  %v1216_v58 = vsel %vm341_vm1, %v1181_v0, 0.0  ;;  %v1220_v32 = vsel %vm341_vm1, %v1186_v26, 0.0  ;;  %v484_v56 = vmul.f32 %v749_v13, %v749_v13 }
  0x20   :  { %1646 = vst [vmem:[#allocation50_spill] sm:$0xff] %v1198_v7  ;;  %1647 = vst [vmem:[#allocation51_spill] sm:$0xff] %v1202_v43  ;;  %v1226_v43 = vsel %vm341_vm1, %v1207_v44, 0.0  ;;  %v1230_v7 = vsel %vm341_vm1, %v1212_v57, 0.0  ;;  %v485_v1 = vmul.f32 %v756_v16, %v756_v16  ;;  %v486_v26 = vmul.f32 %v761_v18, %v761_v18 }
  0x21   :  { %1648 = vst [vmem:[#allocation52_spill] sm:$0xff] %v1207_v44  ;;  %1649 = vst [vmem:[#allocation53_spill] sm:$0xff] %v1212_v57  ;;  %v374_v0 = vadd.f32 %v373_v2, %v372_v36  ;;  %v488_v44 = vmul.f32 %v773_v21, %v773_v21  ;;  %v489_v57 = vmul.f32 %v778_v22, %v778_v22 }
  0x22   :  { %1650 = vst [vmem:[#allocation54_spill] sm:$0xff] %v1230_v7  ;;  %v490_v7 = vmul.f32 %v783_v23, %v783_v23  ;;  %v491_v13 = vmul.f32 %v977_v14, %v977_v14  ;;  %v1248_v16 = vmul.f32 %v30_v4, %v30_v4  ;;  %v1250_v2 = vmul.f32 %v31_v9, %v31_v9 }
  0x23   :  { %v376_v36 = vadd.f32 %v375_v45, %v374_v0  ;;  %v512_v18 = vmul.f32 %v792_v27, %v792_v27  ;;  %v513_v19 = vmul.f32 %v797_v28, %v797_v28  ;;  %v514_v21 = vmul.f32 %v802_v29, %v802_v29 }
  0x24   :  { %v515_v22 = vmul.f32 %v815_v33, %v815_v33  ;;  %v516_v23 = vmul.f32 %v820_v34, %v820_v34  ;;  %v517_v45 = vmul.f32 %v825_v35, %v825_v35  ;;  %v518_v4 = vmul.f32 %v842_v40, %v842_v40 }
  0x25   :  { %v378_v0 = vadd.f32 %v377_v24, %v376_v36  ;;  %v519_v27 = vmul.f32 %v847_v41, %v847_v41  ;;  %v520_v28 = vmul.f32 %v852_v42, %v852_v42  ;;  %v521_v29 = vmul.f32 %v869_v46, %v869_v46 }
  0x26   :  { %v522_v33 = vmul.f32 %v874_v47, %v874_v47  ;;  %v543_v34 = vsel %vm341_vm1, %v479_v63, 0.0  ;;  %v544_v35 = vsel %vm341_vm1, %v480_v31, 0.0  ;;  %v523_v40 = vmul.f32 %v879_v48, %v879_v48 }
  0x27   :  { %v380_v9 = vadd.f32 %v379_v39, %v378_v0  ;;  %v545_v14 = vadd.f32 %v544_v35, %v543_v34  ;;  %v546_v41 = vsel %vm341_vm1, %v481_v37, 0.0  ;;  %v524_v42 = vmul.f32 %v896_v53, %v896_v53  ;;  %v1651_v0 = vld [vmem:[#allocation26_spill] sm:$0xff] }
  0x28   :  { %v525_v46 = vmul.f32 %v901_v54, %v901_v54  ;;  %v526_v47 = vmul.f32 %v906_v55, %v906_v55  ;;  %v548_v63 = vsel %vm341_vm1, %v482_v25, 0.0  ;;  %v527_v39 = vmul.f32 %v923_v59, %v923_v59  ;;  %v1652_v34 = vld [vmem:[#allocation30_spill] sm:$0xff] }
  0x29   :  { %v382_v24 = vadd.f32 %v381_v38, %v380_v9  ;;  %v528_v48 = vmul.f32 %v928_v60, %v928_v60  ;;  %v547_v31 = vadd.f32 %v546_v41, %v545_v14  ;;  %v529_v37 = vmul.f32 %v933_v61, %v933_v61  ;;  %v1653_v41 = vld [vmem:[#allocation49_spill] sm:$0xff] }
  0x2a   :  { %v530_v53 = vmul.f32 %v950_v5, %v950_v5  ;;  %v531_v54 = vmul.f32 %v955_v6, %v955_v6  ;;  %v550_v55 = vsel %vm341_vm1, %v483_v52, 0.0  ;;  %v532_v38 = vmul.f32 %v960_v8, %v960_v8 }
  0x2b   :  { %v384_v25 = vadd.f32 %v383_v51, %v382_v24  ;;  %v533_v59 = vmul.f32 %v982_v15, %v982_v15  ;;  %v549_v60 = vadd.f32 %v548_v63, %v547_v31  ;;  %v534_v36 = vmul.f32 %v987_v17, %v987_v17 }
  0x2c   :  { %v535_v61 = vmul.f32 %v992_v20, %v992_v20  ;;  %v536_v5 = vmul.f32 %v1009_v49, %v1009_v49  ;;  %v552_v6 = vsel %vm341_vm1, %v484_v56, 0.0  ;;  %v537_v52 = vmul.f32 %v1014_v30, %v1014_v30 }
  0x2d   :  { %v386_v51 = vadd.f32 %v1174_v3, %v384_v25  ;;  %v538_v8 = vmul.f32 %v1019_v62, %v1019_v62  ;;  %v551_v15 = vadd.f32 %v550_v55, %v549_v60  ;;  %v539_v17 = vmul.f32 %v1036_v12, %v1036_v12  ;;  %v1655_v25 = vld [vmem:[#allocation51_spill] sm:$0xff] }
  0x2e   :  { %v540_v20 = vmul.f32 %v1041_v11, %v1041_v11  ;;  %v541_v49 = vmul.f32 %v1651_v0, %v1651_v0  ;;  %v554_v56 = vsel %vm341_vm1, %v485_v1, 0.0  ;;  %v542_v30 = vmul.f32 %v1652_v34, %v1652_v34  ;;  %v1657_v34 = vld [vmem:[#allocation54_spill] sm:$0xff] }
  0x2f   :  { %v388_v3 = vadd.f32 %v1190_v50, %v386_v51  ;;  %v553_v35 = vadd.f32 %v552_v6, %v551_v15  ;;  %v556_v62 = vsel %vm341_vm1, %v486_v26, 0.0  ;;  %v558_v9 = vsel %vm341_vm1, %v487_v10, 0.0 }
  0x30   :  { %v560_v12 = vsel %vm341_vm1, %v488_v44, 0.0  ;;  %v562_v14 = vsel %vm341_vm1, %v489_v57, 0.0  ;;  %v564_v11 = vsel %vm341_vm1, %v490_v7, 0.0  ;;  %v566_v1 = vsel %vm341_vm1, %v491_v13, 0.0  ;;  %v1654_v7 = vld [vmem:[#allocation50_spill] sm:$0xff] }
  0x31   :  { %v390_v63 = vadd.f32 %v1653_v41, %v388_v3  ;;  %v555_v24 = vadd.f32 %v554_v56, %v553_v35  ;;  %v1331_v50 = vsel %vm341_vm1, %v512_v18, 0.0  ;;  %v1334_v31 = vsel %vm341_vm1, %v513_v19, 0.0  ;;  %v1656_v56 = vld [vmem:[#allocation35_spill] sm:$0xff] }
  0x32   :  { %v1337_v26 = vsel %vm341_vm1, %v514_v21, 0.0  ;;  %v1340_v44 = vsel %vm341_vm1, %v515_v22, 0.0  ;;  %v1343_v57 = vsel %vm341_vm1, %v516_v23, 0.0  ;;  %v1347_v13 = vsel %vm341_vm1, %v517_v45, 0.0 }
  0x33   :  { %v392_v10 = vadd.f32 %v1654_v7, %v390_v63  ;;  %v557_v55 = vadd.f32 %v556_v62, %v555_v24  ;;  %v1350_v18 = vsel %vm341_vm1, %v518_v4, 0.0  ;;  %v1353_v19 = vsel %vm341_vm1, %v519_v27, 0.0  ;;  %v1658_v62 = vld [vmem:[#allocation36_spill] sm:$0xff] }
  0x34   :  { %v1356_v21 = vsel %vm341_vm1, %v520_v28, 0.0  ;;  %v1359_v22 = vsel %vm341_vm1, %v521_v29, 0.0  ;;  %v1362_v23 = vsel %vm341_vm1, %v522_v33, 0.0  ;;  %v1366_v45 = vsel %vm341_vm1, %v523_v40, 0.0 }
  0x35   :  { %v394_v60 = vadd.f32 %v1655_v25, %v392_v10  ;;  %v559_v6 = vadd.f32 %v558_v9, %v557_v55  ;;  %v1369_v4 = vsel %vm341_vm1, %v524_v42, 0.0  ;;  %v1372_v27 = vsel %vm341_vm1, %v525_v46, 0.0  ;;  %v1660_v10 = vld [vmem:[#allocation38_spill] sm:$0xff] }
  0x36   :  { %v1375_v28 = vsel %vm341_vm1, %v526_v47, 0.0  ;;  %v1378_v29 = vsel %vm341_vm1, %v527_v39, 0.0  ;;  %v1381_v33 = vsel %vm341_vm1, %v528_v48, 0.0  ;;  %v1385_v40 = vsel %vm341_vm1, %v529_v37, 0.0  ;;  %v1661_v25 = vld [vmem:[#allocation2_spill] sm:$0xff] }
  0x37   :  { %v396_v51 = vadd.f32 %v1216_v58, %v394_v60  ;;  %v561_v15 = vadd.f32 %v560_v12, %v559_v6  ;;  %v1388_v42 = vsel %vm341_vm1, %v530_v53, 0.0  ;;  %v1391_v46 = vsel %vm341_vm1, %v531_v54, 0.0 }
  0x38   :  { %v1394_v47 = vsel %vm341_vm1, %v532_v38, 0.0  ;;  %v1397_v39 = vsel %vm341_vm1, %v533_v59, 0.0  ;;  %v1400_v48 = vsel %vm341_vm1, %v534_v36, 0.0  ;;  %v1404_v37 = vsel %vm341_vm1, %v535_v61, 0.0 }
  0x39   :  { %v398_v58 = vadd.f32 %v1220_v32, %v396_v51  ;;  %v563_v0 = vadd.f32 %v562_v14, %v561_v15  ;;  %v1407_v53 = vsel %vm341_vm1, %v536_v5, 0.0  ;;  %v1410_v54 = vsel %vm341_vm1, %v537_v52, 0.0  ;;  %v1424_v32 = vld [vmem:[%s1577_s0 + $0xf8] sm:$0xff]  ;;  %v1662_v51 = vld [vmem:[#allocation39_spill] sm:$0xff] }
  0x3a   :  { %v1413_v38 = vsel %vm341_vm1, %v538_v8, 0.0  ;;  %v1416_v59 = vsel %vm341_vm1, %v539_v17, 0.0  ;;  %v1419_v36 = vsel %vm341_vm1, %v540_v20, 0.0  ;;  %v1428_v52 = vsel %vm341_vm1, %v541_v49, 0.0 }
  0x3b   :  { %v400_v61 = vadd.f32 %v1226_v43, %v398_v58  ;;  %v565_v5 = vadd.f32 %v564_v11, %v563_v0  ;;  %v1431_v8 = vsel %vm341_vm1, %v542_v30, 0.0  ;;  %v403_v17 = vsel %vm341_vm1, %v1424_v32, 0.0  ;;  %v1442_v43 = vld [vmem:[%s1577_s0 + $0x100] sm:$0xff]  ;;  %v1663_v58 = vld [vmem:[#allocation3_spill] sm:$0xff] }
  0x3c   :  { %v494_v20 = vmul.f32 %v1656_v56, %v1656_v56  ;;  %v568_v3 = vsel %vm341_vm1, %v1248_v16, 0.0  ;;  %v405_v30 = vsel %vm341_vm1, %v1442_v43, 0.0  ;;  %v495_v9 = vmul.f32 %v1658_v62, %v1658_v62  ;;  %v1659_v16 = vld [vmem:[#allocation37_spill] sm:$0xff] }
  0x3d   :  { %v402_v49 = vadd.f32 %v1657_v34, %v400_v61  ;;  %v567_v35 = vadd.f32 %v566_v1, %v565_v5  ;;  %v570_v12 = vsel %vm341_vm1, %v1250_v2, 0.0  ;;  %v496_v41 = vmul.f32 %v1659_v16, %v1659_v16  ;;  %v1664_v5 = vld [vmem:[#allocation40_spill] sm:$0xff]  ;;  %v1667_v62 = vld [vmem:[#allocation5_spill] sm:$0xff] }
  0x3e   :  { %v572_v63 = vsel %vm341_vm1, %v494_v20, 0.0  ;;  %v497_v1 = vmul.f32 %v1660_v10, %v1660_v10  ;;  %v574_v55 = vsel %vm341_vm1, %v495_v9, 0.0  ;;  %v498_v2 = vmul.f32 %v1662_v51, %v1662_v51  ;;  %v1665_v20 = vld [vmem:[#allocation4_spill] sm:$0xff] }
  0x3f   :  { %v404_v14 = vadd.f32 %v403_v17, %v402_v49  ;;  %v569_v11 = vadd.f32 %v568_v3, %v567_v35  ;;  %v576_v15 = vsel %vm341_vm1, %v496_v41, 0.0  ;;  %v499_v17 = vmul.f32 %v1664_v5, %v1664_v5  ;;  %v1666_v49 = vld [vmem:[#allocation41_spill] sm:$0xff]  ;;  %v1669_v41 = vld [vmem:[#allocation6_spill] sm:$0xff] }
  0x40   :  { %v578_v56 = vsel %vm341_vm1, %v497_v1, 0.0  ;;  %v500_v35 = vmul.f32 %v1666_v49, %v1666_v49 }
  0x41   :  { %v406_v24 = vadd.f32 %v405_v30, %v404_v14  ;;  %v571_v7 = vadd.f32 %v570_v12, %v569_v11  ;;  %v580_v30 = vsel %vm341_vm1, %v498_v2, 0.0  ;;  %v1668_v14 = vld [vmem:[#allocation42_spill] sm:$0xff]  ;;  %v582_v16 = vsel %vm341_vm1, %v499_v17, 0.0 }
  0x42   :  { %v501_v11 = vmul.f32 %v1668_v14, %v1668_v14  ;;  %v584_v1 = vsel %vm341_vm1, %v500_v35, 0.0 }
  0x43   :  { %v408_v60 = vadd.f32 %v1661_v25, %v406_v24  ;;  %v573_v6 = vadd.f32 %v572_v63, %v571_v7  ;;  %v1670_v7 = vld [vmem:[#allocation43_spill] sm:$0xff] }
  0x44   :  { %v502_v10 = vmul.f32 %v1670_v7, %v1670_v7  ;;  %v586_v2 = vsel %vm341_vm1, %v501_v11, 0.0 }
  0x45   :  { %v410_v0 = vadd.f32 %v1663_v58, %v408_v60  ;;  %v575_v61 = vadd.f32 %v574_v55, %v573_v6  ;;  %v1671_v55 = vld [vmem:[#allocation7_spill] sm:$0xff]  ;;  %v1672_v6 = vld [vmem:[#allocation44_spill] sm:$0xff] }
  0x46   :  { %v503_v51 = vmul.f32 %v1672_v6, %v1672_v6  ;;  %v588_v17 = vsel %vm341_vm1, %v502_v10, 0.0 }
  0x47   :  { %v412_v3 = vadd.f32 %v1665_v20, %v410_v0  ;;  %v577_v34 = vadd.f32 %v576_v15, %v575_v61  ;;  %v1673_v15 = vld [vmem:[#allocation8_spill] sm:$0xff]  ;;  %v1674_v61 = vld [vmem:[#allocation45_spill] sm:$0xff] }
  0x48   :  { %v504_v5 = vmul.f32 %v1674_v61, %v1674_v61  ;;  %v590_v35 = vsel %vm341_vm1, %v503_v51, 0.0 }
  0x49   :  { %v414_v9 = vadd.f32 %v1667_v62, %v412_v3  ;;  %v579_v12 = vadd.f32 %v578_v56, %v577_v34  ;;  %v1675_v56 = vld [vmem:[#allocation9_spill] sm:$0xff]  ;;  %v1676_v34 = vld [vmem:[#allocation46_spill] sm:$0xff] }
  0x4a   :  { %v505_v49 = vmul.f32 %v1676_v34, %v1676_v34  ;;  %v592_v11 = vsel %vm341_vm1, %v504_v5, 0.0 }
  0x4b   :  { %v416_v63 = vadd.f32 %v1669_v41, %v414_v9  ;;  %v581_v24 = vadd.f32 %v580_v30, %v579_v12  ;;  %v1677_v30 = vld [vmem:[#allocation10_spill] sm:$0xff]  ;;  %v1678_v12 = vld [vmem:[#allocation47_spill] sm:$0xff] }
  0x4c   :  { %v506_v14 = vmul.f32 %v1678_v12, %v1678_v12  ;;  %v594_v10 = vsel %vm341_vm1, %v505_v49, 0.0  ;;  %v1686_v49 = vld [vmem:[#allocation15_spill] sm:$0xff]  ;;  %v1687_v12 = vld [vmem:[#allocation16_spill] sm:$0xff] }
  0x4d   :  { %v418_v25 = vadd.f32 %v1671_v55, %v416_v63  ;;  %v583_v60 = vadd.f32 %v582_v16, %v581_v24  ;;  %v1679_v16 = vld [vmem:[#allocation11_spill] sm:$0xff]  ;;  %v1680_v24 = vld [vmem:[#allocation48_spill] sm:$0xff] }
  0x4e   :  { %v507_v7 = vmul.f32 %v1680_v24, %v1680_v24  ;;  %v596_v51 = vsel %vm341_vm1, %v506_v14, 0.0 }
  0x4f   :  { %v420_v58 = vadd.f32 %v1673_v15, %v418_v25  ;;  %v585_v0 = vadd.f32 %v584_v1, %v583_v60  ;;  %v1681_v1 = vld [vmem:[#allocation12_spill] sm:$0xff] }
  0x50   :  { %v1682_v60 = vld [vmem:[#allocation52_spill] sm:$0xff]  ;;  %v598_v5 = vsel %vm341_vm1, %v507_v7, 0.0  ;;  %v1689_v7 = vld [vmem:[#allocation18_spill] sm:$0xff] }
  0x51   :  { %v422_v20 = vadd.f32 %v1675_v56, %v420_v58  ;;  %v587_v3 = vadd.f32 %v586_v2, %v585_v0  ;;  %v508_v6 = vmul.f32 %v1682_v60, %v1682_v60  ;;  %v1683_v2 = vld [vmem:[#allocation13_spill] sm:$0xff] }
  0x52   :  { %v1684_v0 = vld [vmem:[#allocation53_spill] sm:$0xff] }
  0x53   :  { %v424_v62 = vadd.f32 %v1677_v30, %v422_v20  ;;  %v589_v9 = vadd.f32 %v588_v17, %v587_v3  ;;  %v509_v61 = vmul.f32 %v1684_v0, %v1684_v0  ;;  %v1685_v17 = vld [vmem:[#allocation14_spill] sm:$0xff]  ;;  %v510_v3 = vmul.f32 %v1424_v32, %v1424_v32 }
  0x54   :  { %v600_v34 = vsel %vm341_vm1, %v508_v6, 0.0  ;;  %v1691_v6 = vld [vmem:[#allocation20_spill] sm:$0xff]  ;;  %v1693_v0 = vld [vmem:[#allocation22_spill] sm:$0xff] }
  0x55   :  { %v426_v41 = vadd.f32 %v1679_v16, %v424_v62  ;;  %v591_v63 = vadd.f32 %v590_v35, %v589_v9  ;;  %v511_v62 = vmul.f32 %v1442_v43, %v1442_v43  ;;  %v602_v9 = vsel %vm341_vm1, %v509_v61, 0.0 }
  0x56   :  { %v604_v16 = vsel %vm341_vm1, %v510_v3, 0.0  ;;  %v1695_v3 = vld [vmem:[#allocation24_spill] sm:$0xff] }
  0x57   :  { %v428_v55 = vadd.f32 %v1681_v1, %v426_v41  ;;  %v593_v25 = vadd.f32 %v592_v11, %v591_v63  ;;  %v1688_v41 = vld [vmem:[#allocation17_spill] sm:$0xff]  ;;  %v606_v32 = vsel %vm341_vm1, %v511_v62, 0.0  ;;  %v1697_v62 = vld [vmem:[#allocation27_spill] sm:$0xff] }
  0x59   :  { %v430_v15 = vadd.f32 %v1683_v2, %v428_v55  ;;  %v595_v58 = vadd.f32 %v594_v10, %v593_v25  ;;  %v1690_v55 = vld [vmem:[#allocation19_spill] sm:$0xff]  ;;  %v1692_v2 = vld [vmem:[#allocation21_spill] sm:$0xff] }
  0x5b   :  { %v432_v56 = vadd.f32 %v1685_v17, %v430_v15  ;;  %v597_v20 = vadd.f32 %v596_v51, %v595_v58  ;;  %v1694_v17 = vld [vmem:[#allocation23_spill] sm:$0xff] }
  0x5d   :  { %v434_v35 = vadd.f32 %v1686_v49, %v432_v56  ;;  %v599_v30 = vadd.f32 %v598_v5, %v597_v20 }
  0x5f   :  { %v436_v14 = vadd.f32 %v1687_v12, %v434_v35  ;;  %v601_v11 = vadd.f32 %v600_v34, %v599_v30  ;;  %v1696_v35 = vld [vmem:[#allocation25_spill] sm:$0xff]  ;;  %v1698_v12 = vld [vmem:[#allocation28_spill] sm:$0xff] }
  0x61   :  { %v438_v63 = vadd.f32 %v1688_v41, %v436_v14  ;;  %v603_v24 = vadd.f32 %v602_v9, %v601_v11  ;;  %v1699_v11 = vld [vmem:[#allocation29_spill] sm:$0xff]  ;;  %v1700_v41 = vld [vmem:[#allocation31_spill] sm:$0xff] }
  0x63   :  { %v440_v10 = vadd.f32 %v1689_v7, %v438_v63  ;;  %v605_v1 = vadd.f32 %v604_v16, %v603_v24  ;;  %v1701_v24 = vld [vmem:[#allocation32_spill] sm:$0xff]  ;;  %v1702_v7 = vld [vmem:[#allocation33_spill] sm:$0xff] }
  0x65   :  { %v442_v25 = vadd.f32 %v1690_v55, %v440_v10  ;;  %v607_v60 = vadd.f32 %v606_v32, %v605_v1  ;;  %v1703_v1 = vld [vmem:[#allocation34_spill] sm:$0xff] }
  0x67   :  { %v444_v43 = vadd.f32 %v1691_v6, %v442_v25  ;;  %v609_v51 = vadd.f32 %v1331_v50, %v607_v60 }
  0x69   :  { %v446_v15 = vadd.f32 %v1692_v2, %v444_v43  ;;  %v611_v58 = vadd.f32 %v1334_v31, %v609_v51 }
  0x6b   :  { %v448_v61 = vadd.f32 %v1693_v0, %v446_v15  ;;  %v613_v5 = vadd.f32 %v1337_v26, %v611_v58 }
  0x6d   :  { %v450_v56 = vadd.f32 %v1694_v17, %v448_v61  ;;  %v615_v20 = vadd.f32 %v1340_v44, %v613_v5 }
  0x6f   :  { %v452_v34 = vadd.f32 %v1695_v3, %v450_v56  ;;  %v617_v49 = vadd.f32 %v1343_v57, %v615_v20 }
  0x71   :  { %v454_v30 = vadd.f32 %v1696_v35, %v452_v34  ;;  %v619_v50 = vadd.f32 %v1347_v13, %v617_v49 }
  0x73   :  { %v456_v9 = vadd.f32 %v1697_v62, %v454_v30  ;;  %v621_v31 = vadd.f32 %v1350_v18, %v619_v50 }
  0x75   :  { %v458_v14 = vadd.f32 %v1698_v12, %v456_v9  ;;  %v623_v26 = vadd.f32 %v1353_v19, %v621_v31 }
  0x77   :  { %v460_v16 = vadd.f32 %v1699_v11, %v458_v14  ;;  %v625_v44 = vadd.f32 %v1356_v21, %v623_v26 }
  0x79   :  { %v462_v63 = vadd.f32 %v1700_v41, %v460_v16  ;;  %v627_v57 = vadd.f32 %v1359_v22, %v625_v44 }
  0x7b   :  { %v464_v32 = vadd.f32 %v1701_v24, %v462_v63  ;;  %v629_v13 = vadd.f32 %v1362_v23, %v627_v57 }
  0x7d   :  { %v466_v10 = vadd.f32 %v1702_v7, %v464_v32  ;;  %v631_v18 = vadd.f32 %v1366_v45, %v629_v13  ;;  %v340_v45 = vld [vmem:[%s1578_s1] sm:$0x1] }
  0x7f   :  { %v468_v55 = vadd.f32 %v1703_v1, %v466_v10  ;;  %v633_v19 = vadd.f32 %v1369_v4, %v631_v18 }
  0x81   :  { %v469_v25 = vrot.slane %v468_v55, 4  ;;  %v635_v60 = vadd.f32 %v1372_v27, %v633_v19 }
  0x83   :  { %v470_v21 = vadd.f32 %v469_v25, %v468_v55  ;;  %v637_v6 = vadd.f32 %v1375_v28, %v635_v60 }
  0x85   :  { %v471_v43 = vrot.slane %v470_v21, 2  ;;  %v639_v22 = vadd.f32 %v1378_v29, %v637_v6 }
  0x87   :  { %v472_v51 = vadd.f32 %v471_v43, %v470_v21  ;;  %v641_v23 = vadd.f32 %v1381_v33, %v639_v22 }
  0x89   :  { %v473_v2 = vrot.slane %v472_v51, 1  ;;  %v643_v15 = vadd.f32 %v1385_v40, %v641_v23 }
  0x8b   :  { %v474_v4 = vadd.f32 %v473_v2, %v472_v51  ;;  %v645_v58 = vadd.f32 %v1388_v42, %v643_v15 }
  0x8d   :  { %v475_v27 = vadd.f32 %v474_v4, %v340_v45  ;;  %v647_v0 = vadd.f32 %v1391_v46, %v645_v58 }
  0x8f   :  { %477 = vst.msk [vmem:[%s1578_s1] sm:$0x1] %vm14_vm0, %v475_v27  ;;  %v649_v28 = vadd.f32 %v1394_v47, %v647_v0 }
  0x91   :  { %v651_v29 = vadd.f32 %v1397_v39, %v649_v28 }
  0x93   :  { %v653_v33 = vadd.f32 %v1400_v48, %v651_v29 }
  0x95   :  { %v655_v40 = vadd.f32 %v1404_v37, %v653_v33  ;;  %v478_v37 = vld [vmem:[%s1579_s2] sm:$0x1] }
  0x97   :  { %v657_v61 = vadd.f32 %v1407_v53, %v655_v40 }
  0x99   :  { %v659_v42 = vadd.f32 %v1410_v54, %v657_v61 }
  0x9b   :  { %v661_v5 = vadd.f32 %v1413_v38, %v659_v42 }
  0x9d   :  { %v663_v46 = vadd.f32 %v1416_v59, %v661_v5 }
  0x9f   :  { %v665_v17 = vadd.f32 %v1419_v36, %v663_v46 }
  0xa1   :  { %v667_v56 = vadd.f32 %v1428_v52, %v665_v17 }
  0xa3   :  { %v669_v47 = vadd.f32 %v1431_v8, %v667_v56 }
  0xa5   :  { %v670_v20 = vrot.slane %v669_v47, 4 }
  0xa7   :  { %v671_v39 = vadd.f32 %v670_v20, %v669_v47 }
  0xa9   :  { %v672_v3 = vrot.slane %v671_v39, 2 }
  0xab   :  { %v673_v48 = vadd.f32 %v672_v3, %v671_v39 }
  0xad   :  { %v674_v34 = vrot.slane %v673_v48, 1 }
  0xaf   :  { %v675_v53 = vadd.f32 %v674_v34, %v673_v48 }
  0xb1   :  { %v676_v54 = vadd.f32 %v675_v53, %v478_v37 }
  0xb3   :  { %677 = vst.msk [vmem:[%s1579_s2] sm:$0x1] %vm14_vm0, %v676_v54 }

// kernel: densenet_forward.31
= control target key start
LH: loop header
LB: loop body
LE: loop exit
PB: predicated region body
PF: predicated region fallthrough
CT: control target
= control target key end

     0   :  { %vm284_vm0 = vcmask 130048   ;;  %s961_s0 = inlined_call_operand.vmem [shape: f32[512,16], index: 0, kind: input, shape index: {}]   ;;  %s962_s1 = inlined_call_operand.vmem [shape: f32[1,16], index: 1, kind: input, shape index: {}]   ;;  %s963_s2 = inlined_call_operand.vmem [shape: f32[1,16], index: 2, kind: input, shape index: {}]   ;;  %s964_s3 = inlined_call_operand.vmem [shape: f32[512,16], index: 3, kind: output, shape index: {}]  }
   0x1   :  { %v14_v0 = vld [vmem:[%s961_s0] sm:$0xff]  ;;  %v15_v4 = vld [vmem:[%s961_s0 + $0x8] sm:$0xff]  ;;  %v16_v5 = vld [vmem:[%s961_s0 + $0x10] sm:$0xff] }
   0x2   :  { %v381_v1 = vld [vmem:[%s962_s1] ss:$0 sm:$0xff]  ;;  %v17_v6 = vld [vmem:[%s961_s0 + $0x18] sm:$0xff]  ;;  %v19_v11 = vld [vmem:[%s961_s0 + $0x28] sm:$0xff] }
   0x3   :  { %v386_v2 = vld [vmem:[%s963_s2] ss:$0 sm:$0xff]  ;;  %v85_v3 = vmul.f32 %v381_v1, %v14_v0  ;;  %v86_v7 = vmul.f32 %v381_v1, %v15_v4  ;;  %v87_v8 = vmul.f32 %v381_v1, %v16_v5  ;;  %v88_v9 = vmul.f32 %v381_v1, %v17_v6  ;;  %v20_v12 = vld [vmem:[%s961_s0 + $0x30] sm:$0xff]  ;;  %v21_v17 = vld [vmem:[%s961_s0 + $0x38] sm:$0xff] }
   0x4   :  { %v18_v10 = vld [vmem:[%s961_s0 + $0x20] sm:$0xff]  ;;  %v90_v15 = vmul.f32 %v381_v1, %v19_v11  ;;  %v91_v16 = vmul.f32 %v381_v1, %v20_v12  ;;  %v92_v21 = vmul.f32 %v381_v1, %v21_v17  ;;  %v23_v27 = vld [vmem:[%s961_s0 + $0x48] sm:$0xff]  ;;  %v24_v28 = vld [vmem:[%s961_s0 + $0x50] sm:$0xff] }
   0x5   :  { %v156_v13 = vadd.f32 %v386_v2, %v85_v3  ;;  %v89_v14 = vmul.f32 %v381_v1, %v18_v10  ;;  %v157_v18 = vadd.f32 %v386_v2, %v86_v7  ;;  %v158_v19 = vadd.f32 %v386_v2, %v87_v8  ;;  %v22_v22 = vld [vmem:[%s961_s0 + $0x40] sm:$0xff]  ;;  %v25_v29 = vld [vmem:[%s961_s0 + $0x58] sm:$0xff]  ;;  %v27_v35 = vld [vmem:[%s961_s0 + $0x68] sm:$0xff] }
   0x6   :  { %v159_v20 = vadd.f32 %v386_v2, %v88_v9  ;;  %v161_v25 = vadd.f32 %v386_v2, %v90_v15  ;;  %v162_v26 = vadd.f32 %v386_v2, %v91_v16  ;;  %v163_v33 = vadd.f32 %v386_v2, %v92_v21  ;;  %v26_v34 = vld [vmem:[%s961_s0 + $0x60] sm:$0xff]  ;;  %v28_v36 = vld [vmem:[%s961_s0 + $0x70] sm:$0xff]  ;;  %v29_v41 = vld [vmem:[%s961_s0 + $0x78] sm:$0xff] }
   0x7   :  { %v220_v23 = vmax.f32 %v156_v13, 0.0  ;;  %v160_v24 = vadd.f32 %v386_v2, %v89_v14  ;;  %v221_v30 = vmax.f32 %v157_v18, 0.0  ;;  %v222_v31 = vmax.f32 %v158_v19, 0.0  ;;  %v30_v54 = vld [vmem:[%s961_s0 + $0x80] sm:$0xff]  ;;  %v31_v59 = vld [vmem:[%s961_s0 + $0x88] sm:$0xff]  ;;  %v32_v60 = vld [vmem:[%s961_s0 + $0x90] sm:$0xff] }
   0x8   :  { %v223_v32 = vmax.f32 %v159_v20, 0.0  ;;  %v225_v38 = vmax.f32 %v161_v25, 0.0  ;;  %v226_v39 = vmax.f32 %v162_v26, 0.0  ;;  %v93_v40 = vmul.f32 %v381_v1, %v22_v22  ;;  %v33_v61 = vld [vmem:[%s961_s0 + $0x98] sm:$0xff]  ;;  %v34_v4 = vld [vmem:[%s961_s0 + $0xa0] sm:$0xff]  ;;  %v35_v5 = vld [vmem:[%s961_s0 + $0xa8] sm:$0xff] }
   0x9   :  { %285 = vst.msk [vmem:[%s964_s3] sm:$0xff] %vm284_vm0, %v220_v23  ;;  %v224_v37 = vmax.f32 %v160_v24, 0.0  ;;  %286 = vst.msk [vmem:[%s964_s3 + $0x8] sm:$0xff] %vm284_vm0, %v221_v30  ;;  %v227_v42 = vmax.f32 %v163_v33, 0.0  ;;  %v94_v43 = vmul.f32 %v381_v1, %v23_v27  ;;  %v95_v44 = vmul.f32 %v381_v1, %v24_v28  ;;  %v36_v6 = vld [vmem:[%s961_s0 + $0xb0] sm:$0xff]  ;;  %v37_v11 = vld [vmem:[%s961_s0 + $0xb8] sm:$0xff] }
   0xa   :  { %287 = vst.msk [vmem:[%s964_s3 + $0x10] sm:$0xff] %vm284_vm0, %v222_v31  ;;  %288 = vst.msk [vmem:[%s964_s3 + $0x18] sm:$0xff] %vm284_vm0, %v223_v32  ;;  %v96_v45 = vmul.f32 %v381_v1, %v25_v29  ;;  %v164_v46 = vadd.f32 %v386_v2, %v93_v40  ;;  %v97_v47 = vmul.f32 %v381_v1, %v26_v34  ;;  %v38_v24 = vld [vmem:[%s961_s0 + $0xc0] sm:$0xff]  ;;  %v39_v29 = vld [vmem:[%s961_s0 + $0xc8] sm:$0xff] }
   0xb   :  { %289 = vst.msk [vmem:[%s964_s3 + $0x20] sm:$0xff] %vm284_vm0, %v224_v37  ;;  %290 = vst.msk [vmem:[%s964_s3 + $0x28] sm:$0xff] %vm284_vm0, %v225_v38  ;;  %v98_v48 = vmul.f32 %v381_v1, %v27_v35  ;;  %v99_v49 = vmul.f32 %v381_v1, %v28_v36  ;;  %v165_v50 = vadd.f32 %v386_v2, %v94_v43  ;;  %v40_v30 = vld [vmem:[%s961_s0 + $0xd0] sm:$0xff]  ;;  %v41_v31 = vld [vmem:[%s961_s0 + $0xd8] sm:$0xff] }
   0xc   :  { %291 = vst.msk [vmem:[%s964_s3 + $0x30] sm:$0xff] %vm284_vm0, %v226_v39  ;;  %292 = vst.msk [vmem:[%s964_s3 + $0x38] sm:$0xff] %vm284_vm0, %v227_v42  ;;  %v166_v51 = vadd.f32 %v386_v2, %v95_v44  ;;  %v167_v52 = vadd.f32 %v386_v2, %v96_v45  ;;  %v100_v53 = vmul.f32 %v381_v1, %v29_v41  ;;  %v228_v55 = vmax.f32 %v164_v46, 0.0  ;;  %v42_v36 = vld [vmem:[%s961_s0 + $0xe0] sm:$0xff]  ;;  %v43_v37 = vld [vmem:[%s961_s0 + $0xe8] sm:$0xff] }
   0xd   :  { %v168_v56 = vadd.f32 %v386_v2, %v97_v47  ;;  %v169_v57 = vadd.f32 %v386_v2, %v98_v48  ;;  %v170_v58 = vadd.f32 %v386_v2, %v99_v49  ;;  %v229_v62 = vmax.f32 %v165_v50, 0.0  ;;  %v44_v38 = vld [vmem:[%s961_s0 + $0xf0] sm:$0xff]  ;;  %v45_v43 = vld [vmem:[%s961_s0 + $0xf8] sm:$0xff] }
   0xe   :  { %v230_v63 = vmax.f32 %v166_v51, 0.0  ;;  %v231_v0 = vmax.f32 %v167_v52, 0.0  ;;  %v171_v3 = vadd.f32 %v386_v2, %v100_v53  ;;  %293 = vst.msk [vmem:[%s964_s3 + $0x40] sm:$0xff] %vm284_vm0, %v228_v55  ;;  %v101_v10 = vmul.f32 %v381_v1, %v30_v54 }
   0xf   :  { %v232_v7 = vmax.f32 %v168_v56, 0.0  ;;  %v233_v8 = vmax.f32 %v169_v57, 0.0  ;;  %v234_v9 = vmax.f32 %v170_v58, 0.0  ;;  %294 = vst.msk [vmem:[%s964_s3 + $0x48] sm:$0xff] %vm284_vm0, %v229_v62  ;;  %v102_v13 = vmul.f32 %v381_v1, %v31_v59  ;;  %v46_v56 = vld [vmem:[%s961_s0 + $0x100] sm:$0xff]  ;;  %v48_v62 = vld [vmem:[%s961_s0 + $0x110] sm:$0xff] }
  0x10   :  { %295 = vst.msk [vmem:[%s964_s3 + $0x50] sm:$0xff] %vm284_vm0, %v230_v63  ;;  %296 = vst.msk [vmem:[%s964_s3 + $0x58] sm:$0xff] %vm284_vm0, %v231_v0  ;;  %v235_v12 = vmax.f32 %v171_v3, 0.0  ;;  %v103_v14 = vmul.f32 %v381_v1, %v32_v60  ;;  %v104_v15 = vmul.f32 %v381_v1, %v33_v61  ;;  %v172_v16 = vadd.f32 %v386_v2, %v101_v10  ;;  %v47_v61 = vld [vmem:[%s961_s0 + $0x108] sm:$0xff]  ;;  %v49_v63 = vld [vmem:[%s961_s0 + $0x118] sm:$0xff] }
  0x11   :  { %297 = vst.msk [vmem:[%s964_s3 + $0x60] sm:$0xff] %vm284_vm0, %v232_v7  ;;  %298 = vst.msk [vmem:[%s964_s3 + $0x68] sm:$0xff] %vm284_vm0, %v233_v8  ;;  %v105_v17 = vmul.f32 %v381_v1, %v34_v4  ;;  %v106_v18 = vmul.f32 %v381_v1, %v35_v5  ;;  %v107_v19 = vmul.f32 %v381_v1, %v36_v6  ;;  %v50_v6 = vld [vmem:[%s961_s0 + $0x120] sm:$0xff]  ;;  %v51_v7 = vld [vmem:[%s961_s0 + $0x128] sm:$0xff] }
  0x12   :  { %299 = vst.msk [vmem:[%s964_s3 + $0x70] sm:$0xff] %vm284_vm0, %v234_v9  ;;  %300 = vst.msk [vmem:[%s964_s3 + $0x78] sm:$0xff] %vm284_vm0, %v235_v12  ;;  %v173_v20 = vadd.f32 %v386_v2, %v102_v13  ;;  %v174_v21 = vadd.f32 %v386_v2, %v103_v14  ;;  %v175_v22 = vadd.f32 %v386_v2, %v104_v15  ;;  %v236_v25 = vmax.f32 %v172_v16, 0.0  ;;  %v52_v8 = vld [vmem:[%s961_s0 + $0x130] sm:$0xff]  ;;  %v53_v13 = vld [vmem:[%s961_s0 + $0x138] sm:$0xff] }
  0x13   :  { %v108_v23 = vmul.f32 %v381_v1, %v37_v11  ;;  %v176_v26 = vadd.f32 %v386_v2, %v105_v17  ;;  %v177_v27 = vadd.f32 %v386_v2, %v106_v18  ;;  %v178_v28 = vadd.f32 %v386_v2, %v107_v19 }
  0x14   :  { %v237_v32 = vmax.f32 %v173_v20, 0.0  ;;  %v238_v33 = vmax.f32 %v174_v21, 0.0  ;;  %v239_v34 = vmax.f32 %v175_v22, 0.0  ;;  %301 = vst.msk [vmem:[%s964_s3 + $0x80] sm:$0xff] %vm284_vm0, %v236_v25  ;;  %v109_v42 = vmul.f32 %v381_v1, %v38_v24 }
  0x15   :  { %v179_v35 = vadd.f32 %v386_v2, %v108_v23  ;;  %v240_v39 = vmax.f32 %v176_v26, 0.0  ;;  %v241_v40 = vmax.f32 %v177_v27, 0.0  ;;  %v242_v41 = vmax.f32 %v178_v28, 0.0  ;;  %v54_v26 = vld [vmem:[%s961_s0 + $0x140] sm:$0xff] }
  0x16   :  { %302 = vst.msk [vmem:[%s964_s3 + $0x88] sm:$0xff] %vm284_vm0, %v237_v32  ;;  %303 = vst.msk [vmem:[%s964_s3 + $0x90] sm:$0xff] %vm284_vm0, %v238_v33  ;;  %v110_v45 = vmul.f32 %v381_v1, %v39_v29  ;;  %v111_v46 = vmul.f32 %v381_v1, %v40_v30  ;;  %v112_v47 = vmul.f32 %v381_v1, %v41_v31  ;;  %v55_v31 = vld [vmem:[%s961_s0 + $0x148] sm:$0xff]  ;;  %v56_v32 = vld [vmem:[%s961_s0 + $0x150] sm:$0xff] }
  0x17   :  { %304 = vst.msk [vmem:[%s964_s3 + $0x98] sm:$0xff] %vm284_vm0, %v239_v34  ;;  %v243_v44 = vmax.f32 %v179_v35, 0.0  ;;  %305 = vst.msk [vmem:[%s964_s3 + $0xa0] sm:$0xff] %vm284_vm0, %v240_v39  ;;  %v180_v48 = vadd.f32 %v386_v2, %v109_v42  ;;  %v113_v49 = vmul.f32 %v381_v1, %v42_v36  ;;  %v114_v50 = vmul.f32 %v381_v1, %v43_v37  ;;  %v57_v33 = vld [vmem:[%s961_s0 + $0x158] sm:$0xff]  ;;  %v59_v39 = vld [vmem:[%s961_s0 + $0x168] sm:$0xff] }
  0x18   :  { %306 = vst.msk [vmem:[%s964_s3 + $0xa8] sm:$0xff] %vm284_vm0, %v241_v40  ;;  %307 = vst.msk [vmem:[%s964_s3 + $0xb0] sm:$0xff] %vm284_vm0, %v242_v41  ;;  %v115_v51 = vmul.f32 %v381_v1, %v44_v38  ;;  %v181_v52 = vadd.f32 %v386_v2, %v110_v45  ;;  %v182_v53 = vadd.f32 %v386_v2, %v111_v46  ;;  %v58_v38 = vld [vmem:[%s961_s0 + $0x160] sm:$0xff]  ;;  %v60_v40 = vld [vmem:[%s961_s0 + $0x170] sm:$0xff] }
  0x19   :  { %308 = vst.msk [vmem:[%s964_s3 + $0xb8] sm:$0xff] %vm284_vm0, %v243_v44  ;;  %v183_v54 = vadd.f32 %v386_v2, %v112_v47  ;;  %v116_v55 = vmul.f32 %v381_v1, %v45_v43  ;;  %v244_v57 = vmax.f32 %v180_v48, 0.0  ;;  %v184_v58 = vadd.f32 %v386_v2, %v113_v49  ;;  %v61_v45 = vld [vmem:[%s961_s0 + $0x178] sm:$0xff] }
  0x1a   :  { %v185_v59 = vadd.f32 %v386_v2, %v114_v50  ;;  %v186_v60 = vadd.f32 %v386_v2, %v115_v51  ;;  %v245_v0 = vmax.f32 %v181_v52, 0.0  ;;  %v246_v3 = vmax.f32 %v182_v53, 0.0 }
  0x1b   :  { %v247_v4 = vmax.f32 %v183_v54, 0.0  ;;  %v187_v5 = vadd.f32 %v386_v2, %v116_v55  ;;  %309 = vst.msk [vmem:[%s964_s3 + $0xc0] sm:$0xff] %vm284_vm0, %v244_v57  ;;  %v248_v9 = vmax.f32 %v184_v58, 0.0  ;;  %v117_v12 = vmul.f32 %v381_v1, %v46_v56  ;;  %v62_v58 = vld [vmem:[%s961_s0 + $0x180] sm:$0xff] }
  0x1c   :  { %v249_v10 = vmax.f32 %v185_v59, 0.0  ;;  %v250_v11 = vmax.f32 %v186_v60, 0.0  ;;  %310 = vst.msk [vmem:[%s964_s3 + $0xc8] sm:$0xff] %vm284_vm0, %v245_v0  ;;  %311 = vst.msk [vmem:[%s964_s3 + $0xd0] sm:$0xff] %vm284_vm0, %v246_v3  ;;  %v118_v15 = vmul.f32 %v381_v1, %v47_v61  ;;  %v119_v16 = vmul.f32 %v381_v1, %v48_v62  ;;  %v64_v0 = vld [vmem:[%s961_s0 + $0x190] sm:$0xff]  ;;  %v65_v3 = vld [vmem:[%s961_s0 + $0x198] sm:$0xff] }
  0x1d   :  { %312 = vst.msk [vmem:[%s964_s3 + $0xd8] sm:$0xff] %vm284_vm0, %v247_v4  ;;  %v251_v14 = vmax.f32 %v187_v5, 0.0  ;;  %v120_v17 = vmul.f32 %v381_v1, %v49_v63  ;;  %313 = vst.msk [vmem:[%s964_s3 + $0xe0] sm:$0xff] %vm284_vm0, %v248_v9  ;;  %v188_v18 = vadd.f32 %v386_v2, %v117_v12  ;;  %v121_v19 = vmul.f32 %v381_v1, %v50_v6  ;;  %v63_v63 = vld [vmem:[%s961_s0 + $0x188] sm:$0xff] }
  0x1e   :  { %314 = vst.msk [vmem:[%s964_s3 + $0xe8] sm:$0xff] %vm284_vm0, %v249_v10  ;;  %315 = vst.msk [vmem:[%s964_s3 + $0xf0] sm:$0xff] %vm284_vm0, %v250_v11  ;;  %v122_v20 = vmul.f32 %v381_v1, %v51_v7  ;;  %v123_v21 = vmul.f32 %v381_v1, %v52_v8  ;;  %v189_v22 = vadd.f32 %v386_v2, %v118_v15  ;;  %v66_v8 = vld [vmem:[%s961_s0 + $0x1a0] sm:$0xff]  ;;  %v67_v9 = vld [vmem:[%s961_s0 + $0x1a8] sm:$0xff] }
  0x1f   :  { %316 = vst.msk [vmem:[%s964_s3 + $0xf8] sm:$0xff] %vm284_vm0, %v251_v14  ;;  %v190_v23 = vadd.f32 %v386_v2, %v119_v16  ;;  %v191_v24 = vadd.f32 %v386_v2, %v120_v17  ;;  %v124_v25 = vmul.f32 %v381_v1, %v53_v13  ;;  %v252_v27 = vmax.f32 %v188_v18, 0.0  ;;  %v68_v10 = vld [vmem:[%s961_s0 + $0x1b0] sm:$0xff]  ;;  %v69_v15 = vld [vmem:[%s961_s0 + $0x1b8] sm:$0xff] }
  0x20   :  { %v192_v28 = vadd.f32 %v386_v2, %v121_v19  ;;  %v193_v29 = vadd.f32 %v386_v2, %v122_v20  ;;  %v194_v30 = vadd.f32 %v386_v2, %v123_v21  ;;  %v253_v34 = vmax.f32 %v189_v22, 0.0 }
  0x21   :  { %v254_v35 = vmax.f32 %v190_v23, 0.0  ;;  %v255_v36 = vmax.f32 %v191_v24, 0.0  ;;  %v195_v37 = vadd.f32 %v386_v2, %v124_v25  ;;  %317 = vst.msk [vmem:[%s964_s3 + $0x100] sm:$0xff] %vm284_vm0, %v252_v27  ;;  %v125_v44 = vmul.f32 %v381_v1, %v54_v26 }
  0x22   :  { %v256_v41 = vmax.f32 %v192_v28, 0.0  ;;  %v257_v42 = vmax.f32 %v193_v29, 0.0  ;;  %v258_v43 = vmax.f32 %v194_v30, 0.0  ;;  %318 = vst.msk [vmem:[%s964_s3 + $0x108] sm:$0xff] %vm284_vm0, %v253_v34  ;;  %v126_v47 = vmul.f32 %v381_v1, %v55_v31  ;;  %v70_v28 = vld [vmem:[%s961_s0 + $0x1c0] sm:$0xff]  ;;  %v72_v34 = vld [vmem:[%s961_s0 + $0x1d0] sm:$0xff] }
  0x23   :  { %319 = vst.msk [vmem:[%s964_s3 + $0x110] sm:$0xff] %vm284_vm0, %v254_v35  ;;  %320 = vst.msk [vmem:[%s964_s3 + $0x118] sm:$0xff] %vm284_vm0, %v255_v36  ;;  %v259_v46 = vmax.f32 %v195_v37, 0.0  ;;  %v127_v48 = vmul.f32 %v381_v1, %v56_v32  ;;  %v128_v49 = vmul.f32 %v381_v1, %v57_v33  ;;  %v196_v50 = vadd.f32 %v386_v2, %v125_v44  ;;  %v71_v33 = vld [vmem:[%s961_s0 + $0x1c8] sm:$0xff]  ;;  %v73_v35 = vld [vmem:[%s961_s0 + $0x1d8] sm:$0xff] }
  0x24   :  { %321 = vst.msk [vmem:[%s964_s3 + $0x120] sm:$0xff] %vm284_vm0, %v256_v41  ;;  %322 = vst.msk [vmem:[%s964_s3 + $0x128] sm:$0xff] %vm284_vm0, %v257_v42  ;;  %v129_v51 = vmul.f32 %v381_v1, %v58_v38  ;;  %v130_v52 = vmul.f32 %v381_v1, %v59_v39  ;;  %v131_v53 = vmul.f32 %v381_v1, %v60_v40  ;;  %v74_v40 = vld [vmem:[%s961_s0 + $0x1e0] sm:$0xff]  ;;  %v75_v41 = vld [vmem:[%s961_s0 + $0x1e8] sm:$0xff] }
  0x25   :  { %323 = vst.msk [vmem:[%s964_s3 + $0x130] sm:$0xff] %vm284_vm0, %v258_v43  ;;  %324 = vst.msk [vmem:[%s964_s3 + $0x138] sm:$0xff] %vm284_vm0, %v259_v46  ;;  %v197_v54 = vadd.f32 %v386_v2, %v126_v47  ;;  %v198_v55 = vadd.f32 %v386_v2, %v127_v48  ;;  %v199_v56 = vadd.f32 %v386_v2, %v128_v49  ;;  %v260_v59 = vmax.f32 %v196_v50, 0.0  ;;  %v76_v42 = vld [vmem:[%s961_s0 + $0x1f0] sm:$0xff]  ;;  %v77_v47 = vld [vmem:[%s961_s0 + $0x1f8] sm:$0xff] }
  0x26   :  { %v132_v57 = vmul.f32 %v381_v1, %v61_v45  ;;  %v200_v60 = vadd.f32 %v386_v2, %v129_v51  ;;  %v201_v61 = vadd.f32 %v386_v2, %v130_v52  ;;  %v202_v62 = vadd.f32 %v386_v2, %v131_v53 }
  0x27   :  { %v261_v4 = vmax.f32 %v197_v54, 0.0  ;;  %v262_v5 = vmax.f32 %v198_v55, 0.0  ;;  %v263_v6 = vmax.f32 %v199_v56, 0.0  ;;  %325 = vst.msk [vmem:[%s964_s3 + $0x140] sm:$0xff] %vm284_vm0, %v260_v59  ;;  %v133_v14 = vmul.f32 %v381_v1, %v62_v58 }
  0x28   :  { %v203_v7 = vadd.f32 %v386_v2, %v132_v57  ;;  %v264_v11 = vmax.f32 %v200_v60, 0.0  ;;  %v265_v12 = vmax.f32 %v201_v61, 0.0  ;;  %v266_v13 = vmax.f32 %v202_v62, 0.0 }
  0x29   :  { %326 = vst.msk [vmem:[%s964_s3 + $0x148] sm:$0xff] %vm284_vm0, %v261_v4  ;;  %327 = vst.msk [vmem:[%s964_s3 + $0x150] sm:$0xff] %vm284_vm0, %v262_v5  ;;  %v134_v17 = vmul.f32 %v381_v1, %v63_v63  ;;  %v135_v18 = vmul.f32 %v381_v1, %v64_v0  ;;  %v136_v19 = vmul.f32 %v381_v1, %v65_v3 }
  0x2a   :  { %328 = vst.msk [vmem:[%s964_s3 + $0x158] sm:$0xff] %vm284_vm0, %v263_v6  ;;  %v267_v16 = vmax.f32 %v203_v7, 0.0  ;;  %329 = vst.msk [vmem:[%s964_s3 + $0x160] sm:$0xff] %vm284_vm0, %v264_v11  ;;  %v204_v20 = vadd.f32 %v386_v2, %v133_v14  ;;  %v137_v21 = vmul.f32 %v381_v1, %v66_v8  ;;  %v138_v22 = vmul.f32 %v381_v1, %v67_v9 }
  0x2b   :  { %330 = vst.msk [vmem:[%s964_s3 + $0x168] sm:$0xff] %vm284_vm0, %v265_v12  ;;  %331 = vst.msk [vmem:[%s964_s3 + $0x170] sm:$0xff] %vm284_vm0, %v266_v13  ;;  %v139_v23 = vmul.f32 %v381_v1, %v68_v10  ;;  %v205_v24 = vadd.f32 %v386_v2, %v134_v17  ;;  %v206_v25 = vadd.f32 %v386_v2, %v135_v18 }
  0x2c   :  { %332 = vst.msk [vmem:[%s964_s3 + $0x178] sm:$0xff] %vm284_vm0, %v267_v16  ;;  %v207_v26 = vadd.f32 %v386_v2, %v136_v19  ;;  %v140_v27 = vmul.f32 %v381_v1, %v69_v15  ;;  %v268_v29 = vmax.f32 %v204_v20, 0.0  ;;  %v208_v30 = vadd.f32 %v386_v2, %v137_v21 }
  0x2d   :  { %v209_v31 = vadd.f32 %v386_v2, %v138_v22  ;;  %v210_v32 = vadd.f32 %v386_v2, %v139_v23  ;;  %v269_v36 = vmax.f32 %v205_v24, 0.0  ;;  %v270_v37 = vmax.f32 %v206_v25, 0.0 }
  0x2e   :  { %v271_v38 = vmax.f32 %v207_v26, 0.0  ;;  %v211_v39 = vadd.f32 %v386_v2, %v140_v27  ;;  %333 = vst.msk [vmem:[%s964_s3 + $0x180] sm:$0xff] %vm284_vm0, %v268_v29  ;;  %v272_v43 = vmax.f32 %v208_v30, 0.0  ;;  %v141_v46 = vmul.f32 %v381_v1, %v70_v28 }
  0x2f   :  { %v273_v44 = vmax.f32 %v209_v31, 0.0  ;;  %v274_v45 = vmax.f32 %v210_v32, 0.0  ;;  %334 = vst.msk [vmem:[%s964_s3 + $0x188] sm:$0xff] %vm284_vm0, %v269_v36  ;;  %335 = vst.msk [vmem:[%s964_s3 + $0x190] sm:$0xff] %vm284_vm0, %v270_v37  ;;  %v142_v49 = vmul.f32 %v381_v1, %v71_v33  ;;  %v143_v50 = vmul.f32 %v381_v1, %v72_v34 }
  0x30   :  { %336 = vst.msk [vmem:[%s964_s3 + $0x198] sm:$0xff] %vm284_vm0, %v271_v38  ;;  %v275_v48 = vmax.f32 %v211_v39, 0.0  ;;  %v144_v51 = vmul.f32 %v381_v1, %v73_v35  ;;  %337 = vst.msk [vmem:[%s964_s3 + $0x1a0] sm:$0xff] %vm284_vm0, %v272_v43  ;;  %v212_v52 = vadd.f32 %v386_v2, %v141_v46  ;;  %v145_v53 = vmul.f32 %v381_v1, %v74_v40 }
  0x31   :  { %338 = vst.msk [vmem:[%s964_s3 + $0x1a8] sm:$0xff] %vm284_vm0, %v273_v44  ;;  %339 = vst.msk [vmem:[%s964_s3 + $0x1b0] sm:$0xff] %vm284_vm0, %v274_v45  ;;  %v146_v54 = vmul.f32 %v381_v1, %v75_v41  ;;  %v147_v55 = vmul.f32 %v381_v1, %v76_v42  ;;  %v213_v56 = vadd.f32 %v386_v2, %v142_v49 }
  0x32   :  { %340 = vst.msk [vmem:[%s964_s3 + $0x1b8] sm:$0xff] %vm284_vm0, %v275_v48  ;;  %v214_v57 = vadd.f32 %v386_v2, %v143_v50  ;;  %v215_v58 = vadd.f32 %v386_v2, %v144_v51  ;;  %v148_v59 = vmul.f32 %v381_v1, %v77_v47  ;;  %v276_v60 = vmax.f32 %v212_v52, 0.0 }
  0x33   :  { %v216_v61 = vadd.f32 %v386_v2, %v145_v53  ;;  %v217_v62 = vadd.f32 %v386_v2, %v146_v54  ;;  %v218_v63 = vadd.f32 %v386_v2, %v147_v55  ;;  %v277_v0 = vmax.f32 %v213_v56, 0.0 }
  0x34   :  { %v278_v3 = vmax.f32 %v214_v57, 0.0  ;;  %v279_v4 = vmax.f32 %v215_v58, 0.0  ;;  %v219_v5 = vadd.f32 %v386_v2, %v148_v59  ;;  %341 = vst.msk [vmem:[%s964_s3 + $0x1c0] sm:$0xff] %vm284_vm0, %v276_v60 }
  0x35   :  { %v280_v6 = vmax.f32 %v216_v61, 0.0  ;;  %v281_v7 = vmax.f32 %v217_v62, 0.0  ;;  %v282_v1 = vmax.f32 %v218_v63, 0.0  ;;  %342 = vst.msk [vmem:[%s964_s3 + $0x1c8] sm:$0xff] %vm284_vm0, %v277_v0 }
  0x36   :  { %343 = vst.msk [vmem:[%s964_s3 + $0x1d0] sm:$0xff] %vm284_vm0, %v278_v3  ;;  %344 = vst.msk [vmem:[%s964_s3 + $0x1d8] sm:$0xff] %vm284_vm0, %v279_v4  ;;  %v283_v2 = vmax.f32 %v219_v5, 0.0 }
  0x37   :  { %345 = vst.msk [vmem:[%s964_s3 + $0x1e0] sm:$0xff] %vm284_vm0, %v280_v6  ;;  %346 = vst.msk [vmem:[%s964_s3 + $0x1e8] sm:$0xff] %vm284_vm0, %v281_v7 }
  0x38   :  { %347 = vst.msk [vmem:[%s964_s3 + $0x1f0] sm:$0xff] %vm284_vm0, %v282_v1  ;;  %348 = vst.msk [vmem:[%s964_s3 + $0x1f8] sm:$0xff] %vm284_vm0, %v283_v2 }

// kernel: densenet_forward.29
= control target key start
LH: loop header
LB: loop body
LE: loop exit
PB: predicated region body
PF: predicated region fallthrough
CT: control target
= control target key end

     0   :  { %v216_v0 = vlaneseq  ;;  %v1537_v1 = vmov 0.0|0.0   ;;  %vm577_vm0 = vcmask 154624   ;;  %vm770_vm1 = vcmask 1042432   ;;  %s2850_s3 = inlined_call_operand.vmem [shape: f32[147,16], index: 3, kind: input, shape index: {}]   ;;  %s2851_s0 = inlined_call_operand.vmem [shape: f32[512,147], index: 0, kind: input, shape index: {}]   ;;  %s2852_s1 = inlined_call_operand.vmem [shape: f32[1,147], index: 1, kind: input, shape index: {}]   ;;  %s2853_s2 = inlined_call_operand.vmem [shape: f32[1,147], index: 2, kind: input, shape index: {}]   ;;  %s2854_s4 = inlined_call_operand.vmem [shape: f32[512,16], index: 4, kind: output, shape index: {}]  }
   0x1   :  { %1488 = vmatprep.subr.bf16.mxu0 %v1537_v1  ;;  %1515 = vmatprep.subr.bf16.mxu1 %v1537_v1  ;;  %v558_v2 = vld [vmem:[%s2850_s3] sm:$0xff]  ;;  %v559_v3 = vld [vmem:[%s2850_s3 + $0x8] sm:$0xff]  ;;  %v560_v4 = vld [vmem:[%s2850_s3 + $0x10] sm:$0xff]  ;;  %v1538_v57 = vmov 0.0   ;;  %vm21_vm2 = vcmask 130048  }
   0x2   :  { %v1489_v5 = vpack.c.bf16 %v559_v3, %v558_v2  ;;  %v561_v6 = vld [vmem:[%s2850_s3 + $0x18] sm:$0xff]  ;;  %v1578_v7 = vshrl.u32 %v216_v0, 7  ;;  %v562_v10 = vld [vmem:[%s2850_s3 + $0x20] sm:$0xff]  ;;  %v563_v11 = vld [vmem:[%s2850_s3 + $0x28] sm:$0xff]  ;;  %22 = vst.msk [vmem:[#allocation2] sm:$0xff] %vm21_vm2, %v1538_v57 }
   0x3   :  { %v1492_v8 = vpack.c.bf16 %v561_v6, %v560_v4  ;;  %v87_v12 = vld [vmem:[%s2851_s0 + $0x8] sm:$0xff]  ;;  %v214_v13 = vld [vmem:[%s2852_s1] sm:$0x3]  ;;  %v1495_v14 = vpack.c.bf16 %v563_v11, %v562_v10  ;;  %v564_v18 = vld [vmem:[%s2850_s3 + $0x30] sm:$0xff]  ;;  %23 = vst.msk [vmem:[#allocation2 + $0x8] sm:$0xff] %vm21_vm2, %v1538_v57 }
   0x4   :  { %1490 = vmatpush1.bf16.msra.mxu0 %v1489_v5  ;;  %1525 = vmatpush1.bf16.msra.mxu1 %v1489_v5  ;;  %v222_v9 = vsub.s32 1, %v1578_v7  ;;  %v354_v16 = vld [vmem:[%s2853_s2] sm:$0x3]  ;;  %v151_v17 = vld [vmem:[%s2851_s0 + $0x208] sm:$0xff]  ;;  %v565_v19 = vld [vmem:[%s2850_s3 + $0x38] sm:$0xff]  ;;  %v218_v37 = vsub.s32 0, %v1578_v7 }
   0x5   :  { %1491 = vmatprep.subr.bf16.mxu0 %v1537_v1  ;;  %1516 = vmatprep.subr.bf16.mxu1 %v1537_v1  ;;  %v1498_v23 = vpack.c.bf16 %v565_v19, %v564_v18  ;;  %v566_v26 = vld [vmem:[%s2850_s3 + $0x40] sm:$0xff]  ;;  %v567_v27 = vld [vmem:[%s2850_s3 + $0x48] sm:$0xff]  ;;  %v568_v29 = vld [vmem:[%s2850_s3 + $0x50] sm:$0xff]  ;;  %24 = vst.msk [vmem:[#allocation2 + $0x10] sm:$0xff] %vm21_vm2, %v1538_v57 }
   0x6   :  { %v1595_v15 = vrot.slane %v214_v13, %v222_v9  ;;  %v1611_v20 = vrot.slane %v354_v16, %v222_v9  ;;  %v1501_v28 = vpack.c.bf16 %v567_v27, %v566_v26  ;;  %v569_v30 = vld [vmem:[%s2850_s3 + $0x58] sm:$0xff]  ;;  %v570_v32 = vld [vmem:[%s2850_s3 + $0x60] sm:$0xff]  ;;  %v571_v33 = vld [vmem:[%s2850_s3 + $0x68] sm:$0xff]  ;;  %v1660_v41 = vrot.slane %v214_v13, %v218_v37  ;;  %25 = vst.msk [vmem:[#allocation2 + $0x18] sm:$0xff] %vm21_vm2, %v1538_v57 }
   0x7   :  { %v1504_v31 = vpack.c.bf16 %v569_v30, %v568_v29  ;;  %v1507_v34 = vpack.c.bf16 %v571_v33, %v570_v32  ;;  %v572_v35 = vld [vmem:[%s2850_s3 + $0x70] sm:$0xff]  ;;  %v573_v36 = vld [vmem:[%s2850_s3 + $0x78] sm:$0xff]  ;;  %v574_v39 = vld [vmem:[%s2850_s3 + $0x80] sm:$0xff]  ;;  %v1676_v47 = vrot.slane %v354_v16, %v218_v37  ;;  %26 = vst.msk [vmem:[#allocation2 + $0x20] sm:$0xff] %vm21_vm2, %v1538_v57 }
   0x8   :  { %1493 = vmatpush1.bf16.msra.mxu0 %v1492_v8  ;;  %1526 = vmatpush1.bf16.msra.mxu1 %v1492_v8  ;;  %v227_v21 = vmul.f32 %v1595_v15, %v87_v12  ;;  %v291_v22 = vmul.f32 %v1595_v15, %v151_v17  ;;  %v1510_v38 = vpack.c.bf16 %v573_v36, %v572_v35  ;;  %v575_v40 = vld [vmem:[%s2850_s3 + $0x88] sm:$0xff]  ;;  %v86_v42 = vld [vmem:[%s2851_s0] sm:$0xff]  ;;  %v89_v44 = vld [vmem:[%s2851_s0 + $0x18] sm:$0xff] }
   0x9   :  { %1494 = vmatprep.subr.bf16.mxu0 %v1537_v1  ;;  %1517 = vmatprep.subr.bf16.mxu1 %v1537_v1  ;;  %v150_v43 = vld [vmem:[%s2851_s0 + $0x200] sm:$0xff]  ;;  %v153_v45 = vld [vmem:[%s2851_s0 + $0x218] sm:$0xff]  ;;  %v1513_v46 = vpack.c.bf16 %v575_v40, %v574_v39  ;;  %v226_v48 = vmul.f32 %v1660_v41, %v86_v42  ;;  %v88_v50 = vld [vmem:[%s2851_s0 + $0x10] sm:$0xff]  ;;  %v229_v51 = vmul.f32 %v1595_v15, %v89_v44 }
   0xa   :  { %v367_v24 = vadd.f32 %v1611_v20, %v227_v21  ;;  %v431_v25 = vadd.f32 %v1611_v20, %v291_v22  ;;  %v290_v49 = vmul.f32 %v1660_v41, %v150_v43  ;;  %v293_v52 = vmul.f32 %v1595_v15, %v153_v45  ;;  %v152_v53 = vld [vmem:[%s2851_s0 + $0x210] sm:$0xff]  ;;  %v91_v54 = vld [vmem:[%s2851_s0 + $0x28] sm:$0xff]  ;;  %v1716_v62 = vld [vmem:[%s2851_s0 + $0x20] sm:$0xff]  ;;  %27 = vst.msk [vmem:[#allocation2 + $0x28] sm:$0xff] %vm21_vm2, %v1538_v57 }
   0xb   :  { %v155_v55 = vld [vmem:[%s2851_s0 + $0x228] sm:$0xff]  ;;  %v1695_v56 = vmul.f32 %v1660_v41, %v88_v50  ;;  %v1702_v58 = vld [vmem:[%s2850_s3 + $0x90] sm:$0x7]  ;;  %v1705_v59 = vadd.f32 %v1676_v47, %v226_v48  ;;  %v1711_v61 = vmul.f32 %v1660_v41, %v152_v53  ;;  %v1719_v63 = vadd.f32 %v1611_v20, %v229_v51  ;;  %v1733_v3 = vld [vmem:[%s2851_s0 + $0x220] sm:$0xff]  ;;  %28 = vst.msk [vmem:[#allocation2 + $0x30] sm:$0xff] %vm21_vm2, %v1538_v57 }
   0xc   :  { %1496 = vmatpush1.bf16.msra.mxu0 %v1495_v14  ;;  %1527 = vmatpush1.bf16.msra.mxu1 %v1495_v14  ;;  %v1708_v60 = vadd.f32 %v1676_v47, %v290_v49  ;;  %v1722_v0 = vadd.f32 %v1611_v20, %v293_v52  ;;  %v1728_v2 = vmul.f32 %v1595_v15, %v155_v55  ;;  %v1738_v4 = vld [vmem:[%s2851_s0 + $0x38] sm:$0xff]  ;;  %v92_v11 = vld [vmem:[%s2851_s0 + $0x30] sm:$0xff]  ;;  %v95_v17 = vld [vmem:[%s2851_s0 + $0x48] sm:$0xff] }
   0xd   :  { %1497 = vmatprep.subr.bf16.mxu0 %v1537_v1  ;;  %1518 = vmatprep.subr.bf16.mxu1 %v1537_v1  ;;  %29 = vst.msk [vmem:[#allocation2 + $0x38] sm:$0xff] %vm21_vm2, %v1538_v57  ;;  %30 = vst.msk [vmem:[#allocation2 + $0x40] sm:$0xff] %vm21_vm2, %v1538_v57  ;;  %v157_v5 = vld [vmem:[%s2851_s0 + $0x238] sm:$0xff]  ;;  %v368_v6 = vadd.f32 %v1676_v47, %v1695_v56  ;;  %v230_v7 = vmul.f32 %v1660_v41, %v1716_v62  ;;  %v156_v16 = vld [vmem:[%s2851_s0 + $0x230] sm:$0xff] }
   0xe   :  { %1424 = vmatprep.mubr.msk.f32.mxu0 %vm577_vm0, %v367_v24  ;;  %1456 = vmatprep.mubr.msk.f32.mxu1 %vm577_vm0, %v431_v25  ;;  %31 = vst.msk [vmem:[#allocation2 + $0x48] sm:$0xff] %vm21_vm2, %v1538_v57  ;;  %32 = vst.msk [vmem:[#allocation2 + $0x50] sm:$0xff] %vm21_vm2, %v1538_v57  ;;  %v432_v8 = vadd.f32 %v1676_v47, %v1711_v61  ;;  %v294_v9 = vmul.f32 %v1660_v41, %v1733_v3  ;;  %v159_v18 = vld [vmem:[%s2851_s0 + $0x248] sm:$0xff]  ;;  %v94_v25 = vld [vmem:[%s2851_s0 + $0x40] sm:$0xff] }
   0xf   :  { %33 = vst.msk [vmem:[#allocation2 + $0x58] sm:$0xff] %vm21_vm2, %v1538_v57  ;;  %34 = vst.msk [vmem:[#allocation2 + $0x60] sm:$0xff] %vm21_vm2, %v1538_v57  ;;  %v233_v10 = vmul.f32 %v1595_v15, %v1738_v4  ;;  %v435_v13 = vadd.f32 %v1611_v20, %v1728_v2  ;;  %v297_v14 = vmul.f32 %v1595_v15, %v157_v5  ;;  %v158_v26 = vld [vmem:[%s2851_s0 + $0x240] sm:$0xff]  ;;  %v97_v30 = vld [vmem:[%s2851_s0 + $0x58] sm:$0xff] }
  0x10   :  { %1499 = vmatpush1.bf16.msra.mxu0 %v1498_v23  ;;  %1528 = vmatpush1.bf16.msra.mxu1 %v1498_v23  ;;  %35 = vst.msk [vmem:[#allocation2 + $0x68] sm:$0xff] %vm21_vm2, %v1538_v57  ;;  %36 = vst.msk [vmem:[#allocation2 + $0x70] sm:$0xff] %vm21_vm2, %v1538_v57  ;;  %v370_v19 = vadd.f32 %v1676_v47, %v230_v7  ;;  %v232_v21 = vmul.f32 %v1660_v41, %v92_v11  ;;  %v96_v40 = vld [vmem:[%s2851_s0 + $0x50] sm:$0xff]  ;;  %v99_v43 = vld [vmem:[%s2851_s0 + $0x68] sm:$0xff] }
  0x11   :  { %1500 = vmatprep.subr.bf16.mxu0 %v1537_v1  ;;  %1519 = vmatprep.subr.bf16.mxu1 %v1537_v1  ;;  %37 = vst.msk [vmem:[#allocation2 + $0x78] sm:$0xff] %vm21_vm2, %v1538_v57  ;;  %38 = vst.msk [vmem:[#allocation2 + $0x80] sm:$0xff] %vm21_vm2, %v1538_v57  ;;  %v434_v22 = vadd.f32 %v1676_v47, %v294_v9  ;;  %v373_v23 = vadd.f32 %v1611_v20, %v233_v10  ;;  %v160_v42 = vld [vmem:[%s2851_s0 + $0x250] sm:$0xff]  ;;  %v163_v44 = vld [vmem:[%s2851_s0 + $0x268] sm:$0xff] }
  0x12   :  { %39 = vst.msk [vmem:[#allocation2 + $0x88] sm:$0xff] %vm21_vm2, %v1538_v57  ;;  %40 = vst.msk [vmem:[#allocation2 + $0x90] sm:$0xff] %vm21_vm2, %v1538_v57  ;;  %v296_v24 = vmul.f32 %v1660_v41, %v156_v16  ;;  %v437_v27 = vadd.f32 %v1611_v20, %v297_v14  ;;  %v299_v29 = vmul.f32 %v1595_v15, %v159_v18  ;;  %v98_v51 = vld [vmem:[%s2851_s0 + $0x60] sm:$0xff]  ;;  %v101_v56 = vld [vmem:[%s2851_s0 + $0x78] sm:$0xff] }
  0x13   :  { %41 = vst.msk [vmem:[#allocation2 + $0x98] sm:$0xff] %vm21_vm2, %v1538_v57  ;;  %42 = vst.msk [vmem:[#allocation2 + $0xa0] sm:$0xff] %vm21_vm2, %v1538_v57  ;;  %v234_v32 = vmul.f32 %v1660_v41, %v94_v25  ;;  %v298_v33 = vmul.f32 %v1660_v41, %v158_v26  ;;  %v237_v36 = vmul.f32 %v1595_v15, %v97_v30  ;;  %v162_v52 = vld [vmem:[%s2851_s0 + $0x260] sm:$0xff]  ;;  %v100_v2 = vld [vmem:[%s2851_s0 + $0x70] sm:$0xff] }
  0x14   :  { %1502 = vmatpush1.bf16.msra.mxu0 %v1501_v28  ;;  %1529 = vmatpush1.bf16.msra.mxu1 %v1501_v28  ;;  %43 = vst.msk [vmem:[#allocation2 + $0xa8] sm:$0xff] %vm21_vm2, %v1538_v57  ;;  %44 = vst.msk [vmem:[#allocation2 + $0xb0] sm:$0xff] %vm21_vm2, %v1538_v57  ;;  %v235_v28 = vmul.f32 %v1595_v15, %v95_v17  ;;  %v436_v35 = vadd.f32 %v1676_v47, %v296_v24  ;;  %v164_v3 = vld [vmem:[%s2851_s0 + $0x270] sm:$0xff]  ;;  %v103_v4 = vld [vmem:[%s2851_s0 + $0x88] sm:$0xff] }
  0x15   :  { %1503 = vmatprep.subr.bf16.mxu0 %v1537_v1  ;;  %1520 = vmatprep.subr.bf16.mxu1 %v1537_v1  ;;  %45 = vst.msk [vmem:[#allocation2 + $0xb8] sm:$0xff] %vm21_vm2, %v1538_v57  ;;  %46 = vst.msk [vmem:[#allocation2 + $0xc0] sm:$0xff] %vm21_vm2, %v1538_v57  ;;  %v374_v45 = vadd.f32 %v1676_v47, %v234_v32  ;;  %v377_v48 = vadd.f32 %v1611_v20, %v237_v36  ;;  %v167_v5 = vld [vmem:[%s2851_s0 + $0x288] sm:$0xff]  ;;  %v102_v11 = vld [vmem:[%s2851_s0 + $0x80] sm:$0xff] }
  0x16   :  { %47 = vst.msk [vmem:[#allocation2 + $0xc8] sm:$0xff] %vm21_vm2, %v1538_v57  ;;  %48 = vst.msk [vmem:[#allocation2 + $0xd0] sm:$0xff] %vm21_vm2, %v1538_v57  ;;  %v375_v37 = vadd.f32 %v1611_v20, %v235_v28  ;;  %v236_v49 = vmul.f32 %v1660_v41, %v96_v40  ;;  %v300_v50 = vmul.f32 %v1660_v41, %v160_v42  ;;  %v105_v17 = vld [vmem:[%s2851_s0 + $0x98] sm:$0xff]  ;;  %v104_v25 = vld [vmem:[%s2851_s0 + $0x90] sm:$0xff] }
  0x17   :  { %49 = vst.msk [vmem:[#allocation2 + $0xd8] sm:$0xff] %vm21_vm2, %v1538_v57  ;;  %50 = vst.msk [vmem:[#allocation2 + $0xe0] sm:$0xff] %vm21_vm2, %v1538_v57  ;;  %v303_v55 = vmul.f32 %v1595_v15, %v163_v44  ;;  %v241_v62 = vmul.f32 %v1595_v15, %v101_v56  ;;  %v304_v9 = vmul.f32 %v1660_v41, %v164_v3  ;;  %v169_v18 = vld [vmem:[%s2851_s0 + $0x298] sm:$0xff]  ;;  %v107_v30 = vld [vmem:[%s2851_s0 + $0xa8] sm:$0xff] }
  0x18   :  { %1505 = vmatpush1.bf16.msra.mxu0 %v1504_v31  ;;  %1530 = vmatpush1.bf16.msra.mxu1 %v1504_v31  ;;  %51 = vst.msk [vmem:[#allocation2 + $0xe8] sm:$0xff] %vm21_vm2, %v1538_v57  ;;  %52 = vst.msk [vmem:[#allocation2 + $0xf0] sm:$0xff] %vm21_vm2, %v1538_v57  ;;  %v161_v31 = vld [vmem:[%s2851_s0 + $0x258] sm:$0xff]  ;;  %v440_v61 = vadd.f32 %v1676_v47, %v300_v50  ;;  %v243_v10 = vmul.f32 %v1595_v15, %v103_v4  ;;  %v170_v42 = vld [vmem:[%s2851_s0 + $0x2a0] sm:$0xff] }
  0x19   :  { %1506 = vmatprep.subr.bf16.mxu0 %v1537_v1  ;;  %1521 = vmatprep.subr.bf16.mxu1 %v1537_v1  ;;  %53 = vst.msk [vmem:[#allocation2 + $0xf8] sm:$0xff] %vm21_vm2, %v1538_v57  ;;  %54 = vst.msk [vmem:[#allocation2 + $0x100] sm:$0xff] %vm21_vm2, %v1538_v57  ;;  %v301_v39 = vmul.f32 %v1595_v15, %v161_v31  ;;  %v307_v16 = vmul.f32 %v1595_v15, %v167_v5  ;;  %v171_v31 = vld [vmem:[%s2851_s0 + $0x2a8] sm:$0xff]  ;;  %v173_v44 = vld [vmem:[%s2851_s0 + $0x2b8] sm:$0xff] }
  0x1a   :  { %55 = vst.msk [vmem:[#allocation2 + $0x108] sm:$0xff] %vm21_vm2, %v1538_v57  ;;  %56 = vst.msk [vmem:[#allocation2 + $0x110] sm:$0xff] %vm21_vm2, %v1538_v57  ;;  %v383_v24 = vadd.f32 %v1611_v20, %v243_v10  ;;  %v309_v28 = vmul.f32 %v1595_v15, %v169_v18  ;;  %v247_v36 = vmul.f32 %v1595_v15, %v107_v30  ;;  %v111_v56 = vld [vmem:[%s2851_s0 + $0xc8] sm:$0xff]  ;;  %v174_v3 = vld [vmem:[%s2851_s0 + $0x2c0] sm:$0xff] }
  0x1b   :  { %57 = vst.msk [vmem:[#allocation2 + $0x118] sm:$0xff] %vm21_vm2, %v1538_v57  ;;  %58 = vst.msk [vmem:[#allocation2 + $0x120] sm:$0xff] %vm21_vm2, %v1538_v57  ;;  %v441_v53 = vadd.f32 %v1611_v20, %v301_v39  ;;  %v447_v26 = vadd.f32 %v1611_v20, %v307_v16  ;;  %v311_v40 = vmul.f32 %v1595_v15, %v171_v31  ;;  %v113_v4 = vld [vmem:[%s2851_s0 + $0xd8] sm:$0xff]  ;;  %v179_v18 = vld [vmem:[%s2851_s0 + $0x2e8] sm:$0xff] }
  0x1c   :  { %1508 = vmatpush1.bf16.msra.mxu0 %v1507_v34  ;;  %1531 = vmatpush1.bf16.msra.mxu1 %v1507_v34  ;;  %59 = vst.msk [vmem:[#allocation2 + $0x128] sm:$0xff] %vm21_vm2, %v1538_v57  ;;  %60 = vst.msk [vmem:[#allocation2 + $0x130] sm:$0xff] %vm21_vm2, %v1538_v57  ;;  %v372_v34 = vadd.f32 %v1676_v47, %v232_v21  ;;  %v449_v39 = vadd.f32 %v1611_v20, %v309_v28  ;;  %v177_v5 = vld [vmem:[%s2851_s0 + $0x2d8] sm:$0xff]  ;;  %v114_v28 = vld [vmem:[%s2851_s0 + $0xe0] sm:$0xff] }
  0x1d   :  { %1509 = vmatprep.subr.bf16.mxu0 %v1537_v1  ;;  %1522 = vmatprep.subr.bf16.mxu1 %v1537_v1  ;;  %61 = vst.msk [vmem:[#allocation2 + $0x138] sm:$0xff] %vm21_vm2, %v1538_v57  ;;  %62 = vst.msk [vmem:[#allocation2 + $0x140] sm:$0xff] %vm21_vm2, %v1538_v57  ;;  %v310_v50 = vmul.f32 %v1660_v41, %v170_v42  ;;  %v314_v10 = vmul.f32 %v1660_v41, %v174_v3  ;;  %v117_v30 = vld [vmem:[%s2851_s0 + $0xf8] sm:$0xff]  ;;  %v184_v3 = vld [vmem:[%s2851_s0 + $0x310] sm:$0xff] }
  0x1e   :  { %63 = vst.msk [vmem:[#allocation2 + $0x148] sm:$0xff] %vm21_vm2, %v1538_v57  ;;  %64 = vst.msk [vmem:[#allocation2 + $0x150] sm:$0xff] %vm21_vm2, %v1538_v57  ;;  %v317_v16 = vmul.f32 %v1595_v15, %v177_v5  ;;  %v181_v31 = vld [vmem:[%s2851_s0 + $0x2f8] sm:$0xff]  ;;  %v187_v5 = vld [vmem:[%s2851_s0 + $0x328] sm:$0xff] }
  0x1f   :  { %65 = vst.msk [vmem:[#allocation2 + $0x158] sm:$0xff] %vm21_vm2, %v1538_v57  ;;  %66 = vst.msk [vmem:[#allocation2 + $0x160] sm:$0xff] %vm21_vm2, %v1538_v57  ;;  %v321_v42 = vmul.f32 %v1595_v15, %v181_v31  ;;  %v191_v31 = vld [vmem:[%s2851_s0 + $0x348] sm:$0xff] }
  0x20   :  { %1511 = vmatpush1.bf16.msra.mxu0 %v1510_v38  ;;  %1532 = vmatpush1.bf16.msra.mxu1 %v1510_v38  ;;  %67 = vst.msk [vmem:[#allocation2 + $0x168] sm:$0xff] %vm21_vm2, %v1538_v57  ;;  %68 = vst.msk [vmem:[#allocation2 + $0x170] sm:$0xff] %vm21_vm2, %v1538_v57  ;;  %v439_v38 = vadd.f32 %v1611_v20, %v299_v29  ;;  %v168_v29 = vld [vmem:[%s2851_s0 + $0x290] sm:$0xff] }
  0x21   :  { %1512 = vmatprep.subr.bf16.mxu0 %v1537_v1  ;;  %1523 = vmatprep.subr.bf16.mxu1 %v1537_v1  ;;  %v1725_v1 = vmul.f32 %v1595_v15, %v91_v54  ;;  %69 = vst.msk [vmem:[#allocation2 + $0x178] sm:$0xff] %vm21_vm2, %v1538_v57  ;;  %70 = vst.msk [vmem:[#allocation2 + $0x180] sm:$0xff] %vm21_vm2, %v1538_v57  ;;  %v239_v54 = vmul.f32 %v1595_v15, %v99_v43  ;;  %v109_v43 = vld [vmem:[%s2851_s0 + $0xb8] sm:$0xff] }
  0x22   :  { %71 = vst.msk [vmem:[#allocation2 + $0x188] sm:$0xff] %vm21_vm2, %v1538_v57  ;;  %72 = vst.msk [vmem:[#allocation2 + $0x190] sm:$0xff] %vm21_vm2, %v1538_v57 }
  0x23   :  { %73 = vst.msk [vmem:[#allocation2 + $0x198] sm:$0xff] %vm21_vm2, %v1538_v57  ;;  %74 = vst.msk [vmem:[#allocation2 + $0x1a0] sm:$0xff] %vm21_vm2, %v1538_v57  ;;  %v371_v12 = vadd.f32 %v1611_v20, %v1725_v1 }
  0x24   :  { %1514 = vmatpush1.bf16.msra.mxu0 %v1513_v46  ;;  %1533 = vmatpush1.bf16.msra.mxu1 %v1513_v46  ;;  %75 = vst.msk [vmem:[#allocation2 + $0x1a8] sm:$0xff] %vm21_vm2, %v1538_v57  ;;  %76 = vst.msk [vmem:[#allocation2 + $0x1b0] sm:$0xff] %vm21_vm2, %v1538_v57  ;;  %v438_v46 = vadd.f32 %v1676_v47, %v298_v33  ;;  %v244_v33 = vmul.f32 %v1660_v41, %v104_v25 }
  0x25   :  { %810 = vmatprep.subr.mxu0 %v1538_v57  ;;  %1524 = vmatprep.subr.mxu1 %v1538_v57  ;;  %77 = vst.msk [vmem:[#allocation2 + $0x1b8] sm:$0xff] %vm21_vm2, %v1538_v57  ;;  %78 = vst.msk [vmem:[#allocation2 + $0x1c0] sm:$0xff] %vm21_vm2, %v1538_v57 }
  0x26   :  { %79 = vst.msk [vmem:[#allocation2 + $0x1c8] sm:$0xff] %vm21_vm2, %v1538_v57  ;;  %80 = vst.msk [vmem:[#allocation2 + $0x1d0] sm:$0xff] %vm21_vm2, %v1538_v57 }
  0x27   :  { %81 = vst.msk [vmem:[#allocation2 + $0x1d8] sm:$0xff] %vm21_vm2, %v1538_v57  ;;  %82 = vst.msk [vmem:[#allocation2 + $0x1e0] sm:$0xff] %vm21_vm2, %v1538_v57 }
  0x28   :  { %83 = vst.msk [vmem:[#allocation2 + $0x1e8] sm:$0xff] %vm21_vm2, %v1538_v57  ;;  %84 = vst.msk [vmem:[#allocation2 + $0x1f0] sm:$0xff] %vm21_vm2, %v1538_v57  ;;  %1423 = vmatpush1.msk.msra.mxu0 %vm770_vm1, %v1702_v58  ;;  %1534 = vmatpush1.msk.msra.mxu1 %vm770_vm1, %v1702_v58  ;;  %v238_v58 = vmul.f32 %v1660_v41, %v98_v51  ;;  %v108_v51 = vld [vmem:[%s2851_s0 + $0xb0] sm:$0xff] }
  0x29   :  { %85 = vst.msk [vmem:[#allocation2 + $0x1f8] sm:$0xff] %vm21_vm2, %v1538_v57  ;;  %839 = vmatmul.mubr.f32.vlgmr.msra.gmra.mrb[0].mxu0 %v1705_v59  ;;  %999 = vmatmul.mubr.f32.vlgmr.msra.gmra.mrb[0].mxu1 %v1708_v60  ;;  %v165_v57 = vld [vmem:[%s2851_s0 + $0x278] sm:$0xff]  ;;  %v302_v59 = vmul.f32 %v1660_v41, %v162_v52  ;;  %v376_v60 = vadd.f32 %v1676_v47, %v236_v49  ;;  %v172_v52 = vld [vmem:[%s2851_s0 + $0x2b0] sm:$0xff] }
  0x2a   :  { %1425 = vmatprep.mubr.msk.f32.mxu0 %vm577_vm0, %v1719_v63  ;;  %1457 = vmatprep.mubr.msk.f32.mxu1 %vm577_vm0, %v1722_v0  ;;  %v379_v63 = vadd.f32 %v1611_v20, %v239_v54  ;;  %v443_v0 = vadd.f32 %v1611_v20, %v303_v55  ;;  %v305_v1 = vmul.f32 %v1595_v15, %v165_v57  ;;  %v175_v57 = vld [vmem:[%s2851_s0 + $0x2c8] sm:$0xff] }
  0x2b   :  { %v442_v7 = vadd.f32 %v1676_v47, %v302_v59  ;;  %v387_v49 = vadd.f32 %v1611_v20, %v247_v36  ;;  %v249_v54 = vmul.f32 %v1595_v15, %v109_v43  ;;  %v313_v55 = vmul.f32 %v1595_v15, %v173_v44  ;;  %v119_v43 = vld [vmem:[%s2851_s0 + $0x108] sm:$0xff] }
  0x2c   :  { %v445_v14 = vadd.f32 %v1611_v20, %v305_v1  ;;  %v312_v59 = vmul.f32 %v1660_v41, %v172_v52  ;;  %v315_v1 = vmul.f32 %v1595_v15, %v175_v57  ;;  %v183_v44 = vld [vmem:[%s2851_s0 + $0x308] sm:$0xff]  ;;  %v185_v57 = vld [vmem:[%s2851_s0 + $0x318] sm:$0xff] }
  0x2d   :  { %844 = vmatmul.mubr.f32.gmra.mrb[2].mxu0 %v368_v6  ;;  %1004 = vmatmul.mubr.f32.gmra.mrb[2].mxu1 %v432_v8  ;;  %v378_v6 = vadd.f32 %v1676_v47, %v238_v58  ;;  %v240_v8 = vmul.f32 %v1660_v41, %v100_v2  ;;  %v248_v58 = vmul.f32 %v1660_v41, %v108_v51  ;;  %v110_v2 = vld [vmem:[%s2851_s0 + $0xc0] sm:$0xff] }
  0x2e   :  { %1426 = vmatprep.mubr.msk.f32.mxu0 %vm577_vm0, %v371_v12  ;;  %1458 = vmatprep.mubr.msk.f32.mxu1 %vm577_vm0, %v435_v13  ;;  %v166_v12 = vld [vmem:[%s2851_s0 + $0x280] sm:$0xff]  ;;  %v381_v13 = vadd.f32 %v1611_v20, %v241_v62  ;;  %v251_v62 = vmul.f32 %v1595_v15, %v111_v56  ;;  %v121_v56 = vld [vmem:[%s2851_s0 + $0x118] sm:$0xff] }
  0x2f   :  { %v306_v21 = vmul.f32 %v1660_v41, %v166_v12  ;;  %v176_v12 = vld [vmem:[%s2851_s0 + $0x2d0] sm:$0xff]  ;;  %v118_v51 = vld [vmem:[%s2851_s0 + $0x100] sm:$0xff] }
  0x31   :  { %849 = vmatmul.mubr.f32.gmra.mrb[4].mxu0 %v370_v19  ;;  %1009 = vmatmul.mubr.f32.gmra.mrb[4].mxu1 %v434_v22  ;;  %v242_v19 = vmul.f32 %v1660_v41, %v102_v11  ;;  %v380_v22 = vadd.f32 %v1676_v47, %v240_v8  ;;  %v391_v8 = vadd.f32 %v1611_v20, %v251_v62  ;;  %v112_v11 = vld [vmem:[%s2851_s0 + $0xd0] sm:$0xff] }
  0x32   :  { %1427 = vmatprep.mubr.msk.f32.mxu0 %vm577_vm0, %v373_v23  ;;  %1459 = vmatprep.mubr.msk.f32.mxu1 %vm577_vm0, %v437_v27  ;;  %v444_v23 = vadd.f32 %v1676_v47, %v304_v9  ;;  %v245_v27 = vmul.f32 %v1595_v15, %v105_v17  ;;  %v250_v9 = vmul.f32 %v1660_v41, %v110_v2  ;;  %v115_v17 = vld [vmem:[%s2851_s0 + $0xe8] sm:$0xff] }
  0x33   :  { %v382_v32 = vadd.f32 %v1676_v47, %v242_v19  ;;  %v252_v19 = vmul.f32 %v1660_v41, %v112_v11  ;;  %v261_v62 = vmul.f32 %v1595_v15, %v121_v56  ;;  %v325_v2 = vmul.f32 %v1595_v15, %v185_v57  ;;  %v122_v11 = vld [vmem:[%s2851_s0 + $0x120] sm:$0xff]  ;;  %v131_v56 = vld [vmem:[%s2851_s0 + $0x168] sm:$0xff] }
  0x34   :  { %v195_v57 = vld [vmem:[%s2851_s0 + $0x368] sm:$0xff] }
  0x35   :  { %854 = vmatmul.mubr.f32.gmra.mrb[6].mxu0 %v372_v34  ;;  %1014 = vmatmul.mubr.f32.gmra.mrb[6].mxu1 %v436_v35  ;;  %v446_v34 = vadd.f32 %v1676_v47, %v306_v21  ;;  %v308_v35 = vmul.f32 %v1660_v41, %v168_v29  ;;  %v316_v21 = vmul.f32 %v1660_v41, %v176_v12  ;;  %v178_v29 = vld [vmem:[%s2851_s0 + $0x2e0] sm:$0xff] }
  0x36   :  { %1428 = vmatprep.mubr.msk.f32.mxu0 %vm577_vm0, %v375_v37  ;;  %1460 = vmatprep.mubr.msk.f32.mxu1 %vm577_vm0, %v439_v38  ;;  %v106_v37 = vld [vmem:[%s2851_s0 + $0xa0] sm:$0xff]  ;;  %v385_v38 = vadd.f32 %v1611_v20, %v245_v27  ;;  %v319_v27 = vmul.f32 %v1595_v15, %v179_v18  ;;  %v318_v36 = vmul.f32 %v1660_v41, %v178_v29  ;;  %v189_v18 = vld [vmem:[%s2851_s0 + $0x338] sm:$0xff]  ;;  %v188_v29 = vld [vmem:[%s2851_s0 + $0x330] sm:$0xff] }
  0x37   :  { %v465_v12 = vadd.f32 %v1611_v20, %v325_v2  ;;  %v271_v2 = vmul.f32 %v1595_v15, %v131_v56  ;;  %v141_v56 = vld [vmem:[%s2851_s0 + $0x1b8] sm:$0xff] }
  0x39   :  { %859 = vmatmul.mubr.f32.gmra.mrb[8].mxu0 %v374_v45  ;;  %1019 = vmatmul.mubr.f32.gmra.mrb[8].mxu1 %v438_v46  ;;  %v384_v45 = vadd.f32 %v1676_v47, %v244_v33  ;;  %v246_v46 = vmul.f32 %v1660_v41, %v106_v37  ;;  %v456_v33 = vadd.f32 %v1676_v47, %v316_v21  ;;  %v116_v37 = vld [vmem:[%s2851_s0 + $0xf0] sm:$0xff] }
  0x3a   :  { %1429 = vmatprep.mubr.msk.f32.mxu0 %vm577_vm0, %v377_v48  ;;  %1461 = vmatprep.mubr.msk.f32.mxu1 %vm577_vm0, %v441_v53  ;;  %v448_v48 = vadd.f32 %v1676_v47, %v308_v35  ;;  %v451_v53 = vadd.f32 %v1611_v20, %v311_v40  ;;  %v254_v35 = vmul.f32 %v1660_v41, %v114_v28 }
  0x3b   :  { %v257_v40 = vmul.f32 %v1595_v15, %v117_v30  ;;  %v262_v21 = vmul.f32 %v1660_v41, %v122_v11  ;;  %v329_v28 = vmul.f32 %v1595_v15, %v189_v18  ;;  %v127_v30 = vld [vmem:[%s2851_s0 + $0x148] sm:$0xff]  ;;  %v132_v11 = vld [vmem:[%s2851_s0 + $0x170] sm:$0xff] }
  0x3c   :  { %v199_v18 = vld [vmem:[%s2851_s0 + $0x388] sm:$0xff] }
  0x3d   :  { %864 = vmatmul.mubr.f32.gmra.mrb[10].mxu0 %v376_v60  ;;  %1024 = vmatmul.mubr.f32.gmra.mrb[10].mxu1 %v440_v61  ;;  %v386_v60 = vadd.f32 %v1676_v47, %v246_v46  ;;  %v450_v61 = vadd.f32 %v1676_v47, %v310_v50  ;;  %v259_v50 = vmul.f32 %v1595_v15, %v119_v43  ;;  %v129_v43 = vld [vmem:[%s2851_s0 + $0x158] sm:$0xff] }
  0x3e   :  { %1430 = vmatprep.mubr.msk.f32.mxu0 %vm577_vm0, %v379_v63  ;;  %1462 = vmatprep.mubr.msk.f32.mxu1 %vm577_vm0, %v443_v0  ;;  %v389_v63 = vadd.f32 %v1611_v20, %v249_v54  ;;  %v453_v0 = vadd.f32 %v1611_v20, %v313_v55  ;;  %v397_v52 = vadd.f32 %v1611_v20, %v257_v40  ;;  %v182_v55 = vld [vmem:[%s2851_s0 + $0x300] sm:$0xff] }
  0x3f   :  { %v323_v54 = vmul.f32 %v1595_v15, %v183_v44  ;;  %v267_v40 = vmul.f32 %v1595_v15, %v127_v30  ;;  %v193_v44 = vld [vmem:[%s2851_s0 + $0x358] sm:$0xff] }
  0x40   :  { %v137_v30 = vld [vmem:[%s2851_s0 + $0x198] sm:$0xff] }
  0x41   :  { %869 = vmatmul.mubr.f32.gmra.mrb[12].mxu0 %v378_v6  ;;  %1029 = vmatmul.mubr.f32.gmra.mrb[12].mxu1 %v442_v7  ;;  %v388_v6 = vadd.f32 %v1676_v47, %v248_v58  ;;  %v452_v7 = vadd.f32 %v1676_v47, %v312_v59  ;;  %v258_v59 = vmul.f32 %v1660_v41, %v118_v51 }
  0x42   :  { %1431 = vmatprep.mubr.msk.f32.mxu0 %vm577_vm0, %v381_v13  ;;  %1463 = vmatprep.mubr.msk.f32.mxu1 %vm577_vm0, %v445_v14  ;;  %v455_v13 = vadd.f32 %v1611_v20, %v315_v1  ;;  %v253_v14 = vmul.f32 %v1595_v15, %v113_v4  ;;  %v463_v1 = vadd.f32 %v1611_v20, %v323_v54  ;;  %v123_v4 = vld [vmem:[%s2851_s0 + $0x128] sm:$0xff]  ;;  %v128_v54 = vld [vmem:[%s2851_s0 + $0x150] sm:$0xff] }
  0x43   :  { %v407_v51 = vadd.f32 %v1611_v20, %v267_v40 }
  0x44   :  { %v393_v25 = vadd.f32 %v1611_v20, %v253_v14  ;;  %v327_v14 = vmul.f32 %v1595_v15, %v187_v5  ;;  %v197_v5 = vld [vmem:[%s2851_s0 + $0x378] sm:$0xff] }
  0x45   :  { %874 = vmatmul.mubr.f32.gmra.mrb[14].mxu0 %v380_v22  ;;  %1034 = vmatmul.mubr.f32.gmra.mrb[14].mxu1 %v444_v23  ;;  %v390_v22 = vadd.f32 %v1676_v47, %v250_v9  ;;  %v454_v23 = vadd.f32 %v1676_v47, %v314_v10  ;;  %v401_v9 = vadd.f32 %v1611_v20, %v261_v62 }
  0x46   :  { %1432 = vmatprep.mubr.msk.f32.mxu0 %vm577_vm0, %v383_v24  ;;  %1464 = vmatprep.mubr.msk.f32.mxu1 %vm577_vm0, %v447_v26  ;;  %v255_v24 = vmul.f32 %v1595_v15, %v115_v17  ;;  %v457_v26 = vadd.f32 %v1611_v20, %v317_v16  ;;  %v324_v10 = vmul.f32 %v1660_v41, %v184_v3  ;;  %v186_v16 = vld [vmem:[%s2851_s0 + $0x320] sm:$0xff]  ;;  %v125_v17 = vld [vmem:[%s2851_s0 + $0x138] sm:$0xff] }
  0x47   :  { %v335_v3 = vmul.f32 %v1595_v15, %v195_v57  ;;  %v205_v57 = vld [vmem:[%s2851_s0 + $0x3b8] sm:$0xff] }
  0x49   :  { %879 = vmatmul.mubr.f32.gmra.mrb[16].mxu0 %v382_v32  ;;  %1039 = vmatmul.mubr.f32.gmra.mrb[16].mxu1 %v446_v34  ;;  %v392_v32 = vadd.f32 %v1676_v47, %v252_v19  ;;  %v395_v34 = vadd.f32 %v1611_v20, %v255_v24  ;;  %v265_v24 = vmul.f32 %v1595_v15, %v125_v17  ;;  %v135_v17 = vld [vmem:[%s2851_s0 + $0x188] sm:$0xff] }
  0x4a   :  { %1433 = vmatprep.mubr.msk.f32.mxu0 %vm577_vm0, %v385_v38  ;;  %1465 = vmatprep.mubr.msk.f32.mxu1 %vm577_vm0, %v449_v39  ;;  %v180_v38 = vld [vmem:[%s2851_s0 + $0x2f0] sm:$0xff]  ;;  %v459_v39 = vadd.f32 %v1611_v20, %v319_v27  ;;  %v467_v27 = vadd.f32 %v1611_v20, %v327_v14  ;;  %v337_v14 = vmul.f32 %v1595_v15, %v197_v5  ;;  %v207_v5 = vld [vmem:[%s2851_s0 + $0x3c8] sm:$0xff] }
  0x4b   :  { %v320_v46 = vmul.f32 %v1660_v41, %v180_v38  ;;  %v190_v38 = vld [vmem:[%s2851_s0 + $0x340] sm:$0xff] }
  0x4d   :  { %884 = vmatmul.mubr.f32.gmra.mrb[18].mxu0 %v384_v45  ;;  %1044 = vmatmul.mubr.f32.gmra.mrb[18].mxu1 %v448_v48  ;;  %v256_v45 = vmul.f32 %v1660_v41, %v116_v37  ;;  %v394_v48 = vadd.f32 %v1676_v47, %v254_v35  ;;  %v405_v35 = vadd.f32 %v1611_v20, %v265_v24  ;;  %v126_v37 = vld [vmem:[%s2851_s0 + $0x140] sm:$0xff] }
  0x4e   :  { %1434 = vmatprep.mubr.msk.f32.mxu0 %vm577_vm0, %v387_v49  ;;  %1466 = vmatprep.mubr.msk.f32.mxu1 %vm577_vm0, %v451_v53  ;;  %v458_v49 = vadd.f32 %v1676_v47, %v318_v36  ;;  %v461_v53 = vadd.f32 %v1611_v20, %v321_v42  ;;  %v328_v36 = vmul.f32 %v1660_v41, %v188_v29  ;;  %v198_v29 = vld [vmem:[%s2851_s0 + $0x380] sm:$0xff] }
  0x4f   :  { %v396_v58 = vadd.f32 %v1676_v47, %v256_v45  ;;  %v331_v42 = vmul.f32 %v1595_v15, %v191_v31  ;;  %v266_v45 = vmul.f32 %v1660_v41, %v126_v37  ;;  %v275_v24 = vmul.f32 %v1595_v15, %v135_v17  ;;  %v201_v31 = vld [vmem:[%s2851_s0 + $0x398] sm:$0xff]  ;;  %v136_v37 = vld [vmem:[%s2851_s0 + $0x190] sm:$0xff] }
  0x50   :  { %v341_v40 = vmul.f32 %v1595_v15, %v201_v31  ;;  %v145_v17 = vld [vmem:[%s2851_s0 + $0x1d8] sm:$0xff]  ;;  %v211_v31 = vld [vmem:[%s2851_s0 + $0x3e8] sm:$0xff] }
  0x51   :  { %889 = vmatmul.mubr.f32.gmra.mrb[20].mxu0 %v386_v60  ;;  %1049 = vmatmul.mubr.f32.gmra.mrb[20].mxu1 %v450_v61  ;;  %v460_v60 = vadd.f32 %v1676_v47, %v320_v46  ;;  %v322_v61 = vmul.f32 %v1660_v41, %v182_v55  ;;  %v330_v46 = vmul.f32 %v1660_v41, %v190_v38  ;;  %v192_v55 = vld [vmem:[%s2851_s0 + $0x350] sm:$0xff] }
  0x52   :  { %1435 = vmatprep.mubr.msk.f32.mxu0 %vm577_vm0, %v389_v63  ;;  %1467 = vmatprep.mubr.msk.f32.mxu1 %vm577_vm0, %v453_v0  ;;  %v120_v63 = vld [vmem:[%s2851_s0 + $0x110] sm:$0xff]  ;;  %v399_v0 = vadd.f32 %v1611_v20, %v259_v50  ;;  %v269_v50 = vmul.f32 %v1595_v15, %v129_v43  ;;  %v332_v62 = vmul.f32 %v1660_v41, %v192_v55  ;;  %v139_v43 = vld [vmem:[%s2851_s0 + $0x1a8] sm:$0xff]  ;;  %v202_v55 = vld [vmem:[%s2851_s0 + $0x3a0] sm:$0xff] }
  0x55   :  { %894 = vmatmul.mubr.f32.gmra.mrb[22].mxu0 %v388_v6  ;;  %1054 = vmatmul.mubr.f32.gmra.mrb[22].mxu1 %v452_v7  ;;  %v398_v6 = vadd.f32 %v1676_v47, %v258_v59  ;;  %v260_v7 = vmul.f32 %v1660_v41, %v120_v63  ;;  %v470_v59 = vadd.f32 %v1676_v47, %v330_v46  ;;  %v130_v63 = vld [vmem:[%s2851_s0 + $0x160] sm:$0xff] }
  0x56   :  { %1436 = vmatprep.mubr.msk.f32.mxu0 %vm577_vm0, %v391_v8  ;;  %1468 = vmatprep.mubr.msk.f32.mxu1 %vm577_vm0, %v455_v13  ;;  %v462_v8 = vadd.f32 %v1676_v47, %v322_v61  ;;  %v263_v13 = vmul.f32 %v1595_v15, %v123_v4  ;;  %v268_v61 = vmul.f32 %v1660_v41, %v128_v54  ;;  %v133_v4 = vld [vmem:[%s2851_s0 + $0x178] sm:$0xff] }
  0x57   :  { %v400_v19 = vadd.f32 %v1676_v47, %v260_v7  ;;  %v276_v46 = vmul.f32 %v1660_v41, %v136_v37 }
  0x59   :  { %899 = vmatmul.mubr.f32.gmra.mrb[24].mxu0 %v390_v22  ;;  %1059 = vmatmul.mubr.f32.gmra.mrb[24].mxu1 %v454_v23  ;;  %v464_v22 = vadd.f32 %v1676_v47, %v324_v10  ;;  %v326_v23 = vmul.f32 %v1660_v41, %v186_v16  ;;  %v273_v10 = vmul.f32 %v1595_v15, %v133_v4  ;;  %v196_v16 = vld [vmem:[%s2851_s0 + $0x370] sm:$0xff]  ;;  %v143_v4 = vld [vmem:[%s2851_s0 + $0x1c8] sm:$0xff] }
  0x5a   :  { %1437 = vmatprep.mubr.msk.f32.mxu0 %vm577_vm0, %v393_v25  ;;  %1469 = vmatprep.mubr.msk.f32.mxu1 %vm577_vm0, %v457_v26  ;;  %v124_v25 = vld [vmem:[%s2851_s0 + $0x130] sm:$0xff]  ;;  %v403_v26 = vadd.f32 %v1611_v20, %v263_v13  ;;  %v475_v13 = vadd.f32 %v1611_v20, %v335_v3  ;;  %v345_v3 = vmul.f32 %v1595_v15, %v205_v57 }
  0x5d   :  { %904 = vmatmul.mubr.f32.gmra.mrb[26].mxu0 %v392_v32  ;;  %1064 = vmatmul.mubr.f32.gmra.mrb[26].mxu1 %v456_v33  ;;  %v402_v32 = vadd.f32 %v1676_v47, %v262_v21  ;;  %v264_v33 = vmul.f32 %v1660_v41, %v124_v25  ;;  %v272_v21 = vmul.f32 %v1660_v41, %v132_v11  ;;  %v134_v25 = vld [vmem:[%s2851_s0 + $0x180] sm:$0xff] }
  0x5e   :  { %1438 = vmatprep.mubr.msk.f32.mxu0 %vm577_vm0, %v395_v34  ;;  %1470 = vmatprep.mubr.msk.f32.mxu1 %vm577_vm0, %v459_v39  ;;  %v466_v34 = vadd.f32 %v1676_v47, %v326_v23  ;;  %v469_v39 = vadd.f32 %v1611_v20, %v329_v28  ;;  %v336_v23 = vmul.f32 %v1660_v41, %v196_v16  ;;  %v206_v16 = vld [vmem:[%s2851_s0 + $0x3c0] sm:$0xff] }
  0x5f   :  { %v339_v28 = vmul.f32 %v1595_v15, %v199_v18  ;;  %v209_v18 = vld [vmem:[%s2851_s0 + $0x3d8] sm:$0xff] }
  0x61   :  { %909 = vmatmul.mubr.f32.gmra.mrb[28].mxu0 %v394_v48  ;;  %1069 = vmatmul.mubr.f32.gmra.mrb[28].mxu1 %v458_v49  ;;  %v404_v48 = vadd.f32 %v1676_v47, %v264_v33  ;;  %v468_v49 = vadd.f32 %v1676_v47, %v328_v36  ;;  %v274_v33 = vmul.f32 %v1660_v41, %v134_v25  ;;  %v144_v25 = vld [vmem:[%s2851_s0 + $0x1d0] sm:$0xff] }
  0x62   :  { %1439 = vmatprep.mubr.msk.f32.mxu0 %vm577_vm0, %v397_v52  ;;  %1471 = vmatprep.mubr.msk.f32.mxu1 %vm577_vm0, %v461_v53  ;;  %v471_v52 = vadd.f32 %v1611_v20, %v331_v42  ;;  %v333_v53 = vmul.f32 %v1595_v15, %v193_v44  ;;  %v338_v36 = vmul.f32 %v1660_v41, %v198_v29  ;;  %v200_v42 = vld [vmem:[%s2851_s0 + $0x390] sm:$0xff]  ;;  %v203_v44 = vld [vmem:[%s2851_s0 + $0x3a8] sm:$0xff] }
  0x63   :  { %v479_v38 = vadd.f32 %v1611_v20, %v339_v28  ;;  %v343_v54 = vmul.f32 %v1595_v15, %v203_v44  ;;  %v285_v28 = vmul.f32 %v1595_v15, %v145_v17  ;;  %v349_v29 = vmul.f32 %v1595_v15, %v209_v18  ;;  %v213_v44 = vld [vmem:[%s2851_s0 + $0x3f8] sm:$0xff] }
  0x65   :  { %914 = vmatmul.mubr.f32.gmra.mrb[30].mxu0 %v396_v58  ;;  %1074 = vmatmul.mubr.f32.gmra.mrb[30].mxu1 %v460_v60  ;;  %v406_v58 = vadd.f32 %v1676_v47, %v266_v45  ;;  %v409_v60 = vadd.f32 %v1611_v20, %v269_v50  ;;  %v414_v45 = vadd.f32 %v1676_v47, %v274_v33 }
  0x66   :  { %1440 = vmatprep.mubr.msk.f32.mxu0 %vm577_vm0, %v399_v0  ;;  %1472 = vmatprep.mubr.msk.f32.mxu1 %vm577_vm0, %v463_v1  ;;  %v194_v0 = vld [vmem:[%s2851_s0 + $0x360] sm:$0xff]  ;;  %v473_v1 = vadd.f32 %v1611_v20, %v333_v53  ;;  %v279_v50 = vmul.f32 %v1595_v15, %v139_v43  ;;  %v481_v53 = vadd.f32 %v1611_v20, %v341_v40  ;;  %v149_v43 = vld [vmem:[%s2851_s0 + $0x1f8] sm:$0xff] }
  0x67   :  { %v334_v7 = vmul.f32 %v1660_v41, %v194_v0  ;;  %v204_v0 = vld [vmem:[%s2851_s0 + $0x3b0] sm:$0xff]  ;;  %v425_v37 = vadd.f32 %v1611_v20, %v285_v28  ;;  %v146_v40 = vld [vmem:[%s2851_s0 + $0x1e0] sm:$0xff] }
  0x69   :  { %919 = vmatmul.mubr.f32.gmra.mrb[32].mxu0 %v398_v6  ;;  %1079 = vmatmul.mubr.f32.gmra.mrb[32].mxu1 %v462_v8  ;;  %v270_v6 = vmul.f32 %v1660_v41, %v130_v63  ;;  %v408_v8 = vadd.f32 %v1676_v47, %v268_v61  ;;  %v419_v61 = vadd.f32 %v1611_v20, %v279_v50  ;;  %v140_v63 = vld [vmem:[%s2851_s0 + $0x1b0] sm:$0xff] }
  0x6a   :  { %1441 = vmatprep.mubr.msk.f32.mxu0 %vm577_vm0, %v401_v9  ;;  %1473 = vmatprep.mubr.msk.f32.mxu1 %vm577_vm0, %v465_v12  ;;  %v472_v9 = vadd.f32 %v1676_v47, %v332_v62  ;;  %v411_v12 = vadd.f32 %v1611_v20, %v271_v2  ;;  %v342_v62 = vmul.f32 %v1660_v41, %v202_v55  ;;  %v212_v55 = vld [vmem:[%s2851_s0 + $0x3f0] sm:$0xff] }
  0x6b   :  { %v281_v2 = vmul.f32 %v1595_v15, %v141_v56 }
  0x6d   :  { %924 = vmatmul.mubr.f32.gmra.mrb[34].mxu0 %v400_v19  ;;  %1084 = vmatmul.mubr.f32.gmra.mrb[34].mxu1 %v464_v22  ;;  %v410_v19 = vadd.f32 %v1676_v47, %v270_v6  ;;  %v474_v22 = vadd.f32 %v1676_v47, %v334_v7  ;;  %v280_v6 = vmul.f32 %v1660_v41, %v140_v63  ;;  %v526_v63 = vld [vmem:[#allocation2 + $0x100] sm:$0xff] }
  0x6e   :  { %1442 = vmatprep.mubr.msk.f32.mxu0 %vm577_vm0, %v403_v26  ;;  %1474 = vmatprep.mubr.msk.f32.mxu1 %vm577_vm0, %v467_v27  ;;  %v413_v26 = vadd.f32 %v1611_v20, %v273_v10  ;;  %v477_v27 = vadd.f32 %v1611_v20, %v337_v14  ;;  %v344_v7 = vmul.f32 %v1660_v41, %v204_v0  ;;  %v142_v14 = vld [vmem:[%s2851_s0 + $0x1c0] sm:$0xff] }
  0x6f   :  { %v283_v10 = vmul.f32 %v1595_v15, %v143_v4  ;;  %v421_v11 = vadd.f32 %v1611_v20, %v281_v2 }
  0x71   :  { %929 = vmatmul.mubr.f32.gmra.mrb[36].mxu0 %v402_v32  ;;  %1089 = vmatmul.mubr.f32.gmra.mrb[36].mxu1 %v466_v34  ;;  %v412_v32 = vadd.f32 %v1676_v47, %v272_v21  ;;  %v476_v34 = vadd.f32 %v1676_v47, %v336_v23  ;;  %v484_v21 = vadd.f32 %v1676_v47, %v344_v7 }
  0x72   :  { %1443 = vmatprep.mubr.msk.f32.mxu0 %vm577_vm0, %v405_v35  ;;  %1475 = vmatprep.mubr.msk.f32.mxu1 %vm577_vm0, %v469_v39  ;;  %v415_v35 = vadd.f32 %v1611_v20, %v275_v24  ;;  %v277_v39 = vmul.f32 %v1595_v15, %v137_v30  ;;  %v282_v23 = vmul.f32 %v1660_v41, %v142_v14  ;;  %v147_v30 = vld [vmem:[%s2851_s0 + $0x1e8] sm:$0xff] }
  0x73   :  { %v346_v24 = vmul.f32 %v1660_v41, %v206_v16 }
  0x75   :  { %934 = vmatmul.mubr.f32.gmra.mrb[38].mxu0 %v404_v48  ;;  %1094 = vmatmul.mubr.f32.gmra.mrb[38].mxu1 %v468_v49  ;;  %v478_v48 = vadd.f32 %v1676_v47, %v338_v36  ;;  %v340_v49 = vmul.f32 %v1660_v41, %v200_v42  ;;  %v287_v36 = vmul.f32 %v1595_v15, %v147_v30  ;;  %v210_v42 = vld [vmem:[%s2851_s0 + $0x3e0] sm:$0xff] }
  0x76   :  { %1444 = vmatprep.mubr.msk.f32.mxu0 %vm577_vm0, %v407_v51  ;;  %1476 = vmatprep.mubr.msk.f32.mxu1 %vm577_vm0, %v471_v52  ;;  %v138_v51 = vld [vmem:[%s2851_s0 + $0x1a0] sm:$0xff]  ;;  %v417_v52 = vadd.f32 %v1611_v20, %v277_v39  ;;  %v351_v39 = vmul.f32 %v1595_v15, %v211_v31  ;;  %v350_v50 = vmul.f32 %v1660_v41, %v210_v42 }
  0x79   :  { %939 = vmatmul.mubr.f32.gmra.mrb[40].mxu0 %v406_v58  ;;  %1099 = vmatmul.mubr.f32.gmra.mrb[40].mxu1 %v470_v59  ;;  %v416_v58 = vadd.f32 %v1676_v47, %v276_v46  ;;  %v278_v59 = vmul.f32 %v1660_v41, %v138_v51  ;;  %v148_v51 = vld [vmem:[%s2851_s0 + $0x1f0] sm:$0xff] }
  0x7a   :  { %1445 = vmatprep.mubr.msk.f32.mxu0 %vm577_vm0, %v409_v60  ;;  %1477 = vmatprep.mubr.msk.f32.mxu1 %vm577_vm0, %v473_v1  ;;  %v480_v60 = vadd.f32 %v1676_v47, %v340_v49  ;;  %v483_v1 = vadd.f32 %v1611_v20, %v343_v54  ;;  %v286_v49 = vmul.f32 %v1660_v41, %v146_v40 }
  0x7b   :  { %v353_v54 = vmul.f32 %v1595_v15, %v213_v44  ;;  %v288_v56 = vmul.f32 %v1660_v41, %v148_v51 }
  0x7c   :  { %v426_v57 = vadd.f32 %v1676_v47, %v286_v49 }
  0x7d   :  { %944 = vmatmul.mubr.f32.gmra.mrb[42].mxu0 %v408_v8  ;;  %1104 = vmatmul.mubr.f32.gmra.mrb[42].mxu1 %v472_v9  ;;  %v418_v8 = vadd.f32 %v1676_v47, %v278_v59  ;;  %v482_v9 = vadd.f32 %v1676_v47, %v342_v62  ;;  %v352_v59 = vmul.f32 %v1660_v41, %v212_v55 }
  0x7e   :  { %1446 = vmatprep.mubr.msk.f32.mxu0 %vm577_vm0, %v411_v12  ;;  %1478 = vmatprep.mubr.msk.f32.mxu1 %vm577_vm0, %v475_v13  ;;  %v485_v12 = vadd.f32 %v1611_v20, %v345_v3  ;;  %v347_v13 = vmul.f32 %v1595_v15, %v207_v5  ;;  %v495_v5 = vld [vmem:[#allocation2 + $0x8] sm:$0xff] }
  0x7f   :  { %v492_v62 = vadd.f32 %v1676_v47, %v352_v59 }
  0x81   :  { %949 = vmatmul.mubr.f32.gmra.mrb[44].mxu0 %v410_v19  ;;  %1109 = vmatmul.mubr.f32.gmra.mrb[44].mxu1 %v474_v22  ;;  %v420_v19 = vadd.f32 %v1676_v47, %v280_v6  ;;  %v423_v22 = vadd.f32 %v1611_v20, %v283_v10  ;;  %v527_v6 = vld [vmem:[#allocation2 + $0x108] sm:$0xff] }
  0x82   :  { %1447 = vmatprep.mubr.msk.f32.mxu0 %vm577_vm0, %v413_v26  ;;  %1479 = vmatprep.mubr.msk.f32.mxu1 %vm577_vm0, %v477_v27  ;;  %v208_v26 = vld [vmem:[%s2851_s0 + $0x3d0] sm:$0xff]  ;;  %v487_v27 = vadd.f32 %v1611_v20, %v347_v13 }
  0x83   :  { %v348_v33 = vmul.f32 %v1660_v41, %v208_v26  ;;  %v528_v13 = vld [vmem:[#allocation2 + $0x110] sm:$0xff] }
  0x85   :  { %954 = vmatmul.mubr.f32.gmra.mrb[46].mxu0 %v412_v32  ;;  %1114 = vmatmul.mubr.f32.gmra.mrb[46].mxu1 %v476_v34  ;;  %v284_v32 = vmul.f32 %v1660_v41, %v144_v25  ;;  %v422_v34 = vadd.f32 %v1676_v47, %v282_v23  ;;  %v488_v46 = vadd.f32 %v1676_v47, %v348_v33  ;;  %v494_v41 = vld [vmem:[#allocation2] sm:$0xff]  ;;  %v529_v25 = vld [vmem:[#allocation2 + $0x118] sm:$0xff] }
  0x86   :  { %1448 = vmatprep.mubr.msk.f32.mxu0 %vm577_vm0, %v415_v35  ;;  %1480 = vmatprep.mubr.msk.f32.mxu1 %vm577_vm0, %v479_v38  ;;  %v486_v35 = vadd.f32 %v1676_v47, %v346_v24  ;;  %v489_v38 = vadd.f32 %v1611_v20, %v349_v29 }
  0x89   :  { %959 = vmatmul.mubr.f32.gmra.mrb[48].mxu0 %v414_v45  ;;  %1119 = vmatmul.mubr.f32.gmra.mrb[48].mxu1 %v478_v48  ;;  %v424_v45 = vadd.f32 %v1676_v47, %v284_v32  ;;  %v427_v48 = vadd.f32 %v1611_v20, %v287_v36  ;;  %v498_v32 = vld [vmem:[#allocation2 + $0x20] sm:$0xff] }
  0x8a   :  { %1449 = vmatprep.mubr.msk.f32.mxu0 %vm577_vm0, %v417_v52  ;;  %1481 = vmatprep.mubr.msk.f32.mxu1 %vm577_vm0, %v481_v53  ;;  %v491_v52 = vadd.f32 %v1611_v20, %v351_v39  ;;  %v289_v53 = vmul.f32 %v1595_v15, %v149_v43  ;;  %v499_v43 = vld [vmem:[#allocation2 + $0x28] sm:$0xff] }
  0x8c   :  { %v429_v15 = vadd.f32 %v1611_v20, %v289_v53 }
  0x8d   :  { %964 = vmatmul.mubr.f32.gmra.mrb[50].mxu0 %v416_v58  ;;  %1124 = vmatmul.mubr.f32.gmra.mrb[50].mxu1 %v480_v60  ;;  %v490_v58 = vadd.f32 %v1676_v47, %v350_v50  ;;  %v493_v60 = vadd.f32 %v1611_v20, %v353_v54  ;;  %v500_v54 = vld [vmem:[#allocation2 + $0x30] sm:$0xff] }
  0x8e   :  { %1450 = vmatprep.mubr.msk.f32.mxu0 %vm577_vm0, %v419_v61  ;;  %1482 = vmatprep.mubr.msk.f32.mxu1 %vm577_vm0, %v483_v1  ;;  %v428_v61 = vadd.f32 %v1676_v47, %v288_v56 }
  0x91   :  { %969 = vmatmul.mubr.f32.gmra.mrb[52].mxu0 %v418_v8  ;;  %1129 = vmatmul.mubr.f32.gmra.mrb[52].mxu1 %v482_v9 }
  0x92   :  { %1451 = vmatprep.mubr.msk.f32.mxu0 %vm577_vm0, %v421_v11  ;;  %1483 = vmatprep.mubr.msk.f32.mxu1 %vm577_vm0, %v485_v12  ;;  %v496_v12 = vld [vmem:[#allocation2 + $0x10] sm:$0xff] }
  0x95   :  { %974 = vmatmul.mubr.f32.gmra.mrb[54].mxu0 %v420_v19  ;;  %1134 = vmatmul.mubr.f32.gmra.mrb[54].mxu1 %v484_v21 }
  0x96   :  { %1452 = vmatprep.mubr.msk.f32.mxu0 %vm577_vm0, %v423_v22  ;;  %1484 = vmatprep.mubr.msk.f32.mxu1 %vm577_vm0, %v487_v27  ;;  %v497_v22 = vld [vmem:[#allocation2 + $0x18] sm:$0xff] }
  0x99   :  { %979 = vmatmul.mubr.f32.gmra.mrb[56].mxu0 %v422_v34  ;;  %1139 = vmatmul.mubr.f32.gmra.mrb[56].mxu1 %v486_v35  ;;  %v530_v35 = vld [vmem:[#allocation2 + $0x120] sm:$0xff] }
  0x9a   :  { %1453 = vmatprep.mubr.msk.f32.mxu0 %vm577_vm0, %v425_v37  ;;  %1485 = vmatprep.mubr.msk.f32.mxu1 %vm577_vm0, %v489_v38 }
  0x9d   :  { %984 = vmatmul.mubr.f32.gmra.mrb[58].mxu0 %v424_v45  ;;  %1144 = vmatmul.mubr.f32.gmra.mrb[58].mxu1 %v488_v46  ;;  %v531_v46 = vld [vmem:[#allocation2 + $0x128] sm:$0xff] }
  0x9e   :  { %1454 = vmatprep.mubr.msk.f32.mxu0 %vm577_vm0, %v427_v48  ;;  %1486 = vmatprep.mubr.msk.f32.mxu1 %vm577_vm0, %v491_v52 }
  0xa1   :  { %989 = vmatmul.mubr.f32.gmra.mrb[60].mxu0 %v426_v57  ;;  %1149 = vmatmul.mubr.f32.gmra.mrb[60].mxu1 %v490_v58  ;;  %v532_v57 = vld [vmem:[#allocation2 + $0x130] sm:$0xff] }
  0xa2   :  { %1455 = vmatprep.mubr.msk.f32.mxu0 %vm577_vm0, %v429_v15  ;;  %1487 = vmatprep.mubr.msk.f32.mxu1 %vm577_vm0, %v493_v60 }
  0xa5   :  { %994 = vmatmul.mubr.f32.gmra.mrb[62].mxu0 %v428_v61  ;;  %1154 = vmatmul.mubr.f32.gmra.mrb[62].mxu1 %v492_v62 }
  0xfc   :  { %v840_v0 = vpop.f32.mrb[0].mxu0  ;;  %v1000_v1 = vpop.f32.mrb[0].mxu1 }
  0xfd   :  { %v1159_v2 = vadd.f32 %v840_v0, %v494_v41  ;;  %v1191_v3 = vadd.f32 %v1000_v1, %v526_v63  ;;  %v842_v4 = vpop.f32.mrb[1].mxu0  ;;  %v1002_v20 = vpop.f32.mrb[1].mxu1  ;;  %v501_v41 = vld [vmem:[#allocation2 + $0x38] sm:$0xff] }
  0xfe   :  { %v533_v1 = vld [vmem:[#allocation2 + $0x138] sm:$0xff] }
  0xff   :  { %1224 = vst.msk [vmem:[#allocation2] sm:$0xff] %vm21_vm2, %v1159_v2  ;;  %1256 = vst.msk [vmem:[#allocation2 + $0x100] sm:$0xff] %vm21_vm2, %v1191_v3 }
 0x100   :  { %v845_v47 = vpop.f32.mrb[2].mxu0  ;;  %v1005_v7 = vpop.f32.mrb[2].mxu1 }
 0x101   :  { %v1160_v8 = vadd.f32 %v845_v47, %v495_v5  ;;  %v1192_v9 = vadd.f32 %v1005_v7, %v527_v6  ;;  %v847_v10 = vpop.f32.mrb[3].mxu0  ;;  %v1007_v11 = vpop.f32.mrb[3].mxu1  ;;  %v502_v47 = vld [vmem:[#allocation2 + $0x40] sm:$0xff] }
 0x103   :  { %1225 = vst.msk [vmem:[#allocation2 + $0x8] sm:$0xff] %vm21_vm2, %v1160_v8  ;;  %1257 = vst.msk [vmem:[#allocation2 + $0x108] sm:$0xff] %vm21_vm2, %v1192_v9  ;;  %v534_v9 = vld [vmem:[#allocation2 + $0x140] sm:$0xff] }
 0x104   :  { %v850_v14 = vpop.f32.mrb[4].mxu0  ;;  %v1010_v16 = vpop.f32.mrb[4].mxu1 }
 0x105   :  { %v1161_v17 = vadd.f32 %v850_v14, %v496_v12  ;;  %v1193_v18 = vadd.f32 %v1010_v16, %v528_v13  ;;  %v852_v19 = vpop.f32.mrb[5].mxu0  ;;  %v1012_v21 = vpop.f32.mrb[5].mxu1 }
 0x106   :  { %v1291_v23 = vld [vmem:[#allocation2] sm:$0xff]  ;;  %v535_v21 = vld [vmem:[#allocation2 + $0x148] sm:$0xff] }
 0x107   :  { %v1323_v24 = vld [vmem:[#allocation2 + $0x100] sm:$0xff]  ;;  %1355 = vst.msk [vmem:[%s2854_s4] sm:$0xff] %vm21_vm2, %v1291_v23  ;;  %1226 = vst.msk [vmem:[#allocation2 + $0x10] sm:$0xff] %vm21_vm2, %v1161_v17  ;;  %v503_v17 = vld [vmem:[#allocation2 + $0x48] sm:$0xff] }
 0x108   :  { %1387 = vst.msk [vmem:[%s2854_s4 + $0x100] sm:$0xff] %vm21_vm2, %v1323_v24  ;;  %1258 = vst.msk [vmem:[#allocation2 + $0x110] sm:$0xff] %vm21_vm2, %v1193_v18  ;;  %v855_v26 = vpop.f32.mrb[6].mxu0  ;;  %v1015_v27 = vpop.f32.mrb[6].mxu1 }
 0x109   :  { %v1162_v28 = vadd.f32 %v855_v26, %v497_v22  ;;  %v1194_v29 = vadd.f32 %v1015_v27, %v529_v25  ;;  %v857_v30 = vpop.f32.mrb[7].mxu0  ;;  %v1017_v31 = vpop.f32.mrb[7].mxu1 }
 0x10a   :  { %v1292_v33 = vld [vmem:[#allocation2 + $0x8] sm:$0xff]  ;;  %v536_v31 = vld [vmem:[#allocation2 + $0x150] sm:$0xff] }
 0x10b   :  { %v1324_v34 = vld [vmem:[#allocation2 + $0x108] sm:$0xff]  ;;  %1356 = vst.msk [vmem:[%s2854_s4 + $0x8] sm:$0xff] %vm21_vm2, %v1292_v33  ;;  %1227 = vst.msk [vmem:[#allocation2 + $0x18] sm:$0xff] %vm21_vm2, %v1162_v28  ;;  %v504_v28 = vld [vmem:[#allocation2 + $0x50] sm:$0xff] }
 0x10c   :  { %1388 = vst.msk [vmem:[%s2854_s4 + $0x108] sm:$0xff] %vm21_vm2, %v1324_v34  ;;  %1259 = vst.msk [vmem:[#allocation2 + $0x118] sm:$0xff] %vm21_vm2, %v1194_v29  ;;  %v860_v36 = vpop.f32.mrb[8].mxu0  ;;  %v1020_v37 = vpop.f32.mrb[8].mxu1 }
 0x10d   :  { %v1163_v38 = vadd.f32 %v860_v36, %v498_v32  ;;  %v1195_v39 = vadd.f32 %v1020_v37, %v530_v35  ;;  %v862_v40 = vpop.f32.mrb[9].mxu0  ;;  %v1022_v42 = vpop.f32.mrb[9].mxu1 }
 0x10e   :  { %v1293_v44 = vld [vmem:[#allocation2 + $0x10] sm:$0xff]  ;;  %v537_v42 = vld [vmem:[#allocation2 + $0x158] sm:$0xff] }
 0x10f   :  { %v1325_v45 = vld [vmem:[#allocation2 + $0x110] sm:$0xff]  ;;  %1357 = vst.msk [vmem:[%s2854_s4 + $0x10] sm:$0xff] %vm21_vm2, %v1293_v44  ;;  %1228 = vst.msk [vmem:[#allocation2 + $0x20] sm:$0xff] %vm21_vm2, %v1163_v38  ;;  %v505_v38 = vld [vmem:[#allocation2 + $0x58] sm:$0xff] }
 0x110   :  { %1389 = vst.msk [vmem:[%s2854_s4 + $0x110] sm:$0xff] %vm21_vm2, %v1325_v45  ;;  %1260 = vst.msk [vmem:[#allocation2 + $0x120] sm:$0xff] %vm21_vm2, %v1195_v39  ;;  %v865_v48 = vpop.f32.mrb[10].mxu0  ;;  %v1025_v49 = vpop.f32.mrb[10].mxu1 }
 0x111   :  { %v1164_v50 = vadd.f32 %v865_v48, %v499_v43  ;;  %v1196_v51 = vadd.f32 %v1025_v49, %v531_v46  ;;  %v867_v52 = vpop.f32.mrb[11].mxu0  ;;  %v1027_v53 = vpop.f32.mrb[11].mxu1 }
 0x112   :  { %v1294_v55 = vld [vmem:[#allocation2 + $0x18] sm:$0xff]  ;;  %v538_v53 = vld [vmem:[#allocation2 + $0x160] sm:$0xff] }
 0x113   :  { %v1326_v56 = vld [vmem:[#allocation2 + $0x118] sm:$0xff]  ;;  %1358 = vst.msk [vmem:[%s2854_s4 + $0x18] sm:$0xff] %vm21_vm2, %v1294_v55  ;;  %1229 = vst.msk [vmem:[#allocation2 + $0x28] sm:$0xff] %vm21_vm2, %v1164_v50  ;;  %v506_v50 = vld [vmem:[#allocation2 + $0x60] sm:$0xff] }
 0x114   :  { %1390 = vst.msk [vmem:[%s2854_s4 + $0x118] sm:$0xff] %vm21_vm2, %v1326_v56  ;;  %1261 = vst.msk [vmem:[#allocation2 + $0x128] sm:$0xff] %vm21_vm2, %v1196_v51  ;;  %v870_v58 = vpop.f32.mrb[12].mxu0  ;;  %v1030_v59 = vpop.f32.mrb[12].mxu1 }
 0x115   :  { %v1165_v15 = vadd.f32 %v870_v58, %v500_v54  ;;  %v1197_v60 = vadd.f32 %v1030_v59, %v532_v57  ;;  %v872_v61 = vpop.f32.mrb[13].mxu0  ;;  %v1032_v62 = vpop.f32.mrb[13].mxu1 }
 0x116   :  { %v1295_v63 = vld [vmem:[#allocation2 + $0x20] sm:$0xff]  ;;  %v539_v62 = vld [vmem:[#allocation2 + $0x168] sm:$0xff] }
 0x117   :  { %v1327_v0 = vld [vmem:[#allocation2 + $0x120] sm:$0xff]  ;;  %1359 = vst.msk [vmem:[%s2854_s4 + $0x20] sm:$0xff] %vm21_vm2, %v1295_v63  ;;  %1230 = vst.msk [vmem:[#allocation2 + $0x30] sm:$0xff] %vm21_vm2, %v1165_v15  ;;  %v507_v15 = vld [vmem:[#allocation2 + $0x68] sm:$0xff] }
 0x118   :  { %1391 = vst.msk [vmem:[%s2854_s4 + $0x120] sm:$0xff] %vm21_vm2, %v1327_v0  ;;  %1262 = vst.msk [vmem:[#allocation2 + $0x130] sm:$0xff] %vm21_vm2, %v1197_v60  ;;  %v875_v2 = vpop.f32.mrb[14].mxu0  ;;  %v1035_v3 = vpop.f32.mrb[14].mxu1 }
 0x119   :  { %v1166_v4 = vadd.f32 %v875_v2, %v501_v41  ;;  %v1198_v20 = vadd.f32 %v1035_v3, %v533_v1  ;;  %v877_v5 = vpop.f32.mrb[15].mxu0  ;;  %v1037_v6 = vpop.f32.mrb[15].mxu1 }
 0x11a   :  { %v1296_v7 = vld [vmem:[#allocation2 + $0x28] sm:$0xff]  ;;  %v540_v6 = vld [vmem:[#allocation2 + $0x170] sm:$0xff] }
 0x11b   :  { %v1328_v8 = vld [vmem:[#allocation2 + $0x128] sm:$0xff]  ;;  %1360 = vst.msk [vmem:[%s2854_s4 + $0x28] sm:$0xff] %vm21_vm2, %v1296_v7  ;;  %1231 = vst.msk [vmem:[#allocation2 + $0x38] sm:$0xff] %vm21_vm2, %v1166_v4  ;;  %v508_v4 = vld [vmem:[#allocation2 + $0x70] sm:$0xff] }
 0x11c   :  { %1392 = vst.msk [vmem:[%s2854_s4 + $0x128] sm:$0xff] %vm21_vm2, %v1328_v8  ;;  %1263 = vst.msk [vmem:[#allocation2 + $0x138] sm:$0xff] %vm21_vm2, %v1198_v20  ;;  %v880_v10 = vpop.f32.mrb[16].mxu0  ;;  %v1040_v11 = vpop.f32.mrb[16].mxu1 }
 0x11d   :  { %v1167_v12 = vadd.f32 %v880_v10, %v502_v47  ;;  %v1199_v13 = vadd.f32 %v1040_v11, %v534_v9  ;;  %v882_v14 = vpop.f32.mrb[17].mxu0  ;;  %v1042_v16 = vpop.f32.mrb[17].mxu1 }
 0x11e   :  { %v1297_v18 = vld [vmem:[#allocation2 + $0x30] sm:$0xff]  ;;  %v541_v16 = vld [vmem:[#allocation2 + $0x178] sm:$0xff] }
 0x11f   :  { %v1329_v19 = vld [vmem:[#allocation2 + $0x130] sm:$0xff]  ;;  %1361 = vst.msk [vmem:[%s2854_s4 + $0x30] sm:$0xff] %vm21_vm2, %v1297_v18  ;;  %1232 = vst.msk [vmem:[#allocation2 + $0x40] sm:$0xff] %vm21_vm2, %v1167_v12  ;;  %v509_v12 = vld [vmem:[#allocation2 + $0x78] sm:$0xff] }
 0x120   :  { %1393 = vst.msk [vmem:[%s2854_s4 + $0x130] sm:$0xff] %vm21_vm2, %v1329_v19  ;;  %1264 = vst.msk [vmem:[#allocation2 + $0x140] sm:$0xff] %vm21_vm2, %v1199_v13  ;;  %v885_v22 = vpop.f32.mrb[18].mxu0  ;;  %v1045_v23 = vpop.f32.mrb[18].mxu1 }
 0x121   :  { %v1168_v24 = vadd.f32 %v885_v22, %v503_v17  ;;  %v1200_v25 = vadd.f32 %v1045_v23, %v535_v21  ;;  %v887_v26 = vpop.f32.mrb[19].mxu0  ;;  %v1047_v27 = vpop.f32.mrb[19].mxu1 }
 0x122   :  { %v1298_v29 = vld [vmem:[#allocation2 + $0x38] sm:$0xff]  ;;  %v542_v27 = vld [vmem:[#allocation2 + $0x180] sm:$0xff] }
 0x123   :  { %v1330_v30 = vld [vmem:[#allocation2 + $0x138] sm:$0xff]  ;;  %1362 = vst.msk [vmem:[%s2854_s4 + $0x38] sm:$0xff] %vm21_vm2, %v1298_v29  ;;  %1233 = vst.msk [vmem:[#allocation2 + $0x48] sm:$0xff] %vm21_vm2, %v1168_v24  ;;  %v510_v24 = vld [vmem:[#allocation2 + $0x80] sm:$0xff] }
 0x124   :  { %1394 = vst.msk [vmem:[%s2854_s4 + $0x138] sm:$0xff] %vm21_vm2, %v1330_v30  ;;  %1265 = vst.msk [vmem:[#allocation2 + $0x148] sm:$0xff] %vm21_vm2, %v1200_v25  ;;  %v890_v32 = vpop.f32.mrb[20].mxu0  ;;  %v1050_v33 = vpop.f32.mrb[20].mxu1 }
 0x125   :  { %v1169_v34 = vadd.f32 %v890_v32, %v504_v28  ;;  %v1201_v35 = vadd.f32 %v1050_v33, %v536_v31  ;;  %v892_v36 = vpop.f32.mrb[21].mxu0  ;;  %v1052_v37 = vpop.f32.mrb[21].mxu1 }
 0x126   :  { %v1299_v39 = vld [vmem:[#allocation2 + $0x40] sm:$0xff]  ;;  %v543_v37 = vld [vmem:[#allocation2 + $0x188] sm:$0xff] }
 0x127   :  { %v1331_v40 = vld [vmem:[#allocation2 + $0x140] sm:$0xff]  ;;  %1363 = vst.msk [vmem:[%s2854_s4 + $0x40] sm:$0xff] %vm21_vm2, %v1299_v39  ;;  %1234 = vst.msk [vmem:[#allocation2 + $0x50] sm:$0xff] %vm21_vm2, %v1169_v34  ;;  %v511_v34 = vld [vmem:[#allocation2 + $0x88] sm:$0xff] }
 0x128   :  { %1395 = vst.msk [vmem:[%s2854_s4 + $0x140] sm:$0xff] %vm21_vm2, %v1331_v40  ;;  %1266 = vst.msk [vmem:[#allocation2 + $0x150] sm:$0xff] %vm21_vm2, %v1201_v35  ;;  %v895_v43 = vpop.f32.mrb[22].mxu0  ;;  %v1055_v44 = vpop.f32.mrb[22].mxu1 }
 0x129   :  { %v1170_v45 = vadd.f32 %v895_v43, %v505_v38  ;;  %v1202_v46 = vadd.f32 %v1055_v44, %v537_v42  ;;  %v897_v48 = vpop.f32.mrb[23].mxu0  ;;  %v1057_v49 = vpop.f32.mrb[23].mxu1 }
 0x12a   :  { %v1300_v51 = vld [vmem:[#allocation2 + $0x48] sm:$0xff]  ;;  %v544_v49 = vld [vmem:[#allocation2 + $0x190] sm:$0xff] }
 0x12b   :  { %v1332_v52 = vld [vmem:[#allocation2 + $0x148] sm:$0xff]  ;;  %1364 = vst.msk [vmem:[%s2854_s4 + $0x48] sm:$0xff] %vm21_vm2, %v1300_v51  ;;  %1235 = vst.msk [vmem:[#allocation2 + $0x58] sm:$0xff] %vm21_vm2, %v1170_v45  ;;  %v512_v45 = vld [vmem:[#allocation2 + $0x90] sm:$0xff] }
 0x12c   :  { %1396 = vst.msk [vmem:[%s2854_s4 + $0x148] sm:$0xff] %vm21_vm2, %v1332_v52  ;;  %1267 = vst.msk [vmem:[#allocation2 + $0x158] sm:$0xff] %vm21_vm2, %v1202_v46  ;;  %v900_v54 = vpop.f32.mrb[24].mxu0  ;;  %v1060_v55 = vpop.f32.mrb[24].mxu1 }
 0x12d   :  { %v1171_v56 = vadd.f32 %v900_v54, %v506_v50  ;;  %v1203_v57 = vadd.f32 %v1060_v55, %v538_v53  ;;  %v902_v58 = vpop.f32.mrb[25].mxu0  ;;  %v1062_v59 = vpop.f32.mrb[25].mxu1 }
 0x12e   :  { %v1301_v60 = vld [vmem:[#allocation2 + $0x50] sm:$0xff]  ;;  %v545_v59 = vld [vmem:[#allocation2 + $0x198] sm:$0xff] }
 0x12f   :  { %v1333_v61 = vld [vmem:[#allocation2 + $0x150] sm:$0xff]  ;;  %1365 = vst.msk [vmem:[%s2854_s4 + $0x50] sm:$0xff] %vm21_vm2, %v1301_v60  ;;  %1236 = vst.msk [vmem:[#allocation2 + $0x60] sm:$0xff] %vm21_vm2, %v1171_v56  ;;  %v513_v56 = vld [vmem:[#allocation2 + $0x98] sm:$0xff] }
 0x130   :  { %1397 = vst.msk [vmem:[%s2854_s4 + $0x150] sm:$0xff] %vm21_vm2, %v1333_v61  ;;  %1268 = vst.msk [vmem:[#allocation2 + $0x160] sm:$0xff] %vm21_vm2, %v1203_v57  ;;  %v905_v41 = vpop.f32.mrb[26].mxu0  ;;  %v1065_v63 = vpop.f32.mrb[26].mxu1 }
 0x131   :  { %v1172_v0 = vadd.f32 %v905_v41, %v507_v15  ;;  %v1204_v1 = vadd.f32 %v1065_v63, %v539_v62  ;;  %v907_v2 = vpop.f32.mrb[27].mxu0  ;;  %v1067_v3 = vpop.f32.mrb[27].mxu1 }
 0x132   :  { %v1302_v20 = vld [vmem:[#allocation2 + $0x58] sm:$0xff]  ;;  %v546_v3 = vld [vmem:[#allocation2 + $0x1a0] sm:$0xff] }
 0x133   :  { %v1334_v5 = vld [vmem:[#allocation2 + $0x158] sm:$0xff]  ;;  %1366 = vst.msk [vmem:[%s2854_s4 + $0x58] sm:$0xff] %vm21_vm2, %v1302_v20  ;;  %1237 = vst.msk [vmem:[#allocation2 + $0x68] sm:$0xff] %vm21_vm2, %v1172_v0  ;;  %v514_v0 = vld [vmem:[#allocation2 + $0xa0] sm:$0xff] }
 0x134   :  { %1398 = vst.msk [vmem:[%s2854_s4 + $0x158] sm:$0xff] %vm21_vm2, %v1334_v5  ;;  %1269 = vst.msk [vmem:[#allocation2 + $0x168] sm:$0xff] %vm21_vm2, %v1204_v1  ;;  %v910_v47 = vpop.f32.mrb[28].mxu0  ;;  %v1070_v7 = vpop.f32.mrb[28].mxu1 }
 0x135   :  { %v1173_v8 = vadd.f32 %v910_v47, %v508_v4  ;;  %v1205_v9 = vadd.f32 %v1070_v7, %v540_v6  ;;  %v912_v10 = vpop.f32.mrb[29].mxu0  ;;  %v1072_v11 = vpop.f32.mrb[29].mxu1 }
 0x136   :  { %v1303_v13 = vld [vmem:[#allocation2 + $0x60] sm:$0xff]  ;;  %v547_v11 = vld [vmem:[#allocation2 + $0x1a8] sm:$0xff] }
 0x137   :  { %v1335_v14 = vld [vmem:[#allocation2 + $0x160] sm:$0xff]  ;;  %1367 = vst.msk [vmem:[%s2854_s4 + $0x60] sm:$0xff] %vm21_vm2, %v1303_v13  ;;  %1238 = vst.msk [vmem:[#allocation2 + $0x70] sm:$0xff] %vm21_vm2, %v1173_v8  ;;  %v515_v8 = vld [vmem:[#allocation2 + $0xa8] sm:$0xff] }
 0x138   :  { %1399 = vst.msk [vmem:[%s2854_s4 + $0x160] sm:$0xff] %vm21_vm2, %v1335_v14  ;;  %1270 = vst.msk [vmem:[#allocation2 + $0x170] sm:$0xff] %vm21_vm2, %v1205_v9  ;;  %v915_v17 = vpop.f32.mrb[30].mxu0  ;;  %v1075_v18 = vpop.f32.mrb[30].mxu1 }
 0x139   :  { %v1174_v19 = vadd.f32 %v915_v17, %v509_v12  ;;  %v1206_v21 = vadd.f32 %v1075_v18, %v541_v16  ;;  %v917_v22 = vpop.f32.mrb[31].mxu0  ;;  %v1077_v23 = vpop.f32.mrb[31].mxu1 }
 0x13a   :  { %v1304_v25 = vld [vmem:[#allocation2 + $0x68] sm:$0xff]  ;;  %v548_v23 = vld [vmem:[#allocation2 + $0x1b0] sm:$0xff] }
 0x13b   :  { %v1336_v26 = vld [vmem:[#allocation2 + $0x168] sm:$0xff]  ;;  %1368 = vst.msk [vmem:[%s2854_s4 + $0x68] sm:$0xff] %vm21_vm2, %v1304_v25  ;;  %1239 = vst.msk [vmem:[#allocation2 + $0x78] sm:$0xff] %vm21_vm2, %v1174_v19  ;;  %v516_v19 = vld [vmem:[#allocation2 + $0xb0] sm:$0xff] }
 0x13c   :  { %1400 = vst.msk [vmem:[%s2854_s4 + $0x168] sm:$0xff] %vm21_vm2, %v1336_v26  ;;  %1271 = vst.msk [vmem:[#allocation2 + $0x178] sm:$0xff] %vm21_vm2, %v1206_v21  ;;  %v920_v28 = vpop.f32.mrb[32].mxu0  ;;  %v1080_v29 = vpop.f32.mrb[32].mxu1 }
 0x13d   :  { %v1175_v30 = vadd.f32 %v920_v28, %v510_v24  ;;  %v1207_v31 = vadd.f32 %v1080_v29, %v542_v27  ;;  %v922_v32 = vpop.f32.mrb[33].mxu0  ;;  %v1082_v33 = vpop.f32.mrb[33].mxu1 }
 0x13e   :  { %v1305_v35 = vld [vmem:[#allocation2 + $0x70] sm:$0xff]  ;;  %v549_v33 = vld [vmem:[#allocation2 + $0x1b8] sm:$0xff] }
 0x13f   :  { %v1337_v36 = vld [vmem:[#allocation2 + $0x170] sm:$0xff]  ;;  %1369 = vst.msk [vmem:[%s2854_s4 + $0x70] sm:$0xff] %vm21_vm2, %v1305_v35  ;;  %1240 = vst.msk [vmem:[#allocation2 + $0x80] sm:$0xff] %vm21_vm2, %v1175_v30  ;;  %v517_v30 = vld [vmem:[#allocation2 + $0xb8] sm:$0xff] }
 0x140   :  { %1401 = vst.msk [vmem:[%s2854_s4 + $0x170] sm:$0xff] %vm21_vm2, %v1337_v36  ;;  %1272 = vst.msk [vmem:[#allocation2 + $0x180] sm:$0xff] %vm21_vm2, %v1207_v31  ;;  %v925_v38 = vpop.f32.mrb[34].mxu0  ;;  %v1085_v39 = vpop.f32.mrb[34].mxu1 }
 0x141   :  { %v1176_v40 = vadd.f32 %v925_v38, %v511_v34  ;;  %v1208_v42 = vadd.f32 %v1085_v39, %v543_v37  ;;  %v927_v43 = vpop.f32.mrb[35].mxu0  ;;  %v1087_v44 = vpop.f32.mrb[35].mxu1 }
 0x142   :  { %v1306_v46 = vld [vmem:[#allocation2 + $0x78] sm:$0xff]  ;;  %v550_v44 = vld [vmem:[#allocation2 + $0x1c0] sm:$0xff] }
 0x143   :  { %v1338_v48 = vld [vmem:[#allocation2 + $0x178] sm:$0xff]  ;;  %1370 = vst.msk [vmem:[%s2854_s4 + $0x78] sm:$0xff] %vm21_vm2, %v1306_v46  ;;  %1241 = vst.msk [vmem:[#allocation2 + $0x88] sm:$0xff] %vm21_vm2, %v1176_v40  ;;  %v518_v40 = vld [vmem:[#allocation2 + $0xc0] sm:$0xff] }
 0x144   :  { %1402 = vst.msk [vmem:[%s2854_s4 + $0x178] sm:$0xff] %vm21_vm2, %v1338_v48  ;;  %1273 = vst.msk [vmem:[#allocation2 + $0x188] sm:$0xff] %vm21_vm2, %v1208_v42  ;;  %v930_v50 = vpop.f32.mrb[36].mxu0  ;;  %v1090_v51 = vpop.f32.mrb[36].mxu1 }
 0x145   :  { %v1177_v52 = vadd.f32 %v930_v50, %v512_v45  ;;  %v1209_v53 = vadd.f32 %v1090_v51, %v544_v49  ;;  %v932_v54 = vpop.f32.mrb[37].mxu0  ;;  %v1092_v55 = vpop.f32.mrb[37].mxu1 }
 0x146   :  { %v1307_v57 = vld [vmem:[#allocation2 + $0x80] sm:$0xff]  ;;  %v551_v55 = vld [vmem:[#allocation2 + $0x1c8] sm:$0xff] }
 0x147   :  { %v1339_v58 = vld [vmem:[#allocation2 + $0x180] sm:$0xff]  ;;  %1371 = vst.msk [vmem:[%s2854_s4 + $0x80] sm:$0xff] %vm21_vm2, %v1307_v57  ;;  %1242 = vst.msk [vmem:[#allocation2 + $0x90] sm:$0xff] %vm21_vm2, %v1177_v52  ;;  %v519_v52 = vld [vmem:[#allocation2 + $0xc8] sm:$0xff] }
 0x148   :  { %1403 = vst.msk [vmem:[%s2854_s4 + $0x180] sm:$0xff] %vm21_vm2, %v1339_v58  ;;  %1274 = vst.msk [vmem:[#allocation2 + $0x190] sm:$0xff] %vm21_vm2, %v1209_v53  ;;  %v935_v15 = vpop.f32.mrb[38].mxu0  ;;  %v1095_v60 = vpop.f32.mrb[38].mxu1 }
 0x149   :  { %v1178_v61 = vadd.f32 %v935_v15, %v513_v56  ;;  %v1210_v62 = vadd.f32 %v1095_v60, %v545_v59  ;;  %v937_v41 = vpop.f32.mrb[39].mxu0  ;;  %v1097_v63 = vpop.f32.mrb[39].mxu1 }
 0x14a   :  { %v1308_v1 = vld [vmem:[#allocation2 + $0x88] sm:$0xff]  ;;  %v552_v63 = vld [vmem:[#allocation2 + $0x1d0] sm:$0xff] }
 0x14b   :  { %v1340_v2 = vld [vmem:[#allocation2 + $0x188] sm:$0xff]  ;;  %1372 = vst.msk [vmem:[%s2854_s4 + $0x88] sm:$0xff] %vm21_vm2, %v1308_v1  ;;  %1243 = vst.msk [vmem:[#allocation2 + $0x98] sm:$0xff] %vm21_vm2, %v1178_v61  ;;  %v520_v61 = vld [vmem:[#allocation2 + $0xd0] sm:$0xff] }
 0x14c   :  { %1404 = vst.msk [vmem:[%s2854_s4 + $0x188] sm:$0xff] %vm21_vm2, %v1340_v2  ;;  %1275 = vst.msk [vmem:[#allocation2 + $0x198] sm:$0xff] %vm21_vm2, %v1210_v62  ;;  %v940_v4 = vpop.f32.mrb[40].mxu0  ;;  %v1100_v20 = vpop.f32.mrb[40].mxu1 }
 0x14d   :  { %v1179_v5 = vadd.f32 %v940_v4, %v514_v0  ;;  %v1211_v6 = vadd.f32 %v1100_v20, %v546_v3  ;;  %v942_v47 = vpop.f32.mrb[41].mxu0  ;;  %v1102_v7 = vpop.f32.mrb[41].mxu1 }
 0x14e   :  { %v1309_v9 = vld [vmem:[#allocation2 + $0x90] sm:$0xff]  ;;  %v553_v7 = vld [vmem:[#allocation2 + $0x1d8] sm:$0xff] }
 0x14f   :  { %v1341_v10 = vld [vmem:[#allocation2 + $0x190] sm:$0xff]  ;;  %1373 = vst.msk [vmem:[%s2854_s4 + $0x90] sm:$0xff] %vm21_vm2, %v1309_v9  ;;  %1244 = vst.msk [vmem:[#allocation2 + $0xa0] sm:$0xff] %vm21_vm2, %v1179_v5  ;;  %v521_v5 = vld [vmem:[#allocation2 + $0xd8] sm:$0xff] }
 0x150   :  { %1405 = vst.msk [vmem:[%s2854_s4 + $0x190] sm:$0xff] %vm21_vm2, %v1341_v10  ;;  %1276 = vst.msk [vmem:[#allocation2 + $0x1a0] sm:$0xff] %vm21_vm2, %v1211_v6  ;;  %v945_v12 = vpop.f32.mrb[42].mxu0  ;;  %v1105_v13 = vpop.f32.mrb[42].mxu1 }
 0x151   :  { %v1180_v14 = vadd.f32 %v945_v12, %v515_v8  ;;  %v1212_v16 = vadd.f32 %v1105_v13, %v547_v11  ;;  %v947_v17 = vpop.f32.mrb[43].mxu0  ;;  %v1107_v18 = vpop.f32.mrb[43].mxu1 }
 0x152   :  { %v1310_v21 = vld [vmem:[#allocation2 + $0x98] sm:$0xff]  ;;  %v554_v18 = vld [vmem:[#allocation2 + $0x1e0] sm:$0xff] }
 0x153   :  { %v1342_v22 = vld [vmem:[#allocation2 + $0x198] sm:$0xff]  ;;  %1374 = vst.msk [vmem:[%s2854_s4 + $0x98] sm:$0xff] %vm21_vm2, %v1310_v21  ;;  %1245 = vst.msk [vmem:[#allocation2 + $0xa8] sm:$0xff] %vm21_vm2, %v1180_v14  ;;  %v522_v14 = vld [vmem:[#allocation2 + $0xe0] sm:$0xff] }
 0x154   :  { %1406 = vst.msk [vmem:[%s2854_s4 + $0x198] sm:$0xff] %vm21_vm2, %v1342_v22  ;;  %1277 = vst.msk [vmem:[#allocation2 + $0x1a8] sm:$0xff] %vm21_vm2, %v1212_v16  ;;  %v950_v24 = vpop.f32.mrb[44].mxu0  ;;  %v1110_v25 = vpop.f32.mrb[44].mxu1 }
 0x155   :  { %v1181_v26 = vadd.f32 %v950_v24, %v516_v19  ;;  %v1213_v27 = vadd.f32 %v1110_v25, %v548_v23  ;;  %v952_v28 = vpop.f32.mrb[45].mxu0  ;;  %v1112_v29 = vpop.f32.mrb[45].mxu1 }
 0x156   :  { %v1311_v31 = vld [vmem:[#allocation2 + $0xa0] sm:$0xff]  ;;  %v555_v29 = vld [vmem:[#allocation2 + $0x1e8] sm:$0xff] }
 0x157   :  { %v1343_v32 = vld [vmem:[#allocation2 + $0x1a0] sm:$0xff]  ;;  %1375 = vst.msk [vmem:[%s2854_s4 + $0xa0] sm:$0xff] %vm21_vm2, %v1311_v31  ;;  %1246 = vst.msk [vmem:[#allocation2 + $0xb0] sm:$0xff] %vm21_vm2, %v1181_v26  ;;  %v523_v26 = vld [vmem:[#allocation2 + $0xe8] sm:$0xff] }
 0x158   :  { %1407 = vst.msk [vmem:[%s2854_s4 + $0x1a0] sm:$0xff] %vm21_vm2, %v1343_v32  ;;  %1278 = vst.msk [vmem:[#allocation2 + $0x1b0] sm:$0xff] %vm21_vm2, %v1213_v27  ;;  %v955_v34 = vpop.f32.mrb[46].mxu0  ;;  %v1115_v35 = vpop.f32.mrb[46].mxu1 }
 0x159   :  { %v1182_v36 = vadd.f32 %v955_v34, %v517_v30  ;;  %v1214_v37 = vadd.f32 %v1115_v35, %v549_v33  ;;  %v957_v38 = vpop.f32.mrb[47].mxu0  ;;  %v1117_v39 = vpop.f32.mrb[47].mxu1 }
 0x15a   :  { %v1312_v42 = vld [vmem:[#allocation2 + $0xa8] sm:$0xff]  ;;  %v556_v39 = vld [vmem:[#allocation2 + $0x1f0] sm:$0xff] }
 0x15b   :  { %v1344_v43 = vld [vmem:[#allocation2 + $0x1a8] sm:$0xff]  ;;  %1376 = vst.msk [vmem:[%s2854_s4 + $0xa8] sm:$0xff] %vm21_vm2, %v1312_v42  ;;  %1247 = vst.msk [vmem:[#allocation2 + $0xb8] sm:$0xff] %vm21_vm2, %v1182_v36  ;;  %v524_v36 = vld [vmem:[#allocation2 + $0xf0] sm:$0xff] }
 0x15c   :  { %1408 = vst.msk [vmem:[%s2854_s4 + $0x1a8] sm:$0xff] %vm21_vm2, %v1344_v43  ;;  %1279 = vst.msk [vmem:[#allocation2 + $0x1b8] sm:$0xff] %vm21_vm2, %v1214_v37  ;;  %v960_v45 = vpop.f32.mrb[48].mxu0  ;;  %v1120_v46 = vpop.f32.mrb[48].mxu1 }
 0x15d   :  { %v1183_v48 = vadd.f32 %v960_v45, %v518_v40  ;;  %v1215_v49 = vadd.f32 %v1120_v46, %v550_v44  ;;  %v962_v50 = vpop.f32.mrb[49].mxu0  ;;  %v1122_v51 = vpop.f32.mrb[49].mxu1 }
 0x15e   :  { %v1313_v53 = vld [vmem:[#allocation2 + $0xb0] sm:$0xff]  ;;  %v557_v51 = vld [vmem:[#allocation2 + $0x1f8] sm:$0xff] }
 0x15f   :  { %v1345_v54 = vld [vmem:[#allocation2 + $0x1b0] sm:$0xff]  ;;  %1377 = vst.msk [vmem:[%s2854_s4 + $0xb0] sm:$0xff] %vm21_vm2, %v1313_v53  ;;  %1248 = vst.msk [vmem:[#allocation2 + $0xc0] sm:$0xff] %vm21_vm2, %v1183_v48  ;;  %v525_v48 = vld [vmem:[#allocation2 + $0xf8] sm:$0xff] }
 0x160   :  { %1409 = vst.msk [vmem:[%s2854_s4 + $0x1b0] sm:$0xff] %vm21_vm2, %v1345_v54  ;;  %1280 = vst.msk [vmem:[#allocation2 + $0x1c0] sm:$0xff] %vm21_vm2, %v1215_v49  ;;  %v965_v56 = vpop.f32.mrb[50].mxu0  ;;  %v1125_v57 = vpop.f32.mrb[50].mxu1 }
 0x161   :  { %v1184_v58 = vadd.f32 %v965_v56, %v519_v52  ;;  %v1216_v59 = vadd.f32 %v1125_v57, %v551_v55  ;;  %v967_v15 = vpop.f32.mrb[51].mxu0  ;;  %v1127_v60 = vpop.f32.mrb[51].mxu1 }
 0x162   :  { %v1314_v62 = vld [vmem:[#allocation2 + $0xb8] sm:$0xff] }
 0x163   :  { %v1346_v41 = vld [vmem:[#allocation2 + $0x1b8] sm:$0xff]  ;;  %1378 = vst.msk [vmem:[%s2854_s4 + $0xb8] sm:$0xff] %vm21_vm2, %v1314_v62  ;;  %1249 = vst.msk [vmem:[#allocation2 + $0xc8] sm:$0xff] %vm21_vm2, %v1184_v58 }
 0x164   :  { %1410 = vst.msk [vmem:[%s2854_s4 + $0x1b8] sm:$0xff] %vm21_vm2, %v1346_v41  ;;  %1281 = vst.msk [vmem:[#allocation2 + $0x1c8] sm:$0xff] %vm21_vm2, %v1216_v59  ;;  %v970_v0 = vpop.f32.mrb[52].mxu0  ;;  %v1130_v1 = vpop.f32.mrb[52].mxu1 }
 0x165   :  { %v1185_v2 = vadd.f32 %v970_v0, %v520_v61  ;;  %v1217_v3 = vadd.f32 %v1130_v1, %v552_v63  ;;  %v972_v4 = vpop.f32.mrb[53].mxu0  ;;  %v1132_v20 = vpop.f32.mrb[53].mxu1 }
 0x166   :  { %v1315_v6 = vld [vmem:[#allocation2 + $0xc0] sm:$0xff] }
 0x167   :  { %v1347_v47 = vld [vmem:[#allocation2 + $0x1c0] sm:$0xff]  ;;  %1379 = vst.msk [vmem:[%s2854_s4 + $0xc0] sm:$0xff] %vm21_vm2, %v1315_v6  ;;  %1250 = vst.msk [vmem:[#allocation2 + $0xd0] sm:$0xff] %vm21_vm2, %v1185_v2 }
 0x168   :  { %1411 = vst.msk [vmem:[%s2854_s4 + $0x1c0] sm:$0xff] %vm21_vm2, %v1347_v47  ;;  %1282 = vst.msk [vmem:[#allocation2 + $0x1d0] sm:$0xff] %vm21_vm2, %v1217_v3  ;;  %v975_v8 = vpop.f32.mrb[54].mxu0  ;;  %v1135_v9 = vpop.f32.mrb[54].mxu1 }
 0x169   :  { %v1186_v10 = vadd.f32 %v975_v8, %v521_v5  ;;  %v1218_v11 = vadd.f32 %v1135_v9, %v553_v7  ;;  %v977_v12 = vpop.f32.mrb[55].mxu0  ;;  %v1137_v13 = vpop.f32.mrb[55].mxu1 }
 0x16a   :  { %v1316_v16 = vld [vmem:[#allocation2 + $0xc8] sm:$0xff] }
 0x16b   :  { %v1348_v17 = vld [vmem:[#allocation2 + $0x1c8] sm:$0xff]  ;;  %1380 = vst.msk [vmem:[%s2854_s4 + $0xc8] sm:$0xff] %vm21_vm2, %v1316_v16  ;;  %1251 = vst.msk [vmem:[#allocation2 + $0xd8] sm:$0xff] %vm21_vm2, %v1186_v10 }
 0x16c   :  { %1412 = vst.msk [vmem:[%s2854_s4 + $0x1c8] sm:$0xff] %vm21_vm2, %v1348_v17  ;;  %1283 = vst.msk [vmem:[#allocation2 + $0x1d8] sm:$0xff] %vm21_vm2, %v1218_v11  ;;  %v980_v19 = vpop.f32.mrb[56].mxu0  ;;  %v1140_v21 = vpop.f32.mrb[56].mxu1 }
 0x16d   :  { %v1187_v22 = vadd.f32 %v980_v19, %v522_v14  ;;  %v1219_v23 = vadd.f32 %v1140_v21, %v554_v18  ;;  %v982_v24 = vpop.f32.mrb[57].mxu0  ;;  %v1142_v25 = vpop.f32.mrb[57].mxu1 }
 0x16e   :  { %v1317_v27 = vld [vmem:[#allocation2 + $0xd0] sm:$0xff] }
 0x16f   :  { %v1349_v28 = vld [vmem:[#allocation2 + $0x1d0] sm:$0xff]  ;;  %1381 = vst.msk [vmem:[%s2854_s4 + $0xd0] sm:$0xff] %vm21_vm2, %v1317_v27  ;;  %1252 = vst.msk [vmem:[#allocation2 + $0xe0] sm:$0xff] %vm21_vm2, %v1187_v22 }
 0x170   :  { %1413 = vst.msk [vmem:[%s2854_s4 + $0x1d0] sm:$0xff] %vm21_vm2, %v1349_v28  ;;  %1284 = vst.msk [vmem:[#allocation2 + $0x1e0] sm:$0xff] %vm21_vm2, %v1219_v23  ;;  %v985_v30 = vpop.f32.mrb[58].mxu0  ;;  %v1145_v31 = vpop.f32.mrb[58].mxu1 }
 0x171   :  { %v1188_v32 = vadd.f32 %v985_v30, %v523_v26  ;;  %v1220_v33 = vadd.f32 %v1145_v31, %v555_v29  ;;  %v987_v34 = vpop.f32.mrb[59].mxu0  ;;  %v1147_v35 = vpop.f32.mrb[59].mxu1 }
 0x172   :  { %v1318_v37 = vld [vmem:[#allocation2 + $0xd8] sm:$0xff] }
 0x173   :  { %v1350_v38 = vld [vmem:[#allocation2 + $0x1d8] sm:$0xff]  ;;  %1382 = vst.msk [vmem:[%s2854_s4 + $0xd8] sm:$0xff] %vm21_vm2, %v1318_v37  ;;  %1253 = vst.msk [vmem:[#allocation2 + $0xe8] sm:$0xff] %vm21_vm2, %v1188_v32 }
 0x174   :  { %1414 = vst.msk [vmem:[%s2854_s4 + $0x1d8] sm:$0xff] %vm21_vm2, %v1350_v38  ;;  %1285 = vst.msk [vmem:[#allocation2 + $0x1e8] sm:$0xff] %vm21_vm2, %v1220_v33  ;;  %v990_v40 = vpop.f32.mrb[60].mxu0  ;;  %v1150_v42 = vpop.f32.mrb[60].mxu1 }
 0x175   :  { %v1189_v43 = vadd.f32 %v990_v40, %v524_v36  ;;  %v1221_v44 = vadd.f32 %v1150_v42, %v556_v39  ;;  %v992_v45 = vpop.f32.mrb[61].mxu0  ;;  %v1152_v46 = vpop.f32.mrb[61].mxu1 }
 0x176   :  { %v1319_v49 = vld [vmem:[#allocation2 + $0xe0] sm:$0xff] }
 0x177   :  { %v1351_v50 = vld [vmem:[#allocation2 + $0x1e0] sm:$0xff]  ;;  %1383 = vst.msk [vmem:[%s2854_s4 + $0xe0] sm:$0xff] %vm21_vm2, %v1319_v49  ;;  %1254 = vst.msk [vmem:[#allocation2 + $0xf0] sm:$0xff] %vm21_vm2, %v1189_v43 }
 0x178   :  { %1415 = vst.msk [vmem:[%s2854_s4 + $0x1e0] sm:$0xff] %vm21_vm2, %v1351_v50  ;;  %1286 = vst.msk [vmem:[#allocation2 + $0x1f0] sm:$0xff] %vm21_vm2, %v1221_v44  ;;  %v995_v52 = vpop.f32.mrb[62].mxu0  ;;  %v1155_v53 = vpop.f32.mrb[62].mxu1 }
 0x179   :  { %v1190_v54 = vadd.f32 %v995_v52, %v525_v48  ;;  %v1222_v55 = vadd.f32 %v1155_v53, %v557_v51  ;;  %v997_v56 = vpop.f32.mrb[63].mxu0  ;;  %v1157_v57 = vpop.f32.mrb[63].mxu1 }
 0x17a   :  { %v1320_v58 = vld [vmem:[#allocation2 + $0xe8] sm:$0xff] }
 0x17b   :  { %v1352_v59 = vld [vmem:[#allocation2 + $0x1e8] sm:$0xff]  ;;  %1384 = vst.msk [vmem:[%s2854_s4 + $0xe8] sm:$0xff] %vm21_vm2, %v1320_v58  ;;  %1255 = vst.msk [vmem:[#allocation2 + $0xf8] sm:$0xff] %vm21_vm2, %v1190_v54 }
 0x17c   :  { %1416 = vst.msk [vmem:[%s2854_s4 + $0x1e8] sm:$0xff] %vm21_vm2, %v1352_v59  ;;  %1287 = vst.msk [vmem:[#allocation2 + $0x1f8] sm:$0xff] %vm21_vm2, %v1222_v55 }
 0x17e   :  { %v1321_v15 = vld [vmem:[#allocation2 + $0xf0] sm:$0xff] }
 0x17f   :  { %v1353_v60 = vld [vmem:[#allocation2 + $0x1f0] sm:$0xff]  ;;  %1385 = vst.msk [vmem:[%s2854_s4 + $0xf0] sm:$0xff] %vm21_vm2, %v1321_v15 }
 0x180   :  { %1417 = vst.msk [vmem:[%s2854_s4 + $0x1f0] sm:$0xff] %vm21_vm2, %v1353_v60 }
 0x182   :  { %v1322_v61 = vld [vmem:[#allocation2 + $0xf8] sm:$0xff] }
 0x183   :  { %v1354_v62 = vld [vmem:[#allocation2 + $0x1f8] sm:$0xff]  ;;  %1386 = vst.msk [vmem:[%s2854_s4 + $0xf8] sm:$0xff] %vm21_vm2, %v1322_v61 }
 0x184   :  { %1418 = vst.msk [vmem:[%s2854_s4 + $0x1f8] sm:$0xff] %vm21_vm2, %v1354_v62 }

// kernel: densenet_forward.32
= control target key start
LH: loop header
LB: loop body
LE: loop exit
PB: predicated region body
PF: predicated region fallthrough
CT: control target
= control target key end

     0   :  { %vm14_vm0 = vcmask 122880   ;;  %vm101_vm1 = vcmask 130048   ;;  %v207_v0 = vmov 0.0   ;;  %s325_s0 = inlined_call_operand.vmem [shape: f32[128,16], index: 0, kind: input, shape index: {}]   ;;  %s326_s1 = inlined_call_operand.vmem [shape: f32[1,16], index: 1, kind: output, shape index: {0}]   ;;  %s327_s2 = inlined_call_operand.vmem [shape: f32[1,16], index: 2, kind: output, shape index: {1}]  }
   0x1   :  { %15 = vst.msk [vmem:[%s326_s1] sm:$0x1] %vm14_vm0, %v207_v0  ;;  %v17_v1 = vld [vmem:[%s325_s0] sm:$0xff]  ;;  %v18_v2 = vld [vmem:[%s325_s0 + $0x8] sm:$0xff]  ;;  %v19_v3 = vld [vmem:[%s325_s0 + $0x10] sm:$0xff] }
   0x2   :  { %16 = vst.msk [vmem:[%s327_s2] sm:$0x1] %vm14_vm0, %v207_v0  ;;  %v102_v4 = vsel %vm101_vm1, %v17_v1, 0.0  ;;  %v103_v5 = vsel %vm101_vm1, %v18_v2, 0.0  ;;  %v105_v6 = vsel %vm101_vm1, %v19_v3, 0.0  ;;  %v20_v7 = vld [vmem:[%s325_s0 + $0x18] sm:$0xff]  ;;  %v143_v15 = vmul.f32 %v17_v1, %v17_v1 }
   0x3   :  { %v104_v8 = vadd.f32 %v103_v5, %v102_v4  ;;  %v107_v9 = vsel %vm101_vm1, %v20_v7, 0.0  ;;  %v21_v10 = vld [vmem:[%s325_s0 + $0x20] sm:$0xff]  ;;  %v22_v13 = vld [vmem:[%s325_s0 + $0x28] sm:$0xff]  ;;  %v144_v16 = vmul.f32 %v18_v2, %v18_v2  ;;  %v145_v17 = vmul.f32 %v19_v3, %v19_v3  ;;  %v23_v19 = vld [vmem:[%s325_s0 + $0x30] sm:$0xff] }
   0x4   :  { %v109_v12 = vsel %vm101_vm1, %v21_v10, 0.0  ;;  %v111_v18 = vsel %vm101_vm1, %v22_v13, 0.0  ;;  %v146_v21 = vmul.f32 %v20_v7, %v20_v7  ;;  %v113_v22 = vsel %vm101_vm1, %v23_v19, 0.0  ;;  %v24_v24 = vld [vmem:[%s325_s0 + $0x38] sm:$0xff]  ;;  %v25_v31 = vld [vmem:[%s325_s0 + $0x40] sm:$0xff]  ;;  %v26_v37 = vld [vmem:[%s325_s0 + $0x48] sm:$0xff] }
   0x5   :  { %v106_v11 = vadd.f32 %v105_v6, %v104_v8  ;;  %v147_v23 = vmul.f32 %v21_v10, %v21_v10  ;;  %v159_v26 = vsel %vm101_vm1, %v143_v15, 0.0  ;;  %v160_v27 = vsel %vm101_vm1, %v144_v16, 0.0  ;;  %v27_v43 = vld [vmem:[%s325_s0 + $0x50] sm:$0xff]  ;;  %v28_v49 = vld [vmem:[%s325_s0 + $0x58] sm:$0xff]  ;;  %v29_v55 = vld [vmem:[%s325_s0 + $0x60] sm:$0xff] }
   0x6   :  { %v162_v28 = vsel %vm101_vm1, %v145_v17, 0.0  ;;  %v115_v29 = vsel %vm101_vm1, %v24_v24, 0.0  ;;  %v161_v30 = vadd.f32 %v160_v27, %v159_v26  ;;  %v148_v33 = vmul.f32 %v22_v13, %v22_v13  ;;  %v30_v61 = vld [vmem:[%s325_s0 + $0x68] sm:$0xff]  ;;  %v31_v3 = vld [vmem:[%s325_s0 + $0x70] sm:$0xff] }
   0x7   :  { %v108_v14 = vadd.f32 %v107_v9, %v106_v11  ;;  %v164_v34 = vsel %vm101_vm1, %v146_v21, 0.0  ;;  %v117_v35 = vsel %vm101_vm1, %v25_v31, 0.0  ;;  %v149_v39 = vmul.f32 %v23_v19, %v23_v19  ;;  %v32_v9 = vld [vmem:[%s325_s0 + $0x78] sm:$0xff] }
   0x8   :  { %v163_v36 = vadd.f32 %v162_v28, %v161_v30  ;;  %v166_v40 = vsel %vm101_vm1, %v147_v23, 0.0  ;;  %v119_v41 = vsel %vm101_vm1, %v26_v37, 0.0  ;;  %v150_v45 = vmul.f32 %v24_v24, %v24_v24 }
   0x9   :  { %v110_v20 = vadd.f32 %v109_v12, %v108_v14  ;;  %v168_v46 = vsel %vm101_vm1, %v148_v33, 0.0  ;;  %v121_v47 = vsel %vm101_vm1, %v27_v43, 0.0  ;;  %v151_v51 = vmul.f32 %v25_v31, %v25_v31 }
   0xa   :  { %v165_v42 = vadd.f32 %v164_v34, %v163_v36  ;;  %v170_v52 = vsel %vm101_vm1, %v149_v39, 0.0  ;;  %v123_v53 = vsel %vm101_vm1, %v28_v49, 0.0  ;;  %v152_v57 = vmul.f32 %v26_v37, %v26_v37  ;;  %v100_v36 = vld [vmem:[%s326_s1] sm:$0x1] }
   0xb   :  { %v112_v25 = vadd.f32 %v111_v18, %v110_v20  ;;  %v172_v58 = vsel %vm101_vm1, %v150_v45, 0.0  ;;  %v125_v59 = vsel %vm101_vm1, %v29_v55, 0.0  ;;  %v153_v63 = vmul.f32 %v27_v43, %v27_v43 }
   0xc   :  { %v167_v48 = vadd.f32 %v166_v40, %v165_v42  ;;  %v174_v0 = vsel %vm101_vm1, %v151_v51, 0.0  ;;  %v127_v1 = vsel %vm101_vm1, %v30_v61, 0.0  ;;  %v154_v5 = vmul.f32 %v28_v49, %v28_v49 }
   0xd   :  { %v114_v32 = vadd.f32 %v113_v22, %v112_v25  ;;  %v176_v6 = vsel %vm101_vm1, %v152_v57, 0.0  ;;  %v129_v7 = vsel %vm101_vm1, %v31_v3, 0.0  ;;  %v155_v11 = vmul.f32 %v29_v55, %v29_v55 }
   0xe   :  { %v169_v54 = vadd.f32 %v168_v46, %v167_v48  ;;  %v178_v12 = vsel %vm101_vm1, %v153_v63, 0.0  ;;  %v131_v13 = vsel %vm101_vm1, %v32_v9, 0.0  ;;  %v156_v16 = vmul.f32 %v30_v61, %v30_v61 }
   0xf   :  { %v116_v38 = vadd.f32 %v115_v29, %v114_v32  ;;  %v180_v17 = vsel %vm101_vm1, %v154_v5, 0.0  ;;  %v157_v20 = vmul.f32 %v31_v3, %v31_v3  ;;  %v182_v21 = vsel %vm101_vm1, %v155_v11, 0.0 }
  0x10   :  { %v171_v60 = vadd.f32 %v170_v52, %v169_v54  ;;  %v158_v24 = vmul.f32 %v32_v9, %v32_v9  ;;  %v184_v25 = vsel %vm101_vm1, %v156_v16, 0.0 }
  0x11   :  { %v118_v44 = vadd.f32 %v117_v35, %v116_v38  ;;  %v186_v28 = vsel %vm101_vm1, %v157_v20, 0.0 }
  0x12   :  { %v173_v2 = vadd.f32 %v172_v58, %v171_v60  ;;  %v188_v31 = vsel %vm101_vm1, %v158_v24, 0.0 }
  0x13   :  { %v120_v50 = vadd.f32 %v119_v41, %v118_v44  ;;  %v142_v44 = vld [vmem:[%s327_s2] sm:$0x1] }
  0x14   :  { %v175_v8 = vadd.f32 %v174_v0, %v173_v2 }
  0x15   :  { %v122_v56 = vadd.f32 %v121_v47, %v120_v50 }
  0x16   :  { %v177_v14 = vadd.f32 %v176_v6, %v175_v8 }
  0x17   :  { %v124_v62 = vadd.f32 %v123_v53, %v122_v56 }
  0x18   :  { %v179_v18 = vadd.f32 %v178_v12, %v177_v14 }
  0x19   :  { %v126_v4 = vadd.f32 %v125_v59, %v124_v62 }
  0x1a   :  { %v181_v22 = vadd.f32 %v180_v17, %v179_v18 }
  0x1b   :  { %v128_v10 = vadd.f32 %v127_v1, %v126_v4 }
  0x1c   :  { %v183_v26 = vadd.f32 %v182_v21, %v181_v22 }
  0x1d   :  { %v130_v15 = vadd.f32 %v129_v7, %v128_v10 }
  0x1e   :  { %v185_v29 = vadd.f32 %v184_v25, %v183_v26 }
  0x1f   :  { %v132_v19 = vadd.f32 %v131_v13, %v130_v15 }
  0x20   :  { %v187_v32 = vadd.f32 %v186_v28, %v185_v29 }
  0x21   :  { %v133_v23 = vrot.slane %v132_v19, 4 }
  0x22   :  { %v189_v34 = vadd.f32 %v188_v31, %v187_v32 }
  0x23   :  { %v134_v27 = vadd.f32 %v133_v23, %v132_v19 }
  0x24   :  { %v190_v37 = vrot.slane %v189_v34, 4 }
  0x25   :  { %v135_v30 = vrot.slane %v134_v27, 2 }
  0x26   :  { %v191_v39 = vadd.f32 %v190_v37, %v189_v34 }
  0x27   :  { %v136_v33 = vadd.f32 %v135_v30, %v134_v27 }
  0x28   :  { %v192_v41 = vrot.slane %v191_v39, 2 }
  0x29   :  { %v137_v35 = vrot.slane %v136_v33, 1 }
  0x2a   :  { %v193_v42 = vadd.f32 %v192_v41, %v191_v39 }
  0x2b   :  { %v138_v38 = vadd.f32 %v137_v35, %v136_v33 }
  0x2c   :  { %v194_v43 = vrot.slane %v193_v42, 1 }
  0x2d   :  { %v139_v40 = vadd.f32 %v138_v38, %v100_v36 }
  0x2e   :  { %v195_v45 = vadd.f32 %v194_v43, %v193_v42 }
  0x2f   :  { %141 = vst.msk [vmem:[%s326_s1] sm:$0x1] %vm14_vm0, %v139_v40 }
  0x30   :  { %v196_v46 = vadd.f32 %v195_v45, %v142_v44 }
  0x32   :  { %197 = vst.msk [vmem:[%s327_s2] sm:$0x1] %vm14_vm0, %v196_v46 }

// kernel: densenet_forward.33
= control target key start
LH: loop header
LB: loop body
LE: loop exit
PB: predicated region body
PF: predicated region fallthrough
CT: control target
= control target key end

     0   :  { %vm21_vm0 = vcmask 130048   ;;  %v470_v3 = vmov 0.0   ;;  %s704_s3 = inlined_call_operand.vmem [shape: f32[16,16], index: 3, kind: input, shape index: {}]   ;;  %s705_s0 = inlined_call_operand.vmem [shape: f32[128,16], index: 0, kind: input, shape index: {}]   ;;  %s706_s1 = inlined_call_operand.vmem [shape: f32[1,16], index: 1, kind: input, shape index: {}]   ;;  %s707_s2 = inlined_call_operand.vmem [shape: f32[1,16], index: 2, kind: input, shape index: {}]   ;;  %s708_s4 = inlined_call_operand.vmem [shape: f32[128,16], index: 4, kind: output, shape index: {}]  }
   0x1   :  { %v132_v0 = vld [vmem:[%s704_s3] sm:$0xff]  ;;  %v133_v1 = vld [vmem:[%s704_s3 + $0x8] sm:$0xff]  ;;  %23 = vst.msk [vmem:[#allocation2 + $0x8] sm:$0xff] %vm21_vm0, %v470_v3  ;;  %22 = vst.msk [vmem:[#allocation2] sm:$0xff] %vm21_vm0, %v470_v3 }
   0x2   :  { %v38_v2 = vld [vmem:[%s705_s0] sm:$0xff]  ;;  %24 = vst.msk [vmem:[#allocation2 + $0x10] sm:$0xff] %vm21_vm0, %v470_v3  ;;  %25 = vst.msk [vmem:[#allocation2 + $0x18] sm:$0xff] %vm21_vm0, %v470_v3  ;;  %v463_v4 = vpack.c.bf16 %v133_v1, %v132_v0  ;;  %v39_v10 = vld [vmem:[%s705_s0 + $0x8] sm:$0xff] }
   0x3   :  { %26 = vst.msk [vmem:[#allocation2 + $0x20] sm:$0xff] %vm21_vm0, %v470_v3  ;;  %27 = vst.msk [vmem:[#allocation2 + $0x28] sm:$0xff] %vm21_vm0, %v470_v3  ;;  %v524_v5 = vld [vmem:[%s706_s1] ss:$0 sm:$0xff]  ;;  %v47_v11 = vld [vmem:[%s705_s0 + $0x48] sm:$0xff] }
   0x4   :  { %28 = vst.msk [vmem:[#allocation2 + $0x30] sm:$0xff] %vm21_vm0, %v470_v3  ;;  %29 = vst.msk [vmem:[#allocation2 + $0x38] sm:$0xff] %vm21_vm0, %v470_v3  ;;  %v529_v6 = vld [vmem:[%s707_s2] ss:$0 sm:$0xff]  ;;  %v61_v8 = vmul.f32 %v524_v5, %v38_v2  ;;  %v40_v12 = vld [vmem:[%s705_s0 + $0x10] sm:$0xff]  ;;  %464 = vmatprep.subr.bf16.mxu0 %v463_v4  ;;  %467 = vmatprep.subr.bf16.mxu1 %v463_v4  ;;  %v62_v13 = vmul.f32 %v524_v5, %v39_v10 }
   0x5   :  { %30 = vst.msk [vmem:[#allocation2 + $0x40] sm:$0xff] %vm21_vm0, %v470_v3  ;;  %31 = vst.msk [vmem:[#allocation2 + $0x48] sm:$0xff] %vm21_vm0, %v470_v3  ;;  %v46_v7 = vld [vmem:[%s705_s0 + $0x40] sm:$0xff]  ;;  %v70_v14 = vmul.f32 %v524_v5, %v47_v11  ;;  %v63_v15 = vmul.f32 %v524_v5, %v40_v12  ;;  %v48_v16 = vld [vmem:[%s705_s0 + $0x50] sm:$0xff]  ;;  %466 = vmatpush3.bf16.msra.mxu0 %v463_v4  ;;  %468 = vmatpush3.bf16.msra.mxu1 %v463_v4 }
   0x6   :  { %32 = vst.msk [vmem:[#allocation2 + $0x50] sm:$0xff] %vm21_vm0, %v470_v3  ;;  %33 = vst.msk [vmem:[#allocation2 + $0x58] sm:$0xff] %vm21_vm0, %v470_v3  ;;  %v69_v9 = vmul.f32 %v524_v5, %v46_v7  ;;  %v41_v17 = vld [vmem:[%s705_s0 + $0x18] sm:$0xff]  ;;  %v84_v19 = vadd.f32 %v529_v6, %v61_v8  ;;  %v71_v21 = vmul.f32 %v524_v5, %v48_v16  ;;  %v42_v26 = vld [vmem:[%s705_s0 + $0x20] sm:$0xff] }
   0x7   :  { %34 = vst.msk [vmem:[#allocation2 + $0x60] sm:$0xff] %vm21_vm0, %v470_v3  ;;  %35 = vst.msk [vmem:[#allocation2 + $0x68] sm:$0xff] %vm21_vm0, %v470_v3  ;;  %v49_v18 = vld [vmem:[%s705_s0 + $0x58] sm:$0xff]  ;;  %v85_v22 = vadd.f32 %v529_v6, %v62_v13  ;;  %v93_v23 = vadd.f32 %v529_v6, %v70_v14  ;;  %v86_v24 = vadd.f32 %v529_v6, %v63_v15  ;;  %v50_v27 = vld [vmem:[%s705_s0 + $0x60] sm:$0xff] }
   0x8   :  { %36 = vst.msk [vmem:[#allocation2 + $0x70] sm:$0xff] %vm21_vm0, %v470_v3  ;;  %37 = vst.msk [vmem:[#allocation2 + $0x78] sm:$0xff] %vm21_vm0, %v470_v3  ;;  %v92_v20 = vadd.f32 %v529_v6, %v69_v9  ;;  %v64_v25 = vmul.f32 %v524_v5, %v41_v17  ;;  %v100_v28 = vmax.f32 %v84_v19, 0.0  ;;  %v94_v30 = vadd.f32 %v529_v6, %v71_v21  ;;  %v43_v32 = vld [vmem:[%s705_s0 + $0x28] sm:$0xff]  ;;  %v44_v34 = vld [vmem:[%s705_s0 + $0x30] sm:$0xff] }
   0x9   :  { %v72_v31 = vmul.f32 %v524_v5, %v49_v18  ;;  %v51_v33 = vld [vmem:[%s705_s0 + $0x68] sm:$0xff]  ;;  %v101_v35 = vmax.f32 %v85_v22, 0.0  ;;  %v109_v36 = vmax.f32 %v93_v23, 0.0  ;;  %v102_v37 = vmax.f32 %v86_v24, 0.0  ;;  %v52_v39 = vld [vmem:[%s705_s0 + $0x70] sm:$0xff]  ;;  %v45_v44 = vld [vmem:[%s705_s0 + $0x38] sm:$0xff] }
   0xa   :  { %v108_v29 = vmax.f32 %v92_v20, 0.0  ;;  %v87_v38 = vadd.f32 %v529_v6, %v64_v25  ;;  %439 = vmatprep.mubr.msk.f32.mxu0 %vm21_vm0, %v100_v28  ;;  %v110_v40 = vmax.f32 %v94_v30, 0.0  ;;  %v65_v42 = vmul.f32 %v524_v5, %v42_v26  ;;  %v53_v49 = vld [vmem:[%s705_s0 + $0x78] sm:$0xff]  ;;  %v117_v7 = vld [vmem:[#allocation2 + $0x8] sm:$0xff]  ;;  %v116_v9 = vld [vmem:[#allocation2] sm:$0xff] }
   0xb   :  { %v95_v41 = vadd.f32 %v529_v6, %v72_v31  ;;  %v73_v43 = vmul.f32 %v524_v5, %v50_v27  ;;  %440 = vmatmul.mubr.msk.f32.vlgmr.msra.gmra.mrb[0].mxu0 %vm21_vm0, %v101_v35  ;;  %v66_v46 = vmul.f32 %v524_v5, %v43_v32  ;;  %v74_v47 = vmul.f32 %v524_v5, %v51_v33  ;;  %v119_v18 = vld [vmem:[#allocation2 + $0x18] sm:$0xff]  ;;  %v118_v20 = vld [vmem:[#allocation2 + $0x10] sm:$0xff]  ;;  %v121_v30 = vld [vmem:[#allocation2 + $0x28] sm:$0xff] }
   0xc   :  { %451 = vmatprep.mubr.msk.f32.mxu1 %vm21_vm0, %v108_v29  ;;  %v103_v45 = vmax.f32 %v87_v38, 0.0  ;;  %v67_v48 = vmul.f32 %v524_v5, %v44_v34  ;;  %442 = vmatprep.mubr.msk.f32.mxu0 %vm21_vm0, %v102_v37  ;;  %v88_v51 = vadd.f32 %v529_v6, %v65_v42  ;;  %v75_v53 = vmul.f32 %v524_v5, %v52_v39  ;;  %v125_v8 = vld [vmem:[#allocation2 + $0x48] sm:$0xff]  ;;  %v124_v10 = vld [vmem:[#allocation2 + $0x40] sm:$0xff] }
   0xd   :  { %452 = vmatmul.mubr.msk.f32.vlgmr.msra.gmra.mrb[0].mxu1 %vm21_vm0, %v109_v36  ;;  %v111_v50 = vmax.f32 %v95_v41, 0.0  ;;  %v96_v52 = vadd.f32 %v529_v6, %v73_v43  ;;  %v89_v54 = vadd.f32 %v529_v6, %v66_v46  ;;  %v97_v55 = vadd.f32 %v529_v6, %v74_v47  ;;  %v127_v19 = vld [vmem:[#allocation2 + $0x58] sm:$0xff]  ;;  %v126_v21 = vld [vmem:[#allocation2 + $0x50] sm:$0xff]  ;;  %v120_v32 = vld [vmem:[#allocation2 + $0x20] sm:$0xff] }
   0xe   :  { %454 = vmatprep.mubr.msk.f32.mxu1 %vm21_vm0, %v110_v40  ;;  %v90_v56 = vadd.f32 %v529_v6, %v67_v48  ;;  %v68_v57 = vmul.f32 %v524_v5, %v45_v44  ;;  %v104_v58 = vmax.f32 %v88_v51, 0.0  ;;  %v98_v60 = vadd.f32 %v529_v6, %v75_v53  ;;  %v129_v31 = vld [vmem:[#allocation2 + $0x68] sm:$0xff]  ;;  %v128_v33 = vld [vmem:[#allocation2 + $0x60] sm:$0xff]  ;;  %v123_v40 = vld [vmem:[#allocation2 + $0x38] sm:$0xff] }
   0xf   :  { %v112_v59 = vmax.f32 %v96_v52, 0.0  ;;  %v76_v61 = vmul.f32 %v524_v5, %v53_v49  ;;  %443 = vmatmul.mubr.msk.f32.gmra.mrb[2].mxu0 %vm21_vm0, %v103_v45  ;;  %v105_v62 = vmax.f32 %v89_v54, 0.0  ;;  %v113_v63 = vmax.f32 %v97_v55, 0.0  ;;  %v131_v41 = vld [vmem:[#allocation2 + $0x78] sm:$0xff]  ;;  %v122_v46 = vld [vmem:[#allocation2 + $0x30] sm:$0xff] }
  0x10   :  { %v91_v0 = vadd.f32 %v529_v6, %v68_v57  ;;  %445 = vmatprep.mubr.msk.f32.mxu0 %vm21_vm0, %v104_v58  ;;  %v106_v1 = vmax.f32 %v90_v56, 0.0  ;;  %v114_v2 = vmax.f32 %v98_v60, 0.0  ;;  %v130_v49 = vld [vmem:[#allocation2 + $0x70] sm:$0xff] }
  0x11   :  { %455 = vmatmul.mubr.msk.f32.gmra.mrb[2].mxu1 %vm21_vm0, %v111_v50  ;;  %v99_v3 = vadd.f32 %v529_v6, %v76_v61 }
  0x12   :  { %457 = vmatprep.mubr.msk.f32.mxu1 %vm21_vm0, %v112_v59  ;;  %v107_v4 = vmax.f32 %v91_v0, 0.0 }
  0x13   :  { %446 = vmatmul.mubr.msk.f32.gmra.mrb[4].mxu0 %vm21_vm0, %v105_v62  ;;  %v115_v5 = vmax.f32 %v99_v3, 0.0 }
  0x14   :  { %448 = vmatprep.mubr.msk.f32.mxu0 %vm21_vm0, %v106_v1 }
  0x15   :  { %458 = vmatmul.mubr.msk.f32.gmra.mrb[4].mxu1 %vm21_vm0, %v113_v63 }
  0x16   :  { %460 = vmatprep.mubr.msk.f32.mxu1 %vm21_vm0, %v114_v2 }
  0x17   :  { %449 = vmatmul.mubr.msk.f32.gmra.mrb[6].mxu0 %vm21_vm0, %v107_v4 }
  0x19   :  { %461 = vmatmul.mubr.msk.f32.gmra.mrb[6].mxu1 %vm21_vm0, %v115_v5 }
  0xde   :  { %v441_v11 = vpop.f32.mrb[0].mxu0 }
  0xdf   :  { %v329_v12 = vadd.f32 %v441_v11, %v117_v7  ;;  %v249_v14 = vpop.f32.mrb[1].mxu0 }
  0xe0   :  { %v453_v6 = vpop.f32.mrb[0].mxu1  ;;  %v328_v16 = vadd.f32 %v249_v14, %v116_v9 }
  0xe1   :  { %v337_v13 = vadd.f32 %v453_v6, %v125_v8  ;;  %v289_v15 = vpop.f32.mrb[1].mxu1  ;;  %345 = vst.msk [vmem:[#allocation2 + $0x8] sm:$0xff] %vm21_vm0, %v329_v12 }
  0xe2   :  { %v336_v17 = vadd.f32 %v289_v15, %v124_v10  ;;  %344 = vst.msk [vmem:[#allocation2] sm:$0xff] %vm21_vm0, %v328_v16  ;;  %v444_v22 = vpop.f32.mrb[2].mxu0 }
  0xe3   :  { %353 = vst.msk [vmem:[#allocation2 + $0x48] sm:$0xff] %vm21_vm0, %v337_v13  ;;  %v331_v24 = vadd.f32 %v444_v22, %v119_v18  ;;  %v259_v26 = vpop.f32.mrb[3].mxu0 }
  0xe4   :  { %352 = vst.msk [vmem:[#allocation2 + $0x40] sm:$0xff] %vm21_vm0, %v336_v17  ;;  %v456_v23 = vpop.f32.mrb[2].mxu1  ;;  %v330_v28 = vadd.f32 %v259_v26, %v118_v20 }
  0xe5   :  { %v339_v25 = vadd.f32 %v456_v23, %v127_v19  ;;  %v299_v27 = vpop.f32.mrb[3].mxu1  ;;  %347 = vst.msk [vmem:[#allocation2 + $0x18] sm:$0xff] %vm21_vm0, %v331_v24 }
  0xe6   :  { %v338_v29 = vadd.f32 %v299_v27, %v126_v21  ;;  %346 = vst.msk [vmem:[#allocation2 + $0x10] sm:$0xff] %vm21_vm0, %v330_v28  ;;  %v447_v34 = vpop.f32.mrb[4].mxu0 }
  0xe7   :  { %355 = vst.msk [vmem:[#allocation2 + $0x58] sm:$0xff] %vm21_vm0, %v339_v25  ;;  %v333_v36 = vadd.f32 %v447_v34, %v121_v30  ;;  %v269_v38 = vpop.f32.mrb[5].mxu0 }
  0xe8   :  { %354 = vst.msk [vmem:[#allocation2 + $0x50] sm:$0xff] %vm21_vm0, %v338_v29  ;;  %v459_v35 = vpop.f32.mrb[4].mxu1  ;;  %v364_v42 = vld [vmem:[#allocation2 + $0x8] sm:$0xff]  ;;  %v332_v44 = vadd.f32 %v269_v38, %v120_v32 }
  0xe9   :  { %v341_v37 = vadd.f32 %v459_v35, %v129_v31  ;;  %v309_v39 = vpop.f32.mrb[5].mxu1  ;;  %380 = vst.msk [vmem:[%s708_s4 + $0x8] sm:$0xff] %vm21_vm0, %v364_v42  ;;  %v363_v47 = vld [vmem:[#allocation2] sm:$0xff]  ;;  %349 = vst.msk [vmem:[#allocation2 + $0x28] sm:$0xff] %vm21_vm0, %v333_v36 }
  0xea   :  { %v372_v43 = vld [vmem:[#allocation2 + $0x48] sm:$0xff]  ;;  %v340_v45 = vadd.f32 %v309_v39, %v128_v33  ;;  %379 = vst.msk [vmem:[%s708_s4] sm:$0xff] %vm21_vm0, %v363_v47  ;;  %348 = vst.msk [vmem:[#allocation2 + $0x20] sm:$0xff] %vm21_vm0, %v332_v44  ;;  %v450_v50 = vpop.f32.mrb[6].mxu0 }
  0xeb   :  { %388 = vst.msk [vmem:[%s708_s4 + $0x48] sm:$0xff] %vm21_vm0, %v372_v43  ;;  %v371_v48 = vld [vmem:[#allocation2 + $0x40] sm:$0xff]  ;;  %357 = vst.msk [vmem:[#allocation2 + $0x68] sm:$0xff] %vm21_vm0, %v341_v37  ;;  %v335_v52 = vadd.f32 %v450_v50, %v123_v40  ;;  %v279_v54 = vpop.f32.mrb[7].mxu0 }
  0xec   :  { %387 = vst.msk [vmem:[%s708_s4 + $0x40] sm:$0xff] %vm21_vm0, %v371_v48  ;;  %356 = vst.msk [vmem:[#allocation2 + $0x60] sm:$0xff] %vm21_vm0, %v340_v45  ;;  %v462_v51 = vpop.f32.mrb[6].mxu1  ;;  %v366_v56 = vld [vmem:[#allocation2 + $0x18] sm:$0xff]  ;;  %v334_v58 = vadd.f32 %v279_v54, %v122_v46 }
  0xed   :  { %v343_v53 = vadd.f32 %v462_v51, %v131_v41  ;;  %v319_v55 = vpop.f32.mrb[7].mxu1  ;;  %382 = vst.msk [vmem:[%s708_s4 + $0x18] sm:$0xff] %vm21_vm0, %v366_v56  ;;  %v365_v60 = vld [vmem:[#allocation2 + $0x10] sm:$0xff]  ;;  %351 = vst.msk [vmem:[#allocation2 + $0x38] sm:$0xff] %vm21_vm0, %v335_v52 }
  0xee   :  { %v374_v57 = vld [vmem:[#allocation2 + $0x58] sm:$0xff]  ;;  %v342_v59 = vadd.f32 %v319_v55, %v130_v49  ;;  %381 = vst.msk [vmem:[%s708_s4 + $0x10] sm:$0xff] %vm21_vm0, %v365_v60  ;;  %350 = vst.msk [vmem:[#allocation2 + $0x30] sm:$0xff] %vm21_vm0, %v334_v58 }
  0xef   :  { %390 = vst.msk [vmem:[%s708_s4 + $0x58] sm:$0xff] %vm21_vm0, %v374_v57  ;;  %v373_v61 = vld [vmem:[#allocation2 + $0x50] sm:$0xff]  ;;  %359 = vst.msk [vmem:[#allocation2 + $0x78] sm:$0xff] %vm21_vm0, %v343_v53 }
  0xf0   :  { %389 = vst.msk [vmem:[%s708_s4 + $0x50] sm:$0xff] %vm21_vm0, %v373_v61  ;;  %358 = vst.msk [vmem:[#allocation2 + $0x70] sm:$0xff] %vm21_vm0, %v342_v59  ;;  %v368_v62 = vld [vmem:[#allocation2 + $0x28] sm:$0xff] }
  0xf1   :  { %384 = vst.msk [vmem:[%s708_s4 + $0x28] sm:$0xff] %vm21_vm0, %v368_v62  ;;  %v367_v0 = vld [vmem:[#allocation2 + $0x20] sm:$0xff] }
  0xf2   :  { %v376_v63 = vld [vmem:[#allocation2 + $0x68] sm:$0xff]  ;;  %383 = vst.msk [vmem:[%s708_s4 + $0x20] sm:$0xff] %vm21_vm0, %v367_v0 }
  0xf3   :  { %392 = vst.msk [vmem:[%s708_s4 + $0x68] sm:$0xff] %vm21_vm0, %v376_v63  ;;  %v375_v1 = vld [vmem:[#allocation2 + $0x60] sm:$0xff] }
  0xf4   :  { %391 = vst.msk [vmem:[%s708_s4 + $0x60] sm:$0xff] %vm21_vm0, %v375_v1  ;;  %v370_v2 = vld [vmem:[#allocation2 + $0x38] sm:$0xff] }
  0xf5   :  { %386 = vst.msk [vmem:[%s708_s4 + $0x38] sm:$0xff] %vm21_vm0, %v370_v2  ;;  %v369_v4 = vld [vmem:[#allocation2 + $0x30] sm:$0xff] }
  0xf6   :  { %v378_v3 = vld [vmem:[#allocation2 + $0x78] sm:$0xff]  ;;  %385 = vst.msk [vmem:[%s708_s4 + $0x30] sm:$0xff] %vm21_vm0, %v369_v4 }
  0xf7   :  { %394 = vst.msk [vmem:[%s708_s4 + $0x78] sm:$0xff] %vm21_vm0, %v378_v3  ;;  %v377_v5 = vld [vmem:[#allocation2 + $0x70] sm:$0xff] }
  0xf8   :  { %393 = vst.msk [vmem:[%s708_s4 + $0x70] sm:$0xff] %vm21_vm0, %v377_v5 }

// kernel: densenet_forward.36
= control target key start
LH: loop header
LB: loop body
LE: loop exit
PB: predicated region body
PF: predicated region fallthrough
CT: control target
= control target key end

     0   :  { %vm14_vm0 = vcmask 57344   ;;  %vm101_vm1 = vcmask 64512   ;;  %v207_v0 = vmov 0.0   ;;  %s325_s0 = inlined_call_operand.vmem [shape: f32[128,8], index: 0, kind: input, shape index: {}]   ;;  %s326_s1 = inlined_call_operand.vmem [shape: f32[1,8], index: 1, kind: output, shape index: {0}]   ;;  %s327_s2 = inlined_call_operand.vmem [shape: f32[1,8], index: 2, kind: output, shape index: {1}]  }
   0x1   :  { %15 = vst.msk [vmem:[%s326_s1] sm:$0x1] %vm14_vm0, %v207_v0  ;;  %v17_v1 = vld [vmem:[%s325_s0] sm:$0xff]  ;;  %v18_v2 = vld [vmem:[%s325_s0 + $0x8] sm:$0xff]  ;;  %v19_v3 = vld [vmem:[%s325_s0 + $0x10] sm:$0xff] }
   0x2   :  { %16 = vst.msk [vmem:[%s327_s2] sm:$0x1] %vm14_vm0, %v207_v0  ;;  %v102_v4 = vsel %vm101_vm1, %v17_v1, 0.0  ;;  %v103_v5 = vsel %vm101_vm1, %v18_v2, 0.0  ;;  %v105_v6 = vsel %vm101_vm1, %v19_v3, 0.0  ;;  %v20_v7 = vld [vmem:[%s325_s0 + $0x18] sm:$0xff]  ;;  %v143_v15 = vmul.f32 %v17_v1, %v17_v1 }
   0x3   :  { %v104_v8 = vadd.f32 %v103_v5, %v102_v4  ;;  %v107_v9 = vsel %vm101_vm1, %v20_v7, 0.0  ;;  %v21_v10 = vld [vmem:[%s325_s0 + $0x20] sm:$0xff]  ;;  %v22_v13 = vld [vmem:[%s325_s0 + $0x28] sm:$0xff]  ;;  %v144_v16 = vmul.f32 %v18_v2, %v18_v2  ;;  %v145_v17 = vmul.f32 %v19_v3, %v19_v3  ;;  %v23_v19 = vld [vmem:[%s325_s0 + $0x30] sm:$0xff] }
   0x4   :  { %v109_v12 = vsel %vm101_vm1, %v21_v10, 0.0  ;;  %v111_v18 = vsel %vm101_vm1, %v22_v13, 0.0  ;;  %v146_v21 = vmul.f32 %v20_v7, %v20_v7  ;;  %v113_v22 = vsel %vm101_vm1, %v23_v19, 0.0  ;;  %v24_v24 = vld [vmem:[%s325_s0 + $0x38] sm:$0xff]  ;;  %v25_v31 = vld [vmem:[%s325_s0 + $0x40] sm:$0xff]  ;;  %v26_v37 = vld [vmem:[%s325_s0 + $0x48] sm:$0xff] }
   0x5   :  { %v106_v11 = vadd.f32 %v105_v6, %v104_v8  ;;  %v147_v23 = vmul.f32 %v21_v10, %v21_v10  ;;  %v159_v26 = vsel %vm101_vm1, %v143_v15, 0.0  ;;  %v160_v27 = vsel %vm101_vm1, %v144_v16, 0.0  ;;  %v27_v43 = vld [vmem:[%s325_s0 + $0x50] sm:$0xff]  ;;  %v28_v49 = vld [vmem:[%s325_s0 + $0x58] sm:$0xff]  ;;  %v29_v55 = vld [vmem:[%s325_s0 + $0x60] sm:$0xff] }
   0x6   :  { %v162_v28 = vsel %vm101_vm1, %v145_v17, 0.0  ;;  %v115_v29 = vsel %vm101_vm1, %v24_v24, 0.0  ;;  %v161_v30 = vadd.f32 %v160_v27, %v159_v26  ;;  %v148_v33 = vmul.f32 %v22_v13, %v22_v13  ;;  %v30_v61 = vld [vmem:[%s325_s0 + $0x68] sm:$0xff]  ;;  %v31_v3 = vld [vmem:[%s325_s0 + $0x70] sm:$0xff] }
   0x7   :  { %v108_v14 = vadd.f32 %v107_v9, %v106_v11  ;;  %v164_v34 = vsel %vm101_vm1, %v146_v21, 0.0  ;;  %v117_v35 = vsel %vm101_vm1, %v25_v31, 0.0  ;;  %v149_v39 = vmul.f32 %v23_v19, %v23_v19  ;;  %v32_v9 = vld [vmem:[%s325_s0 + $0x78] sm:$0xff] }
   0x8   :  { %v163_v36 = vadd.f32 %v162_v28, %v161_v30  ;;  %v166_v40 = vsel %vm101_vm1, %v147_v23, 0.0  ;;  %v119_v41 = vsel %vm101_vm1, %v26_v37, 0.0  ;;  %v150_v45 = vmul.f32 %v24_v24, %v24_v24 }
   0x9   :  { %v110_v20 = vadd.f32 %v109_v12, %v108_v14  ;;  %v168_v46 = vsel %vm101_vm1, %v148_v33, 0.0  ;;  %v121_v47 = vsel %vm101_vm1, %v27_v43, 0.0  ;;  %v151_v51 = vmul.f32 %v25_v31, %v25_v31 }
   0xa   :  { %v165_v42 = vadd.f32 %v164_v34, %v163_v36  ;;  %v170_v52 = vsel %vm101_vm1, %v149_v39, 0.0  ;;  %v123_v53 = vsel %vm101_vm1, %v28_v49, 0.0  ;;  %v152_v57 = vmul.f32 %v26_v37, %v26_v37  ;;  %v100_v36 = vld [vmem:[%s326_s1] sm:$0x1] }
   0xb   :  { %v112_v25 = vadd.f32 %v111_v18, %v110_v20  ;;  %v172_v58 = vsel %vm101_vm1, %v150_v45, 0.0  ;;  %v125_v59 = vsel %vm101_vm1, %v29_v55, 0.0  ;;  %v153_v63 = vmul.f32 %v27_v43, %v27_v43 }
   0xc   :  { %v167_v48 = vadd.f32 %v166_v40, %v165_v42  ;;  %v174_v0 = vsel %vm101_vm1, %v151_v51, 0.0  ;;  %v127_v1 = vsel %vm101_vm1, %v30_v61, 0.0  ;;  %v154_v5 = vmul.f32 %v28_v49, %v28_v49 }
   0xd   :  { %v114_v32 = vadd.f32 %v113_v22, %v112_v25  ;;  %v176_v6 = vsel %vm101_vm1, %v152_v57, 0.0  ;;  %v129_v7 = vsel %vm101_vm1, %v31_v3, 0.0  ;;  %v155_v11 = vmul.f32 %v29_v55, %v29_v55 }
   0xe   :  { %v169_v54 = vadd.f32 %v168_v46, %v167_v48  ;;  %v178_v12 = vsel %vm101_vm1, %v153_v63, 0.0  ;;  %v131_v13 = vsel %vm101_vm1, %v32_v9, 0.0  ;;  %v156_v16 = vmul.f32 %v30_v61, %v30_v61 }
   0xf   :  { %v116_v38 = vadd.f32 %v115_v29, %v114_v32  ;;  %v180_v17 = vsel %vm101_vm1, %v154_v5, 0.0  ;;  %v157_v20 = vmul.f32 %v31_v3, %v31_v3  ;;  %v182_v21 = vsel %vm101_vm1, %v155_v11, 0.0 }
  0x10   :  { %v171_v60 = vadd.f32 %v170_v52, %v169_v54  ;;  %v158_v24 = vmul.f32 %v32_v9, %v32_v9  ;;  %v184_v25 = vsel %vm101_vm1, %v156_v16, 0.0 }
  0x11   :  { %v118_v44 = vadd.f32 %v117_v35, %v116_v38  ;;  %v186_v28 = vsel %vm101_vm1, %v157_v20, 0.0 }
  0x12   :  { %v173_v2 = vadd.f32 %v172_v58, %v171_v60  ;;  %v188_v31 = vsel %vm101_vm1, %v158_v24, 0.0 }
  0x13   :  { %v120_v50 = vadd.f32 %v119_v41, %v118_v44  ;;  %v142_v44 = vld [vmem:[%s327_s2] sm:$0x1] }
  0x14   :  { %v175_v8 = vadd.f32 %v174_v0, %v173_v2 }
  0x15   :  { %v122_v56 = vadd.f32 %v121_v47, %v120_v50 }
  0x16   :  { %v177_v14 = vadd.f32 %v176_v6, %v175_v8 }
  0x17   :  { %v124_v62 = vadd.f32 %v123_v53, %v122_v56 }
  0x18   :  { %v179_v18 = vadd.f32 %v178_v12, %v177_v14 }
  0x19   :  { %v126_v4 = vadd.f32 %v125_v59, %v124_v62 }
  0x1a   :  { %v181_v22 = vadd.f32 %v180_v17, %v179_v18 }
  0x1b   :  { %v128_v10 = vadd.f32 %v127_v1, %v126_v4 }
  0x1c   :  { %v183_v26 = vadd.f32 %v182_v21, %v181_v22 }
  0x1d   :  { %v130_v15 = vadd.f32 %v129_v7, %v128_v10 }
  0x1e   :  { %v185_v29 = vadd.f32 %v184_v25, %v183_v26 }
  0x1f   :  { %v132_v19 = vadd.f32 %v131_v13, %v130_v15 }
  0x20   :  { %v187_v32 = vadd.f32 %v186_v28, %v185_v29 }
  0x21   :  { %v133_v23 = vrot.slane %v132_v19, 4 }
  0x22   :  { %v189_v34 = vadd.f32 %v188_v31, %v187_v32 }
  0x23   :  { %v134_v27 = vadd.f32 %v133_v23, %v132_v19 }
  0x24   :  { %v190_v37 = vrot.slane %v189_v34, 4 }
  0x25   :  { %v135_v30 = vrot.slane %v134_v27, 2 }
  0x26   :  { %v191_v39 = vadd.f32 %v190_v37, %v189_v34 }
  0x27   :  { %v136_v33 = vadd.f32 %v135_v30, %v134_v27 }
  0x28   :  { %v192_v41 = vrot.slane %v191_v39, 2 }
  0x29   :  { %v137_v35 = vrot.slane %v136_v33, 1 }
  0x2a   :  { %v193_v42 = vadd.f32 %v192_v41, %v191_v39 }
  0x2b   :  { %v138_v38 = vadd.f32 %v137_v35, %v136_v33 }
  0x2c   :  { %v194_v43 = vrot.slane %v193_v42, 1 }
  0x2d   :  { %v139_v40 = vadd.f32 %v138_v38, %v100_v36 }
  0x2e   :  { %v195_v45 = vadd.f32 %v194_v43, %v193_v42 }
  0x2f   :  { %141 = vst.msk [vmem:[%s326_s1] sm:$0x1] %vm14_vm0, %v139_v40 }
  0x30   :  { %v196_v46 = vadd.f32 %v195_v45, %v142_v44 }
  0x32   :  { %197 = vst.msk [vmem:[%s327_s2] sm:$0x1] %vm14_vm0, %v196_v46 }

// kernel: densenet_forward.38
= control target key start
LH: loop header
LB: loop body
LE: loop exit
PB: predicated region body
PF: predicated region fallthrough
CT: control target
= control target key end

     0   :  { %vm21_vm0 = vcmask 130048   ;;  %v463_v3 = vmov 0.0   ;;  %vm133_vm1 = vcmask 64512   ;;  %s694_s3 = inlined_call_operand.vmem [shape: f32[8,16], index: 3, kind: input, shape index: {}]   ;;  %s695_s0 = inlined_call_operand.vmem [shape: f32[128,8], index: 0, kind: input, shape index: {}]   ;;  %s696_s1 = inlined_call_operand.vmem [shape: f32[1,8], index: 1, kind: input, shape index: {}]   ;;  %s697_s2 = inlined_call_operand.vmem [shape: f32[1,8], index: 2, kind: input, shape index: {}]   ;;  %s698_s4 = inlined_call_operand.vmem [shape: f32[128,16], index: 4, kind: output, shape index: {}]  }
   0x1   :  { %v132_v0 = vld [vmem:[%s694_s3] sm:$0xff]  ;;  %23 = vst.msk [vmem:[#allocation2 + $0x8] sm:$0xff] %vm21_vm0, %v463_v3  ;;  %22 = vst.msk [vmem:[#allocation2] sm:$0xff] %vm21_vm0, %v463_v3  ;;  %v39_v7 = vld [vmem:[%s695_s0 + $0x8] sm:$0xff] }
   0x2   :  { %v38_v1 = vld [vmem:[%s695_s0] sm:$0xff]  ;;  %24 = vst.msk [vmem:[#allocation2 + $0x10] sm:$0xff] %vm21_vm0, %v463_v3  ;;  %25 = vst.msk [vmem:[#allocation2 + $0x18] sm:$0xff] %vm21_vm0, %v463_v3  ;;  %434 = vmatprep.subr.mxu0 %v132_v0  ;;  %460 = vmatprep.subr.mxu1 %v132_v0  ;;  %v47_v10 = vld [vmem:[%s695_s0 + $0x48] sm:$0xff] }
   0x3   :  { %v498_v2 = vld [vmem:[%s696_s1] ss:$0 sm:$0xff]  ;;  %26 = vst.msk [vmem:[#allocation2 + $0x20] sm:$0xff] %vm21_vm0, %v463_v3  ;;  %27 = vst.msk [vmem:[#allocation2 + $0x28] sm:$0xff] %vm21_vm0, %v463_v3  ;;  %435 = vmatpush3.msra.mxu0 %v132_v0  ;;  %461 = vmatpush3.msra.mxu1 %v132_v0  ;;  %v40_v11 = vld [vmem:[%s695_s0 + $0x10] sm:$0xff] }
   0x4   :  { %28 = vst.msk [vmem:[#allocation2 + $0x30] sm:$0xff] %vm21_vm0, %v463_v3  ;;  %29 = vst.msk [vmem:[#allocation2 + $0x38] sm:$0xff] %vm21_vm0, %v463_v3  ;;  %v61_v4 = vmul.f32 %v498_v2, %v38_v1  ;;  %v520_v5 = vld [vmem:[%s697_s2] ss:$0 sm:$0xff]  ;;  %v62_v9 = vmul.f32 %v498_v2, %v39_v7  ;;  %v48_v12 = vld [vmem:[%s695_s0 + $0x50] sm:$0xff]  ;;  %v70_v14 = vmul.f32 %v498_v2, %v47_v10 }
   0x5   :  { %30 = vst.msk [vmem:[#allocation2 + $0x40] sm:$0xff] %vm21_vm0, %v463_v3  ;;  %31 = vst.msk [vmem:[#allocation2 + $0x48] sm:$0xff] %vm21_vm0, %v463_v3  ;;  %v46_v6 = vld [vmem:[%s695_s0 + $0x40] sm:$0xff]  ;;  %v63_v15 = vmul.f32 %v498_v2, %v40_v11  ;;  %v71_v16 = vmul.f32 %v498_v2, %v48_v12  ;;  %v41_v17 = vld [vmem:[%s695_s0 + $0x18] sm:$0xff] }
   0x6   :  { %32 = vst.msk [vmem:[#allocation2 + $0x50] sm:$0xff] %vm21_vm0, %v463_v3  ;;  %33 = vst.msk [vmem:[#allocation2 + $0x58] sm:$0xff] %vm21_vm0, %v463_v3  ;;  %v69_v8 = vmul.f32 %v498_v2, %v46_v6  ;;  %v84_v13 = vadd.f32 %v520_v5, %v61_v4  ;;  %v49_v18 = vld [vmem:[%s695_s0 + $0x58] sm:$0xff]  ;;  %v85_v20 = vadd.f32 %v520_v5, %v62_v9  ;;  %v42_v23 = vld [vmem:[%s695_s0 + $0x20] sm:$0xff] }
   0x7   :  { %34 = vst.msk [vmem:[#allocation2 + $0x60] sm:$0xff] %vm21_vm0, %v463_v3  ;;  %35 = vst.msk [vmem:[#allocation2 + $0x68] sm:$0xff] %vm21_vm0, %v463_v3  ;;  %v64_v21 = vmul.f32 %v498_v2, %v41_v17  ;;  %v72_v22 = vmul.f32 %v498_v2, %v49_v18  ;;  %v93_v25 = vadd.f32 %v520_v5, %v70_v14  ;;  %v50_v28 = vld [vmem:[%s695_s0 + $0x60] sm:$0xff]  ;;  %v43_v29 = vld [vmem:[%s695_s0 + $0x28] sm:$0xff] }
   0x8   :  { %36 = vst.msk [vmem:[#allocation2 + $0x70] sm:$0xff] %vm21_vm0, %v463_v3  ;;  %37 = vst.msk [vmem:[#allocation2 + $0x78] sm:$0xff] %vm21_vm0, %v463_v3  ;;  %v92_v19 = vadd.f32 %v520_v5, %v69_v8  ;;  %v100_v24 = vmax.f32 %v84_v13, 0.0  ;;  %v86_v26 = vadd.f32 %v520_v5, %v63_v15  ;;  %v94_v27 = vadd.f32 %v520_v5, %v71_v16  ;;  %v51_v34 = vld [vmem:[%s695_s0 + $0x68] sm:$0xff]  ;;  %v44_v35 = vld [vmem:[%s695_s0 + $0x30] sm:$0xff] }
   0x9   :  { %v101_v31 = vmax.f32 %v85_v20, 0.0  ;;  %v87_v32 = vadd.f32 %v520_v5, %v64_v21  ;;  %v95_v33 = vadd.f32 %v520_v5, %v72_v22  ;;  %v109_v36 = vmax.f32 %v93_v25, 0.0  ;;  %v52_v40 = vld [vmem:[%s695_s0 + $0x70] sm:$0xff]  ;;  %v45_v41 = vld [vmem:[%s695_s0 + $0x38] sm:$0xff]  ;;  %v117_v4 = vld [vmem:[#allocation2 + $0x8] sm:$0xff] }
   0xa   :  { %v108_v30 = vmax.f32 %v92_v19, 0.0  ;;  %436 = vmatprep.mubr.msk.f32.mxu0 %vm133_vm1, %v100_v24  ;;  %v102_v37 = vmax.f32 %v86_v26, 0.0  ;;  %v110_v38 = vmax.f32 %v94_v27, 0.0  ;;  %v65_v39 = vmul.f32 %v498_v2, %v42_v23  ;;  %v53_v45 = vld [vmem:[%s695_s0 + $0x78] sm:$0xff]  ;;  %v118_v18 = vld [vmem:[#allocation2 + $0x10] sm:$0xff]  ;;  %v121_v27 = vld [vmem:[#allocation2 + $0x28] sm:$0xff] }
   0xb   :  { %437 = vmatmul.mubr.msk.f32.vlgmr.msra.gmra.mrb[0].mxu0 %vm133_vm1, %v101_v31  ;;  %v103_v42 = vmax.f32 %v87_v32, 0.0  ;;  %v73_v43 = vmul.f32 %v498_v2, %v50_v28  ;;  %v66_v44 = vmul.f32 %v498_v2, %v43_v29  ;;  %v111_v46 = vmax.f32 %v95_v33, 0.0  ;;  %v119_v15 = vld [vmem:[#allocation2 + $0x18] sm:$0xff] }
   0xc   :  { %448 = vmatprep.mubr.msk.f32.mxu1 %vm133_vm1, %v108_v30  ;;  %439 = vmatprep.mubr.msk.f32.mxu0 %vm133_vm1, %v102_v37  ;;  %v88_v47 = vadd.f32 %v520_v5, %v65_v39  ;;  %v74_v48 = vmul.f32 %v498_v2, %v51_v34  ;;  %v67_v49 = vmul.f32 %v498_v2, %v44_v35  ;;  %v125_v6 = vld [vmem:[#allocation2 + $0x48] sm:$0xff]  ;;  %v124_v8 = vld [vmem:[#allocation2 + $0x40] sm:$0xff] }
   0xd   :  { %449 = vmatmul.mubr.msk.f32.vlgmr.msra.gmra.mrb[0].mxu1 %vm133_vm1, %v109_v36  ;;  %v96_v50 = vadd.f32 %v520_v5, %v73_v43  ;;  %v89_v51 = vadd.f32 %v520_v5, %v66_v44  ;;  %v75_v52 = vmul.f32 %v498_v2, %v52_v40  ;;  %v68_v53 = vmul.f32 %v498_v2, %v45_v41  ;;  %v127_v17 = vld [vmem:[#allocation2 + $0x58] sm:$0xff]  ;;  %v126_v20 = vld [vmem:[#allocation2 + $0x50] sm:$0xff]  ;;  %v120_v30 = vld [vmem:[#allocation2 + $0x20] sm:$0xff] }
   0xe   :  { %451 = vmatprep.mubr.msk.f32.mxu1 %vm133_vm1, %v110_v38  ;;  %v104_v54 = vmax.f32 %v88_v47, 0.0  ;;  %v97_v55 = vadd.f32 %v520_v5, %v74_v48  ;;  %v90_v56 = vadd.f32 %v520_v5, %v67_v49  ;;  %v76_v57 = vmul.f32 %v498_v2, %v53_v45  ;;  %v129_v29 = vld [vmem:[#allocation2 + $0x68] sm:$0xff]  ;;  %v128_v32 = vld [vmem:[#allocation2 + $0x60] sm:$0xff]  ;;  %v123_v40 = vld [vmem:[#allocation2 + $0x38] sm:$0xff] }
   0xf   :  { %440 = vmatmul.mubr.msk.f32.gmra.mrb[2].mxu0 %vm133_vm1, %v103_v42  ;;  %v112_v58 = vmax.f32 %v96_v50, 0.0  ;;  %v105_v59 = vmax.f32 %v89_v51, 0.0  ;;  %v98_v60 = vadd.f32 %v520_v5, %v75_v52  ;;  %v91_v61 = vadd.f32 %v520_v5, %v68_v53  ;;  %v131_v41 = vld [vmem:[#allocation2 + $0x78] sm:$0xff]  ;;  %v122_v45 = vld [vmem:[#allocation2 + $0x30] sm:$0xff] }
  0x10   :  { %442 = vmatprep.mubr.msk.f32.mxu0 %vm133_vm1, %v104_v54  ;;  %v113_v62 = vmax.f32 %v97_v55, 0.0  ;;  %v106_v63 = vmax.f32 %v90_v56, 0.0  ;;  %v99_v0 = vadd.f32 %v520_v5, %v76_v57  ;;  %v116_v5 = vld [vmem:[#allocation2] sm:$0xff]  ;;  %v130_v48 = vld [vmem:[#allocation2 + $0x70] sm:$0xff] }
  0x11   :  { %452 = vmatmul.mubr.msk.f32.gmra.mrb[2].mxu1 %vm133_vm1, %v111_v46  ;;  %v114_v1 = vmax.f32 %v98_v60, 0.0  ;;  %v107_v2 = vmax.f32 %v91_v61, 0.0 }
  0x12   :  { %454 = vmatprep.mubr.msk.f32.mxu1 %vm133_vm1, %v112_v58  ;;  %v115_v3 = vmax.f32 %v99_v0, 0.0 }
  0x13   :  { %443 = vmatmul.mubr.msk.f32.gmra.mrb[4].mxu0 %vm133_vm1, %v105_v59 }
  0x14   :  { %445 = vmatprep.mubr.msk.f32.mxu0 %vm133_vm1, %v106_v63 }
  0x15   :  { %455 = vmatmul.mubr.msk.f32.gmra.mrb[4].mxu1 %vm133_vm1, %v113_v62 }
  0x16   :  { %457 = vmatprep.mubr.msk.f32.mxu1 %vm133_vm1, %v114_v1 }
  0x17   :  { %446 = vmatmul.mubr.msk.f32.gmra.mrb[6].mxu0 %vm133_vm1, %v107_v2 }
  0x19   :  { %458 = vmatmul.mubr.msk.f32.gmra.mrb[6].mxu1 %vm133_vm1, %v115_v3 }
  0xde   :  { %v438_v7 = vpop.f32.mrb[0].mxu0 }
  0xdf   :  { %v328_v9 = vadd.f32 %v438_v7, %v117_v4  ;;  %v248_v11 = vpop.f32.mrb[1].mxu0 }
  0xe0   :  { %v450_v10 = vpop.f32.mrb[0].mxu1  ;;  %v327_v13 = vadd.f32 %v248_v11, %v116_v5 }
  0xe1   :  { %v336_v12 = vadd.f32 %v450_v10, %v125_v6  ;;  %v288_v14 = vpop.f32.mrb[1].mxu1  ;;  %345 = vst.msk [vmem:[#allocation2 + $0x8] sm:$0xff] %vm21_vm0, %v328_v9 }
  0xe2   :  { %v335_v16 = vadd.f32 %v288_v14, %v124_v8  ;;  %344 = vst.msk [vmem:[#allocation2] sm:$0xff] %vm21_vm0, %v327_v13  ;;  %v441_v19 = vpop.f32.mrb[2].mxu0 }
  0xe3   :  { %353 = vst.msk [vmem:[#allocation2 + $0x48] sm:$0xff] %vm21_vm0, %v336_v12  ;;  %v330_v21 = vadd.f32 %v441_v19, %v119_v15  ;;  %v258_v23 = vpop.f32.mrb[3].mxu0 }
  0xe4   :  { %352 = vst.msk [vmem:[#allocation2 + $0x40] sm:$0xff] %vm21_vm0, %v335_v16  ;;  %v453_v22 = vpop.f32.mrb[2].mxu1  ;;  %v329_v25 = vadd.f32 %v258_v23, %v118_v18 }
  0xe5   :  { %v338_v24 = vadd.f32 %v453_v22, %v127_v17  ;;  %v298_v26 = vpop.f32.mrb[3].mxu1  ;;  %347 = vst.msk [vmem:[#allocation2 + $0x18] sm:$0xff] %vm21_vm0, %v330_v21 }
  0xe6   :  { %v337_v28 = vadd.f32 %v298_v26, %v126_v20  ;;  %346 = vst.msk [vmem:[#allocation2 + $0x10] sm:$0xff] %vm21_vm0, %v329_v25  ;;  %v444_v31 = vpop.f32.mrb[4].mxu0 }
  0xe7   :  { %355 = vst.msk [vmem:[#allocation2 + $0x58] sm:$0xff] %vm21_vm0, %v338_v24  ;;  %v332_v33 = vadd.f32 %v444_v31, %v121_v27  ;;  %v268_v35 = vpop.f32.mrb[5].mxu0 }
  0xe8   :  { %354 = vst.msk [vmem:[#allocation2 + $0x50] sm:$0xff] %vm21_vm0, %v337_v28  ;;  %v456_v34 = vpop.f32.mrb[4].mxu1  ;;  %v364_v36 = vld [vmem:[#allocation2 + $0x8] sm:$0xff]  ;;  %v331_v38 = vadd.f32 %v268_v35, %v120_v30 }
  0xe9   :  { %v340_v37 = vadd.f32 %v456_v34, %v129_v29  ;;  %v308_v39 = vpop.f32.mrb[5].mxu1  ;;  %380 = vst.msk [vmem:[%s698_s4 + $0x8] sm:$0xff] %vm21_vm0, %v364_v36  ;;  %v363_v43 = vld [vmem:[#allocation2] sm:$0xff]  ;;  %349 = vst.msk [vmem:[#allocation2 + $0x28] sm:$0xff] %vm21_vm0, %v332_v33 }
  0xea   :  { %v372_v42 = vld [vmem:[#allocation2 + $0x48] sm:$0xff]  ;;  %v339_v44 = vadd.f32 %v308_v39, %v128_v32  ;;  %379 = vst.msk [vmem:[%s698_s4] sm:$0xff] %vm21_vm0, %v363_v43  ;;  %348 = vst.msk [vmem:[#allocation2 + $0x20] sm:$0xff] %vm21_vm0, %v331_v38  ;;  %v447_v47 = vpop.f32.mrb[6].mxu0 }
  0xeb   :  { %388 = vst.msk [vmem:[%s698_s4 + $0x48] sm:$0xff] %vm21_vm0, %v372_v42  ;;  %v371_v46 = vld [vmem:[#allocation2 + $0x40] sm:$0xff]  ;;  %357 = vst.msk [vmem:[#allocation2 + $0x68] sm:$0xff] %vm21_vm0, %v340_v37  ;;  %v334_v49 = vadd.f32 %v447_v47, %v123_v40  ;;  %v278_v51 = vpop.f32.mrb[7].mxu0 }
  0xec   :  { %387 = vst.msk [vmem:[%s698_s4 + $0x40] sm:$0xff] %vm21_vm0, %v371_v46  ;;  %356 = vst.msk [vmem:[#allocation2 + $0x60] sm:$0xff] %vm21_vm0, %v339_v44  ;;  %v459_v50 = vpop.f32.mrb[6].mxu1  ;;  %v366_v52 = vld [vmem:[#allocation2 + $0x18] sm:$0xff]  ;;  %v333_v54 = vadd.f32 %v278_v51, %v122_v45 }
  0xed   :  { %v342_v53 = vadd.f32 %v459_v50, %v131_v41  ;;  %v318_v55 = vpop.f32.mrb[7].mxu1  ;;  %382 = vst.msk [vmem:[%s698_s4 + $0x18] sm:$0xff] %vm21_vm0, %v366_v52  ;;  %v365_v57 = vld [vmem:[#allocation2 + $0x10] sm:$0xff]  ;;  %351 = vst.msk [vmem:[#allocation2 + $0x38] sm:$0xff] %vm21_vm0, %v334_v49 }
  0xee   :  { %v374_v56 = vld [vmem:[#allocation2 + $0x58] sm:$0xff]  ;;  %v341_v58 = vadd.f32 %v318_v55, %v130_v48  ;;  %381 = vst.msk [vmem:[%s698_s4 + $0x10] sm:$0xff] %vm21_vm0, %v365_v57  ;;  %350 = vst.msk [vmem:[#allocation2 + $0x30] sm:$0xff] %vm21_vm0, %v333_v54 }
  0xef   :  { %390 = vst.msk [vmem:[%s698_s4 + $0x58] sm:$0xff] %vm21_vm0, %v374_v56  ;;  %v373_v59 = vld [vmem:[#allocation2 + $0x50] sm:$0xff]  ;;  %359 = vst.msk [vmem:[#allocation2 + $0x78] sm:$0xff] %vm21_vm0, %v342_v53 }
  0xf0   :  { %389 = vst.msk [vmem:[%s698_s4 + $0x50] sm:$0xff] %vm21_vm0, %v373_v59  ;;  %358 = vst.msk [vmem:[#allocation2 + $0x70] sm:$0xff] %vm21_vm0, %v341_v58  ;;  %v368_v60 = vld [vmem:[#allocation2 + $0x28] sm:$0xff] }
  0xf1   :  { %384 = vst.msk [vmem:[%s698_s4 + $0x28] sm:$0xff] %vm21_vm0, %v368_v60  ;;  %v367_v62 = vld [vmem:[#allocation2 + $0x20] sm:$0xff] }
  0xf2   :  { %v376_v61 = vld [vmem:[#allocation2 + $0x68] sm:$0xff]  ;;  %383 = vst.msk [vmem:[%s698_s4 + $0x20] sm:$0xff] %vm21_vm0, %v367_v62 }
  0xf3   :  { %392 = vst.msk [vmem:[%s698_s4 + $0x68] sm:$0xff] %vm21_vm0, %v376_v61  ;;  %v375_v63 = vld [vmem:[#allocation2 + $0x60] sm:$0xff] }
  0xf4   :  { %391 = vst.msk [vmem:[%s698_s4 + $0x60] sm:$0xff] %vm21_vm0, %v375_v63  ;;  %v370_v0 = vld [vmem:[#allocation2 + $0x38] sm:$0xff] }
  0xf5   :  { %386 = vst.msk [vmem:[%s698_s4 + $0x38] sm:$0xff] %vm21_vm0, %v370_v0  ;;  %v369_v2 = vld [vmem:[#allocation2 + $0x30] sm:$0xff] }
  0xf6   :  { %v378_v1 = vld [vmem:[#allocation2 + $0x78] sm:$0xff]  ;;  %385 = vst.msk [vmem:[%s698_s4 + $0x30] sm:$0xff] %vm21_vm0, %v369_v2 }
  0xf7   :  { %394 = vst.msk [vmem:[%s698_s4 + $0x78] sm:$0xff] %vm21_vm0, %v378_v1  ;;  %v377_v3 = vld [vmem:[#allocation2 + $0x70] sm:$0xff] }
  0xf8   :  { %393 = vst.msk [vmem:[%s698_s4 + $0x70] sm:$0xff] %vm21_vm0, %v377_v3 }

// kernel: densenet_forward.35
= control target key start
LH: loop header
LB: loop body
LE: loop exit
PB: predicated region body
PF: predicated region fallthrough
CT: control target
= control target key end

     0   :  { %s3265_s18 = smov 0   ;;  %s4102_s0 = inlined_call_operand.vmem [shape: f32[2,110,16], index: 0, kind: input, shape index: {}]   ;;  %s4103_s1 = inlined_call_operand.vmem [shape: f32[1,16], index: 1, kind: input, shape index: {}]   ;;  %s4104_s2 = inlined_call_operand.vmem [shape: f32[1,16], index: 2, kind: input, shape index: {}]   ;;  %s4105_s3 = inlined_call_operand.vmem [shape: f32[110,1], index: 3, kind: input, shape index: {}]   ;;  %s4106_s4 = inlined_call_operand.vmem [shape: f32[9,16,8], index: 4, kind: input, shape index: {}]   ;;  %s4107_s5 = inlined_call_operand.vmem [shape: f32[2,80,8], index: 5, kind: output, shape index: {}]  }
   0x1 LB: > { %s2697_s19 = sadd.s32 4294967295, %s3232_s18   ;;  %p2701_p0 = scmp.ge.s32.totalorder %s3232_s18, 1  ;;  %s3232_s18 = sphi %s3265_s18, %s15_s18  }
   0x2   : > { %p187_p1 = scmp.lt.s32.totalorder %s3232_s18, 3 }
   0x4   : > { %p188_p2 = pnand %p2701_p0, %p187_p1 }
   0x5   : > { %v361_v0 = vld [vmem:[%s4105_s3 + $0x1] sm:$0xff] (!%p188_p2)  ;;  %v1301_v1 = vld [vmem:[%s4105_s3 + $0xb] sm:$0xff] (!%p188_p2)  ;;  %v3234_v2 = vmov (!%p188_p2), 0   ;;  %v1302_v4 = vld [vmem:[%s4105_s3 + $0x13] sm:$0xff] (!%p188_p2)  ;;  %p215_p3 = scmp.lt.s32.totalorder (!%p188_p2), %s2697_s19, 1  ;;  %vm464_vm0 = vcmask (!%p188_p2), 130048  }
   0x6   : > { %191 = sbr.rel (%p188_p2) target bundleno = 529 (0x211), region = 40  ;;  %3223 = vset.pattern.permute.xlu1 (!%p188_p2), %v3234_v2  ;;  %3222 = vset.pattern.permute.xlu0 (!%p188_p2), %v3234_v2  ;;  %v1303_v3 = vld [vmem:[%s4105_s3 + $0x1b] sm:$0xff] (!%p188_p2)  ;;  %v1304_v5 = vld [vmem:[%s4105_s3 + $0x23] sm:$0xff] (!%p188_p2)  ;;  %v1305_v7 = vld [vmem:[%s4105_s3 + $0x2b] sm:$0xff] (!%p188_p2)  ;;  %vm2631_vm1 = vcmask (!%p188_p2), 64512  }
   0x7   : > { %403 = vperm.xlu1 (!%p188_p2), %3223, %v361_v0   ;;  %1343 = vperm.xlu0 (!%p188_p2), %3222, %v1301_v1   ;;  %v362_v6 = vld [vmem:[%s4105_s3 + $0x9] sm:$0xff] (!%p188_p2)  ;;  %v363_v8 = vld [vmem:[%s4105_s3 + $0x11] sm:$0xff] (!%p188_p2)  ;;  %v364_v10 = vld [vmem:[%s4105_s3 + $0x19] sm:$0xff] (!%p188_p2) }
   0x8   : > { %v1306_v9 = vld [vmem:[%s4105_s3 + $0x33] sm:$0xff] (!%p188_p2)  ;;  %v365_v12 = vld [vmem:[%s4105_s3 + $0x21] sm:$0xff] (!%p188_p2)  ;;  %v366_v20 = vld [vmem:[%s4105_s3 + $0x29] sm:$0xff] (!%p188_p2) }
   0x9   : > { %v1569_v11 = vld [vmem:[%s4105_s3 + $0xc] sm:$0xff] (!%p188_p2)  ;;  %v2752_v13 = vld [vmem:[%s4106_s4 + $0x40] sm:$0xff] (!%p188_p2)  ;;  %v2707_v17 = vld [vmem:[%s4106_s4 + $0x18] sm:$0xff] (!%p188_p2) }
   0xa   : > { %v2753_v14 = vld [vmem:[%s4106_s4 + $0x48] sm:$0xff] (!%p188_p2)  ;;  %v2706_v16 = vld [vmem:[%s4106_s4 + $0x10] sm:$0xff] (!%p188_p2)  ;;  %v2765_v22 = vld [vmem:[%s4106_s4 + $0x58] sm:$0xff] (!%p188_p2) }
   0xb   : > { %1353 = vperm.xlu1 (!%p188_p2), %3223, %v1303_v3   ;;  %1348 = vperm.xlu0 (!%p188_p2), %3222, %v1302_v4   ;;  %v3315_v15 = vpack.c.bf16 (!%p188_p2), %v2753_v14, %v2752_v13  ;;  %v3093_v18 = vpack.c.bf16 (!%p188_p2), %v2707_v17, %v2706_v16  ;;  %v1570_v19 = vld [vmem:[%s4105_s3 + $0x14] sm:$0xff] (!%p188_p2)  ;;  %v1571_v23 = vld [vmem:[%s4105_s3 + $0x1c] sm:$0xff] (!%p188_p2)  ;;  %v1572_v26 = vld [vmem:[%s4105_s3 + $0x24] sm:$0xff] (!%p188_p2) }
   0xc   : > { %v2764_v21 = vld [vmem:[%s4106_s4 + $0x50] sm:$0xff] (!%p188_p2)  ;;  %v368_v27 = vld [vmem:[%s4105_s3 + $0x39] sm:$0xff] (!%p188_p2)  ;;  %v369_v29 = vld [vmem:[%s4105_s3 + $0x41] sm:$0xff] (!%p188_p2) }
   0xd   : > { %3110 = vmatprep.subr.bf16.mxu0 %v3315_v15  ;;  %3094 = vmatprep.subr.bf16.mxu1 %v3093_v18  ;;  %v367_v24 = vld [vmem:[%s4105_s3 + $0x31] sm:$0xff]  ;;  %v3343_v25 = vpack.c.bf16 %v2765_v22, %v2764_v21  ;;  %v370_v31 = vld [vmem:[%s4105_s3 + $0x49] sm:$0xff]  ;;  %v1575_v32 = vld [vmem:[%s4105_s3 + $0x3c] sm:$0xff]  ;;  %s4109_s19 = smov (!%p215_p3, %s2697_s19), 1 }
   0xe   : > { %3112 = vmatpush3.bf16.msra.mxu0 %v3315_v15  ;;  %3096 = vmatpush3.bf16.msra.mxu1 %v3093_v18  ;;  %v1573_v28 = vld [vmem:[%s4105_s3 + $0x2c] sm:$0xff]  ;;  %v1574_v30 = vld [vmem:[%s4105_s3 + $0x34] sm:$0xff]  ;;  %v237_v33 = vld [vmem:[%s4105_s3] sm:$0xff]  ;;  %s3211_s13 = smul.u32 112, %s4109_s19 }
   0xf   : > { %1358 = vperm.xlu1 %3223, %v1304_v5   ;;  %408 = vperm.xlu0 %3222, %v362_v6   ;;  %v349_v34 = vld [vmem:[%s4106_s4] sm:$0xff]  ;;  %v350_v35 = vld [vmem:[%s4106_s4 + $0x8] sm:$0xff]  ;;  %v239_v40 = vld [vmem:[%s4105_s3 + $0x10] sm:$0xff] }
  0x10   : > { %3114 = vmatprep.subr.bf16.mxu0 %v3343_v25  ;;  %v1576_v36 = vld [vmem:[%s4105_s3 + $0x44] sm:$0xff]  ;;  %v3382_v38 = vpack.c.bf16 %v350_v35, %v349_v34  ;;  %v1577_v39 = vld [vmem:[%s4105_s3 + $0x4c] sm:$0xff]  ;;  %v1578_v41 = vld [vmem:[%s4105_s3 + $0x54] sm:$0xff]  ;;  %s3481_s22 = scalar_lea.vmem %s4102_s0, %s3211_s13 }
  0x11   : > { %v238_v37 = vld [vmem:[%s4105_s3 + $0x8] sm:$0xff]  ;;  %v240_v42 = vld [vmem:[%s4105_s3 + $0x18] sm:$0xff]  ;;  %v241_v43 = vld [vmem:[%s4105_s3 + $0x20] sm:$0xff] }
  0x12   : > { %3098 = vmatprep.subr.bf16.mxu1 %v3382_v38  ;;  %v242_v44 = vld [vmem:[%s4105_s3 + $0x28] sm:$0xff]  ;;  %v243_v45 = vld [vmem:[%s4105_s3 + $0x30] sm:$0xff]  ;;  %v244_v46 = vld [vmem:[%s4105_s3 + $0x38] sm:$0xff] }
  0x13   : > { %1363 = vperm.xlu1 %3223, %v1305_v7   ;;  %413 = vperm.xlu0 %3222, %v363_v8   ;;  %v245_v47 = vld [vmem:[%s4105_s3 + $0x40] sm:$0xff]  ;;  %v246_v48 = vld [vmem:[%s4105_s3 + $0x48] sm:$0xff]  ;;  %v3424_v51 = vld [vmem:[%s4105_s3 + $0x12] sm:$0xff] }
  0x14   : > { %v765_v49 = vld [vmem:[%s4105_s3 + $0x2] sm:$0xff]  ;;  %v766_v50 = vld [vmem:[%s4105_s3 + $0xa] sm:$0xff]  ;;  %v3433_v53 = vld [vmem:[%s4105_s3 + $0x1a] sm:$0xff] }
  0x15   : > { %v1846_v52 = vld [vmem:[%s4105_s3 + $0x5c] sm:$0xff]  ;;  %v3453_v57 = vld [vmem:[%s4105_s3 + $0x2a] sm:$0xff]  ;;  %v3466_v59 = vld [vmem:[%s4105_s3 + $0x32] sm:$0xff] }
  0x16   : > { %v2105_v54 = vld [vmem:[%s4105_s3 + $0x15] sm:$0xff]  ;;  %v3442_v55 = vld [vmem:[%s4105_s3 + $0x22] sm:$0xff]  ;;  %v2108_v60 = vld [vmem:[%s4105_s3 + $0x2d] sm:$0xff] }
  0x17   : > { %1368 = vperm.xlu1 %3223, %v1306_v9   ;;  %418 = vperm.xlu0 %3222, %v364_v10   ;;  %v2106_v56 = vld [vmem:[%s4105_s3 + $0x1d] sm:$0xff]  ;;  %v2107_v58 = vld [vmem:[%s4105_s3 + $0x25] sm:$0xff]  ;;  %v2109_v62 = vld [vmem:[%s4105_s3 + $0x35] sm:$0xff] }
  0x18   : > { %v3476_v61 = vld [vmem:[%s4105_s3 + $0x3a] sm:$0xff]  ;;  %v3490_v63 = vld [vmem:[%s4105_s3 + $0x42] sm:$0xff]  ;;  %v1291_v2 = vld [vmem:[%s3481_s22 + $0xb] sm:$0xff] }
  0x19   : > { %v3495_v0 = vld [vmem:[%s4103_s1] ss:$0 sm:$0xff]  ;;  %v351_v1 = vld [vmem:[%s3481_s22 + $0x1] sm:$0xff]  ;;  %v3509_v7 = vld [vmem:[%s4105_s3 + $0x4a] sm:$0xff] }
  0x1a   : > { %v2110_v3 = vld [vmem:[%s4105_s3 + $0x3d] sm:$0xff]  ;;  %v371_v4 = vmul.f32 %v3495_v0, %v351_v1  ;;  %v1311_v5 = vmul.f32 %v3495_v0, %v1291_v2  ;;  %v1292_v9 = vld [vmem:[%s3481_s22 + $0x13] sm:$0xff]  ;;  %v2111_v16 = vld [vmem:[%s4105_s3 + $0x45] sm:$0xff] }
  0x1b   : > { %1611 = vperm.xlu1 %3223, %v1569_v11   ;;  %423 = vperm.xlu0 %3222, %v365_v12   ;;  %v1293_v6 = vld [vmem:[%s3481_s22 + $0x1b] sm:$0xff]  ;;  %v1312_v13 = vmul.f32 %v3495_v0, %v1292_v9  ;;  %v1294_v14 = vld [vmem:[%s3481_s22 + $0x23] sm:$0xff] }
  0x1c   : > { %v3514_v8 = vld [vmem:[%s4104_s2] ss:$0 sm:$0xff]  ;;  %v1313_v10 = vmul.f32 %v3495_v0, %v1293_v6  ;;  %v352_v17 = vld [vmem:[%s3481_s22 + $0x9] sm:$0xff] }
  0x1d   : > { %v381_v11 = vadd.f32 %v3514_v8, %v371_v4  ;;  %v1321_v12 = vadd.f32 %v3514_v8, %v1311_v5  ;;  %v1322_v22 = vadd.f32 %v3514_v8, %v1312_v13  ;;  %v2728_v1 = vld [vmem:[%s4106_s4 + $0x20] sm:$0xff] }
  0x1e   : > { %v1323_v18 = vadd.f32 %v3514_v8, %v1313_v10 }
  0x1f   : > { %1616 = vperm.xlu1 %3223, %v1570_v19   ;;  %428 = vperm.xlu0 %3222, %v366_v20   ;;  %v391_v20 = vmax.f32 %v381_v11, 0.0  ;;  %v1331_v21 = vmax.f32 %v1321_v12, 0.0 }
  0x23   : > { %1621 = vperm.xlu1 %3223, %v1571_v23   ;;  %433 = vperm.xlu0 %3222, %v367_v24   ;;  %v1295_v24 = vld [vmem:[%s3481_s22 + $0x2b] sm:$0xff] }
  0x27   : > { %1626 = vperm.xlu1 %3223, %v1572_v26   ;;  %438 = vperm.xlu0 %3222, %v368_v27   ;;  %v2112_v27 = vld [vmem:[%s4105_s3 + $0x4d] sm:$0xff] }
  0x2b   : > { %1631 = vperm.xlu1 %3223, %v1573_v28   ;;  %443 = vperm.xlu0 %3222, %v369_v29  }
  0x2f   : > { %1636 = vperm.xlu1 %3223, %v1574_v30   ;;  %448 = vperm.xlu0 %3222, %v370_v31  }
  0x33   : > { %1641 = vperm.xlu1 %3223, %v1575_v32   ;;  %291 = vperm.xlu0 %3222, %v237_v33  }
  0x37   : > { %1646 = vperm.xlu1 %3223, %v1576_v36   ;;  %296 = vperm.xlu0 %3222, %v238_v37  }
  0x3b   : > { %1651 = vperm.xlu1 %3223, %v1577_v39   ;;  %301 = vperm.xlu0 %3222, %v239_v40   ;;  %v2113_v40 = vld [vmem:[%s4105_s3 + $0x55] sm:$0xff] }
  0x3f   : > { %1656 = vperm.xlu1 %3223, %v1578_v41   ;;  %306 = vperm.xlu0 %3222, %v240_v42   ;;  %v2776_v42 = vld [vmem:[%s4106_s4 + $0x60] sm:$0xff] }
  0x43   : > { %1879 = vperm.xlu1 %3223, %v1570_v19   ;;  %311 = vperm.xlu0 %3222, %v241_v43   ;;  %v1314_v19 = vmul.f32 %v3495_v0, %v1294_v14  ;;  %v2777_v43 = vld [vmem:[%s4106_s4 + $0x68] sm:$0xff]  ;;  %v1560_v14 = vld [vmem:[%s3481_s22 + $0x14] sm:$0xff] }
  0x45   : > { %v1324_v31 = vadd.f32 %v3514_v8, %v1314_v19 }
  0x47   : > { %1884 = vperm.xlu1 %3223, %v1571_v23   ;;  %316 = vperm.xlu0 %3222, %v242_v44   ;;  %v372_v23 = vmul.f32 %v3495_v0, %v352_v17  ;;  %v356_v17 = vld [vmem:[%s3481_s22 + $0x29] sm:$0xff] }
  0x49   : > { %v382_v37 = vadd.f32 %v3514_v8, %v372_v23 }
  0x4b   : > { %1889 = vperm.xlu1 %3223, %v1572_v26   ;;  %321 = vperm.xlu0 %3222, %v243_v45   ;;  %v353_v26 = vld [vmem:[%s3481_s22 + $0x11] sm:$0xff] }
  0x4c   : > { %v373_v33 = vmul.f32 %v3495_v0, %v353_v26 }
  0x4f   : > { %1894 = vperm.xlu1 %3223, %v1573_v28   ;;  %326 = vperm.xlu0 %3222, %v244_v46   ;;  %v1334_v46 = vmax.f32 %v1324_v31, 0.0 }
  0x53   : > { %1899 = vperm.xlu1 %3223, %v1574_v30   ;;  %331 = vperm.xlu0 %3222, %v245_v47   ;;  %v1333_v30 = vmax.f32 %v1323_v18, 0.0 }
  0x57   : > { %1904 = vperm.xlu1 %3223, %v1575_v32   ;;  %336 = vperm.xlu0 %3222, %v246_v48   ;;  %v1315_v32 = vmul.f32 %v3495_v0, %v1295_v24  ;;  %v383_v48 = vadd.f32 %v3514_v8, %v373_v33 }
  0x59   : > { %v1325_v47 = vadd.f32 %v3514_v8, %v1315_v32  ;;  %v393_v12 = vmax.f32 %v383_v48, 0.0 }
  0x5b   : > { %1909 = vperm.xlu1 %3223, %v1576_v36   ;;  %807 = vperm.xlu0 %3222, %v765_v49   ;;  %v1332_v36 = vmax.f32 %v1322_v22, 0.0  ;;  %v1335_v4 = vmax.f32 %v1325_v47, 0.0  ;;  %v1580_v22 = vmul.f32 %v3495_v0, %v1560_v14 }
  0x5d   : > { %v3605_v32 = vadd.f32 %v3514_v8, %v1580_v22 }
  0x5f   : > { %1914 = vperm.xlu1 %3223, %v1577_v39   ;;  %812 = vperm.xlu0 %3222, %v766_v50   ;;  %v1296_v39 = vld [vmem:[%s3481_s22 + $0x33] sm:$0xff] }
  0x60   : > { %v1316_v49 = vmul.f32 %v3495_v0, %v1296_v39 }
  0x62   : > { %v1326_v5 = vadd.f32 %v3514_v8, %v1316_v49 }
  0x63   : > { %1919 = vperm.xlu1 %3223, %v1578_v41   ;;  %817 = vperm.xlu0 %3222, %v3424_v51   ;;  %v354_v41 = vld [vmem:[%s3481_s22 + $0x19] sm:$0xff] }
  0x64   : > { %v1336_v19 = vmax.f32 %v1326_v5, 0.0 }
  0x67   : > { %1924 = vperm.xlu1 %3223, %v1846_v52   ;;  %822 = vperm.xlu0 %3222, %v3433_v53   ;;  %v392_v52 = vmax.f32 %v382_v37, 0.0 }
  0x6b   : > { %2147 = vperm.xlu1 %3223, %v2105_v54   ;;  %827 = vperm.xlu0 %3222, %v3442_v55   ;;  %v374_v54 = vmul.f32 %v3495_v0, %v354_v41  ;;  %v358_v41 = vld [vmem:[%s3481_s22 + $0x39] sm:$0xff] }
  0x6c   : > { %v378_v47 = vmul.f32 %v3495_v0, %v358_v41 }
  0x6d   : > { %v384_v13 = vadd.f32 %v3514_v8, %v374_v54  ;;  %v359_v54 = vld [vmem:[%s3481_s22 + $0x41] sm:$0xff] }
  0x6f   : > { %2152 = vperm.xlu1 %3223, %v2106_v56   ;;  %832 = vperm.xlu0 %3222, %v3453_v57   ;;  %v1559_v56 = vld [vmem:[%s3481_s22 + $0xc] sm:$0xff]  ;;  %v394_v26 = vmax.f32 %v384_v13, 0.0  ;;  %v2377_v13 = vld [vmem:[%s4105_s3 + $0x36] sm:$0xff] }
  0x70   : > { %v1579_v6 = vmul.f32 %v3495_v0, %v1559_v56  ;;  %v2376_v56 = vld [vmem:[%s4105_s3 + $0x2e] sm:$0xff] }
  0x73   : > { %2157 = vperm.xlu1 %3223, %v2107_v58   ;;  %837 = vperm.xlu0 %3222, %v3466_v59   ;;  %v355_v58 = vld [vmem:[%s3481_s22 + $0x21] sm:$0xff] }
  0x74   : > { %v375_v9 = vmul.f32 %v3495_v0, %v355_v58  ;;  %v2788_v58 = vld [vmem:[%s4106_s4 + $0x70] sm:$0xff] }
  0x77   : > { %2162 = vperm.xlu1 %3223, %v2108_v60   ;;  %842 = vperm.xlu0 %3222, %v3476_v61   ;;  %v2114_v60 = vld [vmem:[%s4105_s3 + $0x5d] sm:$0xff] }
  0x7b   : > { %2167 = vperm.xlu1 %3223, %v2109_v62   ;;  %847 = vperm.xlu0 %3222, %v3490_v63   ;;  %v3564_v62 = vpack.c.bf16 %v2777_v43, %v2776_v42  ;;  %v2375_v42 = vld [vmem:[%s4105_s3 + $0x26] sm:$0xff] }
  0x7f   : > { %2172 = vperm.xlu1 %3223, %v2110_v3   ;;  %852 = vperm.xlu0 %3222, %v3509_v7  }
  0x83   : > { %2177 = vperm.xlu1 %3223, %v2111_v16   ;;  %1075 = vperm.xlu0 %3222, %v766_v50   ;;  %v2373_v16 = vld [vmem:[%s4105_s3 + $0x16] sm:$0xff] }
  0x86   : > { %v404_v28 = vpop.permute.xlu1 %403  ;;  %v1344_v29 = vpop.permute.xlu0 %1343 }
  0x87   : > { %v451_v34 = vmul.f32 %v404_v28, %v391_v20  ;;  %v1391_v35 = vmul.f32 %v1344_v29, %v1331_v21  ;;  %2182 = vperm.xlu1 %3223, %v2112_v27   ;;  %1080 = vperm.xlu0 %3222, %v3424_v51   ;;  %v1589_v20 = vadd.f32 %v3514_v8, %v1579_v6  ;;  %v1561_v28 = vld [vmem:[%s3481_s22 + $0x1c] sm:$0xff]  ;;  %v357_v29 = vld [vmem:[%s3481_s22 + $0x31] sm:$0xff] }
  0x88   : > { %v385_v21 = vadd.f32 %v3514_v8, %v375_v9  ;;  %v376_v27 = vmul.f32 %v3495_v0, %v356_v17  ;;  %v1581_v33 = vmul.f32 %v3495_v0, %v1561_v28 }
  0x89   : > { %2926 = vmatprep.mubr.msk.f32.mxu1 %vm464_vm0, %v451_v34  ;;  %3002 = vmatprep.mubr.msk.f32.mxu0 %vm464_vm0, %v1391_v35  ;;  %v377_v34 = vmul.f32 %v3495_v0, %v357_v29 }
  0x8a   : > { %v1354_v44 = vpop.permute.xlu1 %1353  ;;  %v1349_v45 = vpop.permute.xlu0 %1348  ;;  %v395_v37 = vmax.f32 %v385_v21, 0.0  ;;  %v386_v39 = vadd.f32 %v3514_v8, %v376_v27  ;;  %v1042_v27 = vld [vmem:[%s4105_s3 + $0x52] sm:$0xff] }
  0x8b   : > { %v1393_v50 = vmul.f32 %v1354_v44, %v1333_v30  ;;  %v1392_v51 = vmul.f32 %v1349_v45, %v1332_v36  ;;  %2187 = vperm.xlu1 %3223, %v2113_v40   ;;  %1085 = vperm.xlu0 %3222, %v3433_v53   ;;  %v2729_v53 = vld [vmem:[%s4106_s4 + $0x28] sm:$0xff]  ;;  %v2374_v30 = vld [vmem:[%s4105_s3 + $0x1e] sm:$0xff]  ;;  %v3619_v45 = vadd.f32 %v3514_v8, %v1581_v33 }
  0x8c   : > { %v3586_v18 = vpack.c.bf16 %v2729_v53, %v2728_v1  ;;  %v1562_v40 = vld [vmem:[%s3481_s22 + $0x24] sm:$0xff] }
  0x8d   : > { %3003 = vmatmul.mubr.msk.f32.vlgmr.msra.gmra.mrb[0].mxu0 %vm464_vm0, %v1392_v51  ;;  %v396_v51 = vmax.f32 %v386_v39, 0.0  ;;  %v1601_v53 = vmax.f32 %v3619_v45, 0.0  ;;  %v2379_v39 = vld [vmem:[%s4105_s3 + $0x46] sm:$0xff] }
  0x8e   : > { %v1359_v2 = vpop.permute.xlu1 %1358  ;;  %v409_v3 = vpop.permute.xlu0 %408  ;;  %3005 = vmatprep.mubr.msk.f32.mxu0 %vm464_vm0, %v1393_v50  ;;  %3116 = vmatpush3.bf16.msra.mxu0 %v3343_v25  ;;  %v1600_v50 = vmax.f32 %v3605_v32, 0.0 }
  0x8f   : > { %v1394_v10 = vmul.f32 %v1359_v2, %v1334_v46  ;;  %v452_v11 = vmul.f32 %v409_v3, %v392_v52  ;;  %2192 = vperm.xlu1 %3223, %v2114_v60   ;;  %1090 = vperm.xlu0 %3222, %v3442_v55   ;;  %v1582_v46 = vmul.f32 %v3495_v0, %v1562_v40  ;;  %v1563_v52 = vld [vmem:[%s3481_s22 + $0x2c] sm:$0xff]  ;;  %v1307_v40 = vld [vmem:[%s4105_s3 + $0x3b] sm:$0xff] }
  0x90   : > { %3118 = vmatprep.subr.bf16.mxu0 %v3564_v62  ;;  %v1583_v3 = vmul.f32 %v3495_v0, %v1563_v52  ;;  %v1567_v52 = vld [vmem:[%s3481_s22 + $0x4c] sm:$0xff] }
  0x91   : > { %2927 = vmatmul.mubr.msk.f32.vlgmr.msra.gmra.mrb[0].mxu1 %vm464_vm0, %v452_v11  ;;  %3006 = vmatmul.mubr.msk.f32.gmra.mrb[2].mxu0 %vm464_vm0, %v1394_v10  ;;  %v3641_v2 = vadd.f32 %v3514_v8, %v1582_v46  ;;  %v388_v10 = vadd.f32 %v3514_v8, %v378_v47  ;;  %v1564_v11 = vld [vmem:[%s3481_s22 + $0x34] sm:$0xff] }
  0x92   : > { %v1364_v25 = vpop.permute.xlu1 %1363  ;;  %v414_v55 = vpop.permute.xlu0 %413  ;;  %3100 = vmatpush3.bf16.msra.mxu1 %v3382_v38 }
  0x93   : > { %v1395_v23 = vmul.f32 %v1364_v25, %v1335_v4  ;;  %v453_v24 = vmul.f32 %v414_v55, %v393_v12  ;;  %2415 = vperm.xlu1 %3223, %v2373_v16   ;;  %1095 = vperm.xlu0 %3222, %v3453_v57   ;;  %v1599_v57 = vmax.f32 %v1589_v20, 0.0  ;;  %v379_v4 = vmul.f32 %v3495_v0, %v359_v54  ;;  %v360_v12 = vld [vmem:[%s3481_s22 + $0x49] sm:$0xff] }
  0x94   : > { %3102 = vmatprep.subr.bf16.mxu1 %v3586_v18  ;;  %v3660_v25 = vadd.f32 %v3514_v8, %v1583_v3  ;;  %v1584_v55 = vmul.f32 %v3495_v0, %v1564_v11  ;;  %v398_v22 = vmax.f32 %v388_v10, 0.0  ;;  %v2380_v54 = vld [vmem:[%s4105_s3 + $0x4e] sm:$0xff] }
  0x95   : > { %2929 = vmatprep.mubr.msk.f32.mxu1 %vm464_vm0, %v453_v24  ;;  %3008 = vmatprep.mubr.msk.f32.mxu0 %vm464_vm0, %v1395_v23  ;;  %v389_v23 = vadd.f32 %v3514_v8, %v379_v4  ;;  %v1565_v24 = vld [vmem:[%s3481_s22 + $0x3c] sm:$0xff] }
  0x96   : > { %v1369_v38 = vpop.permute.xlu1 %1368  ;;  %v419_v31 = vpop.permute.xlu0 %418  ;;  %v1603_v29 = vmax.f32 %v3660_v25, 0.0 }
  0x97   : > { %v1396_v35 = vmul.f32 %v1369_v38, %v1336_v19  ;;  %v454_v36 = vmul.f32 %v419_v31, %v394_v26  ;;  %2420 = vperm.xlu1 %3223, %v2374_v30   ;;  %1100 = vperm.xlu0 %3222, %v3466_v59   ;;  %v387_v59 = vadd.f32 %v3514_v8, %v377_v34  ;;  %v2378_v26 = vld [vmem:[%s4105_s3 + $0x3e] sm:$0xff]  ;;  %v399_v34 = vmax.f32 %v389_v23, 0.0 }
  0x98   : > { %v380_v19 = vmul.f32 %v3495_v0, %v360_v12  ;;  %v3682_v30 = vadd.f32 %v3514_v8, %v1584_v55  ;;  %v1585_v31 = vmul.f32 %v3495_v0, %v1565_v24  ;;  %v1568_v12 = vld [vmem:[%s3481_s22 + $0x54] sm:$0xff] }
  0x99   : > { %2930 = vmatmul.mubr.msk.f32.gmra.mrb[2].mxu1 %vm464_vm0, %v454_v36  ;;  %3009 = vmatmul.mubr.msk.f32.gmra.mrb[4].mxu0 %vm464_vm0, %v1396_v35  ;;  %v397_v9 = vmax.f32 %v387_v59, 0.0  ;;  %v1566_v36 = vld [vmem:[%s3481_s22 + $0x44] sm:$0xff] }
  0x9a   : > { %v1612_v43 = vpop.permute.xlu1 %1611  ;;  %v424_v44 = vpop.permute.xlu0 %423  ;;  %v390_v38 = vadd.f32 %v3514_v8, %v380_v19  ;;  %v1586_v59 = vmul.f32 %v3495_v0, %v1566_v36 }
  0x9b   : > { %v1659_v48 = vmul.f32 %v1612_v43, %v1599_v57  ;;  %v455_v49 = vmul.f32 %v424_v44, %v395_v37  ;;  %2425 = vperm.xlu1 %3223, %v2375_v42   ;;  %1105 = vperm.xlu0 %3222, %v3476_v61   ;;  %v2789_v61 = vld [vmem:[%s4106_s4 + $0x78] sm:$0xff]  ;;  %v228_v37 = vld [vmem:[%s3481_s22 + $0x8] sm:$0xff]  ;;  %v1604_v43 = vmax.f32 %v3682_v30, 0.0  ;;  %v3701_v44 = vadd.f32 %v3514_v8, %v1585_v31  ;;  %v2740_v31 = vld [vmem:[%s4106_s4 + $0x30] sm:$0xff] }
  0x9c   : > { %v3654_v14 = vpack.c.bf16 %v2789_v61, %v2788_v58  ;;  %v254_v46 = vmul.f32 %v3495_v0, %v228_v37  ;;  %v229_v58 = vld [vmem:[%s3481_s22 + $0x10] sm:$0xff]  ;;  %v3720_v3 = vadd.f32 %v3514_v8, %v1586_v59 }
  0x9d   : > { %2932 = vmatprep.mubr.msk.f32.mxu1 %vm464_vm0, %v455_v49  ;;  %3021 = vmatprep.mubr.msk.f32.mxu0 %vm464_vm0, %v1659_v48  ;;  %v400_v49 = vmax.f32 %v390_v38, 0.0  ;;  %v255_v11 = vmul.f32 %v3495_v0, %v229_v58  ;;  %v1310_v38 = vld [vmem:[%s4105_s3 + $0x53] sm:$0xff] }
  0x9e   : > { %v1617_v60 = vpop.permute.xlu1 %1616  ;;  %v429_v1 = vpop.permute.xlu0 %428  ;;  %v270_v4 = vadd.f32 %v3514_v8, %v254_v46  ;;  %v232_v46 = vld [vmem:[%s3481_s22 + $0x28] sm:$0xff] }
  0x9f   : > { %v1660_v5 = vmul.f32 %v1617_v60, %v1600_v50  ;;  %v456_v6 = vmul.f32 %v429_v1, %v396_v51  ;;  %2430 = vperm.xlu1 %3223, %v2376_v56   ;;  %1110 = vperm.xlu0 %3222, %v3490_v63   ;;  %v1602_v63 = vmax.f32 %v3641_v2, 0.0  ;;  %v1308_v56 = vld [vmem:[%s4105_s3 + $0x43] sm:$0xff]  ;;  %v1605_v1 = vmax.f32 %v3701_v44, 0.0 }
  0xa0   : > { %v258_v58 = vmul.f32 %v3495_v0, %v232_v46 }
  0xa1   : > { %2933 = vmatmul.mubr.msk.f32.gmra.mrb[4].mxu1 %vm464_vm0, %v456_v6  ;;  %3022 = vmatmul.mubr.msk.f32.vlgmr.msra.gmra.mrb[0].mxu0 %vm464_vm0, %v1660_v5  ;;  %v1587_v5 = vmul.f32 %v3495_v0, %v1567_v52 }
  0xa2   : > { %v1622_v16 = vpop.permute.xlu1 %1621  ;;  %v434_v17 = vpop.permute.xlu0 %433  ;;  %3120 = vmatpush3.bf16.msra.mxu0 %v3564_v62  ;;  %v227_v62 = vld [vmem:[%s3481_s22] sm:$0xff] }
  0xa3   : > { %v1661_v20 = vmul.f32 %v1622_v16, %v1601_v53  ;;  %v457_v21 = vmul.f32 %v434_v17, %v397_v9  ;;  %2435 = vperm.xlu1 %3223, %v2377_v13   ;;  %1115 = vperm.xlu0 %3222, %v3509_v7   ;;  %v253_v35 = vmul.f32 %v3495_v0, %v227_v62  ;;  %v230_v13 = vld [vmem:[%s3481_s22 + $0x18] sm:$0xff]  ;;  %v1309_v17 = vld [vmem:[%s4105_s3 + $0x4b] sm:$0xff] }
  0xa4   : > { %3122 = vmatprep.subr.bf16.mxu0 %v3654_v14  ;;  %v2381_v16 = vld [vmem:[%s4105_s3 + $0x56] sm:$0xff]  ;;  %v256_v23 = vmul.f32 %v3495_v0, %v230_v13  ;;  %v2382_v62 = vld [vmem:[%s4105_s3 + $0x5e] sm:$0xff] }
  0xa5   : > { %2935 = vmatprep.mubr.msk.f32.mxu1 %vm464_vm0, %v457_v21  ;;  %3024 = vmatprep.mubr.msk.f32.mxu0 %vm464_vm0, %v1661_v20  ;;  %v269_v51 = vadd.f32 %v3514_v8, %v253_v35  ;;  %v1606_v20 = vmax.f32 %v3720_v3, 0.0  ;;  %v3739_v21 = vadd.f32 %v3514_v8, %v1587_v5 }
  0xa6   : > { %v1627_v7 = vpop.permute.xlu1 %1626  ;;  %v439_v28 = vpop.permute.xlu0 %438  ;;  %v272_v37 = vadd.f32 %v3514_v8, %v256_v23  ;;  %v235_v23 = vld [vmem:[%s3481_s22 + $0x40] sm:$0xff] }
  0xa7   : > { %v1662_v57 = vmul.f32 %v1627_v7, %v1602_v63  ;;  %v458_v33 = vmul.f32 %v439_v28, %v398_v22  ;;  %2440 = vperm.xlu1 %3223, %v2378_v26   ;;  %1120 = vperm.xlu0 %3222, %v1042_v27   ;;  %v279_v10 = vmax.f32 %v269_v51, 0.0  ;;  %v1588_v22 = vmul.f32 %v3495_v0, %v1568_v12  ;;  %v231_v28 = vld [vmem:[%s3481_s22 + $0x20] sm:$0xff] }
  0xa8   : > { %v280_v27 = vmax.f32 %v270_v4, 0.0  ;;  %v271_v7 = vadd.f32 %v3514_v8, %v255_v11  ;;  %v1607_v35 = vmax.f32 %v3739_v21, 0.0  ;;  %v282_v51 = vmax.f32 %v272_v37, 0.0  ;;  %v234_v11 = vld [vmem:[%s3481_s22 + $0x38] sm:$0xff] }
  0xa9   : > { %2936 = vmatmul.mubr.msk.f32.gmra.mrb[6].mxu1 %vm464_vm0, %v458_v33  ;;  %3025 = vmatmul.mubr.msk.f32.gmra.mrb[2].mxu0 %vm464_vm0, %v1662_v57  ;;  %v2741_v57 = vld [vmem:[%s4106_s4 + $0x38] sm:$0xff]  ;;  %v3763_v36 = vadd.f32 %v3514_v8, %v1588_v22 }
  0xaa   : > { %v1632_v41 = vpop.permute.xlu1 %1631  ;;  %v444_v42 = vpop.permute.xlu0 %443  ;;  %v3769_v59 = vpack.c.bf16 %v2741_v57, %v2740_v31  ;;  %v236_v57 = vld [vmem:[%s3481_s22 + $0x48] sm:$0xff] }
  0xab   : > { %v1663_v47 = vmul.f32 %v1632_v41, %v1603_v29  ;;  %v459_v48 = vmul.f32 %v444_v42, %v399_v34  ;;  %2445 = vperm.xlu1 %3223, %v2379_v39   ;;  %1373 = vperm.xlu0 %3222, %v1307_v40   ;;  %v257_v39 = vmul.f32 %v3495_v0, %v231_v28  ;;  %v281_v42 = vmax.f32 %v271_v7, 0.0 }
  0xad   : > { %2938 = vmatprep.mubr.msk.f32.mxu1 %vm464_vm0, %v459_v48  ;;  %3027 = vmatprep.mubr.msk.f32.mxu0 %vm464_vm0, %v1663_v47 }
  0xae   : > { %v1637_v61 = vpop.permute.xlu1 %1636  ;;  %v449_v60 = vpop.permute.xlu0 %448 }
  0xaf   : > { %v1664_v6 = vmul.f32 %v1637_v61, %v1604_v43  ;;  %v460_v9 = vmul.f32 %v449_v60, %v400_v49  ;;  %2450 = vperm.xlu1 %3223, %v2380_v54   ;;  %1378 = vperm.xlu0 %3222, %v1308_v56   ;;  %v1608_v49 = vmax.f32 %v3763_v36, 0.0  ;;  %v273_v56 = vadd.f32 %v3514_v8, %v257_v39  ;;  %v233_v61 = vld [vmem:[%s3481_s22 + $0x30] sm:$0xff] }
  0xb1   : > { %2939 = vmatmul.mubr.msk.f32.gmra.mrb[8].mxu1 %vm464_vm0, %v460_v9  ;;  %3028 = vmatmul.mubr.msk.f32.gmra.mrb[4].mxu0 %vm464_vm0, %v1664_v6  ;;  %v283_v9 = vmax.f32 %v273_v56, 0.0 }
  0xb2   : > { %v1642_v55 = vpop.permute.xlu1 %1641  ;;  %v292_v19 = vpop.permute.xlu0 %291 }
  0xb3   : > { %v1665_v24 = vmul.f32 %v1642_v55, %v1605_v1  ;;  %v339_v26 = vmul.f32 %v292_v19, %v279_v10  ;;  %2455 = vperm.xlu1 %3223, %v2381_v16   ;;  %1383 = vperm.xlu0 %3222, %v1309_v17   ;;  %v274_v10 = vadd.f32 %v3514_v8, %v258_v58 }
  0xb4   : > { %v260_v17 = vmul.f32 %v3495_v0, %v234_v11  ;;  %v758_v11 = vld [vmem:[%s3481_s22 + $0x1a] sm:$0xff] }
  0xb5   : > { %2945 = vmatprep.mubr.msk.f32.mxu1 %vm464_vm0, %v339_v26  ;;  %3030 = vmatprep.mubr.msk.f32.mxu0 %vm464_vm0, %v1665_v24  ;;  %v284_v22 = vmax.f32 %v274_v10, 0.0  ;;  %v2800_v24 = vld [vmem:[%s4106_s4 + $0x80] sm:$0xff]  ;;  %v2801_v26 = vld [vmem:[%s4106_s4 + $0x88] sm:$0xff]  ;;  %v778_v44 = vmul.f32 %v3495_v0, %v758_v11 }
  0xb6   : > { %v1647_v33 = vpop.permute.xlu1 %1646  ;;  %v297_v34 = vpop.permute.xlu0 %296  ;;  %v3808_v31 = vpack.c.bf16 %v2801_v26, %v2800_v24  ;;  %v1836_v10 = vld [vmem:[%s3481_s22 + $0x5c] sm:$0xff] }
  0xb7   : > { %v1666_v40 = vmul.f32 %v1647_v33, %v1606_v20  ;;  %v340_v41 = vmul.f32 %v297_v34, %v280_v27  ;;  %2460 = vperm.xlu1 %3223, %v2382_v62   ;;  %1388 = vperm.xlu0 %3222, %v1310_v38   ;;  %v261_v38 = vmul.f32 %v3495_v0, %v235_v23  ;;  %v759_v23 = vld [vmem:[%s3481_s22 + $0x22] sm:$0xff] }
  0xb8   : > { %v3860_v3 = vadd.f32 %v3514_v8, %v778_v44 }
  0xb9   : > { %2946 = vmatmul.mubr.msk.f32.vlgmr.msra.gmra.mrb[0].mxu1 %vm464_vm0, %v340_v41  ;;  %3031 = vmatmul.mubr.msk.f32.gmra.mrb[6].mxu0 %vm464_vm0, %v1666_v40  ;;  %v277_v39 = vadd.f32 %v3514_v8, %v261_v38  ;;  %v262_v40 = vmul.f32 %v3495_v0, %v236_v57  ;;  %v755_v41 = vld [vmem:[%s3481_s22 + $0x2] sm:$0xff]  ;;  %v760_v38 = vld [vmem:[%s3481_s22 + $0x2a] sm:$0xff] }
  0xba   : > { %v1652_v47 = vpop.permute.xlu1 %1651  ;;  %v302_v48 = vpop.permute.xlu0 %301  ;;  %3104 = vmatpush3.bf16.msra.mxu1 %v3586_v18  ;;  %v259_v18 = vmul.f32 %v3495_v0, %v233_v61  ;;  %v798_v21 = vmax.f32 %v3860_v3, 0.0 }
  0xbb   : > { %v1667_v52 = vmul.f32 %v1652_v47, %v1607_v35  ;;  %v341_v54 = vmul.f32 %v302_v48, %v281_v42  ;;  %3106 = vmatprep.subr.bf16.mxu1 %v3769_v59  ;;  %v287_v47 = vmax.f32 %v277_v39, 0.0  ;;  %v278_v48 = vadd.f32 %v3514_v8, %v262_v40 }
  0xbc   : > { %v275_v16 = vadd.f32 %v3514_v8, %v259_v18  ;;  %v780_v40 = vmul.f32 %v3495_v0, %v760_v38 }
  0xbd   : > { %2948 = vmatprep.mubr.msk.f32.mxu1 %vm464_vm0, %v341_v54  ;;  %3033 = vmatprep.mubr.msk.f32.mxu0 %vm464_vm0, %v1667_v52 }
  0xbe   : > { %v1657_v60 = vpop.permute.xlu1 %1656  ;;  %v307_v4 = vpop.permute.xlu0 %306  ;;  %v285_v32 = vmax.f32 %v275_v16, 0.0  ;;  %v1856_v16 = vmul.f32 %v3495_v0, %v1836_v10 }
  0xbf   : > { %v1668_v5 = vmul.f32 %v1657_v60, %v1608_v49  ;;  %v342_v6 = vmul.f32 %v307_v4, %v282_v51  ;;  %v756_v51 = vld [vmem:[%s3481_s22 + $0xa] sm:$0xff]  ;;  %v757_v60 = vld [vmem:[%s3481_s22 + $0x12] sm:$0xff] }
  0xc0   : > { %v776_v61 = vmul.f32 %v3495_v0, %v756_v51  ;;  %v3897_v51 = vadd.f32 %v3514_v8, %v780_v40 }
  0xc1   : > { %2949 = vmatmul.mubr.msk.f32.gmra.mrb[2].mxu1 %vm464_vm0, %v342_v6  ;;  %3034 = vmatmul.mubr.msk.f32.gmra.mrb[8].mxu0 %vm464_vm0, %v1668_v5 }
  0xc2   : > { %v1880_v12 = vpop.permute.xlu1 %1879  ;;  %v312_v13 = vpop.permute.xlu0 %311  ;;  %v3839_v30 = vadd.f32 %v3514_v8, %v776_v61 }
  0xc3   : > { %v1927_v55 = vmul.f32 %v1880_v12, %v1600_v50  ;;  %v343_v19 = vmul.f32 %v312_v13, %v283_v9  ;;  %v276_v50 = vadd.f32 %v3514_v8, %v260_v17 }
  0xc5   : > { %2951 = vmatprep.mubr.msk.f32.mxu1 %vm464_vm0, %v343_v19  ;;  %3040 = vmatprep.mubr.msk.f32.mxu0 %vm464_vm0, %v1927_v55  ;;  %v286_v37 = vmax.f32 %v276_v50, 0.0  ;;  %v796_v55 = vmax.f32 %v3839_v30, 0.0 }
  0xc6   : > { %v1885_v27 = vpop.permute.xlu1 %1884  ;;  %v317_v62 = vpop.permute.xlu0 %316 }
  0xc7   : > { %v1928_v7 = vmul.f32 %v1885_v27, %v1601_v53  ;;  %v344_v28 = vmul.f32 %v317_v62, %v284_v22  ;;  %v2095_v22 = vld [vmem:[%s3481_s22 + $0x15] sm:$0xff]  ;;  %v1866_v27 = vadd.f32 %v3514_v8, %v1856_v16 }
  0xc9   : > { %2952 = vmatmul.mubr.msk.f32.gmra.mrb[4].mxu1 %vm464_vm0, %v344_v28  ;;  %3041 = vmatmul.mubr.msk.f32.vlgmr.msra.gmra.mrb[0].mxu0 %vm464_vm0, %v1928_v7  ;;  %v779_v7 = vmul.f32 %v3495_v0, %v759_v23  ;;  %v2096_v28 = vld [vmem:[%s3481_s22 + $0x1d] sm:$0xff] }
  0xca   : > { %v1890_v33 = vpop.permute.xlu1 %1889  ;;  %v322_v34 = vpop.permute.xlu0 %321  ;;  %3124 = vmatpush3.bf16.msra.mxu0 %v3654_v14  ;;  %v775_v14 = vmul.f32 %v3495_v0, %v755_v41  ;;  %v2097_v41 = vld [vmem:[%s3481_s22 + $0x25] sm:$0xff] }
  0xcb   : > { %v1929_v45 = vmul.f32 %v1890_v33, %v1602_v63  ;;  %v345_v53 = vmul.f32 %v322_v34, %v285_v32  ;;  %3126 = vmatprep.subr.bf16.mxu0 %v3808_v31  ;;  %v1876_v34 = vmax.f32 %v1866_v27, 0.0  ;;  %v3882_v39 = vadd.f32 %v3514_v8, %v779_v7 }
  0xcc   : > { %v785_v56 = vadd.f32 %v3514_v8, %v775_v14  ;;  %v2117_v14 = vmul.f32 %v3495_v0, %v2097_v41 }
  0xcd   : > { %2954 = vmatprep.mubr.msk.f32.mxu1 %vm464_vm0, %v345_v53  ;;  %3043 = vmatprep.mubr.msk.f32.mxu0 %vm464_vm0, %v1929_v45 }
  0xce   : > { %v1895_v42 = vpop.permute.xlu1 %1894  ;;  %v327_v46 = vpop.permute.xlu0 %326  ;;  %v795_v5 = vmax.f32 %v785_v56, 0.0 }
  0xcf   : > { %v1930_v2 = vmul.f32 %v1895_v42, %v1603_v29  ;;  %v346_v63 = vmul.f32 %v327_v46, %v286_v37  ;;  %v288_v29 = vmax.f32 %v278_v48, 0.0  ;;  %v2116_v37 = vmul.f32 %v3495_v0, %v2096_v28  ;;  %v761_v42 = vld [vmem:[%s3481_s22 + $0x32] sm:$0xff] }
  0xd0   : > { %v799_v48 = vmax.f32 %v3882_v39, 0.0 }
  0xd1   : > { %2955 = vmatmul.mubr.msk.f32.gmra.mrb[6].mxu1 %vm464_vm0, %v346_v63  ;;  %3044 = vmatmul.mubr.msk.f32.gmra.mrb[2].mxu0 %vm464_vm0, %v1930_v2  ;;  %v2126_v46 = vadd.f32 %v3514_v8, %v2116_v37  ;;  %v781_v2 = vmul.f32 %v3495_v0, %v761_v42 }
  0xd2   : > { %v1900_v52 = vpop.permute.xlu1 %1899  ;;  %v332_v54 = vpop.permute.xlu0 %331 }
  0xd3   : > { %v1931_v58 = vmul.f32 %v1900_v52, %v1604_v43  ;;  %v347_v25 = vmul.f32 %v332_v54, %v287_v47  ;;  %v777_v43 = vmul.f32 %v3495_v0, %v757_v60  ;;  %v2098_v52 = vld [vmem:[%s3481_s22 + $0x2d] sm:$0xff]  ;;  %v762_v54 = vld [vmem:[%s3481_s22 + $0x3a] sm:$0xff]  ;;  %v3905_v61 = vadd.f32 %v3514_v8, %v781_v2 }
  0xd4   : > { %v2118_v60 = vmul.f32 %v3495_v0, %v2098_v52 }
  0xd5   : > { %2957 = vmatprep.mubr.msk.f32.mxu1 %vm464_vm0, %v347_v25  ;;  %3046 = vmatprep.mubr.msk.f32.mxu0 %vm464_vm0, %v1931_v58  ;;  %v3852_v19 = vadd.f32 %v3514_v8, %v777_v43  ;;  %v2136_v25 = vmax.f32 %v2126_v46, 0.0  ;;  %v763_v43 = vld [vmem:[%s3481_s22 + $0x42] sm:$0xff] }
  0xd6   : > { %v1905_v4 = vpop.permute.xlu1 %1904  ;;  %v337_v18 = vpop.permute.xlu0 %336  ;;  %v2128_v16 = vadd.f32 %v3514_v8, %v2118_v60  ;;  %v783_v23 = vmul.f32 %v3495_v0, %v763_v43  ;;  %v2104_v43 = vld [vmem:[%s3481_s22 + $0x5d] sm:$0xff] }
  0xd7   : > { %v1932_v6 = vmul.f32 %v1905_v4, %v1605_v1  ;;  %v348_v9 = vmul.f32 %v337_v18, %v288_v29  ;;  %v797_v50 = vmax.f32 %v3852_v19, 0.0  ;;  %v2127_v29 = vadd.f32 %v3514_v8, %v2117_v14 }
  0xd9   : > { %2958 = vmatmul.mubr.msk.f32.gmra.mrb[8].mxu1 %vm464_vm0, %v348_v9  ;;  %3047 = vmatmul.mubr.msk.f32.gmra.mrb[4].mxu0 %vm464_vm0, %v1932_v6  ;;  %v782_v6 = vmul.f32 %v3495_v0, %v762_v54  ;;  %v2099_v9 = vld [vmem:[%s3481_s22 + $0x35] sm:$0xff] }
  0xda   : > { %v1910_v12 = vpop.permute.xlu1 %1909  ;;  %v808_v13 = vpop.permute.xlu0 %807  ;;  %v2119_v44 = vmul.f32 %v3495_v0, %v2099_v9 }
  0xdb   : > { %v1933_v1 = vmul.f32 %v1910_v12, %v1606_v20  ;;  %v855_v17 = vmul.f32 %v808_v13, %v795_v5  ;;  %v2115_v20 = vmul.f32 %v3495_v0, %v2095_v22  ;;  %v800_v5 = vmax.f32 %v3897_v51, 0.0 }
  0xdc   : > { %v2137_v12 = vmax.f32 %v2127_v29, 0.0  ;;  %v801_v13 = vmax.f32 %v3905_v61, 0.0  ;;  %v3922_v22 = vadd.f32 %v3514_v8, %v782_v6 }
  0xdd   : > { %2964 = vmatprep.mubr.msk.f32.mxu1 %vm464_vm0, %v855_v17  ;;  %3049 = vmatprep.mubr.msk.f32.mxu0 %vm464_vm0, %v1933_v1 }
  0xde   : > { %v1915_v24 = vpop.permute.xlu1 %1914  ;;  %v813_v26 = vpop.permute.xlu0 %812 }
  0xdf   : > { %v1934_v62 = vmul.f32 %v1915_v24, %v1607_v35  ;;  %v856_v32 = vmul.f32 %v813_v26, %v796_v55  ;;  %v2125_v35 = vadd.f32 %v3514_v8, %v2115_v20  ;;  %v2100_v24 = vld [vmem:[%s3481_s22 + $0x3d] sm:$0xff]  ;;  %v764_v26 = vld [vmem:[%s3481_s22 + $0x4a] sm:$0xff] }
  0xe0   : > { %v2120_v7 = vmul.f32 %v3495_v0, %v2100_v24  ;;  %v784_v28 = vmul.f32 %v3495_v0, %v764_v26 }
  0xe1   : > { %2965 = vmatmul.mubr.msk.f32.vlgmr.msra.gmra.mrb[0].mxu1 %vm464_vm0, %v856_v32  ;;  %3050 = vmatmul.mubr.msk.f32.gmra.mrb[6].mxu0 %vm464_vm0, %v1934_v62  ;;  %v2138_v62 = vmax.f32 %v2128_v16, 0.0  ;;  %v2129_v32 = vadd.f32 %v3514_v8, %v2119_v44 }
  0xe2   : > { %v1920_v57 = vpop.permute.xlu1 %1919  ;;  %v818_v33 = vpop.permute.xlu0 %817  ;;  %3108 = vmatpush3.bf16.msra.mxu1 %v3769_v59  ;;  %v3944_v40 = vadd.f32 %v3514_v8, %v784_v28 }
  0xe3   : > { %v1935_v45 = vmul.f32 %v1920_v57, %v1608_v49  ;;  %v857_v53 = vmul.f32 %v818_v33, %v797_v50  ;;  %3129 = vmatprep.subr.bf16.mxu1 %v3315_v15  ;;  %v2135_v49 = vmax.f32 %v2125_v35, 0.0  ;;  %v802_v33 = vmax.f32 %v3922_v22, 0.0  ;;  %v2101_v35 = vld [vmem:[%s3481_s22 + $0x45] sm:$0xff] }
  0xe5   : > { %2967 = vmatprep.mubr.msk.f32.mxu1 %vm464_vm0, %v857_v53  ;;  %3052 = vmatprep.mubr.msk.f32.mxu0 %vm464_vm0, %v1935_v45  ;;  %v2139_v53 = vmax.f32 %v2129_v32, 0.0 }
  0xe6   : > { %v1925_v36 = vpop.permute.xlu1 %1924  ;;  %v823_v59 = vpop.permute.xlu0 %822 }
  0xe7   : > { %v1936_v63 = vmul.f32 %v1925_v36, %v1876_v34  ;;  %v858_v47 = vmul.f32 %v823_v59, %v798_v21  ;;  %v3937_v34 = vadd.f32 %v3514_v8, %v783_v23  ;;  %v2121_v59 = vmul.f32 %v3495_v0, %v2101_v35  ;;  %v2363_v23 = vld [vmem:[%s3481_s22 + $0x16] sm:$0xff] }
  0xe8   : > { %v2383_v30 = vmul.f32 %v3495_v0, %v2363_v23 }
  0xe9   : > { %2968 = vmatmul.mubr.msk.f32.gmra.mrb[2].mxu1 %vm464_vm0, %v858_v47  ;;  %3053 = vmatmul.mubr.msk.f32.gmra.mrb[8].mxu0 %vm464_vm0, %v1936_v63  ;;  %v803_v36 = vmax.f32 %v3937_v34, 0.0  ;;  %v804_v63 = vmax.f32 %v3944_v40, 0.0  ;;  %v2131_v54 = vadd.f32 %v3514_v8, %v2121_v59 }
  0xea   : > { %v2148_v56 = vpop.permute.xlu1 %2147  ;;  %v828_v58 = vpop.permute.xlu0 %827  ;;  %v2393_v35 = vadd.f32 %v3514_v8, %v2383_v30 }
  0xeb   : > { %v2195_v4 = vmul.f32 %v2148_v56, %v2135_v49  ;;  %v859_v18 = vmul.f32 %v828_v58, %v799_v48  ;;  %v2102_v49 = vld [vmem:[%s3481_s22 + $0x4d] sm:$0xff]  ;;  %v2103_v58 = vld [vmem:[%s3481_s22 + $0x55] sm:$0xff]  ;;  %v2141_v6 = vmax.f32 %v2131_v54, 0.0 }
  0xec   : > { %v2122_v56 = vmul.f32 %v3495_v0, %v2102_v49  ;;  %v2123_v60 = vmul.f32 %v3495_v0, %v2103_v58 }
  0xed   : > { %2970 = vmatprep.mubr.msk.f32.mxu1 %vm464_vm0, %v859_v18  ;;  %3059 = vmatprep.mubr.msk.f32.mxu0 %vm464_vm0, %v2195_v4 }
  0xee   : > { %v2153_v10 = vpop.permute.xlu1 %2152  ;;  %v833_v11 = vpop.permute.xlu0 %832  ;;  %v2132_v9 = vadd.f32 %v3514_v8, %v2122_v56 }
  0xef   : > { %v2196_v1 = vmul.f32 %v2153_v10, %v2136_v25  ;;  %v860_v17 = vmul.f32 %v833_v11, %v800_v5 }
  0xf1   : > { %2971 = vmatmul.mubr.msk.f32.gmra.mrb[4].mxu1 %vm464_vm0, %v860_v17  ;;  %3060 = vmatmul.mubr.msk.f32.vlgmr.msra.gmra.mrb[0].mxu0 %vm464_vm0, %v2196_v1  ;;  %v2142_v1 = vmax.f32 %v2132_v9, 0.0  ;;  %v2124_v17 = vmul.f32 %v3495_v0, %v2104_v43 }
  0xf2   : > { %v2158_v27 = vpop.permute.xlu1 %2157  ;;  %v838_v20 = vpop.permute.xlu0 %837  ;;  %3128 = vmatpush3.bf16.msra.mxu0 %v3808_v31  ;;  %v2130_v31 = vadd.f32 %v3514_v8, %v2120_v7 }
  0xf3   : > { %v2197_v38 = vmul.f32 %v2158_v27, %v2137_v12  ;;  %v861_v57 = vmul.f32 %v838_v20, %v801_v13  ;;  %v2133_v12 = vadd.f32 %v3514_v8, %v2123_v60  ;;  %v2134_v32 = vadd.f32 %v3514_v8, %v2124_v17  ;;  %v1032_v60 = vld [vmem:[%s3481_s22 + $0x52] sm:$0xff] }
  0xf4   : > { %v2140_v2 = vmax.f32 %v2130_v31, 0.0  ;;  %v3998_v31 = vld [vmem:[%s4104_s2] ss:$0 sm:$0xff]  ;;  %v2403_v8 = vmax.f32 %v2393_v35, 0.0 }
  0xf5   : > { %2973 = vmatprep.mubr.msk.f32.mxu1 %vm464_vm0, %v861_v57  ;;  %3062 = vmatprep.mubr.msk.f32.mxu0 %vm464_vm0, %v2197_v38  ;;  %v2143_v27 = vmax.f32 %v2133_v12, 0.0  ;;  %v3985_v38 = vld [vmem:[%s4103_s1] ss:$0 sm:$0xff]  ;;  %v2144_v57 = vmax.f32 %v2134_v32, 0.0 }
  0xf6   : > { %v2163_v37 = vpop.permute.xlu1 %2162  ;;  %v843_v45 = vpop.permute.xlu0 %842  ;;  %v1052_v61 = vmul.f32 %v3985_v38, %v1032_v60  ;;  %v1297_v12 = vld [vmem:[%s3481_s22 + $0x3b] sm:$0xff] }
  0xf7   : > { %v2198_v41 = vmul.f32 %v2163_v37, %v2138_v62  ;;  %v862_v42 = vmul.f32 %v843_v45, %v802_v33  ;;  %v2365_v37 = vld [vmem:[%s3481_s22 + $0x26] sm:$0xff] }
  0xf8   : > { %v1062_v23 = vadd.f32 %v3998_v31, %v1052_v61 }
  0xf9   : > { %2974 = vmatmul.mubr.msk.f32.gmra.mrb[6].mxu1 %vm464_vm0, %v862_v42  ;;  %3063 = vmatmul.mubr.msk.f32.gmra.mrb[2].mxu0 %vm464_vm0, %v2198_v41  ;;  %v2385_v41 = vmul.f32 %v3985_v38, %v2365_v37  ;;  %v2366_v42 = vld [vmem:[%s3481_s22 + $0x2e] sm:$0xff] }
  0xfa   : > { %v2168_v46 = vpop.permute.xlu1 %2167  ;;  %v848_v14 = vpop.permute.xlu0 %847 }
  0xfb   : > { %v2199_v47 = vmul.f32 %v2168_v46, %v2139_v53  ;;  %v863_v52 = vmul.f32 %v848_v14, %v803_v36  ;;  %v2395_v39 = vadd.f32 %v3998_v31, %v2385_v41  ;;  %v2372_v41 = vld [vmem:[%s3481_s22 + $0x5e] sm:$0xff] }
  0xfd   : > { %2976 = vmatprep.mubr.msk.f32.mxu1 %vm464_vm0, %v863_v52  ;;  %3065 = vmatprep.mubr.msk.f32.mxu0 %vm464_vm0, %v2199_v47  ;;  %v2367_v47 = vld [vmem:[%s3481_s22 + $0x36] sm:$0xff]  ;;  %v2405_v51 = vmax.f32 %v2395_v39, 0.0 }
  0xfe   : > { %v2173_v25 = vpop.permute.xlu1 %2172  ;;  %v853_v29 = vpop.permute.xlu0 %852  ;;  %v2387_v56 = vmul.f32 %v3985_v38, %v2367_v47 }
  0xff   : > { %v2200_v4 = vmul.f32 %v2173_v25, %v2140_v2  ;;  %v864_v18 = vmul.f32 %v853_v29, %v804_v63  ;;  %v2368_v29 = vld [vmem:[%s3481_s22 + $0x3e] sm:$0xff] }
 0x100   : > { %v2388_v9 = vmul.f32 %v3985_v38, %v2368_v29 }
 0x101   : > { %2977 = vmatmul.mubr.msk.f32.gmra.mrb[8].mxu1 %vm464_vm0, %v864_v18  ;;  %3066 = vmatmul.mubr.msk.f32.gmra.mrb[4].mxu0 %vm464_vm0, %v2200_v4 }
 0x102   : > { %v2178_v10 = vpop.permute.xlu1 %2177  ;;  %v1076_v11 = vpop.permute.xlu0 %1075  ;;  %v2398_v17 = vadd.f32 %v3998_v31, %v2388_v9 }
 0x103   : > { %v2201_v16 = vmul.f32 %v2178_v10, %v2141_v6  ;;  %v1123_v44 = vmul.f32 %v1076_v11, %v796_v55  ;;  %v2364_v55 = vld [vmem:[%s3481_s22 + $0x1e] sm:$0xff]  ;;  %v2397_v6 = vadd.f32 %v3998_v31, %v2387_v56  ;;  %v2369_v11 = vld [vmem:[%s3481_s22 + $0x46] sm:$0xff] }
 0x104   : > { %v2384_v19 = vmul.f32 %v3985_v38, %v2364_v55  ;;  %v2408_v30 = vmax.f32 %v2398_v17, 0.0  ;;  %v1072_v55 = vmax.f32 %v1062_v23, 0.0 }
 0x105   : > { %2983 = vmatprep.mubr.msk.f32.mxu1 %vm464_vm0, %v1123_v44  ;;  %3068 = vmatprep.mubr.msk.f32.mxu0 %vm464_vm0, %v2201_v16 }
 0x106   : > { %v2183_v24 = vpop.permute.xlu1 %2182  ;;  %v1081_v26 = vpop.permute.xlu0 %1080 }
 0x107   : > { %v2202_v20 = vmul.f32 %v2183_v24, %v2142_v1  ;;  %v1124_v62 = vmul.f32 %v1081_v26, %v797_v50  ;;  %v2407_v1 = vmax.f32 %v2397_v6, 0.0  ;;  %v1317_v26 = vmul.f32 %v3985_v38, %v1297_v12 }
 0x109   : > { %2984 = vmatmul.mubr.msk.f32.vlgmr.msra.gmra.mrb[0].mxu1 %vm464_vm0, %v1124_v62  ;;  %3069 = vmatmul.mubr.msk.f32.gmra.mrb[6].mxu0 %vm464_vm0, %v2202_v20  ;;  %v1298_v20 = vld [vmem:[%s3481_s22 + $0x43] sm:$0xff] }
 0x10a   : > { %v2188_v7 = vpop.permute.xlu1 %2187  ;;  %v1086_v28 = vpop.permute.xlu0 %1085  ;;  %3130 = vmatpush3.bf16.msra.mxu1 %v3315_v15  ;;  %v2394_v15 = vadd.f32 %v3998_v31, %v2384_v19  ;;  %v1318_v34 = vmul.f32 %v3985_v38, %v1298_v20 }
 0x10b   : > { %v2203_v50 = vmul.f32 %v2188_v7, %v2143_v27  ;;  %v1125_v0 = vmul.f32 %v1086_v28, %v798_v21  ;;  %v2370_v27 = vld [vmem:[%s3481_s22 + $0x4e] sm:$0xff] }
 0x10c   : > { %v2404_v46 = vmax.f32 %v2394_v15, 0.0  ;;  %v2390_v7 = vmul.f32 %v3985_v38, %v2370_v27 }
 0x10d   : > { %2986 = vmatprep.mubr.msk.f32.mxu1 %vm464_vm0, %v1125_v0  ;;  %3071 = vmatprep.mubr.msk.f32.mxu0 %vm464_vm0, %v2203_v50  ;;  %v1327_v50 = vadd.f32 %v3998_v31, %v1317_v26  ;;  %v2371_v0 = vld [vmem:[%s3481_s22 + $0x56] sm:$0xff] }
 0x10e   : > { %v2193_v45 = vpop.permute.xlu1 %2192  ;;  %v1091_v53 = vpop.permute.xlu0 %1090  ;;  %v2391_v40 = vmul.f32 %v3985_v38, %v2371_v0 }
 0x10f   : > { %v2204_v3 = vmul.f32 %v2193_v45, %v2144_v57  ;;  %v1126_v21 = vmul.f32 %v1091_v53, %v799_v48  ;;  %v2386_v48 = vmul.f32 %v3985_v38, %v2366_v42  ;;  %v1299_v57 = vld [vmem:[%s3481_s22 + $0x4b] sm:$0xff]  ;;  %v2400_v45 = vadd.f32 %v3998_v31, %v2390_v7  ;;  %v1300_v42 = vld [vmem:[%s3481_s22 + $0x53] sm:$0xff]  ;;  %s3212_s22 = smul.u32 80, %s4109_s19 }
 0x110   : > { %v1328_v53 = vadd.f32 %v3998_v31, %v1318_v34 }
 0x111   : > { %2987 = vmatmul.mubr.msk.f32.gmra.mrb[2].mxu1 %vm464_vm0, %v1126_v21  ;;  %3072 = vmatmul.mubr.msk.f32.gmra.mrb[8].mxu0 %vm464_vm0, %v2204_v3  ;;  %s4077_s8 = scalar_lea.vmem %s4107_s5, %s3212_s22 }
 0x112   : > { %v2416_v59 = vpop.permute.xlu1 %2415  ;;  %v1096_v49 = vpop.permute.xlu0 %1095 }
 0x113   : > { %v2463_v14 = vmul.f32 %v2416_v59, %v2403_v8  ;;  %v1127_v2 = vmul.f32 %v1096_v49, %v800_v5  ;;  %v2396_v5 = vadd.f32 %v3998_v31, %v2386_v48  ;;  %v1337_v8 = vmax.f32 %v1327_v50, 0.0 }
 0x115   : > { %2989 = vmatprep.mubr.msk.f32.mxu1 %vm464_vm0, %v1127_v2  ;;  %3078 = vmatprep.mubr.msk.f32.mxu0 %vm464_vm0, %v2463_v14  ;;  %v2406_v10 = vmax.f32 %v2396_v5, 0.0  ;;  %v1338_v14 = vmax.f32 %v1328_v53, 0.0  ;;  %v2401_v2 = vadd.f32 %v3998_v31, %v2391_v40 }
 0x116   : > { %v2421_v52 = vpop.permute.xlu1 %2420  ;;  %v1101_v54 = vpop.permute.xlu0 %1100 }
 0x117   : > { %v2464_v58 = vmul.f32 %v2421_v52, %v2404_v46  ;;  %v1128_v25 = vmul.f32 %v1101_v54, %v801_v13  ;;  %v2410_v46 = vmax.f32 %v2400_v45, 0.0  ;;  %v2392_v52 = vmul.f32 %v3985_v38, %v2372_v41 }
 0x118   : > { %v1320_v54 = vmul.f32 %v3985_v38, %v1300_v42 }
 0x119   : > { %2990 = vmatmul.mubr.msk.f32.gmra.mrb[4].mxu1 %vm464_vm0, %v1128_v25  ;;  %3079 = vmatmul.mubr.msk.f32.vlgmr.msra.gmra.mrb[0].mxu0 %vm464_vm0, %v2464_v58  ;;  %v2411_v25 = vmax.f32 %v2401_v2, 0.0  ;;  %v2402_v60 = vadd.f32 %v3998_v31, %v2392_v52 }
 0x11a   : > { %v2426_v4 = vpop.permute.xlu1 %2425  ;;  %v1106_v18 = vpop.permute.xlu0 %1105 }
 0x11b   : > { %v2465_v43 = vmul.f32 %v2426_v4, %v2405_v51  ;;  %v1129_v13 = vmul.f32 %v1106_v18, %v802_v33  ;;  %v2389_v33 = vmul.f32 %v3985_v38, %v2369_v11  ;;  %v1330_v4 = vadd.f32 %v3998_v31, %v1320_v54 }
 0x11c   : > { %v2412_v61 = vmax.f32 %v2402_v60, 0.0 }
 0x11d   : > { %2992 = vmatprep.mubr.msk.f32.mxu1 %vm464_vm0, %v1129_v13  ;;  %3081 = vmatprep.mubr.msk.f32.mxu0 %vm464_vm0, %v2465_v43  ;;  %v2399_v19 = vadd.f32 %v3998_v31, %v2389_v33  ;;  %v1340_v43 = vmax.f32 %v1330_v4, 0.0 }
 0x11e   : > { %v2431_v16 = vpop.permute.xlu1 %2430  ;;  %v1111_v44 = vpop.permute.xlu0 %1110 }
 0x11f   : > { %v2466_v24 = vmul.f32 %v2431_v16, %v2406_v10  ;;  %v1130_v22 = vmul.f32 %v1111_v44, %v803_v36  ;;  %v2409_v21 = vmax.f32 %v2399_v19, 0.0 }
 0x121   : > { %2993 = vmatmul.mubr.msk.f32.gmra.mrb[6].mxu1 %vm464_vm0, %v1130_v22  ;;  %3082 = vmatmul.mubr.msk.f32.gmra.mrb[2].mxu0 %vm464_vm0, %v2466_v24 }
 0x122   : > { %v2436_v62 = vpop.permute.xlu1 %2435  ;;  %v1116_v32 = vpop.permute.xlu0 %1115 }
 0x123   : > { %v2467_v36 = vmul.f32 %v2436_v62, %v2407_v1  ;;  %v1131_v28 = vmul.f32 %v1116_v32, %v804_v63  ;;  %v1319_v63 = vmul.f32 %v3985_v38, %v1299_v57 }
 0x125   : > { %2995 = vmatprep.mubr.msk.f32.mxu1 %vm464_vm0, %v1131_v28  ;;  %3084 = vmatprep.mubr.msk.f32.mxu0 %vm464_vm0, %v2467_v36  ;;  %v1329_v39 = vadd.f32 %v3998_v31, %v1319_v63 }
 0x126   : > { %v2441_v35 = vpop.permute.xlu1 %2440  ;;  %v1121_v37 = vpop.permute.xlu0 %1120 }
 0x127   : > { %v2468_v15 = vmul.f32 %v2441_v35, %v2408_v30  ;;  %v1132_v3 = vmul.f32 %v1121_v37, %v1072_v55  ;;  %v1339_v51 = vmax.f32 %v1329_v39, 0.0 }
 0x129   : > { %2996 = vmatmul.mubr.msk.f32.gmra.mrb[8].mxu1 %vm464_vm0, %v1132_v3  ;;  %3085 = vmatmul.mubr.msk.f32.gmra.mrb[4].mxu0 %vm464_vm0, %v2468_v15 }
 0x12a   : > { %v2446_v59 = vpop.permute.xlu1 %2445  ;;  %v1374_v49 = vpop.permute.xlu0 %1373 }
 0x12b   : > { %v2469_v48 = vmul.f32 %v2446_v59, %v2409_v21  ;;  %v1397_v47 = vmul.f32 %v1374_v49, %v1337_v8 }
 0x12d   : > { %3011 = vmatprep.mubr.msk.f32.mxu1 %vm464_vm0, %v1397_v47  ;;  %3087 = vmatprep.mubr.msk.f32.mxu0 %vm464_vm0, %v2469_v48 }
 0x12e   : > { %v2451_v56 = vpop.permute.xlu1 %2450  ;;  %v1379_v58 = vpop.permute.xlu0 %1378 }
 0x12f   : > { %v2470_v5 = vmul.f32 %v2451_v56, %v2410_v46  ;;  %v1398_v29 = vmul.f32 %v1379_v58, %v1338_v14 }
 0x131   : > { %3012 = vmatmul.mubr.msk.f32.vlgmr.msra.gmra.mrb[6].mxu1 %vm464_vm0, %v1398_v29  ;;  %3088 = vmatmul.mubr.msk.f32.gmra.mrb[6].mxu0 %vm464_vm0, %v2470_v5 }
 0x132   : > { %v2456_v18 = vpop.permute.xlu1 %2455  ;;  %v1384_v38 = vpop.permute.xlu0 %1383 }
 0x133   : > { %v2471_v6 = vmul.f32 %v2456_v18, %v2411_v25  ;;  %v1399_v9 = vmul.f32 %v1384_v38, %v1339_v51 }
 0x135   : > { %3014 = vmatprep.mubr.msk.f32.mxu1 %vm464_vm0, %v1399_v9  ;;  %3090 = vmatprep.mubr.msk.f32.mxu0 %vm464_vm0, %v2471_v6 }
 0x136   : > { %v2461_v13 = vpop.permute.xlu1 %2460  ;;  %v1389_v10 = vpop.permute.xlu0 %1388 }
 0x137   : > { %v2472_v11 = vmul.f32 %v2461_v13, %v2412_v61  ;;  %v1400_v12 = vmul.f32 %v1389_v10, %v1340_v43 }
 0x139   : > { %3015 = vmatmul.mubr.msk.f32.gmra.mrb[8].mxu1 %vm464_vm0, %v1400_v12  ;;  %3091 = vmatmul.mubr.msk.f32.gmra.mrb[8].mxu0 %vm464_vm0, %v2472_v11 }
 0x1dc   : > { %v2985_v31 = vpop.f32.mrb[0].mxu1 }
 0x1dd   : > { %v1232_v16 = vpop.f32.mrb[1].mxu1 }
 0x1e4   : > { %v2988_v44 = vpop.f32.mrb[2].mxu1 }
 0x1e5   : > { %v1242_v1 = vpop.f32.mrb[3].mxu1 }
 0x1ec   : > { %v2991_v17 = vpop.f32.mrb[4].mxu1  ;;  %v3080_v23 = vpop.f32.mrb[0].mxu0 }
 0x1ed   : > { %v3131_v24 = vadd.f32 %v3080_v23, %v2985_v31  ;;  %v1252_v22 = vpop.f32.mrb[5].mxu1  ;;  %v2572_v33 = vpop.f32.mrb[1].mxu0 }
 0x1ee   : > { %v3132_v26 = vadd.f32 %v2572_v33, %v1232_v16 }
 0x1ef   : > { %2633 = vst.msk [vmem:[%s4077_s8 + $0x8] sm:$0xff] %vm2631_vm1, %v3131_v24 }
 0x1f0   : > { %2632 = vst.msk [vmem:[%s4077_s8] sm:$0xff] %vm2631_vm1, %v3132_v26 }
 0x1f4   : > { %v3083_v27 = vpop.f32.mrb[2].mxu0 }
 0x1f5   : > { %v3133_v20 = vadd.f32 %v3083_v27, %v2988_v44  ;;  %v2582_v62 = vpop.f32.mrb[3].mxu0 }
 0x1f6   : > { %v3134_v32 = vadd.f32 %v2582_v62, %v1242_v1 }
 0x1f7   : > { %2635 = vst.msk [vmem:[%s4077_s8 + $0x18] sm:$0xff] %vm2631_vm1, %v3133_v20 }
 0x1f8   : > { %2634 = vst.msk [vmem:[%s4077_s8 + $0x10] sm:$0xff] %vm2631_vm1, %v3134_v32 }
 0x1fc   : > { %v3086_v30 = vpop.f32.mrb[4].mxu0 }
 0x1fd   : > { %v3135_v55 = vadd.f32 %v3086_v30, %v2991_v17  ;;  %v2592_v7 = vpop.f32.mrb[5].mxu0 }
 0x1fe   : > { %v3136_v34 = vadd.f32 %v2592_v7, %v1252_v22 }
 0x1ff   : > { %2637 = vst.msk [vmem:[%s4077_s8 + $0x28] sm:$0xff] %vm2631_vm1, %v3135_v55 }
 0x200   : > { %2636 = vst.msk [vmem:[%s4077_s8 + $0x20] sm:$0xff] %vm2631_vm1, %v3136_v34 }
 0x204   : > { %v3013_v36 = vpop.f32.mrb[6].mxu1  ;;  %v3089_v28 = vpop.f32.mrb[6].mxu0 }
 0x205   : > { %v3137_v19 = vadd.f32 %v3089_v28, %v3013_v36  ;;  %v1530_v50 = vpop.f32.mrb[7].mxu1  ;;  %v2602_v0 = vpop.f32.mrb[7].mxu0 }
 0x206   : > { %v3138_v57 = vadd.f32 %v2602_v0, %v1530_v50 }
 0x207   : > { %2639 = vst.msk [vmem:[%s4077_s8 + $0x38] sm:$0xff] %vm2631_vm1, %v3137_v19 }
 0x208   : > { %2638 = vst.msk [vmem:[%s4077_s8 + $0x30] sm:$0xff] %vm2631_vm1, %v3138_v57 }
 0x20c   : > { %v3016_v35 = vpop.f32.mrb[8].mxu1  ;;  %v3092_v37 = vpop.f32.mrb[8].mxu0 }
 0x20d   : > { %v3139_v45 = vadd.f32 %v3092_v37, %v3016_v35  ;;  %v1540_v53 = vpop.f32.mrb[9].mxu1  ;;  %v2612_v40 = vpop.f32.mrb[9].mxu0 }
 0x20e   : > { %v3140_v63 = vadd.f32 %v2612_v40, %v1540_v53 }
 0x20f   : > { %2641 = vst.msk [vmem:[%s4077_s8 + $0x48] sm:$0xff] %vm2631_vm1, %v3139_v45 }
 0x210   : > { %2640 = vst.msk [vmem:[%s4077_s8 + $0x40] sm:$0xff] %vm2631_vm1, %v3140_v63 }
 0x211 PF: > { %s15_s18 = sadd.s32 1, %s3232_s18  }
 0x212   : > { %p12_p4 = scmp.ge.s32.totalorder %s15_s18, 4  }
 0x214   :  { %14 = sbr.rel (!%p12_p4) target bundleno = 1 (0x1), region = 78 }

// kernel: densenet_forward.45
= control target key start
LH: loop header
LB: loop body
LE: loop exit
PB: predicated region body
PF: predicated region fallthrough
CT: control target
= control target key end

     0   :  { %vm14_vm0 = vcmask 122880   ;;  %vm41_vm1 = vcmask 130048   ;;  %v87_v0 = vmov 0.0   ;;  %s145_s0 = inlined_call_operand.vmem [shape: f32[32,16], index: 0, kind: input, shape index: {}]   ;;  %s146_s1 = inlined_call_operand.vmem [shape: f32[1,16], index: 1, kind: output, shape index: {0}]   ;;  %s147_s2 = inlined_call_operand.vmem [shape: f32[1,16], index: 2, kind: output, shape index: {1}]  }
   0x1   :  { %15 = vst.msk [vmem:[%s146_s1] sm:$0x1] %vm14_vm0, %v87_v0  ;;  %v17_v1 = vld [vmem:[%s145_s0] sm:$0xff]  ;;  %v18_v2 = vld [vmem:[%s145_s0 + $0x8] sm:$0xff]  ;;  %v19_v3 = vld [vmem:[%s145_s0 + $0x10] sm:$0xff] }
   0x2   :  { %16 = vst.msk [vmem:[%s147_s2] sm:$0x1] %vm14_vm0, %v87_v0  ;;  %v20_v4 = vld [vmem:[%s145_s0 + $0x18] sm:$0xff]  ;;  %v42_v5 = vsel %vm41_vm1, %v17_v1, 0.0  ;;  %v43_v6 = vsel %vm41_vm1, %v18_v2, 0.0  ;;  %v45_v7 = vsel %vm41_vm1, %v19_v3, 0.0  ;;  %v59_v8 = vmul.f32 %v17_v1, %v17_v1 }
   0x3   :  { %v44_v9 = vadd.f32 %v43_v6, %v42_v5  ;;  %v60_v10 = vmul.f32 %v18_v2, %v18_v2  ;;  %v61_v11 = vmul.f32 %v19_v3, %v19_v3  ;;  %v47_v12 = vsel %vm41_vm1, %v20_v4, 0.0 }
   0x4   :  { %v62_v13 = vmul.f32 %v20_v4, %v20_v4  ;;  %v63_v14 = vsel %vm41_vm1, %v59_v8, 0.0 }
   0x5   :  { %v46_v15 = vadd.f32 %v45_v7, %v44_v9  ;;  %v64_v16 = vsel %vm41_vm1, %v60_v10, 0.0  ;;  %v66_v17 = vsel %vm41_vm1, %v61_v11, 0.0 }
   0x6   :  { %v65_v18 = vadd.f32 %v64_v16, %v63_v14  ;;  %v68_v20 = vsel %vm41_vm1, %v62_v13, 0.0 }
   0x7   :  { %v48_v19 = vadd.f32 %v47_v12, %v46_v15 }
   0x8   :  { %v67_v21 = vadd.f32 %v66_v17, %v65_v18  ;;  %v40_v31 = vld [vmem:[%s146_s1] sm:$0x1] }
   0x9   :  { %v49_v22 = vrot.slane %v48_v19, 4  ;;  %v58_v36 = vld [vmem:[%s147_s2] sm:$0x1] }
   0xa   :  { %v69_v23 = vadd.f32 %v68_v20, %v67_v21 }
   0xb   :  { %v50_v24 = vadd.f32 %v49_v22, %v48_v19 }
   0xc   :  { %v70_v25 = vrot.slane %v69_v23, 4 }
   0xd   :  { %v51_v26 = vrot.slane %v50_v24, 2 }
   0xe   :  { %v71_v27 = vadd.f32 %v70_v25, %v69_v23 }
   0xf   :  { %v52_v28 = vadd.f32 %v51_v26, %v50_v24 }
  0x10   :  { %v72_v29 = vrot.slane %v71_v27, 2 }
  0x11   :  { %v53_v30 = vrot.slane %v52_v28, 1 }
  0x12   :  { %v73_v32 = vadd.f32 %v72_v29, %v71_v27 }
  0x13   :  { %v54_v33 = vadd.f32 %v53_v30, %v52_v28 }
  0x14   :  { %v74_v34 = vrot.slane %v73_v32, 1 }
  0x15   :  { %v55_v35 = vadd.f32 %v54_v33, %v40_v31 }
  0x16   :  { %v75_v37 = vadd.f32 %v74_v34, %v73_v32 }
  0x17   :  { %57 = vst.msk [vmem:[%s146_s1] sm:$0x1] %vm14_vm0, %v55_v35 }
  0x18   :  { %v76_v38 = vadd.f32 %v75_v37, %v58_v36 }
  0x1a   :  { %77 = vst.msk [vmem:[%s147_s2] sm:$0x1] %vm14_vm0, %v76_v38 }

// kernel: densenet_forward.46
= control target key start
LH: loop header
LB: loop body
LE: loop exit
PB: predicated region body
PF: predicated region fallthrough
CT: control target
= control target key end

     0   :  { %vm21_vm0 = vcmask 130048   ;;  %v212_v3 = vmov 0.0   ;;  %s290_s3 = inlined_call_operand.vmem [shape: f32[16,16], index: 3, kind: input, shape index: {}]   ;;  %s291_s0 = inlined_call_operand.vmem [shape: f32[32,16], index: 0, kind: input, shape index: {}]   ;;  %s292_s1 = inlined_call_operand.vmem [shape: f32[1,16], index: 1, kind: input, shape index: {}]   ;;  %s293_s2 = inlined_call_operand.vmem [shape: f32[1,16], index: 2, kind: input, shape index: {}]   ;;  %s294_s4 = inlined_call_operand.vmem [shape: f32[32,16], index: 4, kind: output, shape index: {}]  }
   0x1   :  { %v60_v0 = vld [vmem:[%s290_s3] sm:$0xff]  ;;  %v61_v1 = vld [vmem:[%s290_s3 + $0x8] sm:$0xff]  ;;  %23 = vst.msk [vmem:[#allocation2 + $0x8] sm:$0xff] %vm21_vm0, %v212_v3  ;;  %22 = vst.msk [vmem:[#allocation2] sm:$0xff] %vm21_vm0, %v212_v3 }
   0x2   :  { %v26_v2 = vld [vmem:[%s291_s0] sm:$0xff]  ;;  %24 = vst.msk [vmem:[#allocation2 + $0x10] sm:$0xff] %vm21_vm0, %v212_v3  ;;  %25 = vst.msk [vmem:[#allocation2 + $0x18] sm:$0xff] %vm21_vm0, %v212_v3  ;;  %v205_v4 = vpack.c.bf16 %v61_v1, %v60_v0  ;;  %v28_v7 = vld [vmem:[%s291_s0 + $0x10] sm:$0xff] }
   0x3   :  { %v183_v5 = vld [vmem:[%s292_s1] ss:$0 sm:$0xff]  ;;  %v27_v10 = vld [vmem:[%s291_s0 + $0x8] sm:$0xff]  ;;  %v29_v11 = vld [vmem:[%s291_s0 + $0x18] sm:$0xff] }
   0x4   :  { %v184_v6 = vld [vmem:[%s293_s2] ss:$0 sm:$0xff]  ;;  %v37_v8 = vmul.f32 %v183_v5, %v26_v2  ;;  %v39_v9 = vmul.f32 %v183_v5, %v28_v7  ;;  %206 = vmatprep.subr.bf16.mxu0 %v205_v4  ;;  %209 = vmatprep.subr.bf16.mxu1 %v205_v4  ;;  %v38_v12 = vmul.f32 %v183_v5, %v27_v10 }
   0x5   :  { %v40_v13 = vmul.f32 %v183_v5, %v29_v11  ;;  %208 = vmatpush3.bf16.msra.mxu0 %v205_v4  ;;  %210 = vmatpush3.bf16.msra.mxu1 %v205_v4 }
   0x6   :  { %v48_v14 = vadd.f32 %v184_v6, %v37_v8  ;;  %v50_v15 = vadd.f32 %v184_v6, %v39_v9  ;;  %v49_v16 = vadd.f32 %v184_v6, %v38_v12 }
   0x7   :  { %v51_v17 = vadd.f32 %v184_v6, %v40_v13 }
   0x8   :  { %v52_v18 = vmax.f32 %v48_v14, 0.0  ;;  %v54_v19 = vmax.f32 %v50_v15, 0.0  ;;  %v53_v20 = vmax.f32 %v49_v16, 0.0  ;;  %v57_v22 = vld [vmem:[#allocation2 + $0x8] sm:$0xff]  ;;  %v56_v24 = vld [vmem:[#allocation2] sm:$0xff] }
   0x9   :  { %v55_v21 = vmax.f32 %v51_v17, 0.0  ;;  %v59_v23 = vld [vmem:[#allocation2 + $0x18] sm:$0xff]  ;;  %v58_v25 = vld [vmem:[#allocation2 + $0x10] sm:$0xff] }
   0xa   :  { %199 = vmatprep.mubr.msk.f32.mxu0 %vm21_vm0, %v52_v18  ;;  %202 = vmatprep.mubr.msk.f32.mxu1 %vm21_vm0, %v54_v19 }
   0xb   :  { %200 = vmatmul.mubr.msk.f32.vlgmr.msra.gmra.mrb[0].mxu0 %vm21_vm0, %v53_v20  ;;  %203 = vmatmul.mubr.msk.f32.vlgmr.msra.gmra.mrb[0].mxu1 %vm21_vm0, %v55_v21 }
  0xde   :  { %v201_v26 = vpop.f32.mrb[0].mxu0  ;;  %v204_v27 = vpop.f32.mrb[0].mxu1 }
  0xdf   :  { %v161_v28 = vadd.f32 %v201_v26, %v57_v22  ;;  %v163_v29 = vadd.f32 %v204_v27, %v59_v23  ;;  %v141_v30 = vpop.f32.mrb[1].mxu0  ;;  %v151_v31 = vpop.f32.mrb[1].mxu1 }
  0xe0   :  { %v160_v32 = vadd.f32 %v141_v30, %v56_v24  ;;  %v162_v33 = vadd.f32 %v151_v31, %v58_v25 }
  0xe1   :  { %165 = vst.msk [vmem:[#allocation2 + $0x8] sm:$0xff] %vm21_vm0, %v161_v28  ;;  %167 = vst.msk [vmem:[#allocation2 + $0x18] sm:$0xff] %vm21_vm0, %v163_v29 }
  0xe2   :  { %164 = vst.msk [vmem:[#allocation2] sm:$0xff] %vm21_vm0, %v160_v32  ;;  %166 = vst.msk [vmem:[#allocation2 + $0x10] sm:$0xff] %vm21_vm0, %v162_v33 }
  0xe8   :  { %v172_v34 = vld [vmem:[#allocation2 + $0x8] sm:$0xff]  ;;  %v174_v35 = vld [vmem:[#allocation2 + $0x18] sm:$0xff] }
  0xe9   :  { %176 = vst.msk [vmem:[%s294_s4 + $0x8] sm:$0xff] %vm21_vm0, %v172_v34  ;;  %178 = vst.msk [vmem:[%s294_s4 + $0x18] sm:$0xff] %vm21_vm0, %v174_v35  ;;  %v171_v36 = vld [vmem:[#allocation2] sm:$0xff]  ;;  %v173_v37 = vld [vmem:[#allocation2 + $0x10] sm:$0xff] }
  0xea   :  { %175 = vst.msk [vmem:[%s294_s4] sm:$0xff] %vm21_vm0, %v171_v36  ;;  %177 = vst.msk [vmem:[%s294_s4 + $0x10] sm:$0xff] %vm21_vm0, %v173_v37 }

// kernel: densenet_forward.49
= control target key start
LH: loop header
LB: loop body
LE: loop exit
PB: predicated region body
PF: predicated region fallthrough
CT: control target
= control target key end

     0   :  { %vm14_vm0 = vcmask 57344   ;;  %vm41_vm1 = vcmask 64512   ;;  %v87_v0 = vmov 0.0   ;;  %s145_s0 = inlined_call_operand.vmem [shape: f32[32,8], index: 0, kind: input, shape index: {}]   ;;  %s146_s1 = inlined_call_operand.vmem [shape: f32[1,8], index: 1, kind: output, shape index: {0}]   ;;  %s147_s2 = inlined_call_operand.vmem [shape: f32[1,8], index: 2, kind: output, shape index: {1}]  }
   0x1   :  { %15 = vst.msk [vmem:[%s146_s1] sm:$0x1] %vm14_vm0, %v87_v0  ;;  %v17_v1 = vld [vmem:[%s145_s0] sm:$0xff]  ;;  %v18_v2 = vld [vmem:[%s145_s0 + $0x8] sm:$0xff]  ;;  %v19_v3 = vld [vmem:[%s145_s0 + $0x10] sm:$0xff] }
   0x2   :  { %16 = vst.msk [vmem:[%s147_s2] sm:$0x1] %vm14_vm0, %v87_v0  ;;  %v20_v4 = vld [vmem:[%s145_s0 + $0x18] sm:$0xff]  ;;  %v42_v5 = vsel %vm41_vm1, %v17_v1, 0.0  ;;  %v43_v6 = vsel %vm41_vm1, %v18_v2, 0.0  ;;  %v45_v7 = vsel %vm41_vm1, %v19_v3, 0.0  ;;  %v59_v8 = vmul.f32 %v17_v1, %v17_v1 }
   0x3   :  { %v44_v9 = vadd.f32 %v43_v6, %v42_v5  ;;  %v60_v10 = vmul.f32 %v18_v2, %v18_v2  ;;  %v61_v11 = vmul.f32 %v19_v3, %v19_v3  ;;  %v47_v12 = vsel %vm41_vm1, %v20_v4, 0.0 }
   0x4   :  { %v62_v13 = vmul.f32 %v20_v4, %v20_v4  ;;  %v63_v14 = vsel %vm41_vm1, %v59_v8, 0.0 }
   0x5   :  { %v46_v15 = vadd.f32 %v45_v7, %v44_v9  ;;  %v64_v16 = vsel %vm41_vm1, %v60_v10, 0.0  ;;  %v66_v17 = vsel %vm41_vm1, %v61_v11, 0.0 }
   0x6   :  { %v65_v18 = vadd.f32 %v64_v16, %v63_v14  ;;  %v68_v20 = vsel %vm41_vm1, %v62_v13, 0.0 }
   0x7   :  { %v48_v19 = vadd.f32 %v47_v12, %v46_v15 }
   0x8   :  { %v67_v21 = vadd.f32 %v66_v17, %v65_v18  ;;  %v40_v31 = vld [vmem:[%s146_s1] sm:$0x1] }
   0x9   :  { %v49_v22 = vrot.slane %v48_v19, 4  ;;  %v58_v36 = vld [vmem:[%s147_s2] sm:$0x1] }
   0xa   :  { %v69_v23 = vadd.f32 %v68_v20, %v67_v21 }
   0xb   :  { %v50_v24 = vadd.f32 %v49_v22, %v48_v19 }
   0xc   :  { %v70_v25 = vrot.slane %v69_v23, 4 }
   0xd   :  { %v51_v26 = vrot.slane %v50_v24, 2 }
   0xe   :  { %v71_v27 = vadd.f32 %v70_v25, %v69_v23 }
   0xf   :  { %v52_v28 = vadd.f32 %v51_v26, %v50_v24 }
  0x10   :  { %v72_v29 = vrot.slane %v71_v27, 2 }
  0x11   :  { %v53_v30 = vrot.slane %v52_v28, 1 }
  0x12   :  { %v73_v32 = vadd.f32 %v72_v29, %v71_v27 }
  0x13   :  { %v54_v33 = vadd.f32 %v53_v30, %v52_v28 }
  0x14   :  { %v74_v34 = vrot.slane %v73_v32, 1 }
  0x15   :  { %v55_v35 = vadd.f32 %v54_v33, %v40_v31 }
  0x16   :  { %v75_v37 = vadd.f32 %v74_v34, %v73_v32 }
  0x17   :  { %57 = vst.msk [vmem:[%s146_s1] sm:$0x1] %vm14_vm0, %v55_v35 }
  0x18   :  { %v76_v38 = vadd.f32 %v75_v37, %v58_v36 }
  0x1a   :  { %77 = vst.msk [vmem:[%s147_s2] sm:$0x1] %vm14_vm0, %v76_v38 }

// kernel: densenet_forward.51
= control target key start
LH: loop header
LB: loop body
LE: loop exit
PB: predicated region body
PF: predicated region fallthrough
CT: control target
= control target key end

     0   :  { %vm21_vm0 = vcmask 130048   ;;  %v205_v3 = vmov 0.0   ;;  %vm61_vm1 = vcmask 64512   ;;  %s276_s3 = inlined_call_operand.vmem [shape: f32[8,16], index: 3, kind: input, shape index: {}]   ;;  %s277_s0 = inlined_call_operand.vmem [shape: f32[32,8], index: 0, kind: input, shape index: {}]   ;;  %s278_s1 = inlined_call_operand.vmem [shape: f32[1,8], index: 1, kind: input, shape index: {}]   ;;  %s279_s2 = inlined_call_operand.vmem [shape: f32[1,8], index: 2, kind: input, shape index: {}]   ;;  %s280_s4 = inlined_call_operand.vmem [shape: f32[32,16], index: 4, kind: output, shape index: {}]  }
   0x1   :  { %v60_v0 = vld [vmem:[%s276_s3] sm:$0xff]  ;;  %23 = vst.msk [vmem:[#allocation2 + $0x8] sm:$0xff] %vm21_vm0, %v205_v3  ;;  %22 = vst.msk [vmem:[#allocation2] sm:$0xff] %vm21_vm0, %v205_v3  ;;  %v28_v6 = vld [vmem:[%s277_s0 + $0x10] sm:$0xff] }
   0x2   :  { %v26_v1 = vld [vmem:[%s277_s0] sm:$0xff]  ;;  %24 = vst.msk [vmem:[#allocation2 + $0x10] sm:$0xff] %vm21_vm0, %v205_v3  ;;  %25 = vst.msk [vmem:[#allocation2 + $0x18] sm:$0xff] %vm21_vm0, %v205_v3  ;;  %194 = vmatprep.subr.mxu0 %v60_v0  ;;  %202 = vmatprep.subr.mxu1 %v60_v0  ;;  %v27_v7 = vld [vmem:[%s277_s0 + $0x8] sm:$0xff] }
   0x3   :  { %v183_v2 = vld [vmem:[%s278_s1] ss:$0 sm:$0xff]  ;;  %195 = vmatpush3.msra.mxu0 %v60_v0  ;;  %203 = vmatpush3.msra.mxu1 %v60_v0  ;;  %v29_v10 = vld [vmem:[%s277_s0 + $0x18] sm:$0xff] }
   0x4   :  { %v37_v4 = vmul.f32 %v183_v2, %v26_v1  ;;  %v184_v5 = vld [vmem:[%s279_s2] ss:$0 sm:$0xff]  ;;  %v39_v8 = vmul.f32 %v183_v2, %v28_v6  ;;  %v38_v9 = vmul.f32 %v183_v2, %v27_v7  ;;  %v40_v12 = vmul.f32 %v183_v2, %v29_v10 }
   0x6   :  { %v48_v11 = vadd.f32 %v184_v5, %v37_v4  ;;  %v50_v13 = vadd.f32 %v184_v5, %v39_v8  ;;  %v49_v14 = vadd.f32 %v184_v5, %v38_v9  ;;  %v51_v16 = vadd.f32 %v184_v5, %v40_v12 }
   0x8   :  { %v52_v15 = vmax.f32 %v48_v11, 0.0  ;;  %v54_v17 = vmax.f32 %v50_v13, 0.0  ;;  %v53_v18 = vmax.f32 %v49_v14, 0.0  ;;  %v55_v19 = vmax.f32 %v51_v16, 0.0  ;;  %v57_v20 = vld [vmem:[#allocation2 + $0x8] sm:$0xff]  ;;  %v56_v22 = vld [vmem:[#allocation2] sm:$0xff] }
   0x9   :  { %v59_v21 = vld [vmem:[#allocation2 + $0x18] sm:$0xff]  ;;  %v58_v24 = vld [vmem:[#allocation2 + $0x10] sm:$0xff] }
   0xa   :  { %196 = vmatprep.mubr.msk.f32.mxu0 %vm61_vm1, %v52_v15  ;;  %199 = vmatprep.mubr.msk.f32.mxu1 %vm61_vm1, %v54_v17 }
   0xb   :  { %197 = vmatmul.mubr.msk.f32.vlgmr.msra.gmra.mrb[0].mxu0 %vm61_vm1, %v53_v18  ;;  %200 = vmatmul.mubr.msk.f32.vlgmr.msra.gmra.mrb[0].mxu1 %vm61_vm1, %v55_v19 }
  0xde   :  { %v198_v23 = vpop.f32.mrb[0].mxu0  ;;  %v201_v26 = vpop.f32.mrb[0].mxu1 }
  0xdf   :  { %v160_v25 = vadd.f32 %v198_v23, %v57_v20  ;;  %v140_v27 = vpop.f32.mrb[1].mxu0  ;;  %v162_v28 = vadd.f32 %v201_v26, %v59_v21  ;;  %v150_v30 = vpop.f32.mrb[1].mxu1 }
  0xe0   :  { %v159_v29 = vadd.f32 %v140_v27, %v56_v22  ;;  %v161_v31 = vadd.f32 %v150_v30, %v58_v24 }
  0xe1   :  { %165 = vst.msk [vmem:[#allocation2 + $0x8] sm:$0xff] %vm21_vm0, %v160_v25  ;;  %167 = vst.msk [vmem:[#allocation2 + $0x18] sm:$0xff] %vm21_vm0, %v162_v28 }
  0xe2   :  { %164 = vst.msk [vmem:[#allocation2] sm:$0xff] %vm21_vm0, %v159_v29  ;;  %166 = vst.msk [vmem:[#allocation2 + $0x10] sm:$0xff] %vm21_vm0, %v161_v31 }
  0xe8   :  { %v172_v32 = vld [vmem:[#allocation2 + $0x8] sm:$0xff]  ;;  %v174_v33 = vld [vmem:[#allocation2 + $0x18] sm:$0xff] }
  0xe9   :  { %176 = vst.msk [vmem:[%s280_s4 + $0x8] sm:$0xff] %vm21_vm0, %v172_v32  ;;  %v171_v34 = vld [vmem:[#allocation2] sm:$0xff]  ;;  %178 = vst.msk [vmem:[%s280_s4 + $0x18] sm:$0xff] %vm21_vm0, %v174_v33  ;;  %v173_v35 = vld [vmem:[#allocation2 + $0x10] sm:$0xff] }
  0xea   :  { %175 = vst.msk [vmem:[%s280_s4] sm:$0xff] %vm21_vm0, %v171_v34  ;;  %177 = vst.msk [vmem:[%s280_s4 + $0x10] sm:$0xff] %vm21_vm0, %v173_v35 }

// kernel: densenet_forward.48
= control target key start
LH: loop header
LB: loop body
LE: loop exit
PB: predicated region body
PF: predicated region fallthrough
CT: control target
= control target key end

     0   :  { %s1792_s18 = smov 0   ;;  %s2116_s0 = inlined_call_operand.vmem [shape: f32[2,42,16], index: 0, kind: input, shape index: {}]   ;;  %s2117_s1 = inlined_call_operand.vmem [shape: f32[1,16], index: 1, kind: input, shape index: {}]   ;;  %s2118_s2 = inlined_call_operand.vmem [shape: f32[1,16], index: 2, kind: input, shape index: {}]   ;;  %s2119_s3 = inlined_call_operand.vmem [shape: f32[42,1], index: 3, kind: input, shape index: {}]   ;;  %s2120_s4 = inlined_call_operand.vmem [shape: f32[9,16,8], index: 4, kind: input, shape index: {}]   ;;  %s2121_s5 = inlined_call_operand.vmem [shape: f32[2,24,8], index: 5, kind: output, shape index: {}]  }
   0x1 LB: > { %s1444_s19 = sadd.s32 4294967295, %s1756_s18   ;;  %p1448_p0 = scmp.ge.s32.totalorder %s1756_s18, 1  ;;  %s1756_s18 = sphi %s1792_s18, %s15_s18  }
   0x2   : > { %p187_p1 = scmp.lt.s32.totalorder %s1756_s18, 3 }
   0x4   : > { %p188_p2 = pnand %p1448_p0, %p187_p1 }
   0x5   : > { %v278_v0 = vld [vmem:[%s2119_s3 + $0x9] sm:$0xff] (!%p188_p2)  ;;  %v277_v1 = vld [vmem:[%s2119_s3 + $0x1] sm:$0xff] (!%p188_p2)  ;;  %v1758_v2 = vmov (!%p188_p2), 0   ;;  %v279_v3 = vld [vmem:[%s2119_s3 + $0x11] sm:$0xff] (!%p188_p2)  ;;  %v1759_v5 = vmov (!%p188_p2), 0.0|0.0   ;;  %vm1760_vm0 = vmmov (!%p188_p2), 0  }
   0x6   : > { %191 = sbr.rel (%p188_p2) target bundleno = 408 (0x198), region = 40  ;;  %1749 = vset.pattern.permute.xlu1 (!%p188_p2), %v1758_v2  ;;  %1748 = vset.pattern.permute.xlu0 (!%p188_p2), %v1758_v2  ;;  %v748_v4 = vld [vmem:[%s2119_s3 + $0x7] sm:$0xff] (!%p188_p2)  ;;  %v1761_v6 = vmov (!%p188_p2), 0.0   ;;  %v1453_v9 = vld [vmem:[%s2120_s4 + $0x10] sm:$0xff] (!%p188_p2)  ;;  %v1454_v10 = vld [vmem:[%s2120_s4 + $0x18] sm:$0xff] (!%p188_p2)  ;;  %p215_p3 = scmp.lt.s32.totalorder (!%p188_p2), %s1444_s19, 1 }
   0x7   : > { %296 = vperm.xlu1 (!%p188_p2), %1749, %v278_v0   ;;  %291 = vperm.xlu0 (!%p188_p2), %1748, %v277_v1   ;;  %v876_v7 = vld [vmem:[%s2119_s3 + $0x8] sm:$0xff] (!%p188_p2)  ;;  %v230_v8 = vld [vmem:[%s2119_s3] sm:$0xff] (!%p188_p2)  ;;  %v1661_v11 = vpack.c.bf16 (!%p188_p2), %v1454_v10, %v1453_v9  ;;  %v877_v14 = vld [vmem:[%s2119_s3 + $0x10] sm:$0xff] (!%p188_p2)  ;;  %vm310_vm1 = vcmask (!%p188_p2), 130048   ;;  %vm1385_vm2 = vcmask (!%p188_p2), 64512  }
   0x8   : > { %1660 = vmatprep.subr.bf16.mxu1 (!%p188_p2), %v1759_v5  ;;  %1547 = vmatprep.mubr.msk.f32.mxu1 (!%p188_p2), %vm1760_vm0, %v1761_v6  ;;  %v1471_v12 = vld [vmem:[%s2120_s4 + $0x40] sm:$0xff] (!%p188_p2)  ;;  %v1472_v13 = vld [vmem:[%s2120_s4 + $0x48] sm:$0xff] (!%p188_p2)  ;;  %v878_v16 = vld [vmem:[%s2119_s3 + $0x18] sm:$0xff] (!%p188_p2) }
   0x9   : > { %1672 = vmatprep.subr.bf16.mxu0 (!%p188_p2), %v1759_v5  ;;  %1599 = vmatprep.mubr.msk.f32.mxu0 (!%p188_p2), %vm1760_vm0, %v1761_v6  ;;  %v1839_v15 = vpack.c.bf16 (!%p188_p2), %v1472_v13, %v1471_v12  ;;  %v1004_v17 = vld [vmem:[%s2119_s3 + $0xc] sm:$0xff] (!%p188_p2)  ;;  %v492_v18 = vld [vmem:[%s2119_s3 + $0x2] sm:$0xff] (!%p188_p2)  ;;  %v1005_v19 = vld [vmem:[%s2119_s3 + $0x14] sm:$0xff] (!%p188_p2) }
   0xa   : > { %1662 = vmatpush3.bf16.msra.mxu1 (!%p188_p2), %v1661_v11  ;;  %v493_v20 = vld [vmem:[%s2119_s3 + $0xa] sm:$0xff] (!%p188_p2)  ;;  %v1006_v21 = vld [vmem:[%s2119_s3 + $0x1c] sm:$0xff] (!%p188_p2)  ;;  %v494_v22 = vld [vmem:[%s2119_s3 + $0x12] sm:$0xff] (!%p188_p2) }
   0xb   : > { %301 = vperm.xlu1 (!%p188_p2), %1749, %v279_v3   ;;  %762 = vperm.xlu0 (!%p188_p2), %1748, %v748_v4   ;;  %v1132_v23 = vld [vmem:[%s2119_s3 + $0xd] sm:$0xff] (!%p188_p2)  ;;  %v1133_v25 = vld [vmem:[%s2119_s3 + $0x15] sm:$0xff] (!%p188_p2)  ;;  %v1134_v27 = vld [vmem:[%s2119_s3 + $0x1d] sm:$0xff] (!%p188_p2) }
   0xc   : > { %1663 = vmatprep.subr.bf16.mxu1 (!%p188_p2), %v1759_v5  ;;  %1674 = vmatpush3.bf16.msra.mxu0 (!%p188_p2), %v1839_v15  ;;  %v620_v24 = vld [vmem:[%s2119_s3 + $0x6] sm:$0xff] (!%p188_p2)  ;;  %v621_v26 = vld [vmem:[%s2119_s3 + $0xe] sm:$0xff] (!%p188_p2)  ;;  %v622_v28 = vld [vmem:[%s2119_s3 + $0x16] sm:$0xff] (!%p188_p2) }
   0xd   : > { %1675 = vmatprep.subr.bf16.mxu0 %v1759_v5  ;;  %v749_v29 = vld [vmem:[%s2119_s3 + $0xf] sm:$0xff]  ;;  %v750_v30 = vld [vmem:[%s2119_s3 + $0x17] sm:$0xff]  ;;  %s2123_s19 = smov (!%p215_p3, %s1444_s19), 1  ;;  %v1907_v32 = vld [vmem:[%s2117_s1] ss:$0 sm:$0xff] }
   0xe   : > { %v1262_v31 = vld [vmem:[%s2119_s3 + $0x1e] sm:$0xff]  ;;  %s1734_s28 = smul.u32 48, %s2123_s19  ;;  %v273_v47 = vld [vmem:[%s2120_s4 + $0x8] sm:$0xff]  ;;  %v1476_v57 = vld [vmem:[%s2120_s4 + $0x50] sm:$0xff] }
   0xf   : > { %890 = vperm.xlu0 %1748, %v876_v7   ;;  %256 = vperm.xlu1 %1749, %v230_v8   ;;  %v1915_v36 = vld [vmem:[%s2118_s2] ss:$0 sm:$0xff]  ;;  %v1477_v58 = vld [vmem:[%s2120_s4 + $0x58] sm:$0xff] }
  0x10   : > { %s1902_s6 = scalar_lea.vmem %s2116_s0, %s1734_s28  ;;  %v272_v46 = vld [vmem:[%s2120_s4] sm:$0xff]  ;;  %v1676_v2 = vpack.c.bf16 %v1477_v58, %v1476_v57 }
  0x11   : > { %v274_v33 = vld [vmem:[%s1902_s6 + $0x1] sm:$0xff]  ;;  %v275_v34 = vld [vmem:[%s1902_s6 + $0x9] sm:$0xff]  ;;  %v276_v39 = vld [vmem:[%s1902_s6 + $0x11] sm:$0xff]  ;;  %v1664_v54 = vpack.c.bf16 %v273_v47, %v272_v46 }
  0x12   : > { %v280_v35 = vmul.f32 %v1907_v32, %v274_v33  ;;  %v745_v37 = vld [vmem:[%s1902_s6 + $0x7] sm:$0xff]  ;;  %v281_v38 = vmul.f32 %v1907_v32, %v275_v34  ;;  %v282_v43 = vmul.f32 %v1907_v32, %v276_v39  ;;  %v874_v61 = vld [vmem:[%s1902_s6 + $0x10] sm:$0xff]  ;;  %v875_v9 = vld [vmem:[%s1902_s6 + $0x18] sm:$0xff] }
  0x13   : > { %895 = vperm.xlu0 %1748, %v877_v14   ;;  %261 = vperm.xlu1 %1749, %v876_v7   ;;  %v751_v41 = vmul.f32 %v1907_v32, %v745_v37  ;;  %v873_v48 = vld [vmem:[%s1902_s6 + $0x8] sm:$0xff]  ;;  %v227_v49 = vld [vmem:[%s1902_s6] sm:$0xff]  ;;  %v880_v8 = vmul.f32 %v1907_v32, %v874_v61  ;;  %v881_v13 = vmul.f32 %v1907_v32, %v875_v9 }
  0x14   : > { %v283_v40 = vadd.f32 %v1915_v36, %v280_v35  ;;  %v284_v42 = vadd.f32 %v1915_v36, %v281_v38  ;;  %v285_v51 = vadd.f32 %v1915_v36, %v282_v43  ;;  %v879_v59 = vmul.f32 %v1907_v32, %v873_v48  ;;  %v490_v37 = vld [vmem:[%s1902_s6 + $0xa] sm:$0xff]  ;;  %v1003_v43 = vld [vmem:[%s1902_s6 + $0x1c] sm:$0xff]  ;;  %v491_v48 = vld [vmem:[%s1902_s6 + $0x12] sm:$0xff] }
  0x15   : > { %v754_v45 = vadd.f32 %v1915_v36, %v751_v41  ;;  %v239_v60 = vmul.f32 %v1907_v32, %v227_v49  ;;  %v497_v61 = vmul.f32 %v1907_v32, %v491_v48 }
  0x16   : > { %v286_v44 = vmax.f32 %v283_v40, 0.0  ;;  %v287_v50 = vmax.f32 %v284_v42, 0.0  ;;  %v288_v63 = vmax.f32 %v285_v51, 0.0  ;;  %v882_v4 = vadd.f32 %v1915_v36, %v879_v59  ;;  %v1486_v59 = vld [vmem:[%s2120_s4 + $0x70] sm:$0xff] }
  0x17   : > { %900 = vperm.xlu0 %1748, %v878_v16   ;;  %266 = vperm.xlu1 %1749, %v877_v14   ;;  %v757_v56 = vmax.f32 %v754_v45, 0.0  ;;  %v248_v7 = vadd.f32 %v1915_v36, %v239_v60  ;;  %v1001_v14 = vld [vmem:[%s1902_s6 + $0xc] sm:$0xff]  ;;  %v496_v42 = vmul.f32 %v1907_v32, %v490_v37  ;;  %v1487_v60 = vld [vmem:[%s2120_s4 + $0x78] sm:$0xff] }
  0x18   : > { %v885_v16 = vmax.f32 %v882_v4, 0.0 }
  0x1b   : > { %1018 = vperm.xlu0 %1748, %v1004_v17   ;;  %506 = vperm.xlu1 %1749, %v492_v18   ;;  %v251_v17 = vmax.f32 %v248_v7, 0.0  ;;  %v883_v18 = vadd.f32 %v1915_v36, %v880_v8  ;;  %v1682_v8 = vpack.c.bf16 %v1487_v60, %v1486_v59 }
  0x1d   : > { %v886_v34 = vmax.f32 %v883_v18, 0.0 }
  0x1f   : > { %1023 = vperm.xlu0 %1748, %v1005_v19   ;;  %511 = vperm.xlu1 %1749, %v493_v20   ;;  %v1481_v19 = vld [vmem:[%s2120_s4 + $0x60] sm:$0xff]  ;;  %v1482_v20 = vld [vmem:[%s2120_s4 + $0x68] sm:$0xff] }
  0x23   : > { %1028 = vperm.xlu0 %1748, %v1006_v21   ;;  %516 = vperm.xlu1 %1749, %v494_v22   ;;  %v489_v21 = vld [vmem:[%s1902_s6 + $0x2] sm:$0xff] }
  0x24   : > { %v1461_v22 = vld [vmem:[%s2120_s4 + $0x20] sm:$0xff] }
  0x27   : > { %1146 = vperm.xlu0 %1748, %v1132_v23   ;;  %634 = vperm.xlu1 %1749, %v620_v24   ;;  %v1462_v23 = vld [vmem:[%s2120_s4 + $0x28] sm:$0xff] }
  0x28   : > { %v1667_v35 = vpack.c.bf16 %v1462_v23, %v1461_v22 }
  0x2b   : > { %1151 = vperm.xlu0 %1748, %v1133_v25   ;;  %639 = vperm.xlu1 %1749, %v621_v26  }
  0x2f   : > { %1156 = vperm.xlu0 %1748, %v1134_v27   ;;  %644 = vperm.xlu1 %1749, %v622_v28   ;;  %v884_v27 = vadd.f32 %v1915_v36, %v881_v13  ;;  %v500_v13 = vadd.f32 %v1915_v36, %v497_v61 }
  0x31   : > { %v887_v46 = vmax.f32 %v884_v27, 0.0 }
  0x33   : > { %1274 = vperm.xlu0 %1748, %v621_v26   ;;  %767 = vperm.xlu1 %1749, %v749_v29   ;;  %v1679_v26 = vpack.c.bf16 %v1482_v20, %v1481_v19  ;;  %v495_v29 = vmul.f32 %v1907_v32, %v489_v21 }
  0x35   : > { %v498_v47 = vadd.f32 %v1915_v36, %v495_v29  ;;  %v619_v29 = vld [vmem:[%s1902_s6 + $0x16] sm:$0xff] }
  0x37   : > { %1279 = vperm.xlu0 %1748, %v622_v28   ;;  %772 = vperm.xlu1 %1749, %v750_v30   ;;  %v1007_v28 = vmul.f32 %v1907_v32, %v1001_v14  ;;  %v1002_v30 = vld [vmem:[%s1902_s6 + $0x14] sm:$0xff]  ;;  %v501_v58 = vmax.f32 %v498_v47, 0.0 }
  0x38   : > { %v1008_v38 = vmul.f32 %v1907_v32, %v1002_v30 }
  0x39   : > { %v1010_v41 = vadd.f32 %v1915_v36, %v1007_v28  ;;  %v1131_v28 = vld [vmem:[%s1902_s6 + $0x1d] sm:$0xff] }
  0x3a   : > { %v1011_v49 = vadd.f32 %v1915_v36, %v1008_v38  ;;  %v1137_v37 = vmul.f32 %v1907_v32, %v1131_v28 }
  0x3b   : > { %1284 = vperm.xlu0 %1748, %v1262_v31  }
  0x3c   : > { %v1140_v48 = vadd.f32 %v1915_v36, %v1137_v37 }
  0x86   : > { %v297_v52 = vpop.permute.xlu1 %296  ;;  %v292_v53 = vpop.permute.xlu0 %291 }
  0x87   : > { %v304_v55 = vmul.f32 %v292_v53, %v286_v44  ;;  %v305_v62 = vmul.f32 %v297_v52, %v287_v50  ;;  %v1009_v50 = vmul.f32 %v1907_v32, %v1003_v43  ;;  %v1013_v52 = vmax.f32 %v1010_v41, 0.0  ;;  %v1492_v41 = vld [vmem:[%s2120_s4 + $0x88] sm:$0xff] }
  0x88   : > { %v746_v43 = vld [vmem:[%s1902_s6 + $0xf] sm:$0xff] }
  0x89   : > { %1548 = vmatmul.mubr.msk.f32.vlgmr.msra.gmra.mrb[0].mxu1 %vm310_vm1, %v304_v55  ;;  %v1129_v55 = vld [vmem:[%s1902_s6 + $0xd] sm:$0xff] }
  0x8a   : > { %v302_v0 = vpop.permute.xlu1 %301  ;;  %v763_v1 = vpop.permute.xlu0 %762  ;;  %1550 = vmatprep.mubr.msk.f32.mxu1 %vm1760_vm0, %v1761_v6  ;;  %1665 = vmatpush3.bf16.msra.mxu1 %v1664_v54  ;;  %v499_v54 = vadd.f32 %v1915_v36, %v496_v42  ;;  %v1135_v9 = vmul.f32 %v1907_v32, %v1129_v55  ;;  %v625_v42 = vmul.f32 %v1907_v32, %v619_v29 }
  0x8b   : > { %v775_v3 = vmul.f32 %v763_v1, %v757_v56  ;;  %1666 = vmatprep.subr.bf16.mxu1 %v1759_v5  ;;  %v306_v10 = vmul.f32 %v302_v0, %v288_v63  ;;  %v1466_v63 = vld [vmem:[%s2120_s4 + $0x30] sm:$0xff]  ;;  %v1467_v0 = vld [vmem:[%s2120_s4 + $0x38] sm:$0xff]  ;;  %v1014_v1 = vmax.f32 %v1011_v49, 0.0  ;;  %v752_v49 = vmul.f32 %v1907_v32, %v746_v43 }
  0x8c   : > { %v502_v7 = vmax.f32 %v499_v54, 0.0  ;;  %v1670_v14 = vpack.c.bf16 %v1467_v0, %v1466_v63  ;;  %v1138_v21 = vadd.f32 %v1915_v36, %v1135_v9  ;;  %v747_v54 = vld [vmem:[%s1902_s6 + $0x17] sm:$0xff] }
  0x8d   : > { %1551 = vmatmul.mubr.msk.f32.gmra.mrb[2].mxu1 %vm310_vm1, %v305_v62  ;;  %1600 = vmatmul.mubr.msk.f32.vlgmr.msra.gmra.mrb[0].mxu0 %vm310_vm1, %v775_v3  ;;  %v617_v62 = vld [vmem:[%s1902_s6 + $0x6] sm:$0xff]  ;;  %v1259_v63 = vld [vmem:[%s1902_s6 + $0x1e] sm:$0xff] }
  0x8e   : > { %1677 = vmatpush3.bf16.msra.mxu0 %v1676_v2  ;;  %v891_v11 = vpop.permute.xlu0 %890  ;;  %v257_v12 = vpop.permute.xlu1 %256  ;;  %1553 = vmatprep.mubr.msk.f32.mxu1 %vm1760_vm0, %v1761_v6  ;;  %v1012_v2 = vadd.f32 %v1915_v36, %v1009_v50 }
  0x8f   : > { %1612 = vmatprep.mubr.msk.f32.mxu0 %vm1760_vm0, %v1761_v6  ;;  %1678 = vmatprep.subr.bf16.mxu0 %v1759_v5  ;;  %v903_v31 = vmul.f32 %v891_v11, %v885_v16  ;;  %v269_v33 = vmul.f32 %v257_v12, %v251_v17  ;;  %v618_v17 = vld [vmem:[%s1902_s6 + $0xe] sm:$0xff] }
  0x90   : > { %v1015_v19 = vmax.f32 %v1012_v2, 0.0  ;;  %v624_v27 = vmul.f32 %v1907_v32, %v618_v17 }
  0x91   : > { %1554 = vmatmul.mubr.msk.f32.gmra.mrb[4].mxu1 %vm310_vm1, %v306_v10  ;;  %v623_v10 = vmul.f32 %v1907_v32, %v617_v62  ;;  %v753_v62 = vmul.f32 %v1907_v32, %v747_v54 }
  0x92   : > { %v896_v24 = vpop.permute.xlu0 %895  ;;  %v262_v25 = vpop.permute.xlu1 %261  ;;  %1560 = vmatprep.mubr.msk.f32.mxu1 %vm1760_vm0, %v1761_v6 }
  0x93   : > { %v904_v44 = vmul.f32 %v896_v24, %v886_v34  ;;  %v270_v45 = vmul.f32 %v885_v16, %v262_v25  ;;  %v1130_v16 = vld [vmem:[%s1902_s6 + $0x15] sm:$0xff]  ;;  %v626_v22 = vadd.f32 %v1915_v36, %v623_v10  ;;  %s1735_s6 = smul.u32 24, %s2123_s19 }
  0x94   : > { %v1136_v23 = vmul.f32 %v1907_v32, %v1130_v16 }
  0x95   : > { %1561 = vmatmul.mubr.msk.f32.vlgmr.msra.gmra.mrb[0].mxu1 %vm310_vm1, %v269_v33  ;;  %1613 = vmatmul.mubr.msk.f32.vlgmr.msra.gmra.mrb[0].mxu0 %vm310_vm1, %v903_v31  ;;  %v1141_v31 = vmax.f32 %v1138_v21, 0.0  ;;  %s224_s21 = scalar_lea.vmem %s2121_s5, %s1735_s6 }
  0x96   : > { %1680 = vmatpush3.bf16.msra.mxu0 %v1679_v26  ;;  %v901_v39 = vpop.permute.xlu0 %900  ;;  %v267_v40 = vpop.permute.xlu1 %266  ;;  %1563 = vmatprep.mubr.msk.f32.mxu1 %vm1760_vm0, %v1761_v6  ;;  %v503_v26 = vmax.f32 %v500_v13, 0.0 }
  0x97   : > { %1615 = vmatprep.mubr.msk.f32.mxu0 %vm1760_vm0, %v1761_v6  ;;  %1668 = vmatpush3.bf16.msra.mxu1 %v1667_v35  ;;  %v905_v56 = vmul.f32 %v901_v39, %v887_v46  ;;  %v271_v57 = vmul.f32 %v886_v34, %v267_v40  ;;  %v629_v34 = vmax.f32 %v626_v22, 0.0  ;;  %v1139_v35 = vadd.f32 %v1915_v36, %v1136_v23  ;;  %v1491_v40 = vld [vmem:[%s2120_s4 + $0x80] sm:$0xff] }
  0x98   : > { %1681 = vmatprep.subr.bf16.mxu0 %v1759_v5  ;;  %1669 = vmatprep.subr.bf16.mxu1 %v1759_v5  ;;  %v627_v39 = vadd.f32 %v1915_v36, %v624_v27  ;;  %v1685_v47 = vpack.c.bf16 %v1492_v41, %v1491_v40 }
  0x99   : > { %1564 = vmatmul.mubr.msk.f32.gmra.mrb[2].mxu1 %vm310_vm1, %v270_v45  ;;  %1616 = vmatmul.mubr.msk.f32.gmra.mrb[2].mxu0 %vm310_vm1, %v904_v44  ;;  %v1142_v45 = vmax.f32 %v1139_v35, 0.0 }
  0x9a   : > { %v1019_v51 = vpop.permute.xlu0 %1018  ;;  %v507_v53 = vpop.permute.xlu1 %506  ;;  %1566 = vmatprep.mubr.msk.f32.mxu1 %vm1760_vm0, %v1761_v6  ;;  %1618 = vmatprep.mubr.msk.f32.mxu0 %vm1760_vm0, %v1761_v6 }
  0x9b   : > { %v1031_v11 = vmul.f32 %v1019_v51, %v1013_v52  ;;  %v519_v12 = vmul.f32 %v507_v53, %v501_v58  ;;  %v630_v52 = vmax.f32 %v627_v39, 0.0  ;;  %v628_v53 = vadd.f32 %v1915_v36, %v625_v42 }
  0x9c   : > { %v755_v58 = vadd.f32 %v1915_v36, %v752_v49 }
  0x9d   : > { %1567 = vmatmul.mubr.msk.f32.gmra.mrb[4].mxu1 %vm310_vm1, %v271_v57  ;;  %1619 = vmatmul.mubr.msk.f32.gmra.mrb[4].mxu0 %vm310_vm1, %v905_v56  ;;  %v1143_v56 = vmax.f32 %v1140_v48, 0.0  ;;  %v631_v61 = vmax.f32 %v628_v53, 0.0 }
  0x9e   : > { %v1024_v3 = vpop.permute.xlu0 %1023  ;;  %v512_v4 = vpop.permute.xlu1 %511  ;;  %1573 = vmatprep.mubr.msk.f32.mxu1 %vm1760_vm0, %v1761_v6  ;;  %1625 = vmatprep.mubr.msk.f32.mxu0 %vm1760_vm0, %v1761_v6  ;;  %v758_v2 = vmax.f32 %v755_v58, 0.0 }
  0x9f   : > { %v1032_v24 = vmul.f32 %v1024_v3, %v1014_v1  ;;  %v520_v25 = vmul.f32 %v512_v4, %v502_v7  ;;  %v1265_v7 = vmul.f32 %v1907_v32, %v1259_v63 }
  0xa1   : > { %1574 = vmatmul.mubr.msk.f32.vlgmr.msra.gmra.mrb[0].mxu1 %vm310_vm1, %v519_v12  ;;  %1626 = vmatmul.mubr.msk.f32.vlgmr.msra.gmra.mrb[0].mxu0 %vm310_vm1, %v1031_v11  ;;  %v1268_v12 = vadd.f32 %v1915_v36, %v1265_v7 }
  0xa2   : > { %1683 = vmatpush3.bf16.msra.mxu0 %v1682_v8  ;;  %v1029_v18 = vpop.permute.xlu0 %1028  ;;  %v517_v20 = vpop.permute.xlu1 %516  ;;  %1576 = vmatprep.mubr.msk.f32.mxu1 %vm1760_vm0, %v1761_v6 }
  0xa3   : > { %1628 = vmatprep.mubr.msk.f32.mxu0 %vm1760_vm0, %v1761_v6  ;;  %1671 = vmatpush3.bf16.msra.mxu1 %v1670_v14  ;;  %v521_v38 = vmul.f32 %v517_v20, %v503_v26  ;;  %v1271_v16 = vmax.f32 %v1268_v12, 0.0 }
  0xa4   : > { %1684 = vmatprep.subr.bf16.mxu0 %v1759_v5  ;;  %1687 = vmatprep.subr.bf16.mxu1 %v1759_v5  ;;  %v1033_v5 = vmul.f32 %v1029_v18, %v1015_v19 }
  0xa5   : > { %1577 = vmatmul.mubr.msk.f32.gmra.mrb[2].mxu1 %vm310_vm1, %v520_v25  ;;  %1629 = vmatmul.mubr.msk.f32.gmra.mrb[2].mxu0 %vm310_vm1, %v1032_v24 }
  0xa6   : > { %v1147_v30 = vpop.permute.xlu0 %1146  ;;  %v635_v33 = vpop.permute.xlu1 %634  ;;  %1579 = vmatprep.mubr.msk.f32.mxu1 %vm1760_vm0, %v1761_v6  ;;  %1631 = vmatprep.mubr.msk.f32.mxu0 %vm1760_vm0, %v1761_v6 }
  0xa7   : > { %v1159_v50 = vmul.f32 %v1147_v30, %v1141_v31  ;;  %v647_v51 = vmul.f32 %v635_v33, %v629_v34 }
  0xa9   : > { %1580 = vmatmul.mubr.msk.f32.gmra.mrb[4].mxu1 %vm310_vm1, %v521_v38  ;;  %1632 = vmatmul.mubr.msk.f32.gmra.mrb[4].mxu0 %vm310_vm1, %v1033_v5 }
  0xaa   : > { %v1152_v44 = vpop.permute.xlu0 %1151  ;;  %v640_v46 = vpop.permute.xlu1 %639  ;;  %1586 = vmatprep.mubr.msk.f32.mxu1 %vm1760_vm0, %v1761_v6  ;;  %1638 = vmatprep.mubr.msk.f32.mxu0 %vm1760_vm0, %v1761_v6 }
  0xab   : > { %v1160_v59 = vmul.f32 %v1152_v44, %v1142_v45  ;;  %v648_v60 = vmul.f32 %v640_v46, %v630_v52 }
  0xad   : > { %1587 = vmatmul.mubr.msk.f32.vlgmr.msra.gmra.mrb[0].mxu1 %vm310_vm1, %v647_v51  ;;  %1639 = vmatmul.mubr.msk.f32.vlgmr.msra.gmra.mrb[0].mxu0 %vm310_vm1, %v1159_v50 }
  0xae   : > { %1686 = vmatpush3.bf16.msra.mxu0 %v1685_v47  ;;  %v1157_v55 = vpop.permute.xlu0 %1156  ;;  %v645_v57 = vpop.permute.xlu1 %644  ;;  %1589 = vmatprep.mubr.msk.f32.mxu1 %vm1760_vm0, %v1761_v6 }
  0xaf   : > { %1641 = vmatprep.mubr.msk.f32.mxu0 %vm1760_vm0, %v1761_v6  ;;  %1688 = vmatpush3.bf16.msra.mxu1 %v1839_v15  ;;  %v1161_v3 = vmul.f32 %v1157_v55, %v1143_v56  ;;  %v649_v4 = vmul.f32 %v645_v57, %v631_v61  ;;  %v756_v15 = vadd.f32 %v1915_v36, %v753_v62 }
  0xb1   : > { %1590 = vmatmul.mubr.msk.f32.gmra.mrb[2].mxu1 %vm310_vm1, %v648_v60  ;;  %1642 = vmatmul.mubr.msk.f32.gmra.mrb[2].mxu0 %vm310_vm1, %v1160_v59  ;;  %v759_v11 = vmax.f32 %v756_v15, 0.0 }
  0xb2   : > { %v1275_v0 = vpop.permute.xlu0 %1274  ;;  %v768_v1 = vpop.permute.xlu1 %767  ;;  %1592 = vmatprep.mubr.msk.f32.mxu1 %vm1760_vm0, %v1761_v6  ;;  %1644 = vmatprep.mubr.msk.f32.mxu0 %vm1760_vm0, %v1761_v6 }
  0xb3   : > { %v1287_v9 = vmul.f32 %v1275_v0, %v630_v52  ;;  %v776_v10 = vmul.f32 %v768_v1, %v758_v2 }
  0xb5   : > { %1593 = vmatmul.mubr.msk.f32.gmra.mrb[4].mxu1 %vm310_vm1, %v649_v4  ;;  %1645 = vmatmul.mubr.msk.f32.gmra.mrb[4].mxu0 %vm310_vm1, %v1161_v3 }
  0xb6   : > { %v1280_v8 = vpop.permute.xlu0 %1279  ;;  %1602 = vmatprep.mubr.msk.f32.mxu1 %vm1760_vm0, %v1761_v6  ;;  %1651 = vmatprep.mubr.msk.f32.mxu0 %vm1760_vm0, %v1761_v6  ;;  %v773_v13 = vpop.permute.xlu1 %772 }
  0xb7   : > { %v1288_v32 = vmul.f32 %v1280_v8, %v631_v61  ;;  %v777_v14 = vmul.f32 %v773_v13, %v759_v11 }
  0xb9   : > { %1603 = vmatmul.mubr.msk.f32.vlgmr.msra.gmra.mrb[2].mxu1 %vm310_vm1, %v776_v10  ;;  %1652 = vmatmul.mubr.msk.f32.vlgmr.msra.gmra.mrb[0].mxu0 %vm310_vm1, %v1287_v9 }
  0xba   : > { %1605 = vmatprep.mubr.msk.f32.mxu1 %vm1760_vm0, %v1761_v6  ;;  %1654 = vmatprep.mubr.msk.f32.mxu0 %vm1760_vm0, %v1761_v6  ;;  %v1285_v17 = vpop.permute.xlu0 %1284 }
  0xbb   : > { %v1289_v36 = vmul.f32 %v1285_v17, %v1271_v16 }
  0xbd   : > { %1606 = vmatmul.mubr.msk.f32.gmra.mrb[4].mxu1 %vm310_vm1, %v777_v14  ;;  %1655 = vmatmul.mubr.msk.f32.gmra.mrb[2].mxu0 %vm310_vm1, %v1288_v32 }
  0xbe   : > { %1657 = vmatprep.mubr.msk.f32.mxu0 %vm1760_vm0, %v1761_v6 }
  0xc1   : > { %1658 = vmatmul.mubr.msk.f32.gmra.mrb[4].mxu0 %vm310_vm1, %v1289_v36 }
 0x180   : > { %v728_v18 = vpop.f32.mrb[0].mxu1 }
 0x181   : > { %v1588_v19 = vpop.f32.mrb[1].mxu1 }
 0x18c   : > { %v861_v20 = vpop.f32.mrb[2].mxu1  ;;  %v1368_v21 = vpop.f32.mrb[0].mxu0 }
 0x18d   : > { %v1689_v22 = vadd.f32 %v1368_v21, %v728_v18  ;;  %v1604_v23 = vpop.f32.mrb[3].mxu1  ;;  %v1653_v24 = vpop.f32.mrb[1].mxu0 }
 0x18f   : > { %1386 = vst.msk [vmem:[%s224_s21] sm:$0xff] %vm1385_vm2, %v1689_v22 }
 0x190   : > { %v866_v25 = vpop.f32.mrb[4].mxu1  ;;  %v1373_v26 = vpop.f32.mrb[2].mxu0 }
 0x191   : > { %v1690_v6 = vadd.f32 %v1373_v26, %v861_v20  ;;  %v1607_v27 = vpop.f32.mrb[5].mxu1  ;;  %v1656_v28 = vpop.f32.mrb[3].mxu0 }
 0x193   : > { %1387 = vst.msk [vmem:[%s224_s21 + $0x8] sm:$0xff] %vm1385_vm2, %v1690_v6 }
 0x194   : > { %v1378_v29 = vpop.f32.mrb[4].mxu0 }
 0x195   : > { %v1691_v30 = vadd.f32 %v1378_v29, %v866_v25  ;;  %v1659_v31 = vpop.f32.mrb[5].mxu0 }
 0x197   : > { %1388 = vst.msk [vmem:[%s224_s21 + $0x10] sm:$0xff] %vm1385_vm2, %v1691_v30 }
 0x198 PF: > { %s15_s18 = sadd.s32 1, %s1756_s18  }
 0x199   : > { %p12_p4 = scmp.ge.s32.totalorder %s15_s18, 4  }
 0x19b   :  { %14 = sbr.rel (!%p12_p4) target bundleno = 1 (0x1), region = 78 }

// kernel: densenet_forward.56
= control target key start
LH: loop header
LB: loop body
LE: loop exit
PB: predicated region body
PF: predicated region fallthrough
CT: control target
= control target key end

     0   :  { %v242_v0 = vmov 0.0|0.0   ;;  %vm243_vm0 = vmmov 0   ;;  %v244_v4 = vmov 0.0   ;;  %vm51_vm1 = vcmask 261120   ;;  %s302_s0 = inlined_call_operand.vmem [shape: f32[32,8], index: 0, kind: input, shape index: {}]   ;;  %s303_s1 = inlined_call_operand.vmem [shape: f32[1,8], index: 1, kind: input, shape index: {}]   ;;  %s304_s2 = inlined_call_operand.vmem [shape: f32[1,8], index: 2, kind: input, shape index: {}]   ;;  %s305_s3 = inlined_call_operand.vmem [shape: f32[2,32], index: 3, kind: input, shape index: {}]   ;;  %s306_s4 = inlined_call_operand.vmem [shape: f32[8,10], index: 4, kind: input, shape index: {}]   ;;  %s307_s5 = inlined_call_operand.vmem [shape: f32[2,10], index: 5, kind: output, shape index: {}]  }
   0x1   :  { %233 = vmatprep.subr.bf16.mxu0 %v242_v0  ;;  %v20_v1 = vld [vmem:[%s302_s0] sm:$0xff]  ;;  %v21_v2 = vld [vmem:[%s302_s0 + $0x8] sm:$0xff]  ;;  %225 = vmatprep.mubr.msk.f32.mxu0 %vm243_vm0, %v244_v4  ;;  %v22_v8 = vld [vmem:[%s302_s0 + $0x10] sm:$0xff]  ;;  %vm126_vm2 = vcmask 64512   ;;  %vm200_vm3 = vcmask 74752  }
   0x2   :  { %v206_v3 = vld [vmem:[%s303_s1] ss:$0 sm:$0xff]  ;;  %v23_v9 = vld [vmem:[%s302_s0 + $0x18] sm:$0xff]  ;;  %228 = vmatprep.subr.mxu1 %v244_v4  ;;  %230 = vmatprep.mubr.msk.f32.mxu1 %vm243_vm0, %v244_v4 }
   0x3   :  { %v31_v5 = vmul.f32 %v206_v3, %v20_v1  ;;  %v32_v6 = vmul.f32 %v206_v3, %v21_v2  ;;  %v207_v7 = vld [vmem:[%s304_s2] ss:$0 sm:$0xff]  ;;  %v33_v10 = vmul.f32 %v206_v3, %v22_v8  ;;  %v34_v11 = vmul.f32 %v206_v3, %v23_v9 }
   0x4   :  { %v50_v22 = vld [vmem:[%s305_s3] sm:$0x3] }
   0x5   :  { %v42_v12 = vadd.f32 %v207_v7, %v31_v5  ;;  %v43_v13 = vadd.f32 %v207_v7, %v32_v6  ;;  %v44_v14 = vadd.f32 %v207_v7, %v33_v10  ;;  %v45_v15 = vadd.f32 %v207_v7, %v34_v11  ;;  %v125_v23 = vld [vmem:[%s306_s4] sm:$0xff] }
   0x6   :  { %229 = vmatpush3.msra.mxu1 %v125_v23 }
   0x7   :  { %v46_v16 = vmax.f32 %v42_v12, 0.0  ;;  %v47_v17 = vmax.f32 %v43_v13, 0.0  ;;  %v48_v18 = vmax.f32 %v44_v14, 0.0  ;;  %v49_v19 = vmax.f32 %v45_v15, 0.0 }
   0x9   :  { %v234_v20 = vpack.c.bf16 %v47_v17, %v46_v16  ;;  %v237_v21 = vpack.c.bf16 %v49_v19, %v48_v18 }
   0xb   :  { %235 = vmatpush3.bf16.msra.mxu0 %v234_v20 }
   0xc   :  { %236 = vmatprep.subr.bf16.mxu0 %v242_v0 }
   0xf   :  { %238 = vmatpush3.bf16.msra.mxu0 %v237_v21 }
  0x12   :  { %226 = vmatmul.mubr.msk.f32.vlgmr.msra.gmra.mrb[0].mxu0 %vm51_vm1, %v50_v22 }
  0xe5   :  { %v121_v24 = vpop.f32.mrb[0].mxu0 }
  0xe6   :  { %v227_v25 = vpop.f32.mrb[1].mxu0  ;;  %231 = vmatmul.mubr.msk.f32.vlgmr.msra.gmra.mrb[0].mxu1 %vm126_vm2, %v121_v24 }
 0x1b9   :  { %v196_v26 = vpop.f32.mrb[0].mxu1 }
 0x1ba   :  { %201 = vst.msk [vmem:[%s307_s5] sm:$0x3] %vm200_vm3, %v196_v26  ;;  %v232_v27 = vpop.f32.mrb[1].mxu1 }

// kernel: densenet_forward.55
= control target key start
LH: loop header
LB: loop body
LE: loop exit
PB: predicated region body
PF: predicated region fallthrough
CT: control target
= control target key end

     0   :  { %v249_v0 = vmov 0.0|0.0   ;;  %vm250_vm0 = vmmov 0   ;;  %v251_v4 = vmov 0.0   ;;  %vm51_vm1 = vcmask 261120   ;;  %s312_s0 = inlined_call_operand.vmem [shape: f32[32,16], index: 0, kind: input, shape index: {}]   ;;  %s313_s1 = inlined_call_operand.vmem [shape: f32[1,16], index: 1, kind: input, shape index: {}]   ;;  %s314_s2 = inlined_call_operand.vmem [shape: f32[1,16], index: 2, kind: input, shape index: {}]   ;;  %s315_s4 = inlined_call_operand.vmem [shape: f32[16,10], index: 4, kind: input, shape index: {}]   ;;  %s316_s3 = inlined_call_operand.vmem [shape: f32[2,32], index: 3, kind: input, shape index: {}]   ;;  %s317_s5 = inlined_call_operand.vmem [shape: f32[2,10], index: 5, kind: output, shape index: {}]  }
   0x1   :  { %237 = vmatprep.subr.bf16.mxu0 %v249_v0  ;;  %v20_v1 = vld [vmem:[%s312_s0] sm:$0xff]  ;;  %v21_v2 = vld [vmem:[%s312_s0 + $0x8] sm:$0xff]  ;;  %227 = vmatprep.mubr.msk.f32.mxu0 %vm250_vm0, %v251_v4  ;;  %v22_v8 = vld [vmem:[%s312_s0 + $0x10] sm:$0xff]  ;;  %vm127_vm2 = vcmask 130048   ;;  %vm201_vm3 = vcmask 74752  }
   0x2   :  { %v207_v3 = vld [vmem:[%s313_s1] ss:$0 sm:$0xff]  ;;  %v23_v9 = vld [vmem:[%s312_s0 + $0x18] sm:$0xff]  ;;  %243 = vmatprep.subr.bf16.mxu1 %v249_v0  ;;  %234 = vmatprep.mubr.msk.f32.mxu1 %vm250_vm0, %v251_v4  ;;  %v126_v13 = vld [vmem:[%s315_s4 + $0x8] sm:$0xff] }
   0x3   :  { %v31_v5 = vmul.f32 %v207_v3, %v20_v1  ;;  %v32_v6 = vmul.f32 %v207_v3, %v21_v2  ;;  %v208_v7 = vld [vmem:[%s314_s2] ss:$0 sm:$0xff]  ;;  %v33_v10 = vmul.f32 %v207_v3, %v22_v8  ;;  %v34_v11 = vmul.f32 %v207_v3, %v23_v9 }
   0x4   :  { %v125_v12 = vld [vmem:[%s315_s4] sm:$0xff] }
   0x5   :  { %v42_v14 = vadd.f32 %v208_v7, %v31_v5  ;;  %v43_v15 = vadd.f32 %v208_v7, %v32_v6  ;;  %v244_v16 = vpack.c.bf16 %v126_v13, %v125_v12  ;;  %v44_v17 = vadd.f32 %v208_v7, %v33_v10  ;;  %v50_v25 = vld [vmem:[%s316_s3] sm:$0x3] }
   0x6   :  { %v45_v18 = vadd.f32 %v208_v7, %v34_v11 }
   0x7   :  { %v46_v19 = vmax.f32 %v42_v14, 0.0  ;;  %v47_v20 = vmax.f32 %v43_v15, 0.0  ;;  %245 = vmatpush3.bf16.msra.mxu1 %v244_v16  ;;  %v48_v21 = vmax.f32 %v44_v17, 0.0 }
   0x8   :  { %v49_v22 = vmax.f32 %v45_v18, 0.0 }
   0x9   :  { %v238_v23 = vpack.c.bf16 %v47_v20, %v46_v19 }
   0xa   :  { %v241_v24 = vpack.c.bf16 %v49_v22, %v48_v21 }
   0xb   :  { %239 = vmatpush3.bf16.msra.mxu0 %v238_v23 }
   0xc   :  { %240 = vmatprep.subr.bf16.mxu0 %v249_v0 }
   0xf   :  { %242 = vmatpush3.bf16.msra.mxu0 %v241_v24 }
  0x12   :  { %228 = vmatmul.mubr.msk.f32.vlgmr.msra.gmra.mrb[0].mxu0 %vm51_vm1, %v50_v25 }
  0xe5   :  { %v121_v26 = vpop.f32.mrb[0].mxu0 }
  0xe6   :  { %v229_v27 = vpop.f32.mrb[1].mxu0  ;;  %235 = vmatmul.mubr.msk.f32.vlgmr.msra.gmra.mrb[0].mxu1 %vm127_vm2, %v121_v26 }
 0x1b9   :  { %v197_v28 = vpop.f32.mrb[0].mxu1 }
 0x1ba   :  { %202 = vst.msk [vmem:[%s317_s5] sm:$0x3] %vm201_vm3, %v197_v28  ;;  %v236_v29 = vpop.f32.mrb[1].mxu1 }

</bundles_post_ra>
